<compile_context>
chip_gen: v6e
topology: v6e:2x2x1
jax: 0.10.0
libtpu: 0.0.40
codegen_flags: <defaults>
</compile_context>

<pallas_src>
import functools

import jax
import jax.numpy as jnp
from jax.experimental import pallas as pl
from jax.experimental.pallas import tpu as pltpu

LANE = 128
_VMEM_LIMIT = 64 * 1024 * 1024  # > default scoped limit, <= v7x physical VMEM


def _round_up(x, m):
    return (x + m - 1) // m * m


def _pick_tile(dim, cap):
    """Largest power-of-two divisor of `dim` that is <= cap (or dim itself)."""
    if dim <= cap:
        return dim
    t = 1
    while t * 2 <= cap:
        t *= 2
    while t >= 8:
        if dim % t == 0:
            return t
        t //= 2
    return dim


# ----------------------------- matmul kernel --------------------------------


def _matmul_kernel(a_ref, b_ref, o_ref, acc_ref, *, activation):
    @pl.when(pl.program_id(2) == 0)
    def _init():
        acc_ref[...] = jnp.zeros_like(acc_ref)

    acc_ref[...] += jnp.dot(a_ref[0], b_ref[0],
                            preferred_element_type=jnp.float32)

    @pl.when(pl.program_id(2) == pl.num_programs(2) - 1)
    def _store():
        r = acc_ref[...]
        if activation == "tanh":
            r = jnp.tanh(r)
        o_ref[0] = r.astype(o_ref.dtype)


def pallas_matmul(a, b, activation=None):
    """Batched matmul a(P,M,K) @ b(P,K,N) -> (P,M,N) f32.

    a/b are bf16; accumulation in an f32 VMEM scratch across the K grid axis.
    N is expected to be a multiple of 128 (lane-dense stores).  Optional
    fused epilogue ("tanh")."""
    P, M, K = a.shape
    _, _, N = b.shape
    tm = _pick_tile(M, min(512, max(8, (1 << 20) // max(N, 1))))
    tk = _pick_tile(K, 2048)
    grid = (P, M // tm, K // tk)
    kernel = functools.partial(_matmul_kernel, activation=activation)
    return pl.pallas_call(
        kernel,
        out_shape=jax.ShapeDtypeStruct((P, M, N), jnp.float32),
        grid_spec=pltpu.PrefetchScalarGridSpec(
            num_scalar_prefetch=0,
            grid=grid,
            in_specs=[
                pl.BlockSpec((1, tm, tk), lambda p, i, k: (p, i, k)),
                pl.BlockSpec((1, tk, N), lambda p, i, k: (p, k, 0)),
            ],
            out_specs=pl.BlockSpec((1, tm, N), lambda p, i, k: (p, i, 0)),
            scratch_shapes=[pltpu.VMEM((tm, N), jnp.float32)],
        ),
        compiler_params=pltpu.CompilerParams(
            dimension_semantics=("parallel", "parallel", "arbitrary"),
            vmem_limit_bytes=_VMEM_LIMIT),
    )(a, b)


# ------------------------- BatchNorm + ReLU (2 pass) -------------------------


def _bn_stats_kernel(x_ref, s_ref):
    @pl.when(pl.program_id(0) == 0)
    def _init():
        s_ref[...] = jnp.zeros_like(s_ref)

    x = x_ref[...].astype(jnp.float32)
    s_ref[...] += jnp.concatenate(
        [jnp.sum(x, axis=0, keepdims=True),
         jnp.sum(x * x, axis=0, keepdims=True)], axis=0)


def _bn_apply_kernel(x_ref, scale_ref, shift_ref, o_ref):
    y = x_ref[...] * scale_ref[...] + shift_ref[...]
    o_ref[...] = jnp.maximum(y, 0.0).astype(o_ref.dtype)


def pallas_bn_relu(x, gamma, beta, eps=1e-5, out_dtype=jnp.bfloat16):
    """Training-mode BatchNorm2d (batch mean / biased var over rows) + ReLU.

    x: (M, C) f32.  Pass 1: tiled per-channel sum/sum^2 reduction.  Pass 2:
    tiled (x * scale + shift) + ReLU, emitting `out_dtype`."""
    M, C = x.shape
    tm = _pick_tile(M, 512)

    stats = pl.pallas_call(
        _bn_stats_kernel,
        out_shape=jax.ShapeDtypeStruct((2, C), jnp.float32),
        grid_spec=pltpu.PrefetchScalarGridSpec(
            num_scalar_prefetch=0,
            grid=(M // tm,),
            in_specs=[pl.BlockSpec((tm, C), lambda i: (i, 0))],
            out_specs=pl.BlockSpec((2, C), lambda i: (0, 0)),
        ),
        compiler_params=pltpu.CompilerParams(
            dimension_semantics=("arbitrary",),
            vmem_limit_bytes=_VMEM_LIMIT),
    )(x)

    inv_m = 1.0 / float(M)
    mean = stats[0] * inv_m
    var = jnp.maximum(stats[1] * inv_m - mean * mean, 0.0)
    scale_v = gamma * jax.lax.rsqrt(var + eps)
    shift_v = beta - mean * scale_v
    scale = scale_v.reshape(1, C).astype(jnp.float32)
    shift = shift_v.reshape(1, C).astype(jnp.float32)

    return pl.pallas_call(
        _bn_apply_kernel,
        out_shape=jax.ShapeDtypeStruct((M, C), out_dtype),
        grid_spec=pltpu.PrefetchScalarGridSpec(
            num_scalar_prefetch=0,
            grid=(M // tm,),
            in_specs=[
                pl.BlockSpec((tm, C), lambda i: (i, 0)),
                pl.BlockSpec((1, C), lambda i: (0, 0)),
                pl.BlockSpec((1, C), lambda i: (0, 0)),
            ],
            out_specs=pl.BlockSpec((tm, C), lambda i: (i, 0)),
        ),
        compiler_params=pltpu.CompilerParams(
            dimension_semantics=("parallel",),
            vmem_limit_bytes=_VMEM_LIMIT),
    )(x, scale, shift)


# -------------- ConvTranspose2d (k4 s2 p1) via phase decomposition -----------
#
# For stride 2, kernel 4, pad 1:
#   out[2m + r, 2n + s] = sum_{a,b in {0,1}} x[m - 1 + r + a, n - 1 + s + b]
#                                            * w[..., 3 - r - 2a, 3 - s - 2b]
# i.e. each output phase (r, s) is a 2x2xC_in contraction over the un-dilated
# (only 1-padded) input — no multiplies against dilation zeros.


def _phase_patches(x_nhwc):
    """(B, H, W, C) -> (4, B*H*W, 4*C): per-phase 2x2-window im2col."""
    B, H, W, C = x_nhwc.shape
    xp = jnp.pad(x_nhwc, ((0, 0), (1, 1), (1, 1), (0, 0)))
    cols = []
    for r in range(2):
        for s in range(2):
            for a in range(2):
                for b in range(2):
                    cols.append(xp[:, r + a:r + a + H, s + b:s + b + W, :])
    p = jnp.stack(cols, axis=0).reshape(2, 2, 2, 2, B, H, W, C)
    p = p.transpose(0, 1, 4, 5, 6, 2, 3, 7)          # (r, s, B, H, W, a, b, C)
    return p.reshape(4, B * H * W, 4 * C)


def _interleave_phases(y, B, H, W):
    """(4, B*H*W, C) phase-major -> (B, 2H, 2W, C) NHWC."""
    C = y.shape[-1]
    y = y.reshape(2, 2, B, H, W, C)
    y = y.transpose(2, 3, 0, 4, 1, 5)                # (B, H, r, W, s, C)
    return y.reshape(B, 2 * H, 2 * W, C)


def conv_transpose_s2(x_nhwc, w_phase, activation=None):
    """ConvTranspose2d(K=4, s=2, p=1, bias=False) as 4 sub-pixel matmuls.

    x_nhwc: (B, H, W, Cin_pad) bf16; w_phase: (4, 4*Cin_pad, Cout_pad) bf16.
    Returns phase-major output (4, B*H*W, Cout_pad) f32 and (B, H, W)."""
    B, H, W, _ = x_nhwc.shape
    patches = _phase_patches(x_nhwc)
    out = pallas_matmul(patches, w_phase, activation=activation)
    return out, (B, H, W)


# ------------------------------- parameters ----------------------------------


def init_params(key, nz, ngf, nc):
    """Parameters in PyTorch layout / init (ConvT weight (Cin, Cout, 4, 4))."""
    ks = jax.random.split(key, 9)
    std = 0.02

    def conv_w(k, cin, cout):
        return std * jax.random.normal(k, (cin, cout, 4, 4), jnp.float32)

    return {
        "w1": conv_w(ks[0], nz, ngf * 8),
        "w2": conv_w(ks[1], ngf * 8, ngf * 4),
        "w3": conv_w(ks[2], ngf * 4, ngf * 2),
        "w4": conv_w(ks[3], ngf * 2, ngf * 1),
        "w5": conv_w(ks[4], ngf * 1, nc),
        "g1": 1.0 + std * jax.random.normal(ks[5], (ngf * 8,), jnp.float32),
        "b1": jnp.zeros((ngf * 8,), jnp.float32),
        "g2": 1.0 + std * jax.random.normal(ks[6], (ngf * 4,), jnp.float32),
        "b2": jnp.zeros((ngf * 4,), jnp.float32),
        "g3": 1.0 + std * jax.random.normal(ks[7], (ngf * 2,), jnp.float32),
        "b3": jnp.zeros((ngf * 2,), jnp.float32),
        "g4": 1.0 + std * jax.random.normal(ks[8], (ngf * 1,), jnp.float32),
        "b4": jnp.zeros((ngf * 1,), jnp.float32),
    }


def _pad_vec(v, cpad):
    return jnp.pad(v, (0, cpad - v.shape[0]))


def _phase_weight(w, cin_pad, cout_pad):
    """PyTorch ConvT weight (Cin, Cout, 4, 4) -> (4, 4*Cin_pad, Cout_pad) bf16
    per-output-phase matmul weights (zero rows/cols for channel padding)."""
    cin, cout = w.shape[:2]
    wm = jnp.zeros((2, 2, 2, 2, cin_pad, cout_pad), jnp.float32)
    for r in range(2):
        for s in range(2):
            for a in range(2):
                for b in range(2):
                    wm = wm.at[r, s, a, b, :cin, :cout].set(
                        w[:, :, 3 - r - 2 * a, 3 - s - 2 * b])
    return wm.reshape(4, 4 * cin_pad, cout_pad).astype(jnp.bfloat16)


def prepare_params(params, nz, ngf, nc):
    """One-time conversion to matmul-ready (padded, phase-sliced, bf16) weights."""
    c = [ngf * 8, ngf * 4, ngf * 2, ngf * 1, nc]
    cp = [_round_up(x, LANE) for x in c]

    # conv1 (K=4, s=1, p=0 on a 1x1 input) is just (B, nz) @ (nz, 4*4*Cout).
    w1 = jnp.transpose(params["w1"], (0, 2, 3, 1))            # (nz, 4, 4, Cout)
    w1 = jnp.pad(w1, ((0, 0), (0, 0), (0, 0), (0, cp[0] - c[0])))
    w1_mat = w1.reshape(nz, 16 * cp[0]).astype(jnp.bfloat16)

    return {
        "w1": w1_mat,
        "w2": _phase_weight(params["w2"], cp[0], cp[1]),
        "w3": _phase_weight(params["w3"], cp[1], cp[2]),
        "w4": _phase_weight(params["w4"], cp[2], cp[3]),
        "w5": _phase_weight(params["w5"], cp[3], cp[4]),
        "g1": _pad_vec(params["g1"], cp[0]), "b1": _pad_vec(params["b1"], cp[0]),
        "g2": _pad_vec(params["g2"], cp[1]), "b2": _pad_vec(params["b2"], cp[1]),
        "g3": _pad_vec(params["g3"], cp[2]), "b3": _pad_vec(params["b3"], cp[2]),
        "g4": _pad_vec(params["g4"], cp[3]), "b4": _pad_vec(params["b4"], cp[3]),
    }


# ------------------------------- netG forward --------------------------------


def netG_forward(prep, z_nchw, nc):
    """z_nchw: (B, nz, 1, 1) -> (B, nc, 64, 64) in [-1, 1]."""
    B = z_nchw.shape[0]
    z = z_nchw.reshape(B, -1).astype(jnp.bfloat16)            # (B, nz)

    c1p = prep["w1"].shape[1] // 16

    # conv1 (1x1 -> 4x4) + BN + ReLU : one dense, lane-dense matmul.
    y = pallas_matmul(z[None], prep["w1"][None])[0]           # (B, 16*c1p) f32
    y = pallas_bn_relu(y.reshape(B * 16, c1p), prep["g1"], prep["b1"])
    x = y.reshape(B, 4, 4, c1p)                               # NHWC bf16

    # conv2..conv4 (k4 s2 p1) + BN + ReLU, phase-decomposed.
    for w, g, bta in ((prep["w2"], prep["g2"], prep["b2"]),
                      (prep["w3"], prep["g3"], prep["b3"]),
                      (prep["w4"], prep["g4"], prep["b4"])):
        out, (B_, H, W) = conv_transpose_s2(x, w)
        cop = w.shape[-1]
        y = pallas_bn_relu(out.reshape(4 * B_ * H * W, cop), g, bta)
        x = _interleave_phases(y.reshape(4, B_ * H * W, cop), B_, H, W)

    # conv5 (k4 s2 p1) with Tanh fused into the matmul epilogue (no BN).
    out, (B_, H, W) = conv_transpose_s2(x, prep["w5"], activation="tanh")
    x = _interleave_phases(out, B_, H, W)                     # (B, 2H, 2W, cpad)
    x = x[..., :nc]                                           # drop channel pad
    return jnp.transpose(x, (0, 3, 1, 2))                     # NHWC -> NCHW


if __name__ == "__main__":
    # Small but structurally faithful DCGAN-G config (1x1 -> 64x64).
    B, NZ, NGF, NC = 2, 16, 8, 1

    key = jax.random.PRNGKey(0)
    k_param, k_z = jax.random.split(key)
    params = init_params(k_param, NZ, NGF, NC)
    prep = prepare_params(params, NZ, NGF, NC)
    z = jax.random.normal(k_z, (B, NZ, 1, 1), jnp.float32)

    forward = jax.jit(functools.partial(netG_forward, nc=NC))
    out = jax.block_until_ready(forward(prep, z))

    assert out.shape == (B, NC, 64, 64), out.shape
    assert out.dtype == jnp.float32
    assert bool(jnp.all(jnp.isfinite(out)))
    assert bool(jnp.all(jnp.abs(out) <= 1.0))  # tanh range
    print("KERNEL_OK")
</pallas_src>

<mosaic_0001>
module attributes {stable_mosaic.version = 11 : i64} {
  func.func @_matmul_kernel(%arg0: i32, %arg1: i32, %arg2: i32, %arg3: memref<1x2x16xbf16, #tpu.memory_space<vmem>>, %arg4: memref<1x16x2048xbf16, #tpu.memory_space<vmem>>, %arg5: memref<1x2x2048xf32, #tpu.memory_space<vmem>>, %arg6: memref<2x2048xf32, #tpu.memory_space<vmem>>) attributes {dimension_semantics = [#tpu.dimension_semantics<parallel>, #tpu.dimension_semantics<parallel>, #tpu.dimension_semantics<arbitrary>], iteration_bounds = array<i64: 1, 1, 1>, scalar_prefetch = 0 : i64, scratch_operands = 1 : i64, tpu.core_type = #tpu.core_type<tc>, window_params = [{transform_indices = @transform_0, window_bounds = array<i64: 1, 2, 16>}, {transform_indices = @transform_1, window_bounds = array<i64: 1, 16, 2048>}, {transform_indices = @transform_2, window_bounds = array<i64: 1, 2, 2048>}]} {
    %c0_i32 = arith.constant 0 : i32
    %0 = arith.cmpi eq, %arg2, %c0_i32 : i32
    %1 = arith.extui %0 : i1 to i32
    %c0_i32_0 = arith.constant 0 : i32
    %2 = arith.cmpi ne, %1, %c0_i32_0 : i32
    scf.if %2 {
      %cst_12 = arith.constant 0.000000e+00 : f32
      %14 = vector.broadcast %cst_12 : f32 to vector<2x2048xf32>
      %c0_13 = arith.constant 0 : index
      %c0_14 = arith.constant 0 : index
      %15 = vector.load %arg6[%c0_13, %c0_14] : memref<2x2048xf32, #tpu.memory_space<vmem>>, vector<2x2048xf32>
      tpu.vector_store %arg6[%c0_13, %c0_14], %14 {strides = array<i32>} : memref<2x2048xf32, #tpu.memory_space<vmem>>, vector<2x2048xf32>,
    } else {
    }
    %c0 = arith.constant 0 : index
    %c0_1 = arith.constant 0 : index
    %3 = vector.load %arg6[%c0, %c0_1] : memref<2x2048xf32, #tpu.memory_space<vmem>>, vector<2x2048xf32>
    %c0_2 = arith.constant 0 : index
    %c0_3 = arith.constant 0 : index
    %c0_4 = arith.constant 0 : index
    %4 = vector.load %arg3[%c0_2, %c0_3, %c0_4] : memref<1x2x16xbf16, #tpu.memory_space<vmem>>, vector<1x2x16xbf16>
    %5 = vector.shape_cast %4 : vector<1x2x16xbf16> to vector<2x16xbf16>
    %c0_5 = arith.constant 0 : index
    %c0_6 = arith.constant 0 : index
    %c0_7 = arith.constant 0 : index
    %6 = vector.load %arg4[%c0_5, %c0_6, %c0_7] : memref<1x16x2048xbf16, #tpu.memory_space<vmem>>, vector<1x16x2048xbf16>
    %7 = vector.shape_cast %6 : vector<1x16x2048xbf16> to vector<16x2048xbf16>
    %cst = arith.constant dense<0.000000e+00> : vector<2x2048xf32>
    %8 = tpu.matmul %5, %7, %cst {dimension_numbers = #tpu.dot_dimension_numbers<[1], [0], [0], [1], [0, 0, 1, 1], [], []>} : vector<2x16xbf16>, vector<16x2048xbf16>, vector<2x2048xf32> -> vector<2x2048xf32>
    %9 = arith.addf %3, %8 : vector<2x2048xf32>
    %c0_8 = arith.constant 0 : index
    %c0_9 = arith.constant 0 : index
    %10 = vector.load %arg6[%c0_8, %c0_9] : memref<2x2048xf32, #tpu.memory_space<vmem>>, vector<2x2048xf32>
    tpu.vector_store %arg6[%c0_8, %c0_9], %9 {strides = array<i32>} : memref<2x2048xf32, #tpu.memory_space<vmem>>, vector<2x2048xf32>,
    %c0_i32_10 = arith.constant 0 : i32
    %11 = arith.cmpi eq, %arg2, %c0_i32_10 : i32
    %12 = arith.extui %11 : i1 to i32
    %c0_i32_11 = arith.constant 0 : i32
    %13 = arith.cmpi ne, %12, %c0_i32_11 : i32
    scf.if %13 {
      %c0_12 = arith.constant 0 : index
      %c0_13 = arith.constant 0 : index
      %14 = vector.load %arg6[%c0_12, %c0_13] : memref<2x2048xf32, #tpu.memory_space<vmem>>, vector<2x2048xf32>
      %c0_14 = arith.constant 0 : index
      %c0_15 = arith.constant 0 : index
      %c0_16 = arith.constant 0 : index
      %15 = vector.load %arg5[%c0_14, %c0_15, %c0_16] : memref<1x2x2048xf32, #tpu.memory_space<vmem>>, vector<1x2x2048xf32>
      %16 = vector.shape_cast %15 : vector<1x2x2048xf32> to vector<2x2048xf32>
      %17 = vector.shape_cast %14 : vector<2x2048xf32> to vector<1x2x2048xf32>
      tpu.vector_store %arg5[%c0_14, %c0_15, %c0_16], %17 {strides = array<i32>} : memref<1x2x2048xf32, #tpu.memory_space<vmem>>, vector<1x2x2048xf32>,
    } else {
    }
    return
  }
  func.func @transform_0(%arg0: i32, %arg1: i32, %arg2: i32) -> (i32, i32, i32) {
    %c0_i32 = arith.constant 0 : i32
    return %arg0, %arg1, %arg2 : i32, i32, i32
  }
  func.func @transform_1(%arg0: i32, %arg1: i32, %arg2: i32) -> (i32, i32, i32) {
    %c0_i32 = arith.constant 0 : i32
    %c0_i32_0 = arith.constant 0 : i32
    return %arg0, %arg2, %c0_i32 : i32, i32, i32
  }
  func.func @transform_2(%arg0: i32, %arg1: i32, %arg2: i32) -> (i32, i32, i32) {
    %c0_i32 = arith.constant 0 : i32
    %c0_i32_0 = arith.constant 0 : i32
    return %arg0, %arg1, %c0_i32 : i32, i32, i32
  }
}

module attributes {stable_mosaic.version = 11 : i64} {
  func.func @_bn_stats_kernel(%arg0: i32, %arg1: memref<32x128xf32, #tpu.memory_space<vmem>>, %arg2: memref<2x128xf32, #tpu.memory_space<vmem>>) attributes {dimension_semantics = [#tpu.dimension_semantics<arbitrary>], iteration_bounds = array<i64: 1>, scalar_prefetch = 0 : i64, scratch_operands = 0 : i64, tpu.core_type = #tpu.core_type<tc>, window_params = [{transform_indices = @transform_0, window_bounds = array<i64: 32, 128>}, {pipeline_mode = #tpu.pipeline_mode<synchronous>, transform_indices = @transform_1, window_bounds = array<i64: 2, 128>}]} {
    %c0_i32 = arith.constant 0 : i32
    %0 = arith.cmpi eq, %arg0, %c0_i32 : i32
    %1 = arith.extui %0 : i1 to i32
    %c0_i32_0 = arith.constant 0 : i32
    %2 = arith.cmpi ne, %1, %c0_i32_0 : i32
    scf.if %2 {
      %cst_7 = arith.constant 0.000000e+00 : f32
      %13 = vector.broadcast %cst_7 : f32 to vector<2x128xf32>
      %c0_8 = arith.constant 0 : index
      %c0_9 = arith.constant 0 : index
      %14 = vector.load %arg2[%c0_8, %c0_9] : memref<2x128xf32, #tpu.memory_space<vmem>>, vector<2x128xf32>
      tpu.vector_store %arg2[%c0_8, %c0_9], %13 {strides = array<i32>} : memref<2x128xf32, #tpu.memory_space<vmem>>, vector<2x128xf32>,
    } else {
    }
    %c0 = arith.constant 0 : index
    %c0_1 = arith.constant 0 : index
    %3 = vector.load %arg1[%c0, %c0_1] : memref<32x128xf32, #tpu.memory_space<vmem>>, vector<32x128xf32>
    %c0_2 = arith.constant 0 : index
    %c0_3 = arith.constant 0 : index
    %4 = vector.load %arg2[%c0_2, %c0_3] : memref<2x128xf32, #tpu.memory_space<vmem>>, vector<2x128xf32>
    %cst = arith.constant dense<0.000000e+00> : vector<128xf32>
    %5 = vector.multi_reduction <add>, %3, %cst [0] : vector<32x128xf32> to vector<128xf32>
    %6 = vector.shape_cast %5 : vector<128xf32> to vector<1x128xf32>
    %7 = arith.mulf %3, %3 : vector<32x128xf32>
    %cst_4 = arith.constant dense<0.000000e+00> : vector<128xf32>
    %8 = vector.multi_reduction <add>, %7, %cst_4 [0] : vector<32x128xf32> to vector<128xf32>
    %9 = vector.shape_cast %8 : vector<128xf32> to vector<1x128xf32>
    %10 = tpu.concatenate %6, %9 in 0 : vector<1x128xf32>, vector<1x128xf32> -> vector<2x128xf32>
    %11 = arith.addf %4, %10 : vector<2x128xf32>
    %c0_5 = arith.constant 0 : index
    %c0_6 = arith.constant 0 : index
    %12 = vector.load %arg2[%c0_5, %c0_6] : memref<2x128xf32, #tpu.memory_space<vmem>>, vector<2x128xf32>
    tpu.vector_store %arg2[%c0_5, %c0_6], %11 {strides = array<i32>} : memref<2x128xf32, #tpu.memory_space<vmem>>, vector<2x128xf32>,
    return
  }
  func.func @transform_0(%arg0: i32) -> (i32, i32) {
    %c0_i32 = arith.constant 0 : i32
    %c0_i32_0 = arith.constant 0 : i32
    return %arg0, %c0_i32 : i32, i32
  }
  func.func @transform_1(%arg0: i32) -> (i32, i32) {
    %c0_i32 = arith.constant 0 : i32
    %c0_i32_0 = arith.constant 0 : i32
    %c0_i32_1 = arith.constant 0 : i32
    return %c0_i32, %c0_i32_0 : i32, i32
  }
}

module attributes {stable_mosaic.version = 11 : i64} {
  func.func @_bn_apply_kernel(%arg0: i32, %arg1: memref<32x128xf32, #tpu.memory_space<vmem>>, %arg2: memref<1x128xf32, #tpu.memory_space<vmem>>, %arg3: memref<1x128xf32, #tpu.memory_space<vmem>>, %arg4: memref<32x128xbf16, #tpu.memory_space<vmem>>) attributes {dimension_semantics = [#tpu.dimension_semantics<parallel>], iteration_bounds = array<i64: 1>, scalar_prefetch = 0 : i64, scratch_operands = 0 : i64, tpu.core_type = #tpu.core_type<tc>, window_params = [{transform_indices = @transform_0, window_bounds = array<i64: 32, 128>}, {pipeline_mode = #tpu.pipeline_mode<synchronous>, transform_indices = @transform_1, window_bounds = array<i64: 1, 128>}, {pipeline_mode = #tpu.pipeline_mode<synchronous>, transform_indices = @transform_2, window_bounds = array<i64: 1, 128>}, {transform_indices = @transform_3, window_bounds = array<i64: 32, 128>}]} {
    %c0 = arith.constant 0 : index
    %c0_0 = arith.constant 0 : index
    %0 = vector.load %arg1[%c0, %c0_0] : memref<32x128xf32, #tpu.memory_space<vmem>>, vector<32x128xf32>
    %c0_1 = arith.constant 0 : index
    %c0_2 = arith.constant 0 : index
    %1 = vector.load %arg2[%c0_1, %c0_2] : memref<1x128xf32, #tpu.memory_space<vmem>>, vector<1x128xf32>
    %2 = vector.broadcast %1 : vector<1x128xf32> to vector<32x128xf32>
    %3 = arith.mulf %0, %2 : vector<32x128xf32>
    %c0_3 = arith.constant 0 : index
    %c0_4 = arith.constant 0 : index
    %4 = vector.load %arg3[%c0_3, %c0_4] : memref<1x128xf32, #tpu.memory_space<vmem>>, vector<1x128xf32>
    %5 = vector.broadcast %4 : vector<1x128xf32> to vector<32x128xf32>
    %6 = arith.addf %3, %5 : vector<32x128xf32>
    %cst = arith.constant 0.000000e+00 : f32
    %7 = vector.broadcast %cst : f32 to vector<32x128xf32>
    %8 = arith.maximumf %6, %7 : vector<32x128xf32>
    %9 = arith.truncf %8 : vector<32x128xf32> to vector<32x128xbf16>
    %c0_5 = arith.constant 0 : index
    %c0_6 = arith.constant 0 : index
    %10 = vector.load %arg4[%c0_5, %c0_6] : memref<32x128xbf16, #tpu.memory_space<vmem>>, vector<32x128xbf16>
    tpu.vector_store %arg4[%c0_5, %c0_6], %9 {strides = array<i32>} : memref<32x128xbf16, #tpu.memory_space<vmem>>, vector<32x128xbf16>,
    return
  }
  func.func @transform_0(%arg0: i32) -> (i32, i32) {
    %c0_i32 = arith.constant 0 : i32
    %c0_i32_0 = arith.constant 0 : i32
    return %arg0, %c0_i32 : i32, i32
  }
  func.func @transform_1(%arg0: i32) -> (i32, i32) {
    %c0_i32 = arith.constant 0 : i32
    %c0_i32_0 = arith.constant 0 : i32
    %c0_i32_1 = arith.constant 0 : i32
    return %c0_i32, %c0_i32_0 : i32, i32
  }
  func.func @transform_2(%arg0: i32) -> (i32, i32) {
    %c0_i32 = arith.constant 0 : i32
    %c0_i32_0 = arith.constant 0 : i32
    %c0_i32_1 = arith.constant 0 : i32
    return %c0_i32, %c0_i32_0 : i32, i32
  }
  func.func @transform_3(%arg0: i32) -> (i32, i32) {
    %c0_i32 = arith.constant 0 : i32
    %c0_i32_0 = arith.constant 0 : i32
    return %arg0, %c0_i32 : i32, i32
  }
}

module attributes {stable_mosaic.version = 11 : i64} {
  func.func @_matmul_kernel(%arg0: i32, %arg1: i32, %arg2: i32, %arg3: memref<1x32x512xbf16, #tpu.memory_space<vmem>>, %arg4: memref<1x512x128xbf16, #tpu.memory_space<vmem>>, %arg5: memref<1x32x128xf32, #tpu.memory_space<vmem>>, %arg6: memref<32x128xf32, #tpu.memory_space<vmem>>) attributes {dimension_semantics = [#tpu.dimension_semantics<parallel>, #tpu.dimension_semantics<parallel>, #tpu.dimension_semantics<arbitrary>], iteration_bounds = array<i64: 4, 1, 1>, scalar_prefetch = 0 : i64, scratch_operands = 1 : i64, tpu.core_type = #tpu.core_type<tc>, window_params = [{transform_indices = @transform_0, window_bounds = array<i64: 1, 32, 512>}, {transform_indices = @transform_1, window_bounds = array<i64: 1, 512, 128>}, {transform_indices = @transform_2, window_bounds = array<i64: 1, 32, 128>}]} {
    %c0_i32 = arith.constant 0 : i32
    %0 = arith.cmpi eq, %arg2, %c0_i32 : i32
    %1 = arith.extui %0 : i1 to i32
    %c0_i32_0 = arith.constant 0 : i32
    %2 = arith.cmpi ne, %1, %c0_i32_0 : i32
    scf.if %2 {
      %cst_12 = arith.constant 0.000000e+00 : f32
      %14 = vector.broadcast %cst_12 : f32 to vector<32x128xf32>
      %c0_13 = arith.constant 0 : index
      %c0_14 = arith.constant 0 : index
      %15 = vector.load %arg6[%c0_13, %c0_14] : memref<32x128xf32, #tpu.memory_space<vmem>>, vector<32x128xf32>
      tpu.vector_store %arg6[%c0_13, %c0_14], %14 {strides = array<i32>} : memref<32x128xf32, #tpu.memory_space<vmem>>, vector<32x128xf32>,
    } else {
    }
    %c0 = arith.constant 0 : index
    %c0_1 = arith.constant 0 : index
    %3 = vector.load %arg6[%c0, %c0_1] : memref<32x128xf32, #tpu.memory_space<vmem>>, vector<32x128xf32>
    %c0_2 = arith.constant 0 : index
    %c0_3 = arith.constant 0 : index
    %c0_4 = arith.constant 0 : index
    %4 = vector.load %arg3[%c0_2, %c0_3, %c0_4] : memref<1x32x512xbf16, #tpu.memory_space<vmem>>, vector<1x32x512xbf16>
    %5 = vector.shape_cast %4 : vector<1x32x512xbf16> to vector<32x512xbf16>
    %c0_5 = arith.constant 0 : index
    %c0_6 = arith.constant 0 : index
    %c0_7 = arith.constant 0 : index
    %6 = vector.load %arg4[%c0_5, %c0_6, %c0_7] : memref<1x512x128xbf16, #tpu.memory_space<vmem>>, vector<1x512x128xbf16>
    %7 = vector.shape_cast %6 : vector<1x512x128xbf16> to vector<512x128xbf16>
    %cst = arith.constant dense<0.000000e+00> : vector<32x128xf32>
    %8 = tpu.matmul %5, %7, %cst {dimension_numbers = #tpu.dot_dimension_numbers<[1], [0], [0], [1], [0, 0, 1, 1], [], []>} : vector<32x512xbf16>, vector<512x128xbf16>, vector<32x128xf32> -> vector<32x128xf32>
    %9 = arith.addf %3, %8 : vector<32x128xf32>
    %c0_8 = arith.constant 0 : index
    %c0_9 = arith.constant 0 : index
    %10 = vector.load %arg6[%c0_8, %c0_9] : memref<32x128xf32, #tpu.memory_space<vmem>>, vector<32x128xf32>
    tpu.vector_store %arg6[%c0_8, %c0_9], %9 {strides = array<i32>} : memref<32x128xf32, #tpu.memory_space<vmem>>, vector<32x128xf32>,
    %c0_i32_10 = arith.constant 0 : i32
    %11 = arith.cmpi eq, %arg2, %c0_i32_10 : i32
    %12 = arith.extui %11 : i1 to i32
    %c0_i32_11 = arith.constant 0 : i32
    %13 = arith.cmpi ne, %12, %c0_i32_11 : i32
    scf.if %13 {
      %c0_12 = arith.constant 0 : index
      %c0_13 = arith.constant 0 : index
      %14 = vector.load %arg6[%c0_12, %c0_13] : memref<32x128xf32, #tpu.memory_space<vmem>>, vector<32x128xf32>
      %c0_14 = arith.constant 0 : index
      %c0_15 = arith.constant 0 : index
      %c0_16 = arith.constant 0 : index
      %15 = vector.load %arg5[%c0_14, %c0_15, %c0_16] : memref<1x32x128xf32, #tpu.memory_space<vmem>>, vector<1x32x128xf32>
      %16 = vector.shape_cast %15 : vector<1x32x128xf32> to vector<32x128xf32>
      %17 = vector.shape_cast %14 : vector<32x128xf32> to vector<1x32x128xf32>
      tpu.vector_store %arg5[%c0_14, %c0_15, %c0_16], %17 {strides = array<i32>} : memref<1x32x128xf32, #tpu.memory_space<vmem>>, vector<1x32x128xf32>,
    } else {
    }
    return
  }
  func.func @transform_0(%arg0: i32, %arg1: i32, %arg2: i32) -> (i32, i32, i32) {
    %c0_i32 = arith.constant 0 : i32
    return %arg0, %arg1, %arg2 : i32, i32, i32
  }
  func.func @transform_1(%arg0: i32, %arg1: i32, %arg2: i32) -> (i32, i32, i32) {
    %c0_i32 = arith.constant 0 : i32
    %c0_i32_0 = arith.constant 0 : i32
    return %arg0, %arg2, %c0_i32 : i32, i32, i32
  }
  func.func @transform_2(%arg0: i32, %arg1: i32, %arg2: i32) -> (i32, i32, i32) {
    %c0_i32 = arith.constant 0 : i32
    %c0_i32_0 = arith.constant 0 : i32
    return %arg0, %arg1, %c0_i32 : i32, i32, i32
  }
}

module attributes {stable_mosaic.version = 11 : i64} {
  func.func @_bn_stats_kernel(%arg0: i32, %arg1: memref<128x128xf32, #tpu.memory_space<vmem>>, %arg2: memref<2x128xf32, #tpu.memory_space<vmem>>) attributes {dimension_semantics = [#tpu.dimension_semantics<arbitrary>], iteration_bounds = array<i64: 1>, scalar_prefetch = 0 : i64, scratch_operands = 0 : i64, tpu.core_type = #tpu.core_type<tc>, window_params = [{transform_indices = @transform_0, window_bounds = array<i64: 128, 128>}, {pipeline_mode = #tpu.pipeline_mode<synchronous>, transform_indices = @transform_1, window_bounds = array<i64: 2, 128>}]} {
    %c0_i32 = arith.constant 0 : i32
    %0 = arith.cmpi eq, %arg0, %c0_i32 : i32
    %1 = arith.extui %0 : i1 to i32
    %c0_i32_0 = arith.constant 0 : i32
    %2 = arith.cmpi ne, %1, %c0_i32_0 : i32
    scf.if %2 {
      %cst_7 = arith.constant 0.000000e+00 : f32
      %13 = vector.broadcast %cst_7 : f32 to vector<2x128xf32>
      %c0_8 = arith.constant 0 : index
      %c0_9 = arith.constant 0 : index
      %14 = vector.load %arg2[%c0_8, %c0_9] : memref<2x128xf32, #tpu.memory_space<vmem>>, vector<2x128xf32>
      tpu.vector_store %arg2[%c0_8, %c0_9], %13 {strides = array<i32>} : memref<2x128xf32, #tpu.memory_space<vmem>>, vector<2x128xf32>,
    } else {
    }
    %c0 = arith.constant 0 : index
    %c0_1 = arith.constant 0 : index
    %3 = vector.load %arg1[%c0, %c0_1] : memref<128x128xf32, #tpu.memory_space<vmem>>, vector<128x128xf32>
    %c0_2 = arith.constant 0 : index
    %c0_3 = arith.constant 0 : index
    %4 = vector.load %arg2[%c0_2, %c0_3] : memref<2x128xf32, #tpu.memory_space<vmem>>, vector<2x128xf32>
    %cst = arith.constant dense<0.000000e+00> : vector<128xf32>
    %5 = vector.multi_reduction <add>, %3, %cst [0] : vector<128x128xf32> to vector<128xf32>
    %6 = vector.shape_cast %5 : vector<128xf32> to vector<1x128xf32>
    %7 = arith.mulf %3, %3 : vector<128x128xf32>
    %cst_4 = arith.constant dense<0.000000e+00> : vector<128xf32>
    %8 = vector.multi_reduction <add>, %7, %cst_4 [0] : vector<128x128xf32> to vector<128xf32>
    %9 = vector.shape_cast %8 : vector<128xf32> to vector<1x128xf32>
    %10 = tpu.concatenate %6, %9 in 0 : vector<1x128xf32>, vector<1x128xf32> -> vector<2x128xf32>
    %11 = arith.addf %4, %10 : vector<2x128xf32>
    %c0_5 = arith.constant 0 : index
    %c0_6 = arith.constant 0 : index
    %12 = vector.load %arg2[%c0_5, %c0_6] : memref<2x128xf32, #tpu.memory_space<vmem>>, vector<2x128xf32>
    tpu.vector_store %arg2[%c0_5, %c0_6], %11 {strides = array<i32>} : memref<2x128xf32, #tpu.memory_space<vmem>>, vector<2x128xf32>,
    return
  }
  func.func @transform_0(%arg0: i32) -> (i32, i32) {
    %c0_i32 = arith.constant 0 : i32
    %c0_i32_0 = arith.constant 0 : i32
    return %arg0, %c0_i32 : i32, i32
  }
  func.func @transform_1(%arg0: i32) -> (i32, i32) {
    %c0_i32 = arith.constant 0 : i32
    %c0_i32_0 = arith.constant 0 : i32
    %c0_i32_1 = arith.constant 0 : i32
    return %c0_i32, %c0_i32_0 : i32, i32
  }
}

module attributes {stable_mosaic.version = 11 : i64} {
  func.func @_bn_apply_kernel(%arg0: i32, %arg1: memref<128x128xf32, #tpu.memory_space<vmem>>, %arg2: memref<1x128xf32, #tpu.memory_space<vmem>>, %arg3: memref<1x128xf32, #tpu.memory_space<vmem>>, %arg4: memref<128x128xbf16, #tpu.memory_space<vmem>>) attributes {dimension_semantics = [#tpu.dimension_semantics<parallel>], iteration_bounds = array<i64: 1>, scalar_prefetch = 0 : i64, scratch_operands = 0 : i64, tpu.core_type = #tpu.core_type<tc>, window_params = [{transform_indices = @transform_0, window_bounds = array<i64: 128, 128>}, {pipeline_mode = #tpu.pipeline_mode<synchronous>, transform_indices = @transform_1, window_bounds = array<i64: 1, 128>}, {pipeline_mode = #tpu.pipeline_mode<synchronous>, transform_indices = @transform_2, window_bounds = array<i64: 1, 128>}, {transform_indices = @transform_3, window_bounds = array<i64: 128, 128>}]} {
    %c0 = arith.constant 0 : index
    %c0_0 = arith.constant 0 : index
    %0 = vector.load %arg1[%c0, %c0_0] : memref<128x128xf32, #tpu.memory_space<vmem>>, vector<128x128xf32>
    %c0_1 = arith.constant 0 : index
    %c0_2 = arith.constant 0 : index
    %1 = vector.load %arg2[%c0_1, %c0_2] : memref<1x128xf32, #tpu.memory_space<vmem>>, vector<1x128xf32>
    %2 = vector.broadcast %1 : vector<1x128xf32> to vector<128x128xf32>
    %3 = arith.mulf %0, %2 : vector<128x128xf32>
    %c0_3 = arith.constant 0 : index
    %c0_4 = arith.constant 0 : index
    %4 = vector.load %arg3[%c0_3, %c0_4] : memref<1x128xf32, #tpu.memory_space<vmem>>, vector<1x128xf32>
    %5 = vector.broadcast %4 : vector<1x128xf32> to vector<128x128xf32>
    %6 = arith.addf %3, %5 : vector<128x128xf32>
    %cst = arith.constant 0.000000e+00 : f32
    %7 = vector.broadcast %cst : f32 to vector<128x128xf32>
    %8 = arith.maximumf %6, %7 : vector<128x128xf32>
    %9 = arith.truncf %8 : vector<128x128xf32> to vector<128x128xbf16>
    %c0_5 = arith.constant 0 : index
    %c0_6 = arith.constant 0 : index
    %10 = vector.load %arg4[%c0_5, %c0_6] : memref<128x128xbf16, #tpu.memory_space<vmem>>, vector<128x128xbf16>
    tpu.vector_store %arg4[%c0_5, %c0_6], %9 {strides = array<i32>} : memref<128x128xbf16, #tpu.memory_space<vmem>>, vector<128x128xbf16>,
    return
  }
  func.func @transform_0(%arg0: i32) -> (i32, i32) {
    %c0_i32 = arith.constant 0 : i32
    %c0_i32_0 = arith.constant 0 : i32
    return %arg0, %c0_i32 : i32, i32
  }
  func.func @transform_1(%arg0: i32) -> (i32, i32) {
    %c0_i32 = arith.constant 0 : i32
    %c0_i32_0 = arith.constant 0 : i32
    %c0_i32_1 = arith.constant 0 : i32
    return %c0_i32, %c0_i32_0 : i32, i32
  }
  func.func @transform_2(%arg0: i32) -> (i32, i32) {
    %c0_i32 = arith.constant 0 : i32
    %c0_i32_0 = arith.constant 0 : i32
    %c0_i32_1 = arith.constant 0 : i32
    return %c0_i32, %c0_i32_0 : i32, i32
  }
  func.func @transform_3(%arg0: i32) -> (i32, i32) {
    %c0_i32 = arith.constant 0 : i32
    %c0_i32_0 = arith.constant 0 : i32
    return %arg0, %c0_i32 : i32, i32
  }
}

module attributes {stable_mosaic.version = 11 : i64} {
  func.func @_bn_stats_kernel(%arg0: i32, %arg1: memref<512x128xf32, #tpu.memory_space<vmem>>, %arg2: memref<2x128xf32, #tpu.memory_space<vmem>>) attributes {dimension_semantics = [#tpu.dimension_semantics<arbitrary>], iteration_bounds = array<i64: 1>, scalar_prefetch = 0 : i64, scratch_operands = 0 : i64, tpu.core_type = #tpu.core_type<tc>, window_params = [{transform_indices = @transform_0, window_bounds = array<i64: 512, 128>}, {pipeline_mode = #tpu.pipeline_mode<synchronous>, transform_indices = @transform_1, window_bounds = array<i64: 2, 128>}]} {
    %c0_i32 = arith.constant 0 : i32
    %0 = arith.cmpi eq, %arg0, %c0_i32 : i32
    %1 = arith.extui %0 : i1 to i32
    %c0_i32_0 = arith.constant 0 : i32
    %2 = arith.cmpi ne, %1, %c0_i32_0 : i32
    scf.if %2 {
      %cst_7 = arith.constant 0.000000e+00 : f32
      %13 = vector.broadcast %cst_7 : f32 to vector<2x128xf32>
      %c0_8 = arith.constant 0 : index
      %c0_9 = arith.constant 0 : index
      %14 = vector.load %arg2[%c0_8, %c0_9] : memref<2x128xf32, #tpu.memory_space<vmem>>, vector<2x128xf32>
      tpu.vector_store %arg2[%c0_8, %c0_9], %13 {strides = array<i32>} : memref<2x128xf32, #tpu.memory_space<vmem>>, vector<2x128xf32>,
    } else {
    }
    %c0 = arith.constant 0 : index
    %c0_1 = arith.constant 0 : index
    %3 = vector.load %arg1[%c0, %c0_1] : memref<512x128xf32, #tpu.memory_space<vmem>>, vector<512x128xf32>
    %c0_2 = arith.constant 0 : index
    %c0_3 = arith.constant 0 : index
    %4 = vector.load %arg2[%c0_2, %c0_3] : memref<2x128xf32, #tpu.memory_space<vmem>>, vector<2x128xf32>
    %cst = arith.constant dense<0.000000e+00> : vector<128xf32>
    %5 = vector.multi_reduction <add>, %3, %cst [0] : vector<512x128xf32> to vector<128xf32>
    %6 = vector.shape_cast %5 : vector<128xf32> to vector<1x128xf32>
    %7 = arith.mulf %3, %3 : vector<512x128xf32>
    %cst_4 = arith.constant dense<0.000000e+00> : vector<128xf32>
    %8 = vector.multi_reduction <add>, %7, %cst_4 [0] : vector<512x128xf32> to vector<128xf32>
    %9 = vector.shape_cast %8 : vector<128xf32> to vector<1x128xf32>
    %10 = tpu.concatenate %6, %9 in 0 : vector<1x128xf32>, vector<1x128xf32> -> vector<2x128xf32>
    %11 = arith.addf %4, %10 : vector<2x128xf32>
    %c0_5 = arith.constant 0 : index
    %c0_6 = arith.constant 0 : index
    %12 = vector.load %arg2[%c0_5, %c0_6] : memref<2x128xf32, #tpu.memory_space<vmem>>, vector<2x128xf32>
    tpu.vector_store %arg2[%c0_5, %c0_6], %11 {strides = array<i32>} : memref<2x128xf32, #tpu.memory_space<vmem>>, vector<2x128xf32>,
    return
  }
  func.func @transform_0(%arg0: i32) -> (i32, i32) {
    %c0_i32 = arith.constant 0 : i32
    %c0_i32_0 = arith.constant 0 : i32
    return %arg0, %c0_i32 : i32, i32
  }
  func.func @transform_1(%arg0: i32) -> (i32, i32) {
    %c0_i32 = arith.constant 0 : i32
    %c0_i32_0 = arith.constant 0 : i32
    %c0_i32_1 = arith.constant 0 : i32
    return %c0_i32, %c0_i32_0 : i32, i32
  }
}

module attributes {stable_mosaic.version = 11 : i64} {
  func.func @_matmul_kernel(%arg0: i32, %arg1: i32, %arg2: i32, %arg3: memref<1x128x512xbf16, #tpu.memory_space<vmem>>, %arg4: memref<1x512x128xbf16, #tpu.memory_space<vmem>>, %arg5: memref<1x128x128xf32, #tpu.memory_space<vmem>>, %arg6: memref<128x128xf32, #tpu.memory_space<vmem>>) attributes {dimension_semantics = [#tpu.dimension_semantics<parallel>, #tpu.dimension_semantics<parallel>, #tpu.dimension_semantics<arbitrary>], iteration_bounds = array<i64: 4, 1, 1>, scalar_prefetch = 0 : i64, scratch_operands = 1 : i64, tpu.core_type = #tpu.core_type<tc>, window_params = [{transform_indices = @transform_0, window_bounds = array<i64: 1, 128, 512>}, {transform_indices = @transform_1, window_bounds = array<i64: 1, 512, 128>}, {transform_indices = @transform_2, window_bounds = array<i64: 1, 128, 128>}]} {
    %c0_i32 = arith.constant 0 : i32
    %0 = arith.cmpi eq, %arg2, %c0_i32 : i32
    %1 = arith.extui %0 : i1 to i32
    %c0_i32_0 = arith.constant 0 : i32
    %2 = arith.cmpi ne, %1, %c0_i32_0 : i32
    scf.if %2 {
      %cst_12 = arith.constant 0.000000e+00 : f32
      %14 = vector.broadcast %cst_12 : f32 to vector<128x128xf32>
      %c0_13 = arith.constant 0 : index
      %c0_14 = arith.constant 0 : index
      %15 = vector.load %arg6[%c0_13, %c0_14] : memref<128x128xf32, #tpu.memory_space<vmem>>, vector<128x128xf32>
      tpu.vector_store %arg6[%c0_13, %c0_14], %14 {strides = array<i32>} : memref<128x128xf32, #tpu.memory_space<vmem>>, vector<128x128xf32>,
    } else {
    }
    %c0 = arith.constant 0 : index
    %c0_1 = arith.constant 0 : index
    %3 = vector.load %arg6[%c0, %c0_1] : memref<128x128xf32, #tpu.memory_space<vmem>>, vector<128x128xf32>
    %c0_2 = arith.constant 0 : index
    %c0_3 = arith.constant 0 : index
    %c0_4 = arith.constant 0 : index
    %4 = vector.load %arg3[%c0_2, %c0_3, %c0_4] : memref<1x128x512xbf16, #tpu.memory_space<vmem>>, vector<1x128x512xbf16>
    %5 = vector.shape_cast %4 : vector<1x128x512xbf16> to vector<128x512xbf16>
    %c0_5 = arith.constant 0 : index
    %c0_6 = arith.constant 0 : index
    %c0_7 = arith.constant 0 : index
    %6 = vector.load %arg4[%c0_5, %c0_6, %c0_7] : memref<1x512x128xbf16, #tpu.memory_space<vmem>>, vector<1x512x128xbf16>
    %7 = vector.shape_cast %6 : vector<1x512x128xbf16> to vector<512x128xbf16>
    %cst = arith.constant dense<0.000000e+00> : vector<128x128xf32>
    %8 = tpu.matmul %5, %7, %cst {dimension_numbers = #tpu.dot_dimension_numbers<[1], [0], [0], [1], [0, 0, 1, 1], [], []>} : vector<128x512xbf16>, vector<512x128xbf16>, vector<128x128xf32> -> vector<128x128xf32>
    %9 = arith.addf %3, %8 : vector<128x128xf32>
    %c0_8 = arith.constant 0 : index
    %c0_9 = arith.constant 0 : index
    %10 = vector.load %arg6[%c0_8, %c0_9] : memref<128x128xf32, #tpu.memory_space<vmem>>, vector<128x128xf32>
    tpu.vector_store %arg6[%c0_8, %c0_9], %9 {strides = array<i32>} : memref<128x128xf32, #tpu.memory_space<vmem>>, vector<128x128xf32>,
    %c0_i32_10 = arith.constant 0 : i32
    %11 = arith.cmpi eq, %arg2, %c0_i32_10 : i32
    %12 = arith.extui %11 : i1 to i32
    %c0_i32_11 = arith.constant 0 : i32
    %13 = arith.cmpi ne, %12, %c0_i32_11 : i32
    scf.if %13 {
      %c0_12 = arith.constant 0 : index
      %c0_13 = arith.constant 0 : index
      %14 = vector.load %arg6[%c0_12, %c0_13] : memref<128x128xf32, #tpu.memory_space<vmem>>, vector<128x128xf32>
      %c0_14 = arith.constant 0 : index
      %c0_15 = arith.constant 0 : index
      %c0_16 = arith.constant 0 : index
      %15 = vector.load %arg5[%c0_14, %c0_15, %c0_16] : memref<1x128x128xf32, #tpu.memory_space<vmem>>, vector<1x128x128xf32>
      %16 = vector.shape_cast %15 : vector<1x128x128xf32> to vector<128x128xf32>
      %17 = vector.shape_cast %14 : vector<128x128xf32> to vector<1x128x128xf32>
      tpu.vector_store %arg5[%c0_14, %c0_15, %c0_16], %17 {strides = array<i32>} : memref<1x128x128xf32, #tpu.memory_space<vmem>>, vector<1x128x128xf32>,
    } else {
    }
    return
  }
  func.func @transform_0(%arg0: i32, %arg1: i32, %arg2: i32) -> (i32, i32, i32) {
    %c0_i32 = arith.constant 0 : i32
    return %arg0, %arg1, %arg2 : i32, i32, i32
  }
  func.func @transform_1(%arg0: i32, %arg1: i32, %arg2: i32) -> (i32, i32, i32) {
    %c0_i32 = arith.constant 0 : i32
    %c0_i32_0 = arith.constant 0 : i32
    return %arg0, %arg2, %c0_i32 : i32, i32, i32
  }
  func.func @transform_2(%arg0: i32, %arg1: i32, %arg2: i32) -> (i32, i32, i32) {
    %c0_i32 = arith.constant 0 : i32
    %c0_i32_0 = arith.constant 0 : i32
    return %arg0, %arg1, %c0_i32 : i32, i32, i32
  }
}

module attributes {stable_mosaic.version = 11 : i64} {
  func.func @_bn_apply_kernel(%arg0: i32, %arg1: memref<512x128xf32, #tpu.memory_space<vmem>>, %arg2: memref<1x128xf32, #tpu.memory_space<vmem>>, %arg3: memref<1x128xf32, #tpu.memory_space<vmem>>, %arg4: memref<512x128xbf16, #tpu.memory_space<vmem>>) attributes {dimension_semantics = [#tpu.dimension_semantics<parallel>], iteration_bounds = array<i64: 1>, scalar_prefetch = 0 : i64, scratch_operands = 0 : i64, tpu.core_type = #tpu.core_type<tc>, window_params = [{transform_indices = @transform_0, window_bounds = array<i64: 512, 128>}, {pipeline_mode = #tpu.pipeline_mode<synchronous>, transform_indices = @transform_1, window_bounds = array<i64: 1, 128>}, {pipeline_mode = #tpu.pipeline_mode<synchronous>, transform_indices = @transform_2, window_bounds = array<i64: 1, 128>}, {transform_indices = @transform_3, window_bounds = array<i64: 512, 128>}]} {
    %c0 = arith.constant 0 : index
    %c0_0 = arith.constant 0 : index
    %0 = vector.load %arg1[%c0, %c0_0] : memref<512x128xf32, #tpu.memory_space<vmem>>, vector<512x128xf32>
    %c0_1 = arith.constant 0 : index
    %c0_2 = arith.constant 0 : index
    %1 = vector.load %arg2[%c0_1, %c0_2] : memref<1x128xf32, #tpu.memory_space<vmem>>, vector<1x128xf32>
    %2 = vector.broadcast %1 : vector<1x128xf32> to vector<512x128xf32>
    %3 = arith.mulf %0, %2 : vector<512x128xf32>
    %c0_3 = arith.constant 0 : index
    %c0_4 = arith.constant 0 : index
    %4 = vector.load %arg3[%c0_3, %c0_4] : memref<1x128xf32, #tpu.memory_space<vmem>>, vector<1x128xf32>
    %5 = vector.broadcast %4 : vector<1x128xf32> to vector<512x128xf32>
    %6 = arith.addf %3, %5 : vector<512x128xf32>
    %cst = arith.constant 0.000000e+00 : f32
    %7 = vector.broadcast %cst : f32 to vector<512x128xf32>
    %8 = arith.maximumf %6, %7 : vector<512x128xf32>
    %9 = arith.truncf %8 : vector<512x128xf32> to vector<512x128xbf16>
    %c0_5 = arith.constant 0 : index
    %c0_6 = arith.constant 0 : index
    %10 = vector.load %arg4[%c0_5, %c0_6] : memref<512x128xbf16, #tpu.memory_space<vmem>>, vector<512x128xbf16>
    tpu.vector_store %arg4[%c0_5, %c0_6], %9 {strides = array<i32>} : memref<512x128xbf16, #tpu.memory_space<vmem>>, vector<512x128xbf16>,
    return
  }
  func.func @transform_0(%arg0: i32) -> (i32, i32) {
    %c0_i32 = arith.constant 0 : i32
    %c0_i32_0 = arith.constant 0 : i32
    return %arg0, %c0_i32 : i32, i32
  }
  func.func @transform_1(%arg0: i32) -> (i32, i32) {
    %c0_i32 = arith.constant 0 : i32
    %c0_i32_0 = arith.constant 0 : i32
    %c0_i32_1 = arith.constant 0 : i32
    return %c0_i32, %c0_i32_0 : i32, i32
  }
  func.func @transform_2(%arg0: i32) -> (i32, i32) {
    %c0_i32 = arith.constant 0 : i32
    %c0_i32_0 = arith.constant 0 : i32
    %c0_i32_1 = arith.constant 0 : i32
    return %c0_i32, %c0_i32_0 : i32, i32
  }
  func.func @transform_3(%arg0: i32) -> (i32, i32) {
    %c0_i32 = arith.constant 0 : i32
    %c0_i32_0 = arith.constant 0 : i32
    return %arg0, %c0_i32 : i32, i32
  }
}

module attributes {stable_mosaic.version = 11 : i64} {
  func.func @_bn_stats_kernel(%arg0: i32, %arg1: memref<512x128xf32, #tpu.memory_space<vmem>>, %arg2: memref<2x128xf32, #tpu.memory_space<vmem>>) attributes {dimension_semantics = [#tpu.dimension_semantics<arbitrary>], iteration_bounds = array<i64: 4>, scalar_prefetch = 0 : i64, scratch_operands = 0 : i64, tpu.core_type = #tpu.core_type<tc>, window_params = [{transform_indices = @transform_0, window_bounds = array<i64: 512, 128>}, {pipeline_mode = #tpu.pipeline_mode<synchronous>, transform_indices = @transform_1, window_bounds = array<i64: 2, 128>}]} {
    %c0_i32 = arith.constant 0 : i32
    %0 = arith.cmpi eq, %arg0, %c0_i32 : i32
    %1 = arith.extui %0 : i1 to i32
    %c0_i32_0 = arith.constant 0 : i32
    %2 = arith.cmpi ne, %1, %c0_i32_0 : i32
    scf.if %2 {
      %cst_7 = arith.constant 0.000000e+00 : f32
      %13 = vector.broadcast %cst_7 : f32 to vector<2x128xf32>
      %c0_8 = arith.constant 0 : index
      %c0_9 = arith.constant 0 : index
      %14 = vector.load %arg2[%c0_8, %c0_9] : memref<2x128xf32, #tpu.memory_space<vmem>>, vector<2x128xf32>
      tpu.vector_store %arg2[%c0_8, %c0_9], %13 {strides = array<i32>} : memref<2x128xf32, #tpu.memory_space<vmem>>, vector<2x128xf32>,
    } else {
    }
    %c0 = arith.constant 0 : index
    %c0_1 = arith.constant 0 : index
    %3 = vector.load %arg1[%c0, %c0_1] : memref<512x128xf32, #tpu.memory_space<vmem>>, vector<512x128xf32>
    %c0_2 = arith.constant 0 : index
    %c0_3 = arith.constant 0 : index
    %4 = vector.load %arg2[%c0_2, %c0_3] : memref<2x128xf32, #tpu.memory_space<vmem>>, vector<2x128xf32>
    %cst = arith.constant dense<0.000000e+00> : vector<128xf32>
    %5 = vector.multi_reduction <add>, %3, %cst [0] : vector<512x128xf32> to vector<128xf32>
    %6 = vector.shape_cast %5 : vector<128xf32> to vector<1x128xf32>
    %7 = arith.mulf %3, %3 : vector<512x128xf32>
    %cst_4 = arith.constant dense<0.000000e+00> : vector<128xf32>
    %8 = vector.multi_reduction <add>, %7, %cst_4 [0] : vector<512x128xf32> to vector<128xf32>
    %9 = vector.shape_cast %8 : vector<128xf32> to vector<1x128xf32>
    %10 = tpu.concatenate %6, %9 in 0 : vector<1x128xf32>, vector<1x128xf32> -> vector<2x128xf32>
    %11 = arith.addf %4, %10 : vector<2x128xf32>
    %c0_5 = arith.constant 0 : index
    %c0_6 = arith.constant 0 : index
    %12 = vector.load %arg2[%c0_5, %c0_6] : memref<2x128xf32, #tpu.memory_space<vmem>>, vector<2x128xf32>
    tpu.vector_store %arg2[%c0_5, %c0_6], %11 {strides = array<i32>} : memref<2x128xf32, #tpu.memory_space<vmem>>, vector<2x128xf32>,
    return
  }
  func.func @transform_0(%arg0: i32) -> (i32, i32) {
    %c0_i32 = arith.constant 0 : i32
    %c0_i32_0 = arith.constant 0 : i32
    return %arg0, %c0_i32 : i32, i32
  }
  func.func @transform_1(%arg0: i32) -> (i32, i32) {
    %c0_i32 = arith.constant 0 : i32
    %c0_i32_0 = arith.constant 0 : i32
    %c0_i32_1 = arith.constant 0 : i32
    return %c0_i32, %c0_i32_0 : i32, i32
  }
}

module attributes {stable_mosaic.version = 11 : i64} {
  func.func @_matmul_kernel(%arg0: i32, %arg1: i32, %arg2: i32, %arg3: memref<1x512x512xbf16, #tpu.memory_space<vmem>>, %arg4: memref<1x512x128xbf16, #tpu.memory_space<vmem>>, %arg5: memref<1x512x128xf32, #tpu.memory_space<vmem>>, %arg6: memref<512x128xf32, #tpu.memory_space<vmem>>) attributes {dimension_semantics = [#tpu.dimension_semantics<parallel>, #tpu.dimension_semantics<parallel>, #tpu.dimension_semantics<arbitrary>], iteration_bounds = array<i64: 4, 1, 1>, scalar_prefetch = 0 : i64, scratch_operands = 1 : i64, tpu.core_type = #tpu.core_type<tc>, window_params = [{transform_indices = @transform_0, window_bounds = array<i64: 1, 512, 512>}, {transform_indices = @transform_1, window_bounds = array<i64: 1, 512, 128>}, {transform_indices = @transform_2, window_bounds = array<i64: 1, 512, 128>}]} {
    %c0_i32 = arith.constant 0 : i32
    %0 = arith.cmpi eq, %arg2, %c0_i32 : i32
    %1 = arith.extui %0 : i1 to i32
    %c0_i32_0 = arith.constant 0 : i32
    %2 = arith.cmpi ne, %1, %c0_i32_0 : i32
    scf.if %2 {
      %cst_12 = arith.constant 0.000000e+00 : f32
      %14 = vector.broadcast %cst_12 : f32 to vector<512x128xf32>
      %c0_13 = arith.constant 0 : index
      %c0_14 = arith.constant 0 : index
      %15 = vector.load %arg6[%c0_13, %c0_14] : memref<512x128xf32, #tpu.memory_space<vmem>>, vector<512x128xf32>
      tpu.vector_store %arg6[%c0_13, %c0_14], %14 {strides = array<i32>} : memref<512x128xf32, #tpu.memory_space<vmem>>, vector<512x128xf32>,
    } else {
    }
    %c0 = arith.constant 0 : index
    %c0_1 = arith.constant 0 : index
    %3 = vector.load %arg6[%c0, %c0_1] : memref<512x128xf32, #tpu.memory_space<vmem>>, vector<512x128xf32>
    %c0_2 = arith.constant 0 : index
    %c0_3 = arith.constant 0 : index
    %c0_4 = arith.constant 0 : index
    %4 = vector.load %arg3[%c0_2, %c0_3, %c0_4] : memref<1x512x512xbf16, #tpu.memory_space<vmem>>, vector<1x512x512xbf16>
    %5 = vector.shape_cast %4 : vector<1x512x512xbf16> to vector<512x512xbf16>
    %c0_5 = arith.constant 0 : index
    %c0_6 = arith.constant 0 : index
    %c0_7 = arith.constant 0 : index
    %6 = vector.load %arg4[%c0_5, %c0_6, %c0_7] : memref<1x512x128xbf16, #tpu.memory_space<vmem>>, vector<1x512x128xbf16>
    %7 = vector.shape_cast %6 : vector<1x512x128xbf16> to vector<512x128xbf16>
    %cst = arith.constant dense<0.000000e+00> : vector<512x128xf32>
    %8 = tpu.matmul %5, %7, %cst {dimension_numbers = #tpu.dot_dimension_numbers<[1], [0], [0], [1], [0, 0, 1, 1], [], []>} : vector<512x512xbf16>, vector<512x128xbf16>, vector<512x128xf32> -> vector<512x128xf32>
    %9 = arith.addf %3, %8 : vector<512x128xf32>
    %c0_8 = arith.constant 0 : index
    %c0_9 = arith.constant 0 : index
    %10 = vector.load %arg6[%c0_8, %c0_9] : memref<512x128xf32, #tpu.memory_space<vmem>>, vector<512x128xf32>
    tpu.vector_store %arg6[%c0_8, %c0_9], %9 {strides = array<i32>} : memref<512x128xf32, #tpu.memory_space<vmem>>, vector<512x128xf32>,
    %c0_i32_10 = arith.constant 0 : i32
    %11 = arith.cmpi eq, %arg2, %c0_i32_10 : i32
    %12 = arith.extui %11 : i1 to i32
    %c0_i32_11 = arith.constant 0 : i32
    %13 = arith.cmpi ne, %12, %c0_i32_11 : i32
    scf.if %13 {
      %c0_12 = arith.constant 0 : index
      %c0_13 = arith.constant 0 : index
      %14 = vector.load %arg6[%c0_12, %c0_13] : memref<512x128xf32, #tpu.memory_space<vmem>>, vector<512x128xf32>
      %c0_14 = arith.constant 0 : index
      %c0_15 = arith.constant 0 : index
      %c0_16 = arith.constant 0 : index
      %15 = vector.load %arg5[%c0_14, %c0_15, %c0_16] : memref<1x512x128xf32, #tpu.memory_space<vmem>>, vector<1x512x128xf32>
      %16 = vector.shape_cast %15 : vector<1x512x128xf32> to vector<512x128xf32>
      %17 = vector.shape_cast %14 : vector<512x128xf32> to vector<1x512x128xf32>
      tpu.vector_store %arg5[%c0_14, %c0_15, %c0_16], %17 {strides = array<i32>} : memref<1x512x128xf32, #tpu.memory_space<vmem>>, vector<1x512x128xf32>,
    } else {
    }
    return
  }
  func.func @transform_0(%arg0: i32, %arg1: i32, %arg2: i32) -> (i32, i32, i32) {
    %c0_i32 = arith.constant 0 : i32
    return %arg0, %arg1, %arg2 : i32, i32, i32
  }
  func.func @transform_1(%arg0: i32, %arg1: i32, %arg2: i32) -> (i32, i32, i32) {
    %c0_i32 = arith.constant 0 : i32
    %c0_i32_0 = arith.constant 0 : i32
    return %arg0, %arg2, %c0_i32 : i32, i32, i32
  }
  func.func @transform_2(%arg0: i32, %arg1: i32, %arg2: i32) -> (i32, i32, i32) {
    %c0_i32 = arith.constant 0 : i32
    %c0_i32_0 = arith.constant 0 : i32
    return %arg0, %arg1, %c0_i32 : i32, i32, i32
  }
}

module attributes {stable_mosaic.version = 11 : i64} {
  func.func @_bn_apply_kernel(%arg0: i32, %arg1: memref<512x128xf32, #tpu.memory_space<vmem>>, %arg2: memref<1x128xf32, #tpu.memory_space<vmem>>, %arg3: memref<1x128xf32, #tpu.memory_space<vmem>>, %arg4: memref<512x128xbf16, #tpu.memory_space<vmem>>) attributes {dimension_semantics = [#tpu.dimension_semantics<parallel>], iteration_bounds = array<i64: 4>, scalar_prefetch = 0 : i64, scratch_operands = 0 : i64, tpu.core_type = #tpu.core_type<tc>, window_params = [{transform_indices = @transform_0, window_bounds = array<i64: 512, 128>}, {pipeline_mode = #tpu.pipeline_mode<synchronous>, transform_indices = @transform_1, window_bounds = array<i64: 1, 128>}, {pipeline_mode = #tpu.pipeline_mode<synchronous>, transform_indices = @transform_2, window_bounds = array<i64: 1, 128>}, {transform_indices = @transform_3, window_bounds = array<i64: 512, 128>}]} {
    %c0 = arith.constant 0 : index
    %c0_0 = arith.constant 0 : index
    %0 = vector.load %arg1[%c0, %c0_0] : memref<512x128xf32, #tpu.memory_space<vmem>>, vector<512x128xf32>
    %c0_1 = arith.constant 0 : index
    %c0_2 = arith.constant 0 : index
    %1 = vector.load %arg2[%c0_1, %c0_2] : memref<1x128xf32, #tpu.memory_space<vmem>>, vector<1x128xf32>
    %2 = vector.broadcast %1 : vector<1x128xf32> to vector<512x128xf32>
    %3 = arith.mulf %0, %2 : vector<512x128xf32>
    %c0_3 = arith.constant 0 : index
    %c0_4 = arith.constant 0 : index
    %4 = vector.load %arg3[%c0_3, %c0_4] : memref<1x128xf32, #tpu.memory_space<vmem>>, vector<1x128xf32>
    %5 = vector.broadcast %4 : vector<1x128xf32> to vector<512x128xf32>
    %6 = arith.addf %3, %5 : vector<512x128xf32>
    %cst = arith.constant 0.000000e+00 : f32
    %7 = vector.broadcast %cst : f32 to vector<512x128xf32>
    %8 = arith.maximumf %6, %7 : vector<512x128xf32>
    %9 = arith.truncf %8 : vector<512x128xf32> to vector<512x128xbf16>
    %c0_5 = arith.constant 0 : index
    %c0_6 = arith.constant 0 : index
    %10 = vector.load %arg4[%c0_5, %c0_6] : memref<512x128xbf16, #tpu.memory_space<vmem>>, vector<512x128xbf16>
    tpu.vector_store %arg4[%c0_5, %c0_6], %9 {strides = array<i32>} : memref<512x128xbf16, #tpu.memory_space<vmem>>, vector<512x128xbf16>,
    return
  }
  func.func @transform_0(%arg0: i32) -> (i32, i32) {
    %c0_i32 = arith.constant 0 : i32
    %c0_i32_0 = arith.constant 0 : i32
    return %arg0, %c0_i32 : i32, i32
  }
  func.func @transform_1(%arg0: i32) -> (i32, i32) {
    %c0_i32 = arith.constant 0 : i32
    %c0_i32_0 = arith.constant 0 : i32
    %c0_i32_1 = arith.constant 0 : i32
    return %c0_i32, %c0_i32_0 : i32, i32
  }
  func.func @transform_2(%arg0: i32) -> (i32, i32) {
    %c0_i32 = arith.constant 0 : i32
    %c0_i32_0 = arith.constant 0 : i32
    %c0_i32_1 = arith.constant 0 : i32
    return %c0_i32, %c0_i32_0 : i32, i32
  }
  func.func @transform_3(%arg0: i32) -> (i32, i32) {
    %c0_i32 = arith.constant 0 : i32
    %c0_i32_0 = arith.constant 0 : i32
    return %arg0, %c0_i32 : i32, i32
  }
}

module attributes {stable_mosaic.version = 11 : i64} {
  func.func @_matmul_kernel(%arg0: i32, %arg1: i32, %arg2: i32, %arg3: memref<1x512x512xbf16, #tpu.memory_space<vmem>>, %arg4: memref<1x512x128xbf16, #tpu.memory_space<vmem>>, %arg5: memref<1x512x128xf32, #tpu.memory_space<vmem>>, %arg6: memref<512x128xf32, #tpu.memory_space<vmem>>) attributes {dimension_semantics = [#tpu.dimension_semantics<parallel>, #tpu.dimension_semantics<parallel>, #tpu.dimension_semantics<arbitrary>], iteration_bounds = array<i64: 4, 4, 1>, scalar_prefetch = 0 : i64, scratch_operands = 1 : i64, tpu.core_type = #tpu.core_type<tc>, window_params = [{transform_indices = @transform_0, window_bounds = array<i64: 1, 512, 512>}, {transform_indices = @transform_1, window_bounds = array<i64: 1, 512, 128>}, {transform_indices = @transform_2, window_bounds = array<i64: 1, 512, 128>}]} {
    %c0_i32 = arith.constant 0 : i32
    %0 = arith.cmpi eq, %arg2, %c0_i32 : i32
    %1 = arith.extui %0 : i1 to i32
    %c0_i32_0 = arith.constant 0 : i32
    %2 = arith.cmpi ne, %1, %c0_i32_0 : i32
    scf.if %2 {
      %cst_12 = arith.constant 0.000000e+00 : f32
      %14 = vector.broadcast %cst_12 : f32 to vector<512x128xf32>
      %c0_13 = arith.constant 0 : index
      %c0_14 = arith.constant 0 : index
      %15 = vector.load %arg6[%c0_13, %c0_14] : memref<512x128xf32, #tpu.memory_space<vmem>>, vector<512x128xf32>
      tpu.vector_store %arg6[%c0_13, %c0_14], %14 {strides = array<i32>} : memref<512x128xf32, #tpu.memory_space<vmem>>, vector<512x128xf32>,
    } else {
    }
    %c0 = arith.constant 0 : index
    %c0_1 = arith.constant 0 : index
    %3 = vector.load %arg6[%c0, %c0_1] : memref<512x128xf32, #tpu.memory_space<vmem>>, vector<512x128xf32>
    %c0_2 = arith.constant 0 : index
    %c0_3 = arith.constant 0 : index
    %c0_4 = arith.constant 0 : index
    %4 = vector.load %arg3[%c0_2, %c0_3, %c0_4] : memref<1x512x512xbf16, #tpu.memory_space<vmem>>, vector<1x512x512xbf16>
    %5 = vector.shape_cast %4 : vector<1x512x512xbf16> to vector<512x512xbf16>
    %c0_5 = arith.constant 0 : index
    %c0_6 = arith.constant 0 : index
    %c0_7 = arith.constant 0 : index
    %6 = vector.load %arg4[%c0_5, %c0_6, %c0_7] : memref<1x512x128xbf16, #tpu.memory_space<vmem>>, vector<1x512x128xbf16>
    %7 = vector.shape_cast %6 : vector<1x512x128xbf16> to vector<512x128xbf16>
    %cst = arith.constant dense<0.000000e+00> : vector<512x128xf32>
    %8 = tpu.matmul %5, %7, %cst {dimension_numbers = #tpu.dot_dimension_numbers<[1], [0], [0], [1], [0, 0, 1, 1], [], []>} : vector<512x512xbf16>, vector<512x128xbf16>, vector<512x128xf32> -> vector<512x128xf32>
    %9 = arith.addf %3, %8 : vector<512x128xf32>
    %c0_8 = arith.constant 0 : index
    %c0_9 = arith.constant 0 : index
    %10 = vector.load %arg6[%c0_8, %c0_9] : memref<512x128xf32, #tpu.memory_space<vmem>>, vector<512x128xf32>
    tpu.vector_store %arg6[%c0_8, %c0_9], %9 {strides = array<i32>} : memref<512x128xf32, #tpu.memory_space<vmem>>, vector<512x128xf32>,
    %c0_i32_10 = arith.constant 0 : i32
    %11 = arith.cmpi eq, %arg2, %c0_i32_10 : i32
    %12 = arith.extui %11 : i1 to i32
    %c0_i32_11 = arith.constant 0 : i32
    %13 = arith.cmpi ne, %12, %c0_i32_11 : i32
    scf.if %13 {
      %c0_12 = arith.constant 0 : index
      %c0_13 = arith.constant 0 : index
      %14 = vector.load %arg6[%c0_12, %c0_13] : memref<512x128xf32, #tpu.memory_space<vmem>>, vector<512x128xf32>
      %15 = math.tanh %14 : vector<512x128xf32>
      %c0_14 = arith.constant 0 : index
      %c0_15 = arith.constant 0 : index
      %c0_16 = arith.constant 0 : index
      %16 = vector.load %arg5[%c0_14, %c0_15, %c0_16] : memref<1x512x128xf32, #tpu.memory_space<vmem>>, vector<1x512x128xf32>
      %17 = vector.shape_cast %16 : vector<1x512x128xf32> to vector<512x128xf32>
      %18 = vector.shape_cast %15 : vector<512x128xf32> to vector<1x512x128xf32>
      tpu.vector_store %arg5[%c0_14, %c0_15, %c0_16], %18 {strides = array<i32>} : memref<1x512x128xf32, #tpu.memory_space<vmem>>, vector<1x512x128xf32>,
    } else {
    }
    return
  }
  func.func @transform_0(%arg0: i32, %arg1: i32, %arg2: i32) -> (i32, i32, i32) {
    %c0_i32 = arith.constant 0 : i32
    return %arg0, %arg1, %arg2 : i32, i32, i32
  }
  func.func @transform_1(%arg0: i32, %arg1: i32, %arg2: i32) -> (i32, i32, i32) {
    %c0_i32 = arith.constant 0 : i32
    %c0_i32_0 = arith.constant 0 : i32
    return %arg0, %arg2, %c0_i32 : i32, i32, i32
  }
  func.func @transform_2(%arg0: i32, %arg1: i32, %arg2: i32) -> (i32, i32, i32) {
    %c0_i32 = arith.constant 0 : i32
    %c0_i32_0 = arith.constant 0 : i32
    return %arg0, %arg1, %c0_i32 : i32, i32, i32
  }
}

</mosaic_0001>

<bundles_post_ra>
// kernel: squeeze.9
= control target key start
LH: loop header
LB: loop body
LE: loop exit
PB: predicated region body
PF: predicated region fallthrough
CT: control target
= control target key end

     0   :  { %s293_s0 = inlined_call_operand.vmem [shape: f32[1,2,2048], index: 0, kind: input, shape index: {}]   ;;  %s294_s1 = inlined_call_operand.vmem [shape: f32[32,128], index: 1, kind: output, shape index: {}]  }
   0x1   :  { %v157_v0 = vld [vmem:[%s293_s0 + $0x1e] sm:$0x3]  ;;  %v158_v1 = vld [vmem:[%s293_s0 + $0x1c] sm:$0x3]  ;;  %v159_v2 = vld [vmem:[%s293_s0 + $0x1a] sm:$0x3] }
   0x2   :  { %9 = vst [vmem:[#allocation0 + $0x48] sm:$0x3] %v157_v0  ;;  %14 = vst [vmem:[#allocation0 + $0x78] sm:$0x3] %v158_v1  ;;  %v160_v3 = vld [vmem:[%s293_s0 + $0x18] sm:$0x3] }
   0x3   :  { %19 = vst [vmem:[#allocation0 + $0x20] sm:$0x3] %v159_v2  ;;  %v161_v4 = vld [vmem:[%s293_s0 + $0x16] sm:$0x3]  ;;  %v162_v5 = vld [vmem:[%s293_s0 + $0x14] sm:$0x3] }
   0x4   :  { %24 = vst [vmem:[#allocation0 + $0x60] sm:$0x3] %v160_v3  ;;  %29 = vst [vmem:[#allocation0 + $0x28] sm:$0x3] %v161_v4  ;;  %v163_v6 = vld [vmem:[%s293_s0 + $0x12] sm:$0x3] }
   0x5   :  { %34 = vst [vmem:[#allocation0 + $0x10] sm:$0x3] %v162_v5  ;;  %v164_v7 = vld [vmem:[%s293_s0 + $0x10] sm:$0x3]  ;;  %v165_v8 = vld [vmem:[%s293_s0 + $0xe] sm:$0x3] }
   0x6   :  { %39 = vst [vmem:[#allocation0 + $0x70] sm:$0x3] %v163_v6  ;;  %44 = vst [vmem:[#allocation0 + $0x30] sm:$0x3] %v164_v7  ;;  %v166_v9 = vld [vmem:[%s293_s0 + $0xc] sm:$0x3] }
   0x7   :  { %49 = vst [vmem:[#allocation0 + $0x38] sm:$0x3] %v165_v8  ;;  %v167_v10 = vld [vmem:[%s293_s0 + $0xa] sm:$0x3]  ;;  %v168_v11 = vld [vmem:[%s293_s0 + $0x8] sm:$0x3] }
   0x8   :  { %54 = vst [vmem:[#allocation0 + $0x58] sm:$0x3] %v166_v9  ;;  %59 = vst [vmem:[#allocation0 + $0x68] sm:$0x3] %v167_v10  ;;  %v169_v12 = vld [vmem:[%s293_s0 + $0x6] sm:$0x3] }
   0x9   :  { %64 = vst [vmem:[#allocation0 + $0x40] sm:$0x3] %v168_v11  ;;  %v170_v13 = vld [vmem:[%s293_s0 + $0x4] sm:$0x3]  ;;  %v171_v14 = vld [vmem:[%s293_s0 + $0x2] sm:$0x3] }
   0xa   :  { %69 = vst [vmem:[#allocation0 + $0x18] sm:$0x3] %v169_v12  ;;  %74 = vst [vmem:[#allocation0 + $0x8] sm:$0x3] %v170_v13  ;;  %v79_v15 = vld [vmem:[%s293_s0] sm:$0x3] }
   0xb   :  { %78 = vst [vmem:[#allocation0] sm:$0x3] %v171_v14  ;;  %80 = vst [vmem:[#allocation0 + $0x50] sm:$0x3] %v79_v15  ;;  %v132_v16 = vld [vmem:[#allocation0 + $0x20] sm:$0x3]  }
   0xc   :  { %v136_v17 = vld [vmem:[#allocation0 + $0x78] sm:$0x3]   ;;  %v140_v18 = vld [vmem:[#allocation0 + $0x48] sm:$0x3]   ;;  %v120_v19 = vld [vmem:[#allocation0 + $0x10] sm:$0x3]  }
   0xd   :  { %v124_v20 = vld [vmem:[#allocation0 + $0x28] sm:$0x3]   ;;  %v128_v21 = vld [vmem:[#allocation0 + $0x60] sm:$0x3]   ;;  %v112_v23 = vld [vmem:[#allocation0 + $0x30] sm:$0x3]  }
   0xe   :  { %184 = vst [vmem:[%s294_s1 + $0xd] ss:$16 sm:$0x3] %v132_v16   ;;  %185 = vst [vmem:[%s294_s1 + $0xe] ss:$16 sm:$0x3] %v136_v17  }
   0xf   :  { %186 = vst [vmem:[%s294_s1 + $0xf] ss:$16 sm:$0x3] %v140_v18   ;;  %v108_v22 = vld [vmem:[#allocation0 + $0x38] sm:$0x3]  }
  0x10   :  { %v116_v24 = vld [vmem:[#allocation0 + $0x70] sm:$0x3]   ;;  %181 = vst [vmem:[%s294_s1 + $0xa] ss:$16 sm:$0x3] %v120_v19  }
  0x11   :  { %182 = vst [vmem:[%s294_s1 + $0xb] ss:$16 sm:$0x3] %v124_v20   ;;  %183 = vst [vmem:[%s294_s1 + $0xc] ss:$16 sm:$0x3] %v128_v21  }
  0x12   :  { %v96_v25 = vld [vmem:[#allocation0 + $0x40] sm:$0x3]   ;;  %v100_v26 = vld [vmem:[#allocation0 + $0x68] sm:$0x3]   ;;  %v104_v27 = vld [vmem:[#allocation0 + $0x58] sm:$0x3]  }
  0x13   :  { %178 = vst [vmem:[%s294_s1 + $0x7] ss:$16 sm:$0x3] %v108_v22   ;;  %179 = vst [vmem:[%s294_s1 + $0x8] ss:$16 sm:$0x3] %v112_v23  }
  0x14   :  { %180 = vst [vmem:[%s294_s1 + $0x9] ss:$16 sm:$0x3] %v116_v24   ;;  %v84_v28 = vld [vmem:[#allocation0] sm:$0x3]  }
  0x15   :  { %v88_v29 = vld [vmem:[#allocation0 + $0x8] sm:$0x3]   ;;  %v92_v30 = vld [vmem:[#allocation0 + $0x18] sm:$0x3]   ;;  %v81_v31 = vld [vmem:[#allocation0 + $0x50] sm:$0x3]  }
  0x16   :  { %175 = vst [vmem:[%s294_s1 + $0x4] ss:$16 sm:$0x3] %v96_v25   ;;  %176 = vst [vmem:[%s294_s1 + $0x5] ss:$16 sm:$0x3] %v100_v26  }
  0x17   :  { %177 = vst [vmem:[%s294_s1 + $0x6] ss:$16 sm:$0x3] %v104_v27   ;;  %172 = vst [vmem:[%s294_s1 + $0x1] ss:$16 sm:$0x3] %v84_v28  }
  0x18   :  { %173 = vst [vmem:[%s294_s1 + $0x2] ss:$16 sm:$0x3] %v88_v29   ;;  %174 = vst [vmem:[%s294_s1 + $0x3] ss:$16 sm:$0x3] %v92_v30  }
  0x19   :  { %82 = vst [vmem:[%s294_s1] ss:$16 sm:$0x3] %v81_v31  }

// kernel: netG_forward.14
= control target key start
LH: loop header
LB: loop body
LE: loop exit
PB: predicated region body
PF: predicated region fallthrough
CT: control target
= control target key end

     0   :  { %v49_v0 = vmov 0.0   ;;  %vm40_vm0 = vcmask 1040384   ;;  %s81_s1 = inlined_call_operand.vmem [shape: f32[2,128], index: 1, kind: output, shape index: {}]   ;;  %s82_s0 = inlined_call_operand.vmem [shape: f32[32,128], index: 0, kind: input, shape index: {}]  }
   0x1   :  { %12 = vst [vmem:[%s81_s1] sm:$0x3] %v49_v0  ;;  %v13_v1 = vld [vmem:[%s82_s0] sm:$0xff]  ;;  %v14_v2 = vld [vmem:[%s82_s0 + $0x8] sm:$0xff]  ;;  %v15_v3 = vld [vmem:[%s82_s0 + $0x10] sm:$0xff] }
   0x2   :  { %v16_v4 = vld [vmem:[%s82_s0 + $0x18] sm:$0xff]  ;;  %v18_v5 = vadd.f32 %v14_v2, %v13_v1  ;;  %v27_v6 = vmul.f32 %v13_v1, %v13_v1  ;;  %v28_v7 = vmul.f32 %v14_v2, %v14_v2  ;;  %v29_v8 = vmul.f32 %v15_v3, %v15_v3 }
   0x3   :  { %v30_v10 = vmul.f32 %v16_v4, %v16_v4 }
   0x4   :  { %v19_v9 = vadd.f32 %v18_v5, %v15_v3  ;;  %v31_v11 = vadd.f32 %v28_v7, %v27_v6 }
   0x6   :  { %v20_v12 = vadd.f32 %v19_v9, %v16_v4  ;;  %v32_v13 = vadd.f32 %v31_v11, %v29_v8 }
   0x8   :  { %v21_v14 = vrot.slane %v20_v12, 4  ;;  %v33_v15 = vadd.f32 %v32_v13, %v30_v10  ;;  %v17_v26 = vld [vmem:[%s81_s1] sm:$0x3] }
   0xa   :  { %v22_v16 = vadd.f32 %v21_v14, %v20_v12  ;;  %v34_v17 = vrot.slane %v33_v15, 4 }
   0xc   :  { %v23_v18 = vrot.slane %v22_v16, 2  ;;  %v35_v19 = vadd.f32 %v34_v17, %v33_v15 }
   0xe   :  { %v24_v20 = vadd.f32 %v23_v18, %v22_v16  ;;  %v36_v21 = vrot.slane %v35_v19, 2 }
  0x10   :  { %v25_v22 = vrot.slane %v24_v20, 1  ;;  %v37_v23 = vadd.f32 %v36_v21, %v35_v19 }
  0x12   :  { %v26_v24 = vadd.f32 %v25_v22, %v24_v20  ;;  %v38_v25 = vrot.slane %v37_v23, 1 }
  0x14   :  { %v39_v27 = vadd.f32 %v38_v25, %v37_v23 }
  0x16   :  { %v41_v28 = vsel %vm40_vm0, %v26_v24, %v39_v27 }
  0x17   :  { %v42_v29 = vadd.f32 %v41_v28, %v17_v26 }
  0x19   :  { %43 = vst [vmem:[%s81_s1] sm:$0x3] %v42_v29 }

// kernel: netG_forward.15
= control target key start
LH: loop header
LB: loop body
LE: loop exit
PB: predicated region body
PF: predicated region fallthrough
CT: control target
= control target key end

     0   :  { %s133_s0 = inlined_call_operand.vmem [shape: f32[32,128], index: 0, kind: input, shape index: {}]   ;;  %s134_s1 = inlined_call_operand.vmem [shape: f32[1,128], index: 1, kind: input, shape index: {}]   ;;  %s135_s2 = inlined_call_operand.vmem [shape: f32[1,128], index: 2, kind: input, shape index: {}]   ;;  %s136_s3 = inlined_call_operand.vmem [shape: bf16[32,128], index: 3, kind: output, shape index: {}]  }
   0x1   :  { %v14_v0 = vld [vmem:[%s133_s0] sm:$0xff]  ;;  %v15_v1 = vld [vmem:[%s133_s0 + $0x8] sm:$0xff]  ;;  %v16_v6 = vld [vmem:[%s133_s0 + $0x10] sm:$0xff] }
   0x2   :  { %v68_v2 = vld [vmem:[%s134_s1] ss:$0 sm:$0xff]  ;;  %v17_v7 = vld [vmem:[%s133_s0 + $0x18] sm:$0xff] }
   0x3   :  { %v25_v3 = vmul.f32 %v68_v2, %v14_v0  ;;  %v26_v4 = vmul.f32 %v68_v2, %v15_v1  ;;  %v69_v5 = vld [vmem:[%s135_s2] ss:$0 sm:$0xff]  ;;  %v27_v8 = vmul.f32 %v68_v2, %v16_v6  ;;  %v28_v9 = vmul.f32 %v68_v2, %v17_v7 }
   0x5   :  { %v36_v10 = vadd.f32 %v69_v5, %v25_v3  ;;  %v37_v11 = vadd.f32 %v69_v5, %v26_v4  ;;  %v38_v12 = vadd.f32 %v69_v5, %v27_v8  ;;  %v39_v13 = vadd.f32 %v69_v5, %v28_v9 }
   0x7   :  { %v40_v14 = vmax.f32 %v36_v10, 0.0  ;;  %v41_v15 = vmax.f32 %v37_v11, 0.0  ;;  %v42_v16 = vmax.f32 %v38_v12, 0.0  ;;  %v43_v17 = vmax.f32 %v39_v13, 0.0 }
   0x9   :  { %v81_v18 = vpack.c.bf16 %v41_v15, %v40_v14  ;;  %v86_v19 = vpack.c.bf16 %v43_v17, %v42_v16 }
   0xb   :  { %82 = vst [vmem:[%s136_s3] sm:$0xff] %v81_v18   ;;  %88 = vst [vmem:[%s136_s3 + $0x8] sm:$0xff] %v86_v19  }

// kernel: netG_forward.13
= control target key start
LH: loop header
LB: loop body
LE: loop exit
PB: predicated region body
PF: predicated region fallthrough
CT: control target
= control target key end

     0   :  { %7 = vsyncpa [#allocation4], 0  ;;  %s630_s9 = smov [#allocation3]   ;;  %s684_s0 = inlined_call_operand.vmem [shape: bf16[1,2,16], index: 0, kind: input, shape index: {}]   ;;  %s685_s1 = inlined_call_operand.hbm [shape: bf16[1,16,2048], index: 1, kind: input, shape index: {}]   ;;  %s686_s2 = inlined_call_operand.vmem [shape: f32[1,2,2048], index: 2, kind: output, shape index: {}]  }
   0x1   :  { %s15_s10 = sshll.u32 %s630_s9, 4  ;;  %s16_s10 = int_to_ptr.vmem [resolvable:$true] %s15_s10 }
   0x2   :  { %s616_s11 = scalar_lea.vmem %s16_s10, 2048  ;;  %p621_p1 = scmp.lt.s32.totalorder %s16_s10, %s16_s10 }
   0x3   :  { %p617_p0 = scmp.ne.s32.totalorder %s16_s10, %s616_s11  ;;  %p622_p2 = scmp.lt.s32.totalorder %s616_s11, %s616_s11 }
   0x5   :  { %p623_p3 = por %p622_p2, %p621_p1 }
   0x7   :  { %p624_p4 = pnand %p623_p3, %p617_p0 }
   0x9   :  { %627 = shalt.err (!%p624_p4)
}
   0xa   :  { %s631_s12 = smov 1024   ;;  %s632_s13 = smov 64  }
   0xb   :  { %21 = dma.hbm_to_vmem [thread:$0]  %s685_s1, 2048, %s16_s10, [#allocation4], %s631_s12, %s631_s12, %s632_s13  }
   0xc   :  { %628 = dma.done.wait [#allocation4], 2048  }
   0xd   :  { %629 = vsyncadd [#allocation4], 4294965248  ;;  %v633_v0 = vmov 0   ;;  %v39_v1 = vld [vmem:[#allocation3] sm:$0xff]  ;;  %v40_v3 = vld [vmem:[#allocation3 + $0x8] sm:$0xff]  ;;  %vm135_vm0 = vcmask 130048   ;;  %v488_v36 = vlaneseq }
   0xe   :  { %171 = vmatprep.mubr.bf16.mxu0 %v633_v0  ;;  %212 = vmatprep.mubr.bf16.mxu1 %v633_v0  ;;  %v47_v2 = vld [vmem:[#allocation3 + $0x40] sm:$0xff]  ;;  %v48_v5 = vld [vmem:[#allocation3 + $0x48] sm:$0xff]  ;;  %v41_v7 = vld [vmem:[#allocation3 + $0x10] sm:$0xff]  ;;  %v634_v34 = vmov 1983009808  }
   0xf   :  { %v580_v4 = vcombine.high %v39_v1, %v47_v2  ;;  %v579_v6 = vcombine.low %v39_v1, %v47_v2  ;;  %v582_v8 = vcombine.high %v40_v3, %v48_v5  ;;  %v581_v9 = vcombine.low %v40_v3, %v48_v5  ;;  %v49_v10 = vld [vmem:[#allocation3 + $0x50] sm:$0xff]  ;;  %v42_v11 = vld [vmem:[#allocation3 + $0x18] sm:$0xff]  ;;  %v43_v15 = vld [vmem:[#allocation3 + $0x20] sm:$0xff] }
  0x10   :  { %v50_v12 = vld [vmem:[#allocation3 + $0x58] sm:$0xff]  ;;  %v584_v13 = vcombine.high %v41_v7, %v49_v10  ;;  %v51_v16 = vld [vmem:[#allocation3 + $0x60] sm:$0xff]  ;;  %v583_v18 = vcombine.low %v41_v7, %v49_v10  ;;  %v44_v19 = vld [vmem:[#allocation3 + $0x28] sm:$0xff]  ;;  %v486_v35 = vunpack.c.l.s4 %v634_v34  ;;  %v489_v38 = vshrl.u32 %v488_v36, 7 }
  0x11   :  { %153 = vmatprep.subr.bf16.mxu0 %v580_v4  ;;  %v586_v14 = vcombine.high %v42_v11, %v50_v12  ;;  %194 = vmatprep.subr.bf16.mxu1 %v582_v8  ;;  %v38_v17 = vld [vmem:[%s684_s0] sm:$0x1]  ;;  %v52_v20 = vld [vmem:[#allocation3 + $0x68] sm:$0xff]  ;;  %v585_v21 = vcombine.low %v42_v11, %v50_v12  ;;  %v588_v22 = vcombine.high %v43_v15, %v51_v16  ;;  %v45_v24 = vld [vmem:[#allocation3 + $0x30] sm:$0xff] }
  0x12   :  { %154 = vmatpush1.bf16.msra.mxu0 %v579_v6  ;;  %195 = vmatpush1.bf16.msra.mxu1 %v581_v9  ;;  %v590_v23 = vcombine.high %v44_v19, %v52_v20  ;;  %v53_v25 = vld [vmem:[#allocation3 + $0x70] sm:$0xff]  ;;  %v587_v26 = vcombine.low %v43_v15, %v51_v16  ;;  %v46_v27 = vld [vmem:[#allocation3 + $0x38] sm:$0xff]  ;;  %v589_v29 = vcombine.low %v44_v19, %v52_v20  ;;  %v487_v37 = vunpack.c.0.s8 %v486_v35 }
  0x13   :  { %235 = vmatprep.subr.bf16.mxu0 %v584_v13  ;;  %276 = vmatprep.subr.bf16.mxu1 %v586_v14  ;;  %v54_v28 = vld [vmem:[#allocation3 + $0x78] sm:$0xff]  ;;  %v592_v30 = vcombine.high %v45_v24, %v53_v25  ;;  %v591_v32 = vcombine.low %v45_v24, %v53_v25 }
  0x14   :  { %v594_v31 = vcombine.high %v46_v27, %v54_v28  ;;  %v593_v33 = vcombine.low %v46_v27, %v54_v28  ;;  %v490_v41 = vsub.s32 %v487_v37, %v489_v38 }
  0x15   :  { %595 = vmatmul.mubr.msk.bf16.vlgmr.msra.gmra.mxu0 %vm135_vm0, %v38_v17  ;;  %596 = vmatmul.mubr.msk.bf16.vlgmr.msra.gmra.mxu1 %vm135_vm0, %v38_v17 }
  0x16   :  { %236 = vmatpush1.bf16.msra.mxu0 %v583_v18  ;;  %277 = vmatpush1.bf16.msra.mxu1 %v585_v21 }
  0x17   :  { %253 = vmatprep.mubr.bf16.mxu0 %v633_v0  ;;  %294 = vmatprep.mubr.bf16.mxu1 %v633_v0 }
  0x18   :  { %317 = vmatprep.subr.bf16.mxu0 %v588_v22  ;;  %358 = vmatprep.subr.bf16.mxu1 %v590_v23 }
  0x1d   :  { %597 = vmatmul.mubr.msk.bf16.vlgmr.msra.gmra.mxu0 %vm135_vm0, %v38_v17  ;;  %598 = vmatmul.mubr.msk.bf16.vlgmr.msra.gmra.mxu1 %vm135_vm0, %v38_v17 }
  0x1e   :  { %318 = vmatpush1.bf16.msra.mxu0 %v587_v26  ;;  %359 = vmatpush1.bf16.msra.mxu1 %v589_v29 }
  0x1f   :  { %335 = vmatprep.mubr.bf16.mxu0 %v633_v0  ;;  %376 = vmatprep.mubr.bf16.mxu1 %v633_v0 }
  0x20   :  { %399 = vmatprep.subr.bf16.mxu0 %v592_v30  ;;  %440 = vmatprep.subr.bf16.mxu1 %v594_v31 }
  0x25   :  { %599 = vmatmul.mubr.msk.bf16.vlgmr.msra.gmra.mxu0 %vm135_vm0, %v38_v17  ;;  %600 = vmatmul.mubr.msk.bf16.vlgmr.msra.gmra.mxu1 %vm135_vm0, %v38_v17 }
  0x26   :  { %400 = vmatpush1.bf16.msra.mxu0 %v591_v32  ;;  %441 = vmatpush1.bf16.msra.mxu1 %v593_v33 }
  0x27   :  { %417 = vmatprep.mubr.bf16.mxu0 %v633_v0  ;;  %458 = vmatprep.mubr.bf16.mxu1 %v633_v0 }
  0x2d   :  { %601 = vmatmul.mubr.msk.bf16.vlgmr.msra.gmra.mxu0 %vm135_vm0, %v38_v17  ;;  %602 = vmatmul.mubr.msk.bf16.vlgmr.msra.gmra.mxu1 %vm135_vm0, %v38_v17 }
  0xd5   :  { %v173_v39 = vpop.f32.mrf.mxu0  ;;  %v214_v40 = vpop.f32.mrf.mxu1 }
  0xd7   :  { %v175_v42 = vpop.f32.mrf.mxu0  ;;  %v216_v44 = vpop.f32.mrf.mxu1 }
  0xd8   :  { %v483_v43 = vcombine.low %v173_v39, %v175_v42  ;;  %v484_v45 = vcombine.low %v214_v40, %v216_v44 }
  0xd9   :  { %v177_v46 = vpop.f32.mrf.mxu0  ;;  %v218_v48 = vpop.f32.mrf.mxu1 }
  0xda   :  { %v491_v47 = vrot.slane %v483_v43, %v490_v41  ;;  %v498_v49 = vrot.slane %v484_v45, %v490_v41 }
  0xdb   :  { %v178_v50 = vpop.f32.mrf.mxu0  ;;  %v219_v51 = vpop.f32.mrf.mxu1 }
  0xdc   :  { %v499_v52 = vcombine.low %v491_v47, %v498_v49 }
  0xdd   :  { %v255_v53 = vpop.f32.mrf.mxu0  ;;  %v296_v54 = vpop.f32.mrf.mxu1 }
  0xde   :  { %570 = vst [vmem:[%s686_s2] sm:$0xff] %v499_v52 }
  0xdf   :  { %v257_v55 = vpop.f32.mrf.mxu0  ;;  %v298_v57 = vpop.f32.mrf.mxu1 }
  0xe0   :  { %v500_v56 = vcombine.low %v255_v53, %v257_v55  ;;  %v501_v58 = vcombine.low %v296_v54, %v298_v57 }
  0xe1   :  { %v259_v59 = vpop.f32.mrf.mxu0  ;;  %v300_v61 = vpop.f32.mrf.mxu1 }
  0xe2   :  { %v508_v60 = vrot.slane %v500_v56, %v490_v41  ;;  %v515_v62 = vrot.slane %v501_v58, %v490_v41 }
  0xe3   :  { %v260_v63 = vpop.f32.mrf.mxu0  ;;  %v301_v0 = vpop.f32.mrf.mxu1 }
  0xe4   :  { %v516_v1 = vcombine.low %v508_v60, %v515_v62 }
  0xe5   :  { %v337_v2 = vpop.f32.mrf.mxu0  ;;  %v378_v3 = vpop.f32.mrf.mxu1 }
  0xe6   :  { %571 = vst [vmem:[%s686_s2 + $0x8] sm:$0xff] %v516_v1 }
  0xe7   :  { %v339_v4 = vpop.f32.mrf.mxu0  ;;  %v380_v6 = vpop.f32.mrf.mxu1 }
  0xe8   :  { %v517_v5 = vcombine.low %v337_v2, %v339_v4  ;;  %v518_v7 = vcombine.low %v378_v3, %v380_v6 }
  0xe9   :  { %v341_v8 = vpop.f32.mrf.mxu0  ;;  %v382_v10 = vpop.f32.mrf.mxu1 }
  0xea   :  { %v525_v9 = vrot.slane %v517_v5, %v490_v41  ;;  %v532_v11 = vrot.slane %v518_v7, %v490_v41 }
  0xeb   :  { %v342_v12 = vpop.f32.mrf.mxu0  ;;  %v383_v13 = vpop.f32.mrf.mxu1 }
  0xec   :  { %v533_v14 = vcombine.low %v525_v9, %v532_v11 }
  0xed   :  { %v419_v15 = vpop.f32.mrf.mxu0  ;;  %v460_v16 = vpop.f32.mrf.mxu1 }
  0xee   :  { %572 = vst [vmem:[%s686_s2 + $0x10] sm:$0xff] %v533_v14 }
  0xef   :  { %v421_v17 = vpop.f32.mrf.mxu0  ;;  %v462_v19 = vpop.f32.mrf.mxu1 }
  0xf0   :  { %v534_v18 = vcombine.low %v419_v15, %v421_v17  ;;  %v535_v20 = vcombine.low %v460_v16, %v462_v19 }
  0xf1   :  { %v423_v21 = vpop.f32.mrf.mxu0  ;;  %v464_v23 = vpop.f32.mrf.mxu1 }
  0xf2   :  { %v542_v22 = vrot.slane %v534_v18, %v490_v41  ;;  %v549_v24 = vrot.slane %v535_v20, %v490_v41 }
  0xf3   :  { %v424_v25 = vpop.f32.mrf.mxu0  ;;  %v465_v26 = vpop.f32.mrf.mxu1 }
  0xf4   :  { %v550_v27 = vcombine.low %v542_v22, %v549_v24 }
  0xf6   :  { %573 = vst [vmem:[%s686_s2 + $0x18] sm:$0xff] %v550_v27 }
  0xf7   :  { %578 = vsyncpa [#allocation4], 1 }

// kernel: netG_forward.17
= control target key start
LH: loop header
LB: loop body
LE: loop exit
PB: predicated region body
PF: predicated region fallthrough
CT: control target
= control target key end

     0   :  { %v97_v0 = vmov 0.0   ;;  %vm88_vm0 = vcmask 1040384   ;;  %s165_s1 = inlined_call_operand.vmem [shape: f32[2,128], index: 1, kind: output, shape index: {}]   ;;  %s166_s0 = inlined_call_operand.vmem [shape: f32[128,128], index: 0, kind: input, shape index: {}]  }
   0x1   :  { %12 = vst [vmem:[%s165_s1] sm:$0x3] %v97_v0  ;;  %v13_v1 = vld [vmem:[%s166_s0] sm:$0xff]  ;;  %v14_v2 = vld [vmem:[%s166_s0 + $0x8] sm:$0xff]  ;;  %v15_v3 = vld [vmem:[%s166_s0 + $0x10] sm:$0xff] }
   0x2   :  { %v16_v4 = vld [vmem:[%s166_s0 + $0x18] sm:$0xff]  ;;  %v30_v5 = vadd.f32 %v14_v2, %v13_v1  ;;  %v51_v6 = vmul.f32 %v13_v1, %v13_v1  ;;  %v52_v7 = vmul.f32 %v14_v2, %v14_v2  ;;  %v53_v8 = vmul.f32 %v15_v3, %v15_v3  ;;  %v17_v9 = vld [vmem:[%s166_s0 + $0x20] sm:$0xff]  ;;  %v18_v13 = vld [vmem:[%s166_s0 + $0x28] sm:$0xff] }
   0x3   :  { %v54_v11 = vmul.f32 %v16_v4, %v16_v4  ;;  %v55_v15 = vmul.f32 %v17_v9, %v17_v9  ;;  %v19_v17 = vld [vmem:[%s166_s0 + $0x30] sm:$0xff]  ;;  %v56_v19 = vmul.f32 %v18_v13, %v18_v13  ;;  %v20_v21 = vld [vmem:[%s166_s0 + $0x38] sm:$0xff]  ;;  %v21_v25 = vld [vmem:[%s166_s0 + $0x40] sm:$0xff] }
   0x4   :  { %v31_v10 = vadd.f32 %v30_v5, %v15_v3  ;;  %v67_v12 = vadd.f32 %v52_v7, %v51_v6  ;;  %v57_v23 = vmul.f32 %v19_v17, %v19_v17  ;;  %v58_v27 = vmul.f32 %v20_v21, %v20_v21  ;;  %v22_v29 = vld [vmem:[%s166_s0 + $0x48] sm:$0xff]  ;;  %v23_v33 = vld [vmem:[%s166_s0 + $0x50] sm:$0xff]  ;;  %v24_v37 = vld [vmem:[%s166_s0 + $0x58] sm:$0xff] }
   0x5   :  { %v59_v31 = vmul.f32 %v21_v25, %v21_v25  ;;  %v60_v35 = vmul.f32 %v22_v29, %v22_v29  ;;  %v61_v39 = vmul.f32 %v23_v33, %v23_v33  ;;  %v25_v41 = vld [vmem:[%s166_s0 + $0x60] sm:$0xff]  ;;  %v62_v43 = vmul.f32 %v24_v37, %v24_v37  ;;  %v26_v45 = vld [vmem:[%s166_s0 + $0x68] sm:$0xff]  ;;  %v27_v49 = vld [vmem:[%s166_s0 + $0x70] sm:$0xff] }
   0x6   :  { %v32_v14 = vadd.f32 %v31_v10, %v16_v4  ;;  %v68_v16 = vadd.f32 %v67_v12, %v53_v8  ;;  %v63_v47 = vmul.f32 %v25_v41, %v25_v41  ;;  %v64_v51 = vmul.f32 %v26_v45, %v26_v45  ;;  %v28_v53 = vld [vmem:[%s166_s0 + $0x78] sm:$0xff] }
   0x7   :  { %v65_v55 = vmul.f32 %v27_v49, %v27_v49  ;;  %v66_v58 = vmul.f32 %v28_v53, %v28_v53 }
   0x8   :  { %v33_v18 = vadd.f32 %v32_v14, %v17_v9  ;;  %v69_v20 = vadd.f32 %v68_v16, %v54_v11  ;;  %v29_v10 = vld [vmem:[%s165_s1] sm:$0x3] }
   0xa   :  { %v34_v22 = vadd.f32 %v33_v18, %v18_v13  ;;  %v70_v24 = vadd.f32 %v69_v20, %v55_v15 }
   0xc   :  { %v35_v26 = vadd.f32 %v34_v22, %v19_v17  ;;  %v71_v28 = vadd.f32 %v70_v24, %v56_v19 }
   0xe   :  { %v36_v30 = vadd.f32 %v35_v26, %v20_v21  ;;  %v72_v32 = vadd.f32 %v71_v28, %v57_v23 }
  0x10   :  { %v37_v34 = vadd.f32 %v36_v30, %v21_v25  ;;  %v73_v36 = vadd.f32 %v72_v32, %v58_v27 }
  0x12   :  { %v38_v38 = vadd.f32 %v37_v34, %v22_v29  ;;  %v74_v40 = vadd.f32 %v73_v36, %v59_v31 }
  0x14   :  { %v39_v42 = vadd.f32 %v38_v38, %v23_v33  ;;  %v75_v44 = vadd.f32 %v74_v40, %v60_v35 }
  0x16   :  { %v40_v46 = vadd.f32 %v39_v42, %v24_v37  ;;  %v76_v48 = vadd.f32 %v75_v44, %v61_v39 }
  0x18   :  { %v41_v50 = vadd.f32 %v40_v46, %v25_v41  ;;  %v77_v52 = vadd.f32 %v76_v48, %v62_v43 }
  0x1a   :  { %v42_v54 = vadd.f32 %v41_v50, %v26_v45  ;;  %v78_v56 = vadd.f32 %v77_v52, %v63_v47 }
  0x1c   :  { %v43_v57 = vadd.f32 %v42_v54, %v27_v49  ;;  %v79_v59 = vadd.f32 %v78_v56, %v64_v51 }
  0x1e   :  { %v44_v60 = vadd.f32 %v43_v57, %v28_v53  ;;  %v80_v61 = vadd.f32 %v79_v59, %v65_v55 }
  0x20   :  { %v45_v62 = vrot.slane %v44_v60, 4  ;;  %v81_v63 = vadd.f32 %v80_v61, %v66_v58 }
  0x22   :  { %v46_v0 = vadd.f32 %v45_v62, %v44_v60  ;;  %v82_v1 = vrot.slane %v81_v63, 4 }
  0x24   :  { %v47_v2 = vrot.slane %v46_v0, 2  ;;  %v83_v3 = vadd.f32 %v82_v1, %v81_v63 }
  0x26   :  { %v48_v4 = vadd.f32 %v47_v2, %v46_v0  ;;  %v84_v5 = vrot.slane %v83_v3, 2 }
  0x28   :  { %v49_v6 = vrot.slane %v48_v4, 1  ;;  %v85_v7 = vadd.f32 %v84_v5, %v83_v3 }
  0x2a   :  { %v50_v8 = vadd.f32 %v49_v6, %v48_v4  ;;  %v86_v9 = vrot.slane %v85_v7, 1 }
  0x2c   :  { %v87_v11 = vadd.f32 %v86_v9, %v85_v7 }
  0x2e   :  { %v89_v12 = vsel %vm88_vm0, %v50_v8, %v87_v11 }
  0x2f   :  { %v90_v13 = vadd.f32 %v89_v12, %v29_v10 }
  0x31   :  { %91 = vst [vmem:[%s165_s1] sm:$0x3] %v90_v13 }

// kernel: netG_forward.18
= control target key start
LH: loop header
LB: loop body
LE: loop exit
PB: predicated region body
PF: predicated region fallthrough
CT: control target
= control target key end

     0   :  { %s391_s0 = inlined_call_operand.vmem [shape: f32[128,128], index: 0, kind: input, shape index: {}]   ;;  %s392_s1 = inlined_call_operand.vmem [shape: f32[1,128], index: 1, kind: input, shape index: {}]   ;;  %s393_s2 = inlined_call_operand.vmem [shape: f32[1,128], index: 2, kind: input, shape index: {}]   ;;  %s394_s3 = inlined_call_operand.vmem [shape: bf16[128,128], index: 3, kind: output, shape index: {}]  }
   0x1   :  { %v14_v0 = vld [vmem:[%s391_s0] sm:$0xff]  ;;  %v15_v1 = vld [vmem:[%s391_s0 + $0x8] sm:$0xff]  ;;  %v16_v6 = vld [vmem:[%s391_s0 + $0x10] sm:$0xff] }
   0x2   :  { %v286_v2 = vld [vmem:[%s392_s1] ss:$0 sm:$0xff]  ;;  %v17_v7 = vld [vmem:[%s391_s0 + $0x18] sm:$0xff]  ;;  %v19_v11 = vld [vmem:[%s391_s0 + $0x28] sm:$0xff] }
   0x3   :  { %v37_v3 = vmul.f32 %v286_v2, %v14_v0  ;;  %v38_v4 = vmul.f32 %v286_v2, %v15_v1  ;;  %v293_v5 = vld [vmem:[%s393_s2] ss:$0 sm:$0xff]  ;;  %v39_v8 = vmul.f32 %v286_v2, %v16_v6  ;;  %v40_v9 = vmul.f32 %v286_v2, %v17_v7  ;;  %v20_v12 = vld [vmem:[%s391_s0 + $0x30] sm:$0xff]  ;;  %v21_v17 = vld [vmem:[%s391_s0 + $0x38] sm:$0xff] }
   0x4   :  { %v18_v10 = vld [vmem:[%s391_s0 + $0x20] sm:$0xff]  ;;  %v42_v16 = vmul.f32 %v286_v2, %v19_v11  ;;  %v43_v20 = vmul.f32 %v286_v2, %v20_v12  ;;  %v44_v21 = vmul.f32 %v286_v2, %v21_v17  ;;  %v23_v27 = vld [vmem:[%s391_s0 + $0x48] sm:$0xff]  ;;  %v24_v32 = vld [vmem:[%s391_s0 + $0x50] sm:$0xff] }
   0x5   :  { %v60_v13 = vadd.f32 %v293_v5, %v37_v3  ;;  %v61_v14 = vadd.f32 %v293_v5, %v38_v4  ;;  %v41_v15 = vmul.f32 %v286_v2, %v18_v10  ;;  %v62_v18 = vadd.f32 %v293_v5, %v39_v8  ;;  %v22_v22 = vld [vmem:[%s391_s0 + $0x40] sm:$0xff]  ;;  %v25_v33 = vld [vmem:[%s391_s0 + $0x58] sm:$0xff]  ;;  %v27_v39 = vld [vmem:[%s391_s0 + $0x68] sm:$0xff] }
   0x6   :  { %v63_v19 = vadd.f32 %v293_v5, %v40_v9  ;;  %v65_v26 = vadd.f32 %v293_v5, %v42_v16  ;;  %v66_v30 = vadd.f32 %v293_v5, %v43_v20  ;;  %v67_v31 = vadd.f32 %v293_v5, %v44_v21  ;;  %v26_v38 = vld [vmem:[%s391_s0 + $0x60] sm:$0xff]  ;;  %v28_v44 = vld [vmem:[%s391_s0 + $0x70] sm:$0xff]  ;;  %v29_v49 = vld [vmem:[%s391_s0 + $0x78] sm:$0xff] }
   0x7   :  { %v76_v23 = vmax.f32 %v60_v13, 0.0  ;;  %v77_v24 = vmax.f32 %v61_v14, 0.0  ;;  %v64_v25 = vadd.f32 %v293_v5, %v41_v15  ;;  %v78_v28 = vmax.f32 %v62_v18, 0.0 }
   0x8   :  { %v79_v29 = vmax.f32 %v63_v19, 0.0  ;;  %v81_v36 = vmax.f32 %v65_v26, 0.0  ;;  %v45_v37 = vmul.f32 %v286_v2, %v22_v22  ;;  %v82_v41 = vmax.f32 %v66_v30, 0.0 }
   0x9   :  { %v213_v34 = vpack.c.bf16 %v77_v24, %v76_v23  ;;  %v80_v35 = vmax.f32 %v64_v25, 0.0  ;;  %v83_v42 = vmax.f32 %v67_v31, 0.0  ;;  %v46_v43 = vmul.f32 %v286_v2, %v23_v27 }
   0xa   :  { %v218_v40 = vpack.c.bf16 %v79_v29, %v78_v28  ;;  %v68_v46 = vadd.f32 %v293_v5, %v45_v37  ;;  %v47_v47 = vmul.f32 %v286_v2, %v24_v32  ;;  %v48_v48 = vmul.f32 %v286_v2, %v25_v33 }
   0xb   :  { %214 = vst [vmem:[%s394_s3] sm:$0xff] %v213_v34   ;;  %v223_v45 = vpack.c.bf16 %v81_v36, %v80_v35  ;;  %v228_v50 = vpack.c.bf16 %v83_v42, %v82_v41  ;;  %v69_v51 = vadd.f32 %v293_v5, %v46_v43  ;;  %v49_v52 = vmul.f32 %v286_v2, %v26_v38 }
   0xc   :  { %250 = vst [vmem:[%s394_s3 + $0x8] sm:$0xff] %v218_v40   ;;  %v50_v53 = vmul.f32 %v286_v2, %v27_v39  ;;  %v84_v54 = vmax.f32 %v68_v46, 0.0  ;;  %v70_v55 = vadd.f32 %v293_v5, %v47_v47  ;;  %v71_v56 = vadd.f32 %v293_v5, %v48_v48 }
   0xd   :  { %251 = vst [vmem:[%s394_s3 + $0x10] sm:$0xff] %v223_v45   ;;  %v51_v57 = vmul.f32 %v286_v2, %v28_v44  ;;  %252 = vst [vmem:[%s394_s3 + $0x18] sm:$0xff] %v228_v50   ;;  %v85_v58 = vmax.f32 %v69_v51, 0.0  ;;  %v72_v59 = vadd.f32 %v293_v5, %v49_v52  ;;  %v52_v61 = vmul.f32 %v286_v2, %v29_v49 }
   0xe   :  { %v73_v60 = vadd.f32 %v293_v5, %v50_v53  ;;  %v86_v62 = vmax.f32 %v70_v55, 0.0  ;;  %v87_v63 = vmax.f32 %v71_v56, 0.0 }
   0xf   :  { %v74_v0 = vadd.f32 %v293_v5, %v51_v57  ;;  %v233_v1 = vpack.c.bf16 %v85_v58, %v84_v54  ;;  %v88_v3 = vmax.f32 %v72_v59, 0.0  ;;  %v75_v6 = vadd.f32 %v293_v5, %v52_v61 }
  0x10   :  { %v89_v4 = vmax.f32 %v73_v60, 0.0  ;;  %v238_v7 = vpack.c.bf16 %v87_v63, %v86_v62 }
  0x11   :  { %v90_v8 = vmax.f32 %v74_v0, 0.0  ;;  %253 = vst [vmem:[%s394_s3 + $0x20] sm:$0xff] %v233_v1   ;;  %v91_v10 = vmax.f32 %v75_v6, 0.0 }
  0x12   :  { %v243_v9 = vpack.c.bf16 %v89_v4, %v88_v3  ;;  %254 = vst [vmem:[%s394_s3 + $0x28] sm:$0xff] %v238_v7  }
  0x13   :  { %v248_v2 = vpack.c.bf16 %v91_v10, %v90_v8 }
  0x14   :  { %255 = vst [vmem:[%s394_s3 + $0x30] sm:$0xff] %v243_v9  }
  0x15   :  { %256 = vst [vmem:[%s394_s3 + $0x38] sm:$0xff] %v248_v2  }

// kernel: netG_forward.16
= control target key start
LH: loop header
LB: loop body
LE: loop exit
PB: predicated region body
PF: predicated region fallthrough
CT: control target
= control target key end

     0   :  { %7 = vsyncpa [#allocation4], 0  ;;  %s1260_s0 = inlined_call_operand.vmem [shape: bf16[4,32,512], index: 0, kind: input, shape index: {}]   ;;  %s1261_s1 = inlined_call_operand.hbm [shape: bf16[4,512,128], index: 1, kind: input, shape index: {}]   ;;  %s1262_s2 = inlined_call_operand.vmem [shape: f32[4,32,128], index: 2, kind: output, shape index: {}]  }
   0x1   :  { %9 = vsyncpa [#allocation4 + $0x1], 0  ;;  %s1123_s9 = smov 0   ;;  %s1125_s10 = smov 0  }
   0x2   :  { %s1127_s11 = smov 0   ;;  %s1129_s12 = smov 0  }
   0x3   :  { %s1131_s13 = smov 0   ;;  %s1133_s14 = smov 0  }
   0x4 LB: > { %s810_s15 = sadd.s32 4294967295, %s1103_s14   ;;  %s34_s16 = sadd.s32 1, %s1099_s13  ;;  %s1103_s14 = sphi %s1133_s14, %s15_s14   ;;  %s1099_s13 = sphi %s1131_s13, %s1270_s13   ;;  %s1095_s12 = sphi %s1129_s12, %s1269_s12   ;;  %s1091_s11 = sphi %s1127_s11, %s1268_s11   ;;  %s1087_s10 = sphi %s1125_s10, %s1267_s10   ;;  %s1083_s9 = sphi %s1123_s9, %s1266_s9  }
   0x5   : > { %p36_p0 = scmp.ge.s32.totalorder %s34_s16, 4  ;;  %s73_s17 = sadd.s32 1, %s1091_s11 }
   0x6   : > { %p80_p1 = scmp.ne.s32.totalorder %s1091_s11, %s1087_s10  ;;  %p81_p2 = scmp.eq.s32.totalorder %s1103_s14, 0 }
   0x7   : > { %s1272_s16 = smov (%p36_p0, %s34_s16), 0  ;;  %p86_p4 = scmp.ne.s32.totalorder %s1087_s10, %s1083_s9 }
   0x8   : > { %p1159_p3 = por %p81_p2, %p80_p1  ;;  %s68_s19 = ssub.s32 %s1099_s13, %s1272_s16 }
   0x9   : > { %p87_p5 = scmp.eq.s32.totalorder %s810_s15, 0  ;;  %p71_p6 = scmp.eq.s32.totalorder %s68_s19, 0 }
   0xa   : > { %p930_p8 = scmp.lt.s32.totalorder %s1103_s14, 4  ;;  %s157_s22 = sand.u32 1, %s1091_s11  }
   0xb   : > { %p1166_p7 = por %p87_p5, %p86_p4  ;;  %s865_s23 = sshll.u32 %s1099_s13, 12 }
   0xc   : > { %s1172_s21 = scalar_select %p71_p6, %s1091_s11, %s73_s17  }
   0xd   : > { %s814_s24 = sshll.u32 %s157_s22, 8  ;;  %s169_s27 = scalar_lea.hbm %s1261_s1, %s865_s23 }
   0xe   : > { %s161_s28 = scalar_lea.vmem [#allocation3], %s814_s24  ;;  %p1181_p9 = pnand %p930_p8, %p1159_p3 }
   0xf   : > { %s170_s29 = sshll.u32 %s161_s28, 4  ;;  %s158_s3 = scalar_lea.sflag [#allocation4], %s157_s22  ;;  %s171_s29 = int_to_ptr.vmem [resolvable:$true] %s170_s29 }
  0x10   : > { %p1027_p10 = pneg %p1181_p9  ;;  %s1038_s4 = scalar_lea.vmem %s171_s29, 4096 }
  0x11   : > { %p1039_p11 = scmp.ne.s32.totalorder %s171_s29, %s1038_s4  ;;  %s1105_s5 = smov [#allocation3]  }
  0x12   : > { %s1043_s6 = sshll.u32 %s1105_s5, 4  ;;  %s1044_s6 = int_to_ptr.vmem [resolvable:$false] %s1043_s6 }
  0x13   : > { %p1041_p12 = pnand %p1039_p11, %p1027_p10  ;;  %s1045_s7 = scalar_lea.vmem %s1044_s6, 8192 }
  0x14   : > { %p1046_p0 = scmp.lt.s32.totalorder %s171_s29, %s1044_s6  ;;  %p1047_p1 = scmp.lt.s32.totalorder %s1045_s7, %s1038_s4 }
  0x15   : > { %p1042_p13 = pneg %p1041_p12 }
  0x16   : > { %p1048_p2 = por %p1047_p1, %p1046_p0 }
  0x18   : > { %p1049_p3 = pnand %p1048_p2, %p1042_p13 }
  0x1a   : > { %1052 = shalt.err (!%p1049_p3)
}
  0x1b   : > { %s1106_s8 = smov 64   ;;  %s1107_s9 = smov 4  }
  0x1c   : > { %929 = dma.hbm_to_vmem [thread:$0]  (!%p1181_p9), %s169_s27, 4096, %s171_s29, %s158_s3, %s1106_s8, %s1106_s8, %s1107_s9  }
  0x1d   : > { %p817_p4 = scmp.ge.s32.totalorder %s1103_s14, 1  ;;  %p178_p5 = scmp.lt.s32.totalorder %s1103_s14, 5 }
  0x1f   : > { %p179_p6 = pnand %p817_p4, %p178_p5 }
  0x20   : > { %s184_s15 = sand.u32 (!%p179_p6), 1, %s1087_s10  }
  0x21   : > { %182 = sbr.rel (%p179_p6) target bundleno = 286 (0x11e), region = 28  ;;  %s818_s17 = sshll.u32 (!%p179_p6), %s184_s15, 8 }
  0x22   : > { %s185_s18 = scalar_lea.sflag (!%p179_p6), [#allocation4], %s184_s15  ;;  %s1192_s19 = scalar_lea.vmem (!%p179_p6), [#allocation3], %s818_s17 }
  0x26   : > { %1078 = dma.done.wait (%p1166_p7), %s185_s18, 4096  }
  0x27   : > { %1080 = vsyncadd (%p1166_p7), %s185_s18, 4294963200  ;;  %v981_v0 = vld [vmem:[%s1192_s19 + $0x78] sm:$0xff]   ;;  %v985_v4 = vld [vmem:[%s1192_s19 + $0x70] sm:$0xff]   ;;  %p229_p7 = scmp.lt.s32.totalorder %s1095_s12, 3 }
  0x28   : > { %v982_v1 = vld [vmem:[%s1192_s19 + $0xf8] sm:$0xff]   ;;  %868 = vmatprep.subr.bf16.mxu0 %v981_v0  ;;  %v986_v5 = vld [vmem:[%s1192_s19 + $0xf0] sm:$0xff]   ;;  %v989_v8 = vld [vmem:[%s1192_s19 + $0x68] sm:$0xff]  }
  0x29   : > { %v983_v2 = vld [vmem:[%s1192_s19 + $0x38] sm:$0xff]   ;;  %896 = vmatprep.subr.bf16.mxu1 %v982_v1  ;;  %v987_v6 = vld [vmem:[%s1192_s19 + $0x30] sm:$0xff]   ;;  %v990_v9 = vld [vmem:[%s1192_s19 + $0xe8] sm:$0xff]   ;;  %s1274_s12 = smov (!%p229_p7, %s1095_s12), 3 }
  0x2a   : > { %v984_v3 = vld [vmem:[%s1192_s19 + $0xb8] sm:$0xff]   ;;  %869 = vmatpush3.bf16.msra.mxu0 %v983_v2  ;;  %v988_v7 = vld [vmem:[%s1192_s19 + $0xb0] sm:$0xff]   ;;  %v991_v10 = vld [vmem:[%s1192_s19 + $0x28] sm:$0xff]   ;;  %s866_s20 = sshll.u32 %s1274_s12, 6  ;;  %s867_s25 = sshll.u32 %s1274_s12, 5 }
  0x2b   : > { %897 = vmatpush3.bf16.msra.mxu1 %v984_v3  ;;  %870 = vmatprep.subr.bf16.mxu0 %v985_v4  ;;  %v992_v11 = vld [vmem:[%s1192_s19 + $0xa8] sm:$0xff]   ;;  %v993_v12 = vld [vmem:[%s1192_s19 + $0x60] sm:$0xff]   ;;  %v997_v16 = vld [vmem:[%s1192_s19 + $0x58] sm:$0xff]   ;;  %s240_s24 = scalar_lea.vmem %s1260_s0, %s866_s20  ;;  %s252_s28 = scalar_lea.vmem %s1262_s2, %s867_s25 }
  0x2c   : > { %898 = vmatprep.subr.bf16.mxu1 %v986_v5  ;;  %v994_v13 = vld [vmem:[%s1192_s19 + $0xe0] sm:$0xff]   ;;  %v998_v17 = vld [vmem:[%s1192_s19 + $0xd8] sm:$0xff]   ;;  %v1001_v20 = vld [vmem:[%s1192_s19 + $0x50] sm:$0xff]  }
  0x2d   : > { %v995_v14 = vld [vmem:[%s1192_s19 + $0x20] sm:$0xff]   ;;  %v999_v18 = vld [vmem:[%s1192_s19 + $0x18] sm:$0xff]   ;;  %v1002_v21 = vld [vmem:[%s1192_s19 + $0xd0] sm:$0xff]  }
  0x2e   : > { %871 = vmatpush3.bf16.msra.mxu0 %v987_v6  ;;  %v996_v15 = vld [vmem:[%s1192_s19 + $0xa0] sm:$0xff]   ;;  %v1000_v19 = vld [vmem:[%s1192_s19 + $0x98] sm:$0xff]   ;;  %v1003_v22 = vld [vmem:[%s1192_s19 + $0x10] sm:$0xff]  }
  0x2f   : > { %899 = vmatpush3.bf16.msra.mxu1 %v988_v7  ;;  %872 = vmatprep.subr.bf16.mxu0 %v989_v8  ;;  %v1004_v23 = vld [vmem:[%s1192_s19 + $0x90] sm:$0xff]   ;;  %v1005_v24 = vld [vmem:[%s1192_s19 + $0x48] sm:$0xff]   ;;  %v1009_v28 = vld [vmem:[%s1192_s19 + $0x40] sm:$0xff]  }
  0x30   : > { %900 = vmatprep.subr.bf16.mxu1 %v990_v9  ;;  %v1006_v25 = vld [vmem:[%s1192_s19 + $0xc8] sm:$0xff]   ;;  %v1010_v29 = vld [vmem:[%s1192_s19 + $0xc0] sm:$0xff]  }
  0x31   : > { %v1007_v26 = vld [vmem:[%s1192_s19 + $0x8] sm:$0xff]   ;;  %v1011_v30 = vld [vmem:[%s1192_s19] sm:$0xff]  }
  0x32   : > { %873 = vmatpush3.bf16.msra.mxu0 %v991_v10  ;;  %v1008_v27 = vld [vmem:[%s1192_s19 + $0x88] sm:$0xff]   ;;  %v1012_v31 = vld [vmem:[%s1192_s19 + $0x80] sm:$0xff]  }
  0x33   : > { %901 = vmatpush3.bf16.msra.mxu1 %v992_v11  ;;  %874 = vmatprep.subr.bf16.mxu0 %v993_v12  ;;  %v1013_v32 = vld [vmem:[%s240_s24] ss:$16 sps:$4 sm:$0xff]   ;;  %v1015_v33 = vld [vmem:[%s240_s24 + $0x4] ss:$16 sps:$4 sm:$0xff]   ;;  %v1016_v34 = vld [vmem:[%s240_s24 + $0x8] ss:$16 sps:$4 sm:$0xff]  }
  0x34   : > { %902 = vmatprep.subr.bf16.mxu1 %v994_v13  ;;  %v1018_v35 = vld [vmem:[%s240_s24 + $0xc] ss:$16 sps:$4 sm:$0xff]   ;;  %603 = vmatprep.mubr.bf16.mxu0 %v1015_v33  ;;  %v1019_v36 = vld [vmem:[%s240_s24 + $0x24] ss:$16 sps:$4 sm:$0xff]   ;;  %v1023_v38 = vld [vmem:[%s240_s24 + $0x20] ss:$16 sps:$4 sm:$0xff]  }
  0x35   : > { %652 = vmatprep.mubr.bf16.mxu1 %v1018_v35  ;;  %v1021_v37 = vld [vmem:[%s240_s24 + $0x2c] ss:$16 sps:$4 sm:$0xff]   ;;  %v1024_v39 = vld [vmem:[%s240_s24 + $0x28] ss:$16 sps:$4 sm:$0xff]  }
  0x36   : > { %875 = vmatpush3.bf16.msra.mxu0 %v995_v14 }
  0x37   : > { %903 = vmatpush3.bf16.msra.mxu1 %v996_v15  ;;  %876 = vmatprep.subr.bf16.mxu0 %v997_v16 }
  0x38   : > { %904 = vmatprep.subr.bf16.mxu1 %v998_v17 }
  0x3a   : > { %877 = vmatpush3.bf16.msra.mxu0 %v999_v18 }
  0x3b   : > { %905 = vmatpush3.bf16.msra.mxu1 %v1000_v19  ;;  %878 = vmatprep.subr.bf16.mxu0 %v1001_v20 }
  0x3c   : > { %906 = vmatprep.subr.bf16.mxu1 %v1002_v21 }
  0x3e   : > { %879 = vmatpush3.bf16.msra.mxu0 %v1003_v22 }
  0x3f   : > { %907 = vmatpush3.bf16.msra.mxu1 %v1004_v23  ;;  %880 = vmatprep.subr.bf16.mxu0 %v1005_v24 }
  0x40   : > { %908 = vmatprep.subr.bf16.mxu1 %v1006_v25 }
  0x42   : > { %881 = vmatpush3.bf16.msra.mxu0 %v1007_v26 }
  0x43   : > { %909 = vmatpush3.bf16.msra.mxu1 %v1008_v27  ;;  %882 = vmatprep.subr.bf16.mxu0 %v1009_v28 }
  0x44   : > { %910 = vmatprep.subr.bf16.mxu1 %v1010_v29 }
  0x46   : > { %883 = vmatpush3.bf16.msra.mxu0 %v1011_v30 }
  0x47   : > { %911 = vmatpush3.bf16.msra.mxu1 %v1012_v31 }
  0x49   : > { %604 = vmatmul.mubr.bf16.vlgmr.msra.gmra.mxu0 %v1013_v32 }
  0x4a   : > { %653 = vmatmul.mubr.bf16.vlgmr.msra.gmra.mxu1 %v1016_v34  ;;  %611 = vmatprep.mubr.bf16.mxu0 %v1019_v36 }
  0x4b   : > { %660 = vmatprep.mubr.bf16.mxu1 %v1021_v37 }
  0x51   : > { %612 = vmatmul.mubr.bf16.gmra.mxu0 %v1023_v38 }
  0x52   : > { %661 = vmatmul.mubr.bf16.gmra.mxu1 %v1024_v39 }
 0x109   : > { %v884_v40 = vpop.f32.mrf.mxu0 }
 0x10a   : > { %v912_v41 = vpop.f32.mrf.mxu1 }
 0x10b   : > { %v885_v42 = vpop.f32.mrf.mxu0 }
 0x10c   : > { %v886_v43 = vadd.f32 %v885_v42, %v884_v40  ;;  %v913_v44 = vpop.f32.mrf.mxu1 }
 0x10d   : > { %v914_v45 = vadd.f32 %v913_v44, %v912_v41  ;;  %v887_v46 = vpop.f32.mrf.mxu0 }
 0x10e   : > { %v915_v47 = vpop.f32.mrf.mxu1 }
 0x10f   : > { %v655_v48 = vadd.f32 %v914_v45, %v886_v43  ;;  %v888_v49 = vpop.f32.mrf.mxu0 }
 0x110   : > { %v889_v50 = vadd.f32 %v888_v49, %v887_v46  ;;  %v916_v51 = vpop.f32.mrf.mxu1 }
 0x111   : > { %684 = vst [vmem:[%s252_s28] sm:$0xff] %v655_v48  ;;  %v917_v52 = vadd.f32 %v916_v51, %v915_v47  ;;  %v890_v53 = vpop.f32.mrf.mxu0 }
 0x112   : > { %v918_v54 = vpop.f32.mrf.mxu1 }
 0x113   : > { %v658_v55 = vadd.f32 %v917_v52, %v889_v50  ;;  %v891_v56 = vpop.f32.mrf.mxu0 }
 0x114   : > { %v892_v57 = vadd.f32 %v891_v56, %v890_v53  ;;  %v919_v58 = vpop.f32.mrf.mxu1 }
 0x115   : > { %685 = vst [vmem:[%s252_s28 + $0x8] sm:$0xff] %v658_v55  ;;  %v920_v59 = vadd.f32 %v919_v58, %v918_v54  ;;  %v893_v60 = vpop.f32.mrf.mxu0 }
 0x116   : > { %v921_v61 = vpop.f32.mrf.mxu1 }
 0x117   : > { %v663_v62 = vadd.f32 %v920_v59, %v892_v57  ;;  %v894_v63 = vpop.f32.mrf.mxu0 }
 0x118   : > { %v895_v0 = vadd.f32 %v894_v63, %v893_v60  ;;  %v922_v1 = vpop.f32.mrf.mxu1 }
 0x119   : > { %686 = vst [vmem:[%s252_s28 + $0x10] sm:$0xff] %v663_v62  ;;  %v923_v2 = vadd.f32 %v922_v1, %v921_v61 }
 0x11b   : > { %v666_v3 = vadd.f32 %v923_v2, %v895_v0 }
 0x11d   : > { %687 = vst [vmem:[%s252_s28 + $0x18] sm:$0xff] %v666_v3 }
 0x11e PF: > { %s15_s14 = sadd.s32 1, %s1103_s14   ;;  %s1266_s9 = smov %s1087_s10 }
 0x11f   : > { %p12_p8 = scmp.ge.s32.totalorder %s15_s14, 6   ;;  %s1267_s10 = smov %s1091_s11 }
 0x120   : > { %s1268_s11 = smov %s1172_s21  ;;  %s1269_s12 = smov %s1099_s13 }
 0x121   : > { %s1270_s13 = smov %s1272_s16  ;;  %14 = sbr.rel (!%p12_p8) target bundleno = 4 (0x4), region = 79 }
 0x126   :  { %718 = vsyncpa [#allocation4], 1 }
 0x127   :  { %720 = vsyncpa [#allocation4 + $0x1], 1 }

// kernel: netG_forward.20
= control target key start
LH: loop header
LB: loop body
LE: loop exit
PB: predicated region body
PF: predicated region fallthrough
CT: control target
= control target key end

     0   :  { %v289_v0 = vmov 0.0   ;;  %vm280_vm0 = vcmask 1040384   ;;  %s501_s0 = inlined_call_operand.vmem [shape: f32[512,128], index: 0, kind: input, shape index: {}]   ;;  %s502_s1 = inlined_call_operand.vmem [shape: f32[2,128], index: 1, kind: output, shape index: {}]  }
   0x1   :  { %12 = vst [vmem:[%s502_s1] sm:$0x3] %v289_v0  ;;  %v13_v1 = vld [vmem:[%s501_s0] sm:$0xff]  ;;  %v14_v2 = vld [vmem:[%s501_s0 + $0x8] sm:$0xff]  ;;  %v15_v3 = vld [vmem:[%s501_s0 + $0x10] sm:$0xff] }
   0x2   :  { %v16_v4 = vld [vmem:[%s501_s0 + $0x18] sm:$0xff]  ;;  %v78_v5 = vadd.f32 %v14_v2, %v13_v1  ;;  %v147_v6 = vmul.f32 %v13_v1, %v13_v1  ;;  %v148_v7 = vmul.f32 %v14_v2, %v14_v2  ;;  %v149_v8 = vmul.f32 %v15_v3, %v15_v3  ;;  %v17_v9 = vld [vmem:[%s501_s0 + $0x20] sm:$0xff]  ;;  %v18_v13 = vld [vmem:[%s501_s0 + $0x28] sm:$0xff] }
   0x3   :  { %v150_v11 = vmul.f32 %v16_v4, %v16_v4  ;;  %v151_v15 = vmul.f32 %v17_v9, %v17_v9  ;;  %v19_v17 = vld [vmem:[%s501_s0 + $0x30] sm:$0xff]  ;;  %v152_v19 = vmul.f32 %v18_v13, %v18_v13  ;;  %v20_v21 = vld [vmem:[%s501_s0 + $0x38] sm:$0xff]  ;;  %v21_v25 = vld [vmem:[%s501_s0 + $0x40] sm:$0xff] }
   0x4   :  { %v79_v10 = vadd.f32 %v78_v5, %v15_v3  ;;  %v211_v12 = vadd.f32 %v148_v7, %v147_v6  ;;  %v153_v23 = vmul.f32 %v19_v17, %v19_v17  ;;  %v154_v27 = vmul.f32 %v20_v21, %v20_v21  ;;  %v22_v29 = vld [vmem:[%s501_s0 + $0x48] sm:$0xff]  ;;  %v23_v33 = vld [vmem:[%s501_s0 + $0x50] sm:$0xff]  ;;  %v24_v37 = vld [vmem:[%s501_s0 + $0x58] sm:$0xff] }
   0x5   :  { %v155_v31 = vmul.f32 %v21_v25, %v21_v25  ;;  %v156_v35 = vmul.f32 %v22_v29, %v22_v29  ;;  %v157_v39 = vmul.f32 %v23_v33, %v23_v33  ;;  %v25_v41 = vld [vmem:[%s501_s0 + $0x60] sm:$0xff]  ;;  %v158_v43 = vmul.f32 %v24_v37, %v24_v37  ;;  %v26_v45 = vld [vmem:[%s501_s0 + $0x68] sm:$0xff]  ;;  %v27_v49 = vld [vmem:[%s501_s0 + $0x70] sm:$0xff] }
   0x6   :  { %v80_v14 = vadd.f32 %v79_v10, %v16_v4  ;;  %v212_v16 = vadd.f32 %v211_v12, %v149_v8  ;;  %v159_v47 = vmul.f32 %v25_v41, %v25_v41  ;;  %v160_v51 = vmul.f32 %v26_v45, %v26_v45  ;;  %v28_v53 = vld [vmem:[%s501_s0 + $0x78] sm:$0xff]  ;;  %v29_v57 = vld [vmem:[%s501_s0 + $0x80] sm:$0xff]  ;;  %v30_v61 = vld [vmem:[%s501_s0 + $0x88] sm:$0xff] }
   0x7   :  { %v161_v55 = vmul.f32 %v27_v49, %v27_v49  ;;  %v162_v59 = vmul.f32 %v28_v53, %v28_v53  ;;  %v163_v63 = vmul.f32 %v29_v57, %v29_v57  ;;  %v31_v1 = vld [vmem:[%s501_s0 + $0x90] sm:$0xff]  ;;  %v164_v3 = vmul.f32 %v30_v61, %v30_v61  ;;  %v32_v5 = vld [vmem:[%s501_s0 + $0x98] sm:$0xff] }
   0x8   :  { %v81_v18 = vadd.f32 %v80_v14, %v17_v9  ;;  %v213_v20 = vadd.f32 %v212_v16, %v150_v11  ;;  %v165_v7 = vmul.f32 %v31_v1, %v31_v1  ;;  %v33_v9 = vld [vmem:[%s501_s0 + $0xa0] sm:$0xff]  ;;  %v166_v11 = vmul.f32 %v32_v5, %v32_v5 }
   0xa   :  { %v82_v22 = vadd.f32 %v81_v18, %v18_v13  ;;  %v214_v24 = vadd.f32 %v213_v20, %v151_v15  ;;  %v34_v13 = vld [vmem:[%s501_s0 + $0xa8] sm:$0xff]  ;;  %v167_v15 = vmul.f32 %v33_v9, %v33_v9 }
   0xc   :  { %v83_v26 = vadd.f32 %v82_v22, %v19_v17  ;;  %v215_v28 = vadd.f32 %v214_v24, %v152_v19  ;;  %v35_v17 = vld [vmem:[%s501_s0 + $0xb0] sm:$0xff]  ;;  %v168_v19 = vmul.f32 %v34_v13, %v34_v13 }
   0xe   :  { %v84_v30 = vadd.f32 %v83_v26, %v20_v21  ;;  %v216_v32 = vadd.f32 %v215_v28, %v153_v23  ;;  %v36_v21 = vld [vmem:[%s501_s0 + $0xb8] sm:$0xff]  ;;  %v169_v23 = vmul.f32 %v35_v17, %v35_v17 }
  0x10   :  { %v85_v34 = vadd.f32 %v84_v30, %v21_v25  ;;  %v217_v36 = vadd.f32 %v216_v32, %v154_v27  ;;  %v37_v25 = vld [vmem:[%s501_s0 + $0xc0] sm:$0xff]  ;;  %v170_v27 = vmul.f32 %v36_v21, %v36_v21 }
  0x12   :  { %v86_v38 = vadd.f32 %v85_v34, %v22_v29  ;;  %v218_v40 = vadd.f32 %v217_v36, %v155_v31  ;;  %v38_v29 = vld [vmem:[%s501_s0 + $0xc8] sm:$0xff]  ;;  %v171_v31 = vmul.f32 %v37_v25, %v37_v25 }
  0x14   :  { %v87_v42 = vadd.f32 %v86_v38, %v23_v33  ;;  %v219_v44 = vadd.f32 %v218_v40, %v156_v35  ;;  %v39_v33 = vld [vmem:[%s501_s0 + $0xd0] sm:$0xff]  ;;  %v172_v35 = vmul.f32 %v38_v29, %v38_v29 }
  0x16   :  { %v88_v46 = vadd.f32 %v87_v42, %v24_v37  ;;  %v220_v48 = vadd.f32 %v219_v44, %v157_v39  ;;  %v40_v37 = vld [vmem:[%s501_s0 + $0xd8] sm:$0xff]  ;;  %v173_v39 = vmul.f32 %v39_v33, %v39_v33 }
  0x18   :  { %v89_v50 = vadd.f32 %v88_v46, %v25_v41  ;;  %v221_v52 = vadd.f32 %v220_v48, %v158_v43  ;;  %v41_v41 = vld [vmem:[%s501_s0 + $0xe0] sm:$0xff]  ;;  %v174_v43 = vmul.f32 %v40_v37, %v40_v37 }
  0x1a   :  { %v90_v54 = vadd.f32 %v89_v50, %v26_v45  ;;  %v222_v56 = vadd.f32 %v221_v52, %v159_v47  ;;  %v42_v45 = vld [vmem:[%s501_s0 + $0xe8] sm:$0xff]  ;;  %v175_v47 = vmul.f32 %v41_v41, %v41_v41 }
  0x1c   :  { %v91_v58 = vadd.f32 %v90_v54, %v27_v49  ;;  %v223_v60 = vadd.f32 %v222_v56, %v160_v51  ;;  %v43_v49 = vld [vmem:[%s501_s0 + $0xf0] sm:$0xff]  ;;  %v176_v51 = vmul.f32 %v42_v45, %v42_v45 }
  0x1e   :  { %v92_v62 = vadd.f32 %v91_v58, %v28_v53  ;;  %v224_v0 = vadd.f32 %v223_v60, %v161_v55  ;;  %v44_v53 = vld [vmem:[%s501_s0 + $0xf8] sm:$0xff]  ;;  %v177_v55 = vmul.f32 %v43_v49, %v43_v49 }
  0x20   :  { %v93_v2 = vadd.f32 %v92_v62, %v29_v57  ;;  %v225_v4 = vadd.f32 %v224_v0, %v162_v59  ;;  %v45_v57 = vld [vmem:[%s501_s0 + $0x100] sm:$0xff]  ;;  %v178_v59 = vmul.f32 %v44_v53, %v44_v53 }
  0x22   :  { %v94_v6 = vadd.f32 %v93_v2, %v30_v61  ;;  %v226_v8 = vadd.f32 %v225_v4, %v163_v63  ;;  %v46_v61 = vld [vmem:[%s501_s0 + $0x108] sm:$0xff]  ;;  %v179_v63 = vmul.f32 %v45_v57, %v45_v57 }
  0x24   :  { %v95_v10 = vadd.f32 %v94_v6, %v31_v1  ;;  %v227_v12 = vadd.f32 %v226_v8, %v164_v3  ;;  %v47_v1 = vld [vmem:[%s501_s0 + $0x110] sm:$0xff]  ;;  %v180_v3 = vmul.f32 %v46_v61, %v46_v61 }
  0x26   :  { %v96_v14 = vadd.f32 %v95_v10, %v32_v5  ;;  %v228_v16 = vadd.f32 %v227_v12, %v165_v7  ;;  %v48_v5 = vld [vmem:[%s501_s0 + $0x118] sm:$0xff]  ;;  %v181_v7 = vmul.f32 %v47_v1, %v47_v1 }
  0x28   :  { %v97_v18 = vadd.f32 %v96_v14, %v33_v9  ;;  %v229_v20 = vadd.f32 %v228_v16, %v166_v11  ;;  %v49_v9 = vld [vmem:[%s501_s0 + $0x120] sm:$0xff]  ;;  %v182_v11 = vmul.f32 %v48_v5, %v48_v5 }
  0x2a   :  { %v98_v22 = vadd.f32 %v97_v18, %v34_v13  ;;  %v230_v24 = vadd.f32 %v229_v20, %v167_v15  ;;  %v50_v13 = vld [vmem:[%s501_s0 + $0x128] sm:$0xff]  ;;  %v183_v15 = vmul.f32 %v49_v9, %v49_v9 }
  0x2c   :  { %v99_v26 = vadd.f32 %v98_v22, %v35_v17  ;;  %v231_v28 = vadd.f32 %v230_v24, %v168_v19  ;;  %v51_v17 = vld [vmem:[%s501_s0 + $0x130] sm:$0xff]  ;;  %v184_v19 = vmul.f32 %v50_v13, %v50_v13 }
  0x2e   :  { %v100_v30 = vadd.f32 %v99_v26, %v36_v21  ;;  %v232_v32 = vadd.f32 %v231_v28, %v169_v23  ;;  %v52_v21 = vld [vmem:[%s501_s0 + $0x138] sm:$0xff]  ;;  %v185_v23 = vmul.f32 %v51_v17, %v51_v17 }
  0x30   :  { %v101_v34 = vadd.f32 %v100_v30, %v37_v25  ;;  %v233_v36 = vadd.f32 %v232_v32, %v170_v27  ;;  %v53_v25 = vld [vmem:[%s501_s0 + $0x140] sm:$0xff]  ;;  %v186_v27 = vmul.f32 %v52_v21, %v52_v21 }
  0x32   :  { %v102_v38 = vadd.f32 %v101_v34, %v38_v29  ;;  %v234_v40 = vadd.f32 %v233_v36, %v171_v31  ;;  %v54_v29 = vld [vmem:[%s501_s0 + $0x148] sm:$0xff]  ;;  %v187_v31 = vmul.f32 %v53_v25, %v53_v25 }
  0x34   :  { %v103_v42 = vadd.f32 %v102_v38, %v39_v33  ;;  %v235_v44 = vadd.f32 %v234_v40, %v172_v35  ;;  %v55_v33 = vld [vmem:[%s501_s0 + $0x150] sm:$0xff]  ;;  %v188_v35 = vmul.f32 %v54_v29, %v54_v29 }
  0x36   :  { %v104_v46 = vadd.f32 %v103_v42, %v40_v37  ;;  %v236_v48 = vadd.f32 %v235_v44, %v173_v39  ;;  %v56_v37 = vld [vmem:[%s501_s0 + $0x158] sm:$0xff]  ;;  %v189_v39 = vmul.f32 %v55_v33, %v55_v33 }
  0x38   :  { %v105_v50 = vadd.f32 %v104_v46, %v41_v41  ;;  %v237_v52 = vadd.f32 %v236_v48, %v174_v43  ;;  %v57_v41 = vld [vmem:[%s501_s0 + $0x160] sm:$0xff]  ;;  %v190_v43 = vmul.f32 %v56_v37, %v56_v37 }
  0x3a   :  { %v106_v54 = vadd.f32 %v105_v50, %v42_v45  ;;  %v238_v56 = vadd.f32 %v237_v52, %v175_v47  ;;  %v58_v45 = vld [vmem:[%s501_s0 + $0x168] sm:$0xff]  ;;  %v191_v47 = vmul.f32 %v57_v41, %v57_v41 }
  0x3c   :  { %v107_v58 = vadd.f32 %v106_v54, %v43_v49  ;;  %v239_v60 = vadd.f32 %v238_v56, %v176_v51  ;;  %v59_v49 = vld [vmem:[%s501_s0 + $0x170] sm:$0xff]  ;;  %v192_v51 = vmul.f32 %v58_v45, %v58_v45 }
  0x3e   :  { %v108_v62 = vadd.f32 %v107_v58, %v44_v53  ;;  %v240_v0 = vadd.f32 %v239_v60, %v177_v55  ;;  %v60_v53 = vld [vmem:[%s501_s0 + $0x178] sm:$0xff]  ;;  %v193_v55 = vmul.f32 %v59_v49, %v59_v49 }
  0x40   :  { %v109_v2 = vadd.f32 %v108_v62, %v45_v57  ;;  %v241_v4 = vadd.f32 %v240_v0, %v178_v59  ;;  %v61_v57 = vld [vmem:[%s501_s0 + $0x180] sm:$0xff]  ;;  %v194_v59 = vmul.f32 %v60_v53, %v60_v53 }
  0x42   :  { %v110_v6 = vadd.f32 %v109_v2, %v46_v61  ;;  %v242_v8 = vadd.f32 %v241_v4, %v179_v63  ;;  %v62_v61 = vld [vmem:[%s501_s0 + $0x188] sm:$0xff]  ;;  %v195_v63 = vmul.f32 %v61_v57, %v61_v57 }
  0x44   :  { %v111_v10 = vadd.f32 %v110_v6, %v47_v1  ;;  %v243_v12 = vadd.f32 %v242_v8, %v180_v3  ;;  %v63_v1 = vld [vmem:[%s501_s0 + $0x190] sm:$0xff]  ;;  %v196_v3 = vmul.f32 %v62_v61, %v62_v61 }
  0x46   :  { %v112_v14 = vadd.f32 %v111_v10, %v48_v5  ;;  %v244_v16 = vadd.f32 %v243_v12, %v181_v7  ;;  %v64_v5 = vld [vmem:[%s501_s0 + $0x198] sm:$0xff]  ;;  %v197_v7 = vmul.f32 %v63_v1, %v63_v1 }
  0x48   :  { %v113_v18 = vadd.f32 %v112_v14, %v49_v9  ;;  %v245_v20 = vadd.f32 %v244_v16, %v182_v11  ;;  %v65_v9 = vld [vmem:[%s501_s0 + $0x1a0] sm:$0xff]  ;;  %v198_v11 = vmul.f32 %v64_v5, %v64_v5 }
  0x4a   :  { %v114_v22 = vadd.f32 %v113_v18, %v50_v13  ;;  %v246_v24 = vadd.f32 %v245_v20, %v183_v15  ;;  %v66_v13 = vld [vmem:[%s501_s0 + $0x1a8] sm:$0xff]  ;;  %v199_v15 = vmul.f32 %v65_v9, %v65_v9 }
  0x4c   :  { %v115_v26 = vadd.f32 %v114_v22, %v51_v17  ;;  %v247_v28 = vadd.f32 %v246_v24, %v184_v19  ;;  %v67_v17 = vld [vmem:[%s501_s0 + $0x1b0] sm:$0xff]  ;;  %v200_v19 = vmul.f32 %v66_v13, %v66_v13 }
  0x4e   :  { %v116_v30 = vadd.f32 %v115_v26, %v52_v21  ;;  %v248_v32 = vadd.f32 %v247_v28, %v185_v23  ;;  %v68_v21 = vld [vmem:[%s501_s0 + $0x1b8] sm:$0xff]  ;;  %v201_v23 = vmul.f32 %v67_v17, %v67_v17 }
  0x50   :  { %v117_v34 = vadd.f32 %v116_v30, %v53_v25  ;;  %v249_v36 = vadd.f32 %v248_v32, %v186_v27  ;;  %v69_v25 = vld [vmem:[%s501_s0 + $0x1c0] sm:$0xff]  ;;  %v202_v27 = vmul.f32 %v68_v21, %v68_v21 }
  0x52   :  { %v118_v38 = vadd.f32 %v117_v34, %v54_v29  ;;  %v250_v40 = vadd.f32 %v249_v36, %v187_v31  ;;  %v70_v29 = vld [vmem:[%s501_s0 + $0x1c8] sm:$0xff]  ;;  %v203_v31 = vmul.f32 %v69_v25, %v69_v25 }
  0x54   :  { %v119_v42 = vadd.f32 %v118_v38, %v55_v33  ;;  %v251_v44 = vadd.f32 %v250_v40, %v188_v35  ;;  %v71_v33 = vld [vmem:[%s501_s0 + $0x1d0] sm:$0xff]  ;;  %v204_v35 = vmul.f32 %v70_v29, %v70_v29 }
  0x56   :  { %v120_v46 = vadd.f32 %v119_v42, %v56_v37  ;;  %v252_v48 = vadd.f32 %v251_v44, %v189_v39  ;;  %v72_v37 = vld [vmem:[%s501_s0 + $0x1d8] sm:$0xff]  ;;  %v205_v39 = vmul.f32 %v71_v33, %v71_v33 }
  0x58   :  { %v121_v50 = vadd.f32 %v120_v46, %v57_v41  ;;  %v253_v52 = vadd.f32 %v252_v48, %v190_v43  ;;  %v73_v41 = vld [vmem:[%s501_s0 + $0x1e0] sm:$0xff]  ;;  %v206_v43 = vmul.f32 %v72_v37, %v72_v37 }
  0x5a   :  { %v122_v54 = vadd.f32 %v121_v50, %v58_v45  ;;  %v254_v56 = vadd.f32 %v253_v52, %v191_v47  ;;  %v74_v45 = vld [vmem:[%s501_s0 + $0x1e8] sm:$0xff]  ;;  %v207_v47 = vmul.f32 %v73_v41, %v73_v41 }
  0x5c   :  { %v123_v58 = vadd.f32 %v122_v54, %v59_v49  ;;  %v255_v60 = vadd.f32 %v254_v56, %v192_v51  ;;  %v75_v49 = vld [vmem:[%s501_s0 + $0x1f0] sm:$0xff]  ;;  %v208_v51 = vmul.f32 %v74_v45, %v74_v45 }
  0x5e   :  { %v124_v62 = vadd.f32 %v123_v58, %v60_v53  ;;  %v256_v0 = vadd.f32 %v255_v60, %v193_v55  ;;  %v76_v53 = vld [vmem:[%s501_s0 + $0x1f8] sm:$0xff]  ;;  %v209_v55 = vmul.f32 %v75_v49, %v75_v49 }
  0x5f   :  { %v210_v58 = vmul.f32 %v76_v53, %v76_v53 }
  0x60   :  { %v125_v2 = vadd.f32 %v124_v62, %v61_v57  ;;  %v257_v4 = vadd.f32 %v256_v0, %v194_v59 }
  0x62   :  { %v126_v6 = vadd.f32 %v125_v2, %v62_v61  ;;  %v258_v8 = vadd.f32 %v257_v4, %v195_v63 }
  0x64   :  { %v127_v10 = vadd.f32 %v126_v6, %v63_v1  ;;  %v259_v12 = vadd.f32 %v258_v8, %v196_v3 }
  0x66   :  { %v128_v14 = vadd.f32 %v127_v10, %v64_v5  ;;  %v260_v16 = vadd.f32 %v259_v12, %v197_v7  ;;  %v77_v10 = vld [vmem:[%s502_s1] sm:$0x3] }
  0x68   :  { %v129_v18 = vadd.f32 %v128_v14, %v65_v9  ;;  %v261_v20 = vadd.f32 %v260_v16, %v198_v11 }
  0x6a   :  { %v130_v22 = vadd.f32 %v129_v18, %v66_v13  ;;  %v262_v24 = vadd.f32 %v261_v20, %v199_v15 }
  0x6c   :  { %v131_v26 = vadd.f32 %v130_v22, %v67_v17  ;;  %v263_v28 = vadd.f32 %v262_v24, %v200_v19 }
  0x6e   :  { %v132_v30 = vadd.f32 %v131_v26, %v68_v21  ;;  %v264_v32 = vadd.f32 %v263_v28, %v201_v23 }
  0x70   :  { %v133_v34 = vadd.f32 %v132_v30, %v69_v25  ;;  %v265_v36 = vadd.f32 %v264_v32, %v202_v27 }
  0x72   :  { %v134_v38 = vadd.f32 %v133_v34, %v70_v29  ;;  %v266_v40 = vadd.f32 %v265_v36, %v203_v31 }
  0x74   :  { %v135_v42 = vadd.f32 %v134_v38, %v71_v33  ;;  %v267_v44 = vadd.f32 %v266_v40, %v204_v35 }
  0x76   :  { %v136_v46 = vadd.f32 %v135_v42, %v72_v37  ;;  %v268_v48 = vadd.f32 %v267_v44, %v205_v39 }
  0x78   :  { %v137_v50 = vadd.f32 %v136_v46, %v73_v41  ;;  %v269_v52 = vadd.f32 %v268_v48, %v206_v43 }
  0x7a   :  { %v138_v54 = vadd.f32 %v137_v50, %v74_v45  ;;  %v270_v56 = vadd.f32 %v269_v52, %v207_v47 }
  0x7c   :  { %v139_v57 = vadd.f32 %v138_v54, %v75_v49  ;;  %v271_v59 = vadd.f32 %v270_v56, %v208_v51 }
  0x7e   :  { %v140_v60 = vadd.f32 %v139_v57, %v76_v53  ;;  %v272_v61 = vadd.f32 %v271_v59, %v209_v55 }
  0x80   :  { %v141_v62 = vrot.slane %v140_v60, 4  ;;  %v273_v63 = vadd.f32 %v272_v61, %v210_v58 }
  0x82   :  { %v142_v0 = vadd.f32 %v141_v62, %v140_v60  ;;  %v274_v1 = vrot.slane %v273_v63, 4 }
  0x84   :  { %v143_v2 = vrot.slane %v142_v0, 2  ;;  %v275_v3 = vadd.f32 %v274_v1, %v273_v63 }
  0x86   :  { %v144_v4 = vadd.f32 %v143_v2, %v142_v0  ;;  %v276_v5 = vrot.slane %v275_v3, 2 }
  0x88   :  { %v145_v6 = vrot.slane %v144_v4, 1  ;;  %v277_v7 = vadd.f32 %v276_v5, %v275_v3 }
  0x8a   :  { %v146_v8 = vadd.f32 %v145_v6, %v144_v4  ;;  %v278_v9 = vrot.slane %v277_v7, 1 }
  0x8c   :  { %v279_v11 = vadd.f32 %v278_v9, %v277_v7 }
  0x8e   :  { %v281_v12 = vsel %vm280_vm0, %v146_v8, %v279_v11 }
  0x8f   :  { %v282_v13 = vadd.f32 %v281_v12, %v77_v10 }
  0x91   :  { %283 = vst [vmem:[%s502_s1] sm:$0x3] %v282_v13 }

// kernel: netG_forward.21
= control target key start
LH: loop header
LB: loop body
LE: loop exit
PB: predicated region body
PF: predicated region fallthrough
CT: control target
= control target key end

     0   :  { %s1375_s0 = inlined_call_operand.vmem [shape: f32[512,128], index: 0, kind: input, shape index: {}]   ;;  %s1376_s1 = inlined_call_operand.vmem [shape: f32[1,128], index: 1, kind: input, shape index: {}]   ;;  %s1377_s2 = inlined_call_operand.vmem [shape: f32[1,128], index: 2, kind: input, shape index: {}]   ;;  %s1378_s3 = inlined_call_operand.vmem [shape: bf16[512,128], index: 3, kind: output, shape index: {}]  }
   0x1   :  { %v14_v0 = vld [vmem:[%s1375_s0] sm:$0xff]  ;;  %v15_v1 = vld [vmem:[%s1375_s0 + $0x8] sm:$0xff]  ;;  %v16_v6 = vld [vmem:[%s1375_s0 + $0x10] sm:$0xff] }
   0x2   :  { %v958_v2 = vld [vmem:[%s1376_s1] ss:$0 sm:$0xff]  ;;  %v17_v7 = vld [vmem:[%s1375_s0 + $0x18] sm:$0xff]  ;;  %v19_v11 = vld [vmem:[%s1375_s0 + $0x28] sm:$0xff] }
   0x3   :  { %v85_v3 = vmul.f32 %v958_v2, %v14_v0  ;;  %v86_v4 = vmul.f32 %v958_v2, %v15_v1  ;;  %v965_v5 = vld [vmem:[%s1377_s2] ss:$0 sm:$0xff]  ;;  %v87_v8 = vmul.f32 %v958_v2, %v16_v6  ;;  %v88_v9 = vmul.f32 %v958_v2, %v17_v7  ;;  %v20_v12 = vld [vmem:[%s1375_s0 + $0x30] sm:$0xff]  ;;  %v21_v17 = vld [vmem:[%s1375_s0 + $0x38] sm:$0xff] }
   0x4   :  { %v18_v10 = vld [vmem:[%s1375_s0 + $0x20] sm:$0xff]  ;;  %v90_v16 = vmul.f32 %v958_v2, %v19_v11  ;;  %v91_v20 = vmul.f32 %v958_v2, %v20_v12  ;;  %v92_v21 = vmul.f32 %v958_v2, %v21_v17  ;;  %v23_v27 = vld [vmem:[%s1375_s0 + $0x48] sm:$0xff]  ;;  %v24_v32 = vld [vmem:[%s1375_s0 + $0x50] sm:$0xff] }
   0x5   :  { %v156_v13 = vadd.f32 %v965_v5, %v85_v3  ;;  %v157_v14 = vadd.f32 %v965_v5, %v86_v4  ;;  %v89_v15 = vmul.f32 %v958_v2, %v18_v10  ;;  %v158_v18 = vadd.f32 %v965_v5, %v87_v8  ;;  %v22_v22 = vld [vmem:[%s1375_s0 + $0x40] sm:$0xff]  ;;  %v25_v33 = vld [vmem:[%s1375_s0 + $0x58] sm:$0xff]  ;;  %v27_v39 = vld [vmem:[%s1375_s0 + $0x68] sm:$0xff] }
   0x6   :  { %v159_v19 = vadd.f32 %v965_v5, %v88_v9  ;;  %v161_v26 = vadd.f32 %v965_v5, %v90_v16  ;;  %v162_v30 = vadd.f32 %v965_v5, %v91_v20  ;;  %v163_v31 = vadd.f32 %v965_v5, %v92_v21  ;;  %v26_v38 = vld [vmem:[%s1375_s0 + $0x60] sm:$0xff]  ;;  %v28_v44 = vld [vmem:[%s1375_s0 + $0x70] sm:$0xff]  ;;  %v29_v49 = vld [vmem:[%s1375_s0 + $0x78] sm:$0xff] }
   0x7   :  { %v220_v23 = vmax.f32 %v156_v13, 0.0  ;;  %v221_v24 = vmax.f32 %v157_v14, 0.0  ;;  %v160_v25 = vadd.f32 %v965_v5, %v89_v15  ;;  %v222_v28 = vmax.f32 %v158_v18, 0.0  ;;  %v30_v54 = vld [vmem:[%s1375_s0 + $0x80] sm:$0xff]  ;;  %v31_v63 = vld [vmem:[%s1375_s0 + $0x88] sm:$0xff]  ;;  %v32_v6 = vld [vmem:[%s1375_s0 + $0x90] sm:$0xff] }
   0x8   :  { %v223_v29 = vmax.f32 %v159_v19, 0.0  ;;  %v225_v36 = vmax.f32 %v161_v26, 0.0  ;;  %v93_v37 = vmul.f32 %v958_v2, %v22_v22  ;;  %v226_v41 = vmax.f32 %v162_v30, 0.0  ;;  %v33_v7 = vld [vmem:[%s1375_s0 + $0x98] sm:$0xff]  ;;  %v34_v12 = vld [vmem:[%s1375_s0 + $0xa0] sm:$0xff]  ;;  %v35_v13 = vld [vmem:[%s1375_s0 + $0xa8] sm:$0xff] }
   0x9   :  { %v741_v34 = vpack.c.bf16 %v221_v24, %v220_v23  ;;  %v224_v35 = vmax.f32 %v160_v25, 0.0  ;;  %v227_v42 = vmax.f32 %v163_v31, 0.0  ;;  %v94_v43 = vmul.f32 %v958_v2, %v23_v27  ;;  %v36_v18 = vld [vmem:[%s1375_s0 + $0xb0] sm:$0xff]  ;;  %v37_v23 = vld [vmem:[%s1375_s0 + $0xb8] sm:$0xff] }
   0xa   :  { %v746_v40 = vpack.c.bf16 %v223_v29, %v222_v28  ;;  %v164_v46 = vadd.f32 %v965_v5, %v93_v37  ;;  %v95_v47 = vmul.f32 %v958_v2, %v24_v32  ;;  %v96_v48 = vmul.f32 %v958_v2, %v25_v33  ;;  %v38_v28 = vld [vmem:[%s1375_s0 + $0xc0] sm:$0xff]  ;;  %v39_v37 = vld [vmem:[%s1375_s0 + $0xc8] sm:$0xff] }
   0xb   :  { %742 = vst [vmem:[%s1378_s3] sm:$0xff] %v741_v34   ;;  %v751_v45 = vpack.c.bf16 %v225_v36, %v224_v35  ;;  %v756_v50 = vpack.c.bf16 %v227_v42, %v226_v41  ;;  %v165_v51 = vadd.f32 %v965_v5, %v94_v43  ;;  %v97_v52 = vmul.f32 %v958_v2, %v26_v38  ;;  %v40_v42 = vld [vmem:[%s1375_s0 + $0xd0] sm:$0xff]  ;;  %v41_v43 = vld [vmem:[%s1375_s0 + $0xd8] sm:$0xff] }
   0xc   :  { %898 = vst [vmem:[%s1378_s3 + $0x8] sm:$0xff] %v746_v40   ;;  %v98_v53 = vmul.f32 %v958_v2, %v27_v39  ;;  %v228_v55 = vmax.f32 %v164_v46, 0.0  ;;  %v166_v56 = vadd.f32 %v965_v5, %v95_v47  ;;  %v167_v57 = vadd.f32 %v965_v5, %v96_v48  ;;  %v42_v48 = vld [vmem:[%s1375_s0 + $0xe0] sm:$0xff] }
   0xd   :  { %899 = vst [vmem:[%s1378_s3 + $0x10] sm:$0xff] %v751_v45   ;;  %v99_v58 = vmul.f32 %v958_v2, %v28_v44  ;;  %900 = vst [vmem:[%s1378_s3 + $0x18] sm:$0xff] %v756_v50   ;;  %v229_v59 = vmax.f32 %v165_v51, 0.0  ;;  %v168_v60 = vadd.f32 %v965_v5, %v97_v52  ;;  %v100_v62 = vmul.f32 %v958_v2, %v29_v49  ;;  %v43_v49 = vld [vmem:[%s1375_s0 + $0xe8] sm:$0xff] }
   0xe   :  { %v169_v61 = vadd.f32 %v965_v5, %v98_v53  ;;  %v230_v0 = vmax.f32 %v166_v56, 0.0  ;;  %v231_v1 = vmax.f32 %v167_v57, 0.0  ;;  %v101_v4 = vmul.f32 %v958_v2, %v30_v54  ;;  %v44_v54 = vld [vmem:[%s1375_s0 + $0xf0] sm:$0xff] }
   0xf   :  { %v170_v3 = vadd.f32 %v965_v5, %v99_v58  ;;  %v761_v8 = vpack.c.bf16 %v229_v59, %v228_v55  ;;  %v232_v9 = vmax.f32 %v168_v60, 0.0  ;;  %v171_v11 = vadd.f32 %v965_v5, %v100_v62  ;;  %v45_v59 = vld [vmem:[%s1375_s0 + $0xf8] sm:$0xff] }
  0x10   :  { %v233_v10 = vmax.f32 %v169_v61, 0.0  ;;  %v766_v14 = vpack.c.bf16 %v231_v1, %v230_v0  ;;  %v102_v16 = vmul.f32 %v958_v2, %v31_v63  ;;  %v172_v17 = vadd.f32 %v965_v5, %v101_v4  ;;  %v46_v0 = vld [vmem:[%s1375_s0 + $0x100] sm:$0xff] }
  0x11   :  { %v234_v15 = vmax.f32 %v170_v3, 0.0  ;;  %901 = vst [vmem:[%s1378_s3 + $0x20] sm:$0xff] %v761_v8   ;;  %v235_v20 = vmax.f32 %v171_v11, 0.0  ;;  %v103_v21 = vmul.f32 %v958_v2, %v32_v6  ;;  %v104_v22 = vmul.f32 %v958_v2, %v33_v7  ;;  %v47_v11 = vld [vmem:[%s1375_s0 + $0x108] sm:$0xff] }
  0x12   :  { %v771_v19 = vpack.c.bf16 %v233_v10, %v232_v9  ;;  %902 = vst [vmem:[%s1378_s3 + $0x28] sm:$0xff] %v766_v14   ;;  %v173_v24 = vadd.f32 %v965_v5, %v102_v16  ;;  %v236_v25 = vmax.f32 %v172_v17, 0.0  ;;  %v105_v26 = vmul.f32 %v958_v2, %v34_v12  ;;  %v48_v16 = vld [vmem:[%s1375_s0 + $0x110] sm:$0xff]  ;;  %v49_v17 = vld [vmem:[%s1375_s0 + $0x118] sm:$0xff] }
  0x13   :  { %v106_v27 = vmul.f32 %v958_v2, %v35_v13  ;;  %v776_v29 = vpack.c.bf16 %v235_v20, %v234_v15  ;;  %v174_v30 = vadd.f32 %v965_v5, %v103_v21  ;;  %v175_v31 = vadd.f32 %v965_v5, %v104_v22  ;;  %v50_v22 = vld [vmem:[%s1375_s0 + $0x120] sm:$0xff] }
  0x14   :  { %903 = vst [vmem:[%s1378_s3 + $0x30] sm:$0xff] %v771_v19   ;;  %v107_v32 = vmul.f32 %v958_v2, %v36_v18  ;;  %v237_v33 = vmax.f32 %v173_v24, 0.0  ;;  %v176_v34 = vadd.f32 %v965_v5, %v105_v26  ;;  %v108_v36 = vmul.f32 %v958_v2, %v37_v23  ;;  %v51_v23 = vld [vmem:[%s1375_s0 + $0x128] sm:$0xff] }
  0x15   :  { %v177_v35 = vadd.f32 %v965_v5, %v106_v27  ;;  %904 = vst [vmem:[%s1378_s3 + $0x38] sm:$0xff] %v776_v29   ;;  %v238_v38 = vmax.f32 %v174_v30, 0.0  ;;  %v239_v39 = vmax.f32 %v175_v31, 0.0  ;;  %v109_v41 = vmul.f32 %v958_v2, %v38_v28  ;;  %v52_v28 = vld [vmem:[%s1375_s0 + $0x130] sm:$0xff] }
  0x16   :  { %v178_v40 = vadd.f32 %v965_v5, %v107_v32  ;;  %v781_v44 = vpack.c.bf16 %v237_v33, %v236_v25  ;;  %v240_v45 = vmax.f32 %v176_v34, 0.0  ;;  %v179_v47 = vadd.f32 %v965_v5, %v108_v36  ;;  %v53_v33 = vld [vmem:[%s1375_s0 + $0x138] sm:$0xff] }
  0x17   :  { %v241_v46 = vmax.f32 %v177_v35, 0.0  ;;  %v786_v50 = vpack.c.bf16 %v239_v39, %v238_v38  ;;  %v110_v52 = vmul.f32 %v958_v2, %v39_v37  ;;  %v180_v53 = vadd.f32 %v965_v5, %v109_v41  ;;  %v54_v38 = vld [vmem:[%s1375_s0 + $0x140] sm:$0xff] }
  0x18   :  { %v242_v51 = vmax.f32 %v178_v40, 0.0  ;;  %905 = vst [vmem:[%s1378_s3 + $0x40] sm:$0xff] %v781_v44   ;;  %v243_v56 = vmax.f32 %v179_v47, 0.0  ;;  %v111_v57 = vmul.f32 %v958_v2, %v40_v42  ;;  %v112_v58 = vmul.f32 %v958_v2, %v41_v43  ;;  %v55_v47 = vld [vmem:[%s1375_s0 + $0x148] sm:$0xff] }
  0x19   :  { %v791_v55 = vpack.c.bf16 %v241_v46, %v240_v45  ;;  %906 = vst [vmem:[%s1378_s3 + $0x48] sm:$0xff] %v786_v50   ;;  %v181_v60 = vadd.f32 %v965_v5, %v110_v52  ;;  %v244_v61 = vmax.f32 %v180_v53, 0.0  ;;  %v113_v62 = vmul.f32 %v958_v2, %v42_v48  ;;  %v56_v52 = vld [vmem:[%s1375_s0 + $0x150] sm:$0xff]  ;;  %v57_v53 = vld [vmem:[%s1375_s0 + $0x158] sm:$0xff] }
  0x1a   :  { %v114_v63 = vmul.f32 %v958_v2, %v43_v49  ;;  %v796_v1 = vpack.c.bf16 %v243_v56, %v242_v51  ;;  %v182_v3 = vadd.f32 %v965_v5, %v111_v57  ;;  %v183_v4 = vadd.f32 %v965_v5, %v112_v58  ;;  %v58_v58 = vld [vmem:[%s1375_s0 + $0x160] sm:$0xff] }
  0x1b   :  { %907 = vst [vmem:[%s1378_s3 + $0x50] sm:$0xff] %v791_v55   ;;  %v115_v6 = vmul.f32 %v958_v2, %v44_v54  ;;  %v245_v7 = vmax.f32 %v181_v60, 0.0  ;;  %v184_v8 = vadd.f32 %v965_v5, %v113_v62  ;;  %v116_v10 = vmul.f32 %v958_v2, %v45_v59  ;;  %v59_v59 = vld [vmem:[%s1375_s0 + $0x168] sm:$0xff] }
  0x1c   :  { %v185_v9 = vadd.f32 %v965_v5, %v114_v63  ;;  %908 = vst [vmem:[%s1378_s3 + $0x58] sm:$0xff] %v796_v1   ;;  %v246_v12 = vmax.f32 %v182_v3, 0.0  ;;  %v247_v13 = vmax.f32 %v183_v4, 0.0  ;;  %v117_v15 = vmul.f32 %v958_v2, %v46_v0  ;;  %v60_v0 = vld [vmem:[%s1375_s0 + $0x170] sm:$0xff] }
  0x1d   :  { %v186_v14 = vadd.f32 %v965_v5, %v115_v6  ;;  %v801_v18 = vpack.c.bf16 %v245_v7, %v244_v61  ;;  %v248_v19 = vmax.f32 %v184_v8, 0.0  ;;  %v187_v21 = vadd.f32 %v965_v5, %v116_v10  ;;  %v61_v7 = vld [vmem:[%s1375_s0 + $0x178] sm:$0xff] }
  0x1e   :  { %v249_v20 = vmax.f32 %v185_v9, 0.0  ;;  %v806_v24 = vpack.c.bf16 %v247_v13, %v246_v12  ;;  %v118_v26 = vmul.f32 %v958_v2, %v47_v11  ;;  %v188_v27 = vadd.f32 %v965_v5, %v117_v15  ;;  %v62_v12 = vld [vmem:[%s1375_s0 + $0x180] sm:$0xff] }
  0x1f   :  { %v250_v25 = vmax.f32 %v186_v14, 0.0  ;;  %909 = vst [vmem:[%s1378_s3 + $0x60] sm:$0xff] %v801_v18   ;;  %v251_v30 = vmax.f32 %v187_v21, 0.0  ;;  %v119_v31 = vmul.f32 %v958_v2, %v48_v16  ;;  %v120_v32 = vmul.f32 %v958_v2, %v49_v17  ;;  %v63_v21 = vld [vmem:[%s1375_s0 + $0x188] sm:$0xff] }
  0x20   :  { %v811_v29 = vpack.c.bf16 %v249_v20, %v248_v19  ;;  %910 = vst [vmem:[%s1378_s3 + $0x68] sm:$0xff] %v806_v24   ;;  %v189_v34 = vadd.f32 %v965_v5, %v118_v26  ;;  %v252_v35 = vmax.f32 %v188_v27, 0.0  ;;  %v121_v36 = vmul.f32 %v958_v2, %v50_v22  ;;  %v64_v26 = vld [vmem:[%s1375_s0 + $0x190] sm:$0xff]  ;;  %v65_v27 = vld [vmem:[%s1375_s0 + $0x198] sm:$0xff] }
  0x21   :  { %v122_v37 = vmul.f32 %v958_v2, %v51_v23  ;;  %v816_v39 = vpack.c.bf16 %v251_v30, %v250_v25  ;;  %v190_v40 = vadd.f32 %v965_v5, %v119_v31  ;;  %v191_v41 = vadd.f32 %v965_v5, %v120_v32  ;;  %v66_v32 = vld [vmem:[%s1375_s0 + $0x1a0] sm:$0xff] }
  0x22   :  { %911 = vst [vmem:[%s1378_s3 + $0x70] sm:$0xff] %v811_v29   ;;  %v123_v42 = vmul.f32 %v958_v2, %v52_v28  ;;  %v253_v43 = vmax.f32 %v189_v34, 0.0  ;;  %v192_v44 = vadd.f32 %v965_v5, %v121_v36  ;;  %v124_v46 = vmul.f32 %v958_v2, %v53_v33  ;;  %v67_v33 = vld [vmem:[%s1375_s0 + $0x1a8] sm:$0xff] }
  0x23   :  { %v193_v45 = vadd.f32 %v965_v5, %v122_v37  ;;  %912 = vst [vmem:[%s1378_s3 + $0x78] sm:$0xff] %v816_v39   ;;  %v254_v48 = vmax.f32 %v190_v40, 0.0  ;;  %v255_v49 = vmax.f32 %v191_v41, 0.0  ;;  %v125_v51 = vmul.f32 %v958_v2, %v54_v38  ;;  %v68_v38 = vld [vmem:[%s1375_s0 + $0x1b0] sm:$0xff] }
  0x24   :  { %v194_v50 = vadd.f32 %v965_v5, %v123_v42  ;;  %v821_v54 = vpack.c.bf16 %v253_v43, %v252_v35  ;;  %v256_v55 = vmax.f32 %v192_v44, 0.0  ;;  %v195_v57 = vadd.f32 %v965_v5, %v124_v46  ;;  %v69_v43 = vld [vmem:[%s1375_s0 + $0x1b8] sm:$0xff] }
  0x25   :  { %v257_v56 = vmax.f32 %v193_v45, 0.0  ;;  %v826_v60 = vpack.c.bf16 %v255_v49, %v254_v48  ;;  %v126_v62 = vmul.f32 %v958_v2, %v55_v47  ;;  %v196_v63 = vadd.f32 %v965_v5, %v125_v51  ;;  %v70_v48 = vld [vmem:[%s1375_s0 + $0x1c0] sm:$0xff] }
  0x26   :  { %v258_v61 = vmax.f32 %v194_v50, 0.0  ;;  %913 = vst [vmem:[%s1378_s3 + $0x80] sm:$0xff] %v821_v54   ;;  %v259_v3 = vmax.f32 %v195_v57, 0.0  ;;  %v127_v4 = vmul.f32 %v958_v2, %v56_v52  ;;  %v128_v6 = vmul.f32 %v958_v2, %v57_v53  ;;  %v71_v57 = vld [vmem:[%s1375_s0 + $0x1c8] sm:$0xff] }
  0x27   :  { %v831_v1 = vpack.c.bf16 %v257_v56, %v256_v55  ;;  %914 = vst [vmem:[%s1378_s3 + $0x88] sm:$0xff] %v826_v60   ;;  %v197_v8 = vadd.f32 %v965_v5, %v126_v62  ;;  %v260_v9 = vmax.f32 %v196_v63, 0.0  ;;  %v129_v10 = vmul.f32 %v958_v2, %v58_v58  ;;  %v72_v62 = vld [vmem:[%s1375_s0 + $0x1d0] sm:$0xff]  ;;  %v73_v63 = vld [vmem:[%s1375_s0 + $0x1d8] sm:$0xff] }
  0x28   :  { %v130_v11 = vmul.f32 %v958_v2, %v59_v59  ;;  %v836_v13 = vpack.c.bf16 %v259_v3, %v258_v61  ;;  %v198_v14 = vadd.f32 %v965_v5, %v127_v4  ;;  %v199_v15 = vadd.f32 %v965_v5, %v128_v6  ;;  %v74_v6 = vld [vmem:[%s1375_s0 + $0x1e0] sm:$0xff] }
  0x29   :  { %915 = vst [vmem:[%s1378_s3 + $0x90] sm:$0xff] %v831_v1   ;;  %v131_v16 = vmul.f32 %v958_v2, %v60_v0  ;;  %v261_v17 = vmax.f32 %v197_v8, 0.0  ;;  %v200_v18 = vadd.f32 %v965_v5, %v129_v10  ;;  %v132_v20 = vmul.f32 %v958_v2, %v61_v7  ;;  %v75_v7 = vld [vmem:[%s1375_s0 + $0x1e8] sm:$0xff] }
  0x2a   :  { %v201_v19 = vadd.f32 %v965_v5, %v130_v11  ;;  %916 = vst [vmem:[%s1378_s3 + $0x98] sm:$0xff] %v836_v13   ;;  %v262_v22 = vmax.f32 %v198_v14, 0.0  ;;  %v263_v23 = vmax.f32 %v199_v15, 0.0  ;;  %v133_v25 = vmul.f32 %v958_v2, %v62_v12  ;;  %v76_v12 = vld [vmem:[%s1375_s0 + $0x1f0] sm:$0xff] }
  0x2b   :  { %v202_v24 = vadd.f32 %v965_v5, %v131_v16  ;;  %v841_v28 = vpack.c.bf16 %v261_v17, %v260_v9  ;;  %v264_v29 = vmax.f32 %v200_v18, 0.0  ;;  %v203_v31 = vadd.f32 %v965_v5, %v132_v20  ;;  %v77_v17 = vld [vmem:[%s1375_s0 + $0x1f8] sm:$0xff] }
  0x2c   :  { %v265_v30 = vmax.f32 %v201_v19, 0.0  ;;  %v846_v34 = vpack.c.bf16 %v263_v23, %v262_v22  ;;  %v134_v36 = vmul.f32 %v958_v2, %v63_v21  ;;  %v204_v37 = vadd.f32 %v965_v5, %v133_v25 }
  0x2d   :  { %v266_v35 = vmax.f32 %v202_v24, 0.0  ;;  %917 = vst [vmem:[%s1378_s3 + $0xa0] sm:$0xff] %v841_v28   ;;  %v267_v40 = vmax.f32 %v203_v31, 0.0  ;;  %v135_v41 = vmul.f32 %v958_v2, %v64_v26  ;;  %v136_v42 = vmul.f32 %v958_v2, %v65_v27 }
  0x2e   :  { %v851_v39 = vpack.c.bf16 %v265_v30, %v264_v29  ;;  %918 = vst [vmem:[%s1378_s3 + $0xa8] sm:$0xff] %v846_v34   ;;  %v205_v44 = vadd.f32 %v965_v5, %v134_v36  ;;  %v268_v45 = vmax.f32 %v204_v37, 0.0  ;;  %v137_v46 = vmul.f32 %v958_v2, %v66_v32 }
  0x2f   :  { %v138_v47 = vmul.f32 %v958_v2, %v67_v33  ;;  %v856_v49 = vpack.c.bf16 %v267_v40, %v266_v35  ;;  %v206_v50 = vadd.f32 %v965_v5, %v135_v41  ;;  %v207_v51 = vadd.f32 %v965_v5, %v136_v42 }
  0x30   :  { %919 = vst [vmem:[%s1378_s3 + $0xb0] sm:$0xff] %v851_v39   ;;  %v139_v52 = vmul.f32 %v958_v2, %v68_v38  ;;  %v269_v53 = vmax.f32 %v205_v44, 0.0  ;;  %v208_v54 = vadd.f32 %v965_v5, %v137_v46  ;;  %v140_v56 = vmul.f32 %v958_v2, %v69_v43 }
  0x31   :  { %v209_v55 = vadd.f32 %v965_v5, %v138_v47  ;;  %920 = vst [vmem:[%s1378_s3 + $0xb8] sm:$0xff] %v856_v49   ;;  %v270_v58 = vmax.f32 %v206_v50, 0.0  ;;  %v271_v59 = vmax.f32 %v207_v51, 0.0  ;;  %v141_v61 = vmul.f32 %v958_v2, %v70_v48 }
  0x32   :  { %v210_v60 = vadd.f32 %v965_v5, %v139_v52  ;;  %v861_v0 = vpack.c.bf16 %v269_v53, %v268_v45  ;;  %v272_v1 = vmax.f32 %v208_v54, 0.0  ;;  %v211_v4 = vadd.f32 %v965_v5, %v140_v56 }
  0x33   :  { %v273_v3 = vmax.f32 %v209_v55, 0.0  ;;  %v866_v8 = vpack.c.bf16 %v271_v59, %v270_v58  ;;  %v142_v10 = vmul.f32 %v958_v2, %v71_v57  ;;  %v212_v11 = vadd.f32 %v965_v5, %v141_v61 }
  0x34   :  { %v274_v9 = vmax.f32 %v210_v60, 0.0  ;;  %921 = vst [vmem:[%s1378_s3 + $0xc0] sm:$0xff] %v861_v0   ;;  %v275_v14 = vmax.f32 %v211_v4, 0.0  ;;  %v143_v15 = vmul.f32 %v958_v2, %v72_v62  ;;  %v144_v16 = vmul.f32 %v958_v2, %v73_v63 }
  0x35   :  { %v871_v13 = vpack.c.bf16 %v273_v3, %v272_v1  ;;  %922 = vst [vmem:[%s1378_s3 + $0xc8] sm:$0xff] %v866_v8   ;;  %v213_v18 = vadd.f32 %v965_v5, %v142_v10  ;;  %v276_v19 = vmax.f32 %v212_v11, 0.0  ;;  %v145_v20 = vmul.f32 %v958_v2, %v74_v6 }
  0x36   :  { %v146_v21 = vmul.f32 %v958_v2, %v75_v7  ;;  %v876_v22 = vpack.c.bf16 %v275_v14, %v274_v9  ;;  %v214_v23 = vadd.f32 %v965_v5, %v143_v15  ;;  %v215_v24 = vadd.f32 %v965_v5, %v144_v16 }
  0x37   :  { %923 = vst [vmem:[%s1378_s3 + $0xd0] sm:$0xff] %v871_v13   ;;  %v147_v25 = vmul.f32 %v958_v2, %v76_v12  ;;  %v277_v26 = vmax.f32 %v213_v18, 0.0  ;;  %v216_v27 = vadd.f32 %v965_v5, %v145_v20  ;;  %v148_v29 = vmul.f32 %v958_v2, %v77_v17 }
  0x38   :  { %v217_v28 = vadd.f32 %v965_v5, %v146_v21  ;;  %924 = vst [vmem:[%s1378_s3 + $0xd8] sm:$0xff] %v876_v22   ;;  %v278_v30 = vmax.f32 %v214_v23, 0.0  ;;  %v279_v31 = vmax.f32 %v215_v24, 0.0 }
  0x39   :  { %v218_v32 = vadd.f32 %v965_v5, %v147_v25  ;;  %v881_v33 = vpack.c.bf16 %v277_v26, %v276_v19  ;;  %v280_v34 = vmax.f32 %v216_v27, 0.0  ;;  %v219_v36 = vadd.f32 %v965_v5, %v148_v29 }
  0x3a   :  { %v281_v35 = vmax.f32 %v217_v28, 0.0  ;;  %v886_v37 = vpack.c.bf16 %v279_v31, %v278_v30 }
  0x3b   :  { %v282_v38 = vmax.f32 %v218_v32, 0.0  ;;  %925 = vst [vmem:[%s1378_s3 + $0xe0] sm:$0xff] %v881_v33   ;;  %v283_v39 = vmax.f32 %v219_v36, 0.0 }
  0x3c   :  { %v891_v2 = vpack.c.bf16 %v281_v35, %v280_v34  ;;  %926 = vst [vmem:[%s1378_s3 + $0xe8] sm:$0xff] %v886_v37  }
  0x3d   :  { %v896_v40 = vpack.c.bf16 %v283_v39, %v282_v38 }
  0x3e   :  { %927 = vst [vmem:[%s1378_s3 + $0xf0] sm:$0xff] %v891_v2  }
  0x3f   :  { %928 = vst [vmem:[%s1378_s3 + $0xf8] sm:$0xff] %v896_v40  }

// kernel: netG_forward.19
= control target key start
LH: loop header
LB: loop body
LE: loop exit
PB: predicated region body
PF: predicated region fallthrough
CT: control target
= control target key end

     0   :  { %s1456_s9 = smov 0   ;;  %s1458_s10 = smov 0   ;;  %s1586_s0 = inlined_call_operand.vmem [shape: bf16[4,128,512], index: 0, kind: input, shape index: {}]   ;;  %s1587_s1 = inlined_call_operand.vmem [shape: bf16[4,512,128], index: 1, kind: input, shape index: {}]   ;;  %s1588_s2 = inlined_call_operand.vmem [shape: f32[4,128,128], index: 2, kind: output, shape index: {}]  }
   0x1   :  { %s1460_s11 = smov 0  }
   0x2 LB: > { %s31_s12 = sadd.s32 1, %s1435_s10  ;;  %p1109_p0 = scmp.ge.s32.totalorder %s1439_s11, 1  ;;  %s1439_s11 = sphi %s1460_s11, %s12_s11   ;;  %s1435_s10 = sphi %s1458_s10, %s1590_s10   ;;  %s1431_s9 = sphi %s1456_s9, %s1589_s9  }
   0x3   : > { %p33_p1 = scmp.ge.s32.totalorder %s31_s12, 4  ;;  %p165_p2 = scmp.lt.s32.totalorder %s1439_s11, 5 }
   0x5   : > { %s1592_s12 = smov (%p33_p1, %s31_s12), 0  ;;  %p166_p3 = pnand %p1109_p0, %p165_p2 }
   0x6   : > { %p211_p4 = scmp.lt.s32.totalorder (!%p166_p3), %s1431_s9, 3 }
   0x7   : > { %169 = sbr.rel (%p166_p3) target bundleno = 310 (0x136), region = 28 }
   0xc   : > { %s1594_s9 = smov (!%p211_p4, %s1431_s9), 3 }
   0xd   : > { %s1182_s13 = sshll.u32 %s1594_s9, 8  ;;  %s1184_s20 = sshll.u32 %s1594_s9, 7 }
   0xe   : > { %s1482_s16 = scalar_lea.vmem %s1587_s1, %s1182_s13  ;;  %s1519_s19 = scalar_lea.vmem %s1586_s0, %s1182_s13 }
   0xf   : > { %v1337_v0 = vld [vmem:[%s1482_s16 + $0x78] sm:$0xff]   ;;  %v1341_v4 = vld [vmem:[%s1482_s16 + $0x70] sm:$0xff]   ;;  %v1345_v8 = vld [vmem:[%s1482_s16 + $0x68] sm:$0xff]   ;;  %s1559_s23 = scalar_lea.vmem %s1588_s2, %s1184_s20 }
  0x10   : > { %v1338_v1 = vld [vmem:[%s1482_s16 + $0xf8] sm:$0xff]   ;;  %1185 = vmatprep.subr.bf16.mxu0 %v1337_v0  ;;  %v1342_v5 = vld [vmem:[%s1482_s16 + $0xf0] sm:$0xff]   ;;  %v1346_v9 = vld [vmem:[%s1482_s16 + $0xe8] sm:$0xff]  }
  0x11   : > { %v1339_v2 = vld [vmem:[%s1482_s16 + $0x38] sm:$0xff]   ;;  %1249 = vmatprep.subr.bf16.mxu1 %v1338_v1  ;;  %v1343_v6 = vld [vmem:[%s1482_s16 + $0x30] sm:$0xff]   ;;  %v1347_v10 = vld [vmem:[%s1482_s16 + $0x28] sm:$0xff]  }
  0x12   : > { %v1340_v3 = vld [vmem:[%s1482_s16 + $0xb8] sm:$0xff]   ;;  %1186 = vmatpush3.bf16.msra.mxu0 %v1339_v2  ;;  %v1344_v7 = vld [vmem:[%s1482_s16 + $0xb0] sm:$0xff]   ;;  %v1348_v11 = vld [vmem:[%s1482_s16 + $0xa8] sm:$0xff]  }
  0x13   : > { %1250 = vmatpush3.bf16.msra.mxu1 %v1340_v3  ;;  %1187 = vmatprep.subr.bf16.mxu0 %v1341_v4  ;;  %v1349_v12 = vld [vmem:[%s1482_s16 + $0x60] sm:$0xff]   ;;  %v1353_v16 = vld [vmem:[%s1482_s16 + $0x58] sm:$0xff]   ;;  %v1357_v20 = vld [vmem:[%s1482_s16 + $0x50] sm:$0xff]  }
  0x14   : > { %1251 = vmatprep.subr.bf16.mxu1 %v1342_v5  ;;  %v1350_v13 = vld [vmem:[%s1482_s16 + $0xe0] sm:$0xff]   ;;  %v1354_v17 = vld [vmem:[%s1482_s16 + $0xd8] sm:$0xff]   ;;  %v1358_v21 = vld [vmem:[%s1482_s16 + $0xd0] sm:$0xff]  }
  0x15   : > { %v1351_v14 = vld [vmem:[%s1482_s16 + $0x20] sm:$0xff]   ;;  %v1355_v18 = vld [vmem:[%s1482_s16 + $0x18] sm:$0xff]   ;;  %v1359_v22 = vld [vmem:[%s1482_s16 + $0x10] sm:$0xff]  }
  0x16   : > { %1188 = vmatpush3.bf16.msra.mxu0 %v1343_v6  ;;  %v1352_v15 = vld [vmem:[%s1482_s16 + $0xa0] sm:$0xff]   ;;  %v1356_v19 = vld [vmem:[%s1482_s16 + $0x98] sm:$0xff]   ;;  %v1360_v23 = vld [vmem:[%s1482_s16 + $0x90] sm:$0xff]  }
  0x17   : > { %1252 = vmatpush3.bf16.msra.mxu1 %v1344_v7  ;;  %1189 = vmatprep.subr.bf16.mxu0 %v1345_v8  ;;  %v1361_v24 = vld [vmem:[%s1482_s16 + $0x48] sm:$0xff]   ;;  %v1365_v28 = vld [vmem:[%s1482_s16 + $0x40] sm:$0xff]  }
  0x18   : > { %1253 = vmatprep.subr.bf16.mxu1 %v1346_v9  ;;  %v1362_v25 = vld [vmem:[%s1482_s16 + $0xc8] sm:$0xff]   ;;  %v1366_v29 = vld [vmem:[%s1482_s16 + $0xc0] sm:$0xff]  }
  0x19   : > { %v1363_v26 = vld [vmem:[%s1482_s16 + $0x8] sm:$0xff]   ;;  %v1367_v30 = vld [vmem:[%s1482_s16] sm:$0xff]  }
  0x1a   : > { %1190 = vmatpush3.bf16.msra.mxu0 %v1347_v10  ;;  %v1364_v27 = vld [vmem:[%s1482_s16 + $0x88] sm:$0xff]   ;;  %v1368_v31 = vld [vmem:[%s1482_s16 + $0x80] sm:$0xff]  }
  0x1b   : > { %1254 = vmatpush3.bf16.msra.mxu1 %v1348_v11  ;;  %1191 = vmatprep.subr.bf16.mxu0 %v1349_v12  ;;  %v1369_v32 = vld [vmem:[%s1519_s19] ss:$16 sps:$4 sm:$0xff]   ;;  %v1371_v33 = vld [vmem:[%s1519_s19 + $0x4] ss:$16 sps:$4 sm:$0xff]   ;;  %v1372_v34 = vld [vmem:[%s1519_s19 + $0x8] ss:$16 sps:$4 sm:$0xff]  }
  0x1c   : > { %1255 = vmatprep.subr.bf16.mxu1 %v1350_v13  ;;  %v1374_v35 = vld [vmem:[%s1519_s19 + $0xc] ss:$16 sps:$4 sm:$0xff]   ;;  %762 = vmatprep.mubr.bf16.mxu0 %v1371_v33  ;;  %v1375_v36 = vld [vmem:[%s1519_s19 + $0x24] ss:$16 sps:$4 sm:$0xff]   ;;  %v1379_v38 = vld [vmem:[%s1519_s19 + $0x20] ss:$16 sps:$4 sm:$0xff]  }
  0x1d   : > { %859 = vmatprep.mubr.bf16.mxu1 %v1374_v35  ;;  %v1377_v37 = vld [vmem:[%s1519_s19 + $0x2c] ss:$16 sps:$4 sm:$0xff]   ;;  %v1380_v39 = vld [vmem:[%s1519_s19 + $0x28] ss:$16 sps:$4 sm:$0xff]   ;;  %v1381_v40 = vld [vmem:[%s1519_s19 + $0x44] ss:$16 sps:$4 sm:$0xff]  }
  0x1e   : > { %1192 = vmatpush3.bf16.msra.mxu0 %v1351_v14  ;;  %v1383_v41 = vld [vmem:[%s1519_s19 + $0x4c] ss:$16 sps:$4 sm:$0xff]   ;;  %v1385_v42 = vld [vmem:[%s1519_s19 + $0x40] ss:$16 sps:$4 sm:$0xff]   ;;  %v1386_v43 = vld [vmem:[%s1519_s19 + $0x48] ss:$16 sps:$4 sm:$0xff]  }
  0x1f   : > { %1256 = vmatpush3.bf16.msra.mxu1 %v1352_v15  ;;  %1193 = vmatprep.subr.bf16.mxu0 %v1353_v16  ;;  %v1387_v44 = vld [vmem:[%s1519_s19 + $0x64] ss:$16 sps:$4 sm:$0xff]   ;;  %v1389_v45 = vld [vmem:[%s1519_s19 + $0x6c] ss:$16 sps:$4 sm:$0xff]   ;;  %v1391_v46 = vld [vmem:[%s1519_s19 + $0x60] ss:$16 sps:$4 sm:$0xff]  }
  0x20   : > { %1257 = vmatprep.subr.bf16.mxu1 %v1354_v17  ;;  %v1392_v47 = vld [vmem:[%s1519_s19 + $0x68] ss:$16 sps:$4 sm:$0xff]   ;;  %v1393_v48 = vld [vmem:[%s1519_s19 + $0x84] ss:$16 sps:$4 sm:$0xff]   ;;  %v1395_v49 = vld [vmem:[%s1519_s19 + $0x8c] ss:$16 sps:$4 sm:$0xff]  }
  0x21   : > { %v1397_v50 = vld [vmem:[%s1519_s19 + $0x80] ss:$16 sps:$4 sm:$0xff]   ;;  %v1398_v51 = vld [vmem:[%s1519_s19 + $0x88] ss:$16 sps:$4 sm:$0xff]   ;;  %v1399_v52 = vld [vmem:[%s1519_s19 + $0xa4] ss:$16 sps:$4 sm:$0xff]  }
  0x22   : > { %1194 = vmatpush3.bf16.msra.mxu0 %v1355_v18  ;;  %v1401_v53 = vld [vmem:[%s1519_s19 + $0xac] ss:$16 sps:$4 sm:$0xff]   ;;  %v1403_v54 = vld [vmem:[%s1519_s19 + $0xa0] ss:$16 sps:$4 sm:$0xff]   ;;  %v1404_v55 = vld [vmem:[%s1519_s19 + $0xa8] ss:$16 sps:$4 sm:$0xff]  }
  0x23   : > { %1258 = vmatpush3.bf16.msra.mxu1 %v1356_v19  ;;  %1195 = vmatprep.subr.bf16.mxu0 %v1357_v20  ;;  %v1405_v56 = vld [vmem:[%s1519_s19 + $0xc4] ss:$16 sps:$4 sm:$0xff]   ;;  %v1407_v57 = vld [vmem:[%s1519_s19 + $0xcc] ss:$16 sps:$4 sm:$0xff]   ;;  %v1409_v58 = vld [vmem:[%s1519_s19 + $0xc0] ss:$16 sps:$4 sm:$0xff]  }
  0x24   : > { %1259 = vmatprep.subr.bf16.mxu1 %v1358_v21  ;;  %v1410_v59 = vld [vmem:[%s1519_s19 + $0xc8] ss:$16 sps:$4 sm:$0xff]   ;;  %v1411_v60 = vld [vmem:[%s1519_s19 + $0xe4] ss:$16 sps:$4 sm:$0xff]   ;;  %v1413_v61 = vld [vmem:[%s1519_s19 + $0xec] ss:$16 sps:$4 sm:$0xff]  }
  0x25   : > { %v1415_v62 = vld [vmem:[%s1519_s19 + $0xe0] ss:$16 sps:$4 sm:$0xff]   ;;  %v1416_v63 = vld [vmem:[%s1519_s19 + $0xe8] ss:$16 sps:$4 sm:$0xff]  }
  0x26   : > { %1196 = vmatpush3.bf16.msra.mxu0 %v1359_v22 }
  0x27   : > { %1260 = vmatpush3.bf16.msra.mxu1 %v1360_v23  ;;  %1197 = vmatprep.subr.bf16.mxu0 %v1361_v24 }
  0x28   : > { %1261 = vmatprep.subr.bf16.mxu1 %v1362_v25 }
  0x2a   : > { %1198 = vmatpush3.bf16.msra.mxu0 %v1363_v26 }
  0x2b   : > { %1262 = vmatpush3.bf16.msra.mxu1 %v1364_v27  ;;  %1199 = vmatprep.subr.bf16.mxu0 %v1365_v28 }
  0x2c   : > { %1263 = vmatprep.subr.bf16.mxu1 %v1366_v29 }
  0x2e   : > { %1200 = vmatpush3.bf16.msra.mxu0 %v1367_v30 }
  0x2f   : > { %1264 = vmatpush3.bf16.msra.mxu1 %v1368_v31 }
  0x31   : > { %763 = vmatmul.mubr.bf16.vlgmr.msra.gmra.mxu0 %v1369_v32 }
  0x32   : > { %860 = vmatmul.mubr.bf16.vlgmr.msra.gmra.mxu1 %v1372_v34  ;;  %770 = vmatprep.mubr.bf16.mxu0 %v1375_v36 }
  0x33   : > { %867 = vmatprep.mubr.bf16.mxu1 %v1377_v37 }
  0x39   : > { %771 = vmatmul.mubr.bf16.gmra.mxu0 %v1379_v38 }
  0x3a   : > { %868 = vmatmul.mubr.bf16.gmra.mxu1 %v1380_v39  ;;  %778 = vmatprep.mubr.bf16.mxu0 %v1381_v40 }
  0x3b   : > { %875 = vmatprep.mubr.bf16.mxu1 %v1383_v41 }
  0x41   : > { %779 = vmatmul.mubr.bf16.gmra.mxu0 %v1385_v42 }
  0x42   : > { %876 = vmatmul.mubr.bf16.gmra.mxu1 %v1386_v43  ;;  %786 = vmatprep.mubr.bf16.mxu0 %v1387_v44 }
  0x43   : > { %883 = vmatprep.mubr.bf16.mxu1 %v1389_v45 }
  0x49   : > { %787 = vmatmul.mubr.bf16.gmra.mxu0 %v1391_v46 }
  0x4a   : > { %884 = vmatmul.mubr.bf16.gmra.mxu1 %v1392_v47  ;;  %794 = vmatprep.mubr.bf16.mxu0 %v1393_v48 }
  0x4b   : > { %891 = vmatprep.mubr.bf16.mxu1 %v1395_v49 }
  0x51   : > { %795 = vmatmul.mubr.bf16.gmra.mxu0 %v1397_v50 }
  0x52   : > { %892 = vmatmul.mubr.bf16.gmra.mxu1 %v1398_v51  ;;  %802 = vmatprep.mubr.bf16.mxu0 %v1399_v52 }
  0x53   : > { %899 = vmatprep.mubr.bf16.mxu1 %v1401_v53 }
  0x59   : > { %803 = vmatmul.mubr.bf16.gmra.mxu0 %v1403_v54 }
  0x5a   : > { %900 = vmatmul.mubr.bf16.gmra.mxu1 %v1404_v55  ;;  %810 = vmatprep.mubr.bf16.mxu0 %v1405_v56 }
  0x5b   : > { %907 = vmatprep.mubr.bf16.mxu1 %v1407_v57 }
  0x61   : > { %811 = vmatmul.mubr.bf16.gmra.mxu0 %v1409_v58 }
  0x62   : > { %908 = vmatmul.mubr.bf16.gmra.mxu1 %v1410_v59  ;;  %818 = vmatprep.mubr.bf16.mxu0 %v1411_v60 }
  0x63   : > { %915 = vmatprep.mubr.bf16.mxu1 %v1413_v61 }
  0x69   : > { %819 = vmatmul.mubr.bf16.gmra.mxu0 %v1415_v62 }
  0x6a   : > { %916 = vmatmul.mubr.bf16.gmra.mxu1 %v1416_v63 }
  0xf1   : > { %v1201_v0 = vpop.f32.mrf.mxu0 }
  0xf2   : > { %v1265_v1 = vpop.f32.mrf.mxu1 }
  0xf3   : > { %v1202_v2 = vpop.f32.mrf.mxu0 }
  0xf4   : > { %v1203_v3 = vadd.f32 %v1202_v2, %v1201_v0  ;;  %v1266_v4 = vpop.f32.mrf.mxu1 }
  0xf5   : > { %v1267_v5 = vadd.f32 %v1266_v4, %v1265_v1  ;;  %v1204_v6 = vpop.f32.mrf.mxu0 }
  0xf6   : > { %v1268_v7 = vpop.f32.mrf.mxu1 }
  0xf7   : > { %v862_v8 = vadd.f32 %v1267_v5, %v1203_v3  ;;  %v1205_v9 = vpop.f32.mrf.mxu0 }
  0xf8   : > { %v1206_v10 = vadd.f32 %v1205_v9, %v1204_v6  ;;  %v1269_v11 = vpop.f32.mrf.mxu1 }
  0xf9   : > { %975 = vst [vmem:[%s1559_s23] sm:$0xff] %v862_v8  ;;  %v1270_v12 = vadd.f32 %v1269_v11, %v1268_v7  ;;  %v1207_v13 = vpop.f32.mrf.mxu0 }
  0xfa   : > { %v1271_v14 = vpop.f32.mrf.mxu1 }
  0xfb   : > { %v865_v15 = vadd.f32 %v1270_v12, %v1206_v10  ;;  %v1208_v16 = vpop.f32.mrf.mxu0 }
  0xfc   : > { %v1209_v17 = vadd.f32 %v1208_v16, %v1207_v13  ;;  %v1272_v18 = vpop.f32.mrf.mxu1 }
  0xfd   : > { %976 = vst [vmem:[%s1559_s23 + $0x8] sm:$0xff] %v865_v15  ;;  %v1273_v19 = vadd.f32 %v1272_v18, %v1271_v14  ;;  %v1210_v20 = vpop.f32.mrf.mxu0 }
  0xfe   : > { %v1274_v21 = vpop.f32.mrf.mxu1 }
  0xff   : > { %v870_v22 = vadd.f32 %v1273_v19, %v1209_v17  ;;  %v1211_v23 = vpop.f32.mrf.mxu0 }
 0x100   : > { %v1212_v24 = vadd.f32 %v1211_v23, %v1210_v20  ;;  %v1275_v25 = vpop.f32.mrf.mxu1 }
 0x101   : > { %977 = vst [vmem:[%s1559_s23 + $0x10] sm:$0xff] %v870_v22  ;;  %v1276_v26 = vadd.f32 %v1275_v25, %v1274_v21  ;;  %v1213_v27 = vpop.f32.mrf.mxu0 }
 0x102   : > { %v1277_v28 = vpop.f32.mrf.mxu1 }
 0x103   : > { %v873_v29 = vadd.f32 %v1276_v26, %v1212_v24  ;;  %v1214_v30 = vpop.f32.mrf.mxu0 }
 0x104   : > { %v1215_v31 = vadd.f32 %v1214_v30, %v1213_v27  ;;  %v1278_v32 = vpop.f32.mrf.mxu1 }
 0x105   : > { %978 = vst [vmem:[%s1559_s23 + $0x18] sm:$0xff] %v873_v29  ;;  %v1279_v33 = vadd.f32 %v1278_v32, %v1277_v28  ;;  %v1216_v34 = vpop.f32.mrf.mxu0 }
 0x106   : > { %v1280_v35 = vpop.f32.mrf.mxu1 }
 0x107   : > { %v878_v36 = vadd.f32 %v1279_v33, %v1215_v31  ;;  %v1217_v37 = vpop.f32.mrf.mxu0 }
 0x108   : > { %v1218_v38 = vadd.f32 %v1217_v37, %v1216_v34  ;;  %v1281_v39 = vpop.f32.mrf.mxu1 }
 0x109   : > { %979 = vst [vmem:[%s1559_s23 + $0x20] sm:$0xff] %v878_v36  ;;  %v1282_v40 = vadd.f32 %v1281_v39, %v1280_v35  ;;  %v1219_v41 = vpop.f32.mrf.mxu0 }
 0x10a   : > { %v1283_v42 = vpop.f32.mrf.mxu1 }
 0x10b   : > { %v881_v43 = vadd.f32 %v1282_v40, %v1218_v38  ;;  %v1220_v44 = vpop.f32.mrf.mxu0 }
 0x10c   : > { %v1221_v45 = vadd.f32 %v1220_v44, %v1219_v41  ;;  %v1284_v46 = vpop.f32.mrf.mxu1 }
 0x10d   : > { %980 = vst [vmem:[%s1559_s23 + $0x28] sm:$0xff] %v881_v43  ;;  %v1285_v47 = vadd.f32 %v1284_v46, %v1283_v42  ;;  %v1222_v48 = vpop.f32.mrf.mxu0 }
 0x10e   : > { %v1286_v49 = vpop.f32.mrf.mxu1 }
 0x10f   : > { %v886_v50 = vadd.f32 %v1285_v47, %v1221_v45  ;;  %v1223_v51 = vpop.f32.mrf.mxu0 }
 0x110   : > { %v1224_v52 = vadd.f32 %v1223_v51, %v1222_v48  ;;  %v1287_v53 = vpop.f32.mrf.mxu1 }
 0x111   : > { %981 = vst [vmem:[%s1559_s23 + $0x30] sm:$0xff] %v886_v50  ;;  %v1288_v54 = vadd.f32 %v1287_v53, %v1286_v49  ;;  %v1225_v55 = vpop.f32.mrf.mxu0 }
 0x112   : > { %v1289_v56 = vpop.f32.mrf.mxu1 }
 0x113   : > { %v889_v57 = vadd.f32 %v1288_v54, %v1224_v52  ;;  %v1226_v58 = vpop.f32.mrf.mxu0 }
 0x114   : > { %v1227_v59 = vadd.f32 %v1226_v58, %v1225_v55  ;;  %v1290_v60 = vpop.f32.mrf.mxu1 }
 0x115   : > { %982 = vst [vmem:[%s1559_s23 + $0x38] sm:$0xff] %v889_v57  ;;  %v1291_v61 = vadd.f32 %v1290_v60, %v1289_v56  ;;  %v1228_v62 = vpop.f32.mrf.mxu0 }
 0x116   : > { %v1292_v63 = vpop.f32.mrf.mxu1 }
 0x117   : > { %v894_v0 = vadd.f32 %v1291_v61, %v1227_v59  ;;  %v1229_v1 = vpop.f32.mrf.mxu0 }
 0x118   : > { %v1230_v2 = vadd.f32 %v1229_v1, %v1228_v62  ;;  %v1293_v3 = vpop.f32.mrf.mxu1 }
 0x119   : > { %983 = vst [vmem:[%s1559_s23 + $0x40] sm:$0xff] %v894_v0  ;;  %v1294_v4 = vadd.f32 %v1293_v3, %v1292_v63  ;;  %v1231_v5 = vpop.f32.mrf.mxu0 }
 0x11a   : > { %v1295_v6 = vpop.f32.mrf.mxu1 }
 0x11b   : > { %v897_v7 = vadd.f32 %v1294_v4, %v1230_v2  ;;  %v1232_v8 = vpop.f32.mrf.mxu0 }
 0x11c   : > { %v1233_v9 = vadd.f32 %v1232_v8, %v1231_v5  ;;  %v1296_v10 = vpop.f32.mrf.mxu1 }
 0x11d   : > { %984 = vst [vmem:[%s1559_s23 + $0x48] sm:$0xff] %v897_v7  ;;  %v1297_v11 = vadd.f32 %v1296_v10, %v1295_v6  ;;  %v1234_v12 = vpop.f32.mrf.mxu0 }
 0x11e   : > { %v1298_v13 = vpop.f32.mrf.mxu1 }
 0x11f   : > { %v902_v14 = vadd.f32 %v1297_v11, %v1233_v9  ;;  %v1235_v15 = vpop.f32.mrf.mxu0 }
 0x120   : > { %v1236_v16 = vadd.f32 %v1235_v15, %v1234_v12  ;;  %v1299_v17 = vpop.f32.mrf.mxu1 }
 0x121   : > { %985 = vst [vmem:[%s1559_s23 + $0x50] sm:$0xff] %v902_v14  ;;  %v1300_v18 = vadd.f32 %v1299_v17, %v1298_v13  ;;  %v1237_v19 = vpop.f32.mrf.mxu0 }
 0x122   : > { %v1301_v20 = vpop.f32.mrf.mxu1 }
 0x123   : > { %v905_v21 = vadd.f32 %v1300_v18, %v1236_v16  ;;  %v1238_v22 = vpop.f32.mrf.mxu0 }
 0x124   : > { %v1239_v23 = vadd.f32 %v1238_v22, %v1237_v19  ;;  %v1302_v24 = vpop.f32.mrf.mxu1 }
 0x125   : > { %986 = vst [vmem:[%s1559_s23 + $0x58] sm:$0xff] %v905_v21  ;;  %v1303_v25 = vadd.f32 %v1302_v24, %v1301_v20  ;;  %v1240_v26 = vpop.f32.mrf.mxu0 }
 0x126   : > { %v1304_v27 = vpop.f32.mrf.mxu1 }
 0x127   : > { %v910_v28 = vadd.f32 %v1303_v25, %v1239_v23  ;;  %v1241_v29 = vpop.f32.mrf.mxu0 }
 0x128   : > { %v1242_v30 = vadd.f32 %v1241_v29, %v1240_v26  ;;  %v1305_v31 = vpop.f32.mrf.mxu1 }
 0x129   : > { %987 = vst [vmem:[%s1559_s23 + $0x60] sm:$0xff] %v910_v28  ;;  %v1306_v32 = vadd.f32 %v1305_v31, %v1304_v27  ;;  %v1243_v33 = vpop.f32.mrf.mxu0 }
 0x12a   : > { %v1307_v34 = vpop.f32.mrf.mxu1 }
 0x12b   : > { %v913_v35 = vadd.f32 %v1306_v32, %v1242_v30  ;;  %v1244_v36 = vpop.f32.mrf.mxu0 }
 0x12c   : > { %v1245_v37 = vadd.f32 %v1244_v36, %v1243_v33  ;;  %v1308_v38 = vpop.f32.mrf.mxu1 }
 0x12d   : > { %988 = vst [vmem:[%s1559_s23 + $0x68] sm:$0xff] %v913_v35  ;;  %v1309_v39 = vadd.f32 %v1308_v38, %v1307_v34  ;;  %v1246_v40 = vpop.f32.mrf.mxu0 }
 0x12e   : > { %v1310_v41 = vpop.f32.mrf.mxu1 }
 0x12f   : > { %v918_v42 = vadd.f32 %v1309_v39, %v1245_v37  ;;  %v1247_v43 = vpop.f32.mrf.mxu0 }
 0x130   : > { %v1248_v44 = vadd.f32 %v1247_v43, %v1246_v40  ;;  %v1311_v45 = vpop.f32.mrf.mxu1 }
 0x131   : > { %989 = vst [vmem:[%s1559_s23 + $0x70] sm:$0xff] %v918_v42  ;;  %v1312_v46 = vadd.f32 %v1311_v45, %v1310_v41 }
 0x133   : > { %v921_v47 = vadd.f32 %v1312_v46, %v1248_v44 }
 0x135   : > { %990 = vst [vmem:[%s1559_s23 + $0x78] sm:$0xff] %v921_v47 }
 0x136 PF: > { %s12_s11 = sadd.s32 1, %s1439_s11   ;;  %s1589_s9 = smov %s1435_s10 }
 0x137   : > { %p9_p5 = scmp.ge.s32.totalorder %s12_s11, 6   ;;  %s1590_s10 = smov %s1592_s12 }
 0x139   :  { %11 = sbr.rel (!%p9_p5) target bundleno = 2 (0x2), region = 69 }

// kernel: netG_forward.23
= control target key start
LH: loop header
LB: loop body
LE: loop exit
PB: predicated region body
PF: predicated region fallthrough
CT: control target
= control target key end

     0   :  { %s445_s6 = smov 0   ;;  %s534_s0 = inlined_call_operand.vmem [shape: f32[2048,128], index: 0, kind: input, shape index: {}]   ;;  %s535_s1 = inlined_call_operand.vmem [shape: f32[2,128], index: 1, kind: output, shape index: {}]  }
   0x1 LB: > { %s408_s7 = sadd.s32 4294967295, %s432_s6   ;;  %p411_p0 = scmp.ge.s32.totalorder %s432_s6, 1  ;;  %s432_s6 = sphi %s445_s6, %s11_s6  }
   0x2   : > { %p83_p1 = scmp.lt.s32.totalorder %s432_s6, 5 }
   0x4   : > { %p84_p2 = pnand %p411_p0, %p83_p1 }
   0x5   : > { %s412_s8 = sshll.u32 (!%p84_p2), %s408_s7, 6  ;;  %p414_p4 = scmp.ne.s32.totalorder (!%p84_p2), %s408_s7, 0 }
   0x6   : > { %87 = sbr.rel (%p84_p2) target bundleno = 163 (0xa3), region = 24  ;;  %p99_p3 = scmp.lt.s32.totalorder (!%p84_p2), %s412_s8, 255 }
   0xb   : > { %s537_s8 = smov (!%p99_p3, %s412_s8), 255  ;;  %107 = sbr.rel (%p414_p4) target bundleno = 18 (0x12), region = 28 }
   0xc   : > { %s413_s9 = sshll.u32 %s537_s8, 3 }
   0xd   : > { %s456_s12 = scalar_lea.vmem %s534_s0, %s413_s9 }
  0x10   : > { %v434_v0 = vmov 0.0  }
  0x11   : > { %108 = vst [vmem:[%s535_s1] sm:$0x3] %v434_v0 }
  0x12 PF: > { %v109_v1 = vld [vmem:[%s456_s12] sm:$0xff]  ;;  %v110_v2 = vld [vmem:[%s456_s12 + $0x8] sm:$0xff]  ;;  %v111_v3 = vld [vmem:[%s456_s12 + $0x10] sm:$0xff]  ;;  %vm376_vm0 = vcmask 1040384  }
  0x13   : > { %v112_v4 = vld [vmem:[%s456_s12 + $0x18] sm:$0xff]  ;;  %v174_v5 = vadd.f32 %v110_v2, %v109_v1  ;;  %v243_v6 = vmul.f32 %v109_v1, %v109_v1  ;;  %v244_v7 = vmul.f32 %v110_v2, %v110_v2  ;;  %v245_v8 = vmul.f32 %v111_v3, %v111_v3  ;;  %v113_v9 = vld [vmem:[%s456_s12 + $0x20] sm:$0xff]  ;;  %v114_v13 = vld [vmem:[%s456_s12 + $0x28] sm:$0xff] }
  0x14   : > { %v246_v11 = vmul.f32 %v112_v4, %v112_v4  ;;  %v247_v15 = vmul.f32 %v113_v9, %v113_v9  ;;  %v115_v17 = vld [vmem:[%s456_s12 + $0x30] sm:$0xff]  ;;  %v248_v19 = vmul.f32 %v114_v13, %v114_v13  ;;  %v116_v21 = vld [vmem:[%s456_s12 + $0x38] sm:$0xff]  ;;  %v117_v25 = vld [vmem:[%s456_s12 + $0x40] sm:$0xff] }
  0x15   : > { %v175_v10 = vadd.f32 %v174_v5, %v111_v3  ;;  %v307_v12 = vadd.f32 %v244_v7, %v243_v6  ;;  %v249_v23 = vmul.f32 %v115_v17, %v115_v17  ;;  %v250_v27 = vmul.f32 %v116_v21, %v116_v21  ;;  %v118_v29 = vld [vmem:[%s456_s12 + $0x48] sm:$0xff]  ;;  %v119_v33 = vld [vmem:[%s456_s12 + $0x50] sm:$0xff]  ;;  %v120_v37 = vld [vmem:[%s456_s12 + $0x58] sm:$0xff] }
  0x16   : > { %v251_v31 = vmul.f32 %v117_v25, %v117_v25  ;;  %v252_v35 = vmul.f32 %v118_v29, %v118_v29  ;;  %v253_v39 = vmul.f32 %v119_v33, %v119_v33  ;;  %v121_v41 = vld [vmem:[%s456_s12 + $0x60] sm:$0xff]  ;;  %v254_v43 = vmul.f32 %v120_v37, %v120_v37  ;;  %v122_v45 = vld [vmem:[%s456_s12 + $0x68] sm:$0xff]  ;;  %v123_v49 = vld [vmem:[%s456_s12 + $0x70] sm:$0xff] }
  0x17   : > { %v176_v14 = vadd.f32 %v175_v10, %v112_v4  ;;  %v308_v16 = vadd.f32 %v307_v12, %v245_v8  ;;  %v255_v47 = vmul.f32 %v121_v41, %v121_v41  ;;  %v256_v51 = vmul.f32 %v122_v45, %v122_v45  ;;  %v124_v53 = vld [vmem:[%s456_s12 + $0x78] sm:$0xff]  ;;  %v125_v57 = vld [vmem:[%s456_s12 + $0x80] sm:$0xff]  ;;  %v126_v61 = vld [vmem:[%s456_s12 + $0x88] sm:$0xff] }
  0x18   : > { %v257_v55 = vmul.f32 %v123_v49, %v123_v49  ;;  %v258_v59 = vmul.f32 %v124_v53, %v124_v53  ;;  %v259_v63 = vmul.f32 %v125_v57, %v125_v57  ;;  %v127_v1 = vld [vmem:[%s456_s12 + $0x90] sm:$0xff]  ;;  %v260_v3 = vmul.f32 %v126_v61, %v126_v61  ;;  %v128_v5 = vld [vmem:[%s456_s12 + $0x98] sm:$0xff] }
  0x19   : > { %v177_v18 = vadd.f32 %v176_v14, %v113_v9  ;;  %v309_v20 = vadd.f32 %v308_v16, %v246_v11  ;;  %v261_v7 = vmul.f32 %v127_v1, %v127_v1  ;;  %v129_v9 = vld [vmem:[%s456_s12 + $0xa0] sm:$0xff]  ;;  %v262_v11 = vmul.f32 %v128_v5, %v128_v5 }
  0x1b   : > { %v178_v22 = vadd.f32 %v177_v18, %v114_v13  ;;  %v310_v24 = vadd.f32 %v309_v20, %v247_v15  ;;  %v130_v13 = vld [vmem:[%s456_s12 + $0xa8] sm:$0xff]  ;;  %v263_v15 = vmul.f32 %v129_v9, %v129_v9 }
  0x1d   : > { %v179_v26 = vadd.f32 %v178_v22, %v115_v17  ;;  %v311_v28 = vadd.f32 %v310_v24, %v248_v19  ;;  %v131_v17 = vld [vmem:[%s456_s12 + $0xb0] sm:$0xff]  ;;  %v264_v19 = vmul.f32 %v130_v13, %v130_v13 }
  0x1f   : > { %v180_v30 = vadd.f32 %v179_v26, %v116_v21  ;;  %v312_v32 = vadd.f32 %v311_v28, %v249_v23  ;;  %v132_v21 = vld [vmem:[%s456_s12 + $0xb8] sm:$0xff]  ;;  %v265_v23 = vmul.f32 %v131_v17, %v131_v17 }
  0x21   : > { %v181_v34 = vadd.f32 %v180_v30, %v117_v25  ;;  %v313_v36 = vadd.f32 %v312_v32, %v250_v27  ;;  %v133_v25 = vld [vmem:[%s456_s12 + $0xc0] sm:$0xff]  ;;  %v266_v27 = vmul.f32 %v132_v21, %v132_v21 }
  0x23   : > { %v182_v38 = vadd.f32 %v181_v34, %v118_v29  ;;  %v314_v40 = vadd.f32 %v313_v36, %v251_v31  ;;  %v134_v29 = vld [vmem:[%s456_s12 + $0xc8] sm:$0xff]  ;;  %v267_v31 = vmul.f32 %v133_v25, %v133_v25 }
  0x25   : > { %v183_v42 = vadd.f32 %v182_v38, %v119_v33  ;;  %v315_v44 = vadd.f32 %v314_v40, %v252_v35  ;;  %v135_v33 = vld [vmem:[%s456_s12 + $0xd0] sm:$0xff]  ;;  %v268_v35 = vmul.f32 %v134_v29, %v134_v29 }
  0x27   : > { %v184_v46 = vadd.f32 %v183_v42, %v120_v37  ;;  %v316_v48 = vadd.f32 %v315_v44, %v253_v39  ;;  %v136_v37 = vld [vmem:[%s456_s12 + $0xd8] sm:$0xff]  ;;  %v269_v39 = vmul.f32 %v135_v33, %v135_v33 }
  0x29   : > { %v185_v50 = vadd.f32 %v184_v46, %v121_v41  ;;  %v317_v52 = vadd.f32 %v316_v48, %v254_v43  ;;  %v137_v41 = vld [vmem:[%s456_s12 + $0xe0] sm:$0xff]  ;;  %v270_v43 = vmul.f32 %v136_v37, %v136_v37 }
  0x2b   : > { %v186_v54 = vadd.f32 %v185_v50, %v122_v45  ;;  %v318_v56 = vadd.f32 %v317_v52, %v255_v47  ;;  %v138_v45 = vld [vmem:[%s456_s12 + $0xe8] sm:$0xff]  ;;  %v271_v47 = vmul.f32 %v137_v41, %v137_v41 }
  0x2d   : > { %v187_v58 = vadd.f32 %v186_v54, %v123_v49  ;;  %v319_v60 = vadd.f32 %v318_v56, %v256_v51  ;;  %v139_v49 = vld [vmem:[%s456_s12 + $0xf0] sm:$0xff]  ;;  %v272_v51 = vmul.f32 %v138_v45, %v138_v45 }
  0x2f   : > { %v188_v62 = vadd.f32 %v187_v58, %v124_v53  ;;  %v320_v0 = vadd.f32 %v319_v60, %v257_v55  ;;  %v140_v53 = vld [vmem:[%s456_s12 + $0xf8] sm:$0xff]  ;;  %v273_v55 = vmul.f32 %v139_v49, %v139_v49 }
  0x31   : > { %v189_v2 = vadd.f32 %v188_v62, %v125_v57  ;;  %v321_v4 = vadd.f32 %v320_v0, %v258_v59  ;;  %v141_v57 = vld [vmem:[%s456_s12 + $0x100] sm:$0xff]  ;;  %v274_v59 = vmul.f32 %v140_v53, %v140_v53 }
  0x33   : > { %v190_v6 = vadd.f32 %v189_v2, %v126_v61  ;;  %v322_v8 = vadd.f32 %v321_v4, %v259_v63  ;;  %v142_v61 = vld [vmem:[%s456_s12 + $0x108] sm:$0xff]  ;;  %v275_v63 = vmul.f32 %v141_v57, %v141_v57 }
  0x35   : > { %v191_v10 = vadd.f32 %v190_v6, %v127_v1  ;;  %v323_v12 = vadd.f32 %v322_v8, %v260_v3  ;;  %v143_v1 = vld [vmem:[%s456_s12 + $0x110] sm:$0xff]  ;;  %v276_v3 = vmul.f32 %v142_v61, %v142_v61 }
  0x37   : > { %v192_v14 = vadd.f32 %v191_v10, %v128_v5  ;;  %v324_v16 = vadd.f32 %v323_v12, %v261_v7  ;;  %v144_v5 = vld [vmem:[%s456_s12 + $0x118] sm:$0xff]  ;;  %v277_v7 = vmul.f32 %v143_v1, %v143_v1 }
  0x39   : > { %v193_v18 = vadd.f32 %v192_v14, %v129_v9  ;;  %v325_v20 = vadd.f32 %v324_v16, %v262_v11  ;;  %v145_v9 = vld [vmem:[%s456_s12 + $0x120] sm:$0xff]  ;;  %v278_v11 = vmul.f32 %v144_v5, %v144_v5 }
  0x3b   : > { %v194_v22 = vadd.f32 %v193_v18, %v130_v13  ;;  %v326_v24 = vadd.f32 %v325_v20, %v263_v15  ;;  %v146_v13 = vld [vmem:[%s456_s12 + $0x128] sm:$0xff]  ;;  %v279_v15 = vmul.f32 %v145_v9, %v145_v9 }
  0x3d   : > { %v195_v26 = vadd.f32 %v194_v22, %v131_v17  ;;  %v327_v28 = vadd.f32 %v326_v24, %v264_v19  ;;  %v147_v17 = vld [vmem:[%s456_s12 + $0x130] sm:$0xff]  ;;  %v280_v19 = vmul.f32 %v146_v13, %v146_v13 }
  0x3f   : > { %v196_v30 = vadd.f32 %v195_v26, %v132_v21  ;;  %v328_v32 = vadd.f32 %v327_v28, %v265_v23  ;;  %v148_v21 = vld [vmem:[%s456_s12 + $0x138] sm:$0xff]  ;;  %v281_v23 = vmul.f32 %v147_v17, %v147_v17 }
  0x41   : > { %v197_v34 = vadd.f32 %v196_v30, %v133_v25  ;;  %v329_v36 = vadd.f32 %v328_v32, %v266_v27  ;;  %v149_v25 = vld [vmem:[%s456_s12 + $0x140] sm:$0xff]  ;;  %v282_v27 = vmul.f32 %v148_v21, %v148_v21 }
  0x43   : > { %v198_v38 = vadd.f32 %v197_v34, %v134_v29  ;;  %v330_v40 = vadd.f32 %v329_v36, %v267_v31  ;;  %v150_v29 = vld [vmem:[%s456_s12 + $0x148] sm:$0xff]  ;;  %v283_v31 = vmul.f32 %v149_v25, %v149_v25 }
  0x45   : > { %v199_v42 = vadd.f32 %v198_v38, %v135_v33  ;;  %v331_v44 = vadd.f32 %v330_v40, %v268_v35  ;;  %v151_v33 = vld [vmem:[%s456_s12 + $0x150] sm:$0xff]  ;;  %v284_v35 = vmul.f32 %v150_v29, %v150_v29 }
  0x47   : > { %v200_v46 = vadd.f32 %v199_v42, %v136_v37  ;;  %v332_v48 = vadd.f32 %v331_v44, %v269_v39  ;;  %v152_v37 = vld [vmem:[%s456_s12 + $0x158] sm:$0xff]  ;;  %v285_v39 = vmul.f32 %v151_v33, %v151_v33 }
  0x49   : > { %v201_v50 = vadd.f32 %v200_v46, %v137_v41  ;;  %v333_v52 = vadd.f32 %v332_v48, %v270_v43  ;;  %v153_v41 = vld [vmem:[%s456_s12 + $0x160] sm:$0xff]  ;;  %v286_v43 = vmul.f32 %v152_v37, %v152_v37 }
  0x4b   : > { %v202_v54 = vadd.f32 %v201_v50, %v138_v45  ;;  %v334_v56 = vadd.f32 %v333_v52, %v271_v47  ;;  %v154_v45 = vld [vmem:[%s456_s12 + $0x168] sm:$0xff]  ;;  %v287_v47 = vmul.f32 %v153_v41, %v153_v41 }
  0x4d   : > { %v203_v58 = vadd.f32 %v202_v54, %v139_v49  ;;  %v335_v60 = vadd.f32 %v334_v56, %v272_v51  ;;  %v155_v49 = vld [vmem:[%s456_s12 + $0x170] sm:$0xff]  ;;  %v288_v51 = vmul.f32 %v154_v45, %v154_v45 }
  0x4f   : > { %v204_v62 = vadd.f32 %v203_v58, %v140_v53  ;;  %v336_v0 = vadd.f32 %v335_v60, %v273_v55  ;;  %v156_v53 = vld [vmem:[%s456_s12 + $0x178] sm:$0xff]  ;;  %v289_v55 = vmul.f32 %v155_v49, %v155_v49 }
  0x51   : > { %v205_v2 = vadd.f32 %v204_v62, %v141_v57  ;;  %v337_v4 = vadd.f32 %v336_v0, %v274_v59  ;;  %v157_v57 = vld [vmem:[%s456_s12 + $0x180] sm:$0xff]  ;;  %v290_v59 = vmul.f32 %v156_v53, %v156_v53 }
  0x53   : > { %v206_v6 = vadd.f32 %v205_v2, %v142_v61  ;;  %v338_v8 = vadd.f32 %v337_v4, %v275_v63  ;;  %v158_v61 = vld [vmem:[%s456_s12 + $0x188] sm:$0xff]  ;;  %v291_v63 = vmul.f32 %v157_v57, %v157_v57 }
  0x55   : > { %v207_v10 = vadd.f32 %v206_v6, %v143_v1  ;;  %v339_v12 = vadd.f32 %v338_v8, %v276_v3  ;;  %v159_v1 = vld [vmem:[%s456_s12 + $0x190] sm:$0xff]  ;;  %v292_v3 = vmul.f32 %v158_v61, %v158_v61 }
  0x57   : > { %v208_v14 = vadd.f32 %v207_v10, %v144_v5  ;;  %v340_v16 = vadd.f32 %v339_v12, %v277_v7  ;;  %v160_v5 = vld [vmem:[%s456_s12 + $0x198] sm:$0xff]  ;;  %v293_v7 = vmul.f32 %v159_v1, %v159_v1 }
  0x59   : > { %v209_v18 = vadd.f32 %v208_v14, %v145_v9  ;;  %v341_v20 = vadd.f32 %v340_v16, %v278_v11  ;;  %v161_v9 = vld [vmem:[%s456_s12 + $0x1a0] sm:$0xff]  ;;  %v294_v11 = vmul.f32 %v160_v5, %v160_v5 }
  0x5b   : > { %v210_v22 = vadd.f32 %v209_v18, %v146_v13  ;;  %v342_v24 = vadd.f32 %v341_v20, %v279_v15  ;;  %v162_v13 = vld [vmem:[%s456_s12 + $0x1a8] sm:$0xff]  ;;  %v295_v15 = vmul.f32 %v161_v9, %v161_v9 }
  0x5d   : > { %v211_v26 = vadd.f32 %v210_v22, %v147_v17  ;;  %v343_v28 = vadd.f32 %v342_v24, %v280_v19  ;;  %v163_v17 = vld [vmem:[%s456_s12 + $0x1b0] sm:$0xff]  ;;  %v296_v19 = vmul.f32 %v162_v13, %v162_v13 }
  0x5f   : > { %v212_v30 = vadd.f32 %v211_v26, %v148_v21  ;;  %v344_v32 = vadd.f32 %v343_v28, %v281_v23  ;;  %v164_v21 = vld [vmem:[%s456_s12 + $0x1b8] sm:$0xff]  ;;  %v297_v23 = vmul.f32 %v163_v17, %v163_v17 }
  0x61   : > { %v213_v34 = vadd.f32 %v212_v30, %v149_v25  ;;  %v345_v36 = vadd.f32 %v344_v32, %v282_v27  ;;  %v165_v25 = vld [vmem:[%s456_s12 + $0x1c0] sm:$0xff]  ;;  %v298_v27 = vmul.f32 %v164_v21, %v164_v21 }
  0x63   : > { %v214_v38 = vadd.f32 %v213_v34, %v150_v29  ;;  %v346_v40 = vadd.f32 %v345_v36, %v283_v31  ;;  %v166_v29 = vld [vmem:[%s456_s12 + $0x1c8] sm:$0xff]  ;;  %v299_v31 = vmul.f32 %v165_v25, %v165_v25 }
  0x65   : > { %v215_v42 = vadd.f32 %v214_v38, %v151_v33  ;;  %v347_v44 = vadd.f32 %v346_v40, %v284_v35  ;;  %v167_v33 = vld [vmem:[%s456_s12 + $0x1d0] sm:$0xff]  ;;  %v300_v35 = vmul.f32 %v166_v29, %v166_v29 }
  0x67   : > { %v216_v46 = vadd.f32 %v215_v42, %v152_v37  ;;  %v348_v48 = vadd.f32 %v347_v44, %v285_v39  ;;  %v168_v37 = vld [vmem:[%s456_s12 + $0x1d8] sm:$0xff]  ;;  %v301_v39 = vmul.f32 %v167_v33, %v167_v33 }
  0x69   : > { %v217_v50 = vadd.f32 %v216_v46, %v153_v41  ;;  %v349_v52 = vadd.f32 %v348_v48, %v286_v43  ;;  %v169_v41 = vld [vmem:[%s456_s12 + $0x1e0] sm:$0xff]  ;;  %v302_v43 = vmul.f32 %v168_v37, %v168_v37 }
  0x6b   : > { %v218_v54 = vadd.f32 %v217_v50, %v154_v45  ;;  %v350_v56 = vadd.f32 %v349_v52, %v287_v47  ;;  %v170_v45 = vld [vmem:[%s456_s12 + $0x1e8] sm:$0xff]  ;;  %v303_v47 = vmul.f32 %v169_v41, %v169_v41 }
  0x6d   : > { %v219_v58 = vadd.f32 %v218_v54, %v155_v49  ;;  %v351_v60 = vadd.f32 %v350_v56, %v288_v51  ;;  %v171_v49 = vld [vmem:[%s456_s12 + $0x1f0] sm:$0xff]  ;;  %v304_v51 = vmul.f32 %v170_v45, %v170_v45 }
  0x6f   : > { %v220_v62 = vadd.f32 %v219_v58, %v156_v53  ;;  %v352_v0 = vadd.f32 %v351_v60, %v289_v55  ;;  %v172_v53 = vld [vmem:[%s456_s12 + $0x1f8] sm:$0xff]  ;;  %v305_v55 = vmul.f32 %v171_v49, %v171_v49 }
  0x70   : > { %v306_v58 = vmul.f32 %v172_v53, %v172_v53 }
  0x71   : > { %v221_v2 = vadd.f32 %v220_v62, %v157_v57  ;;  %v353_v4 = vadd.f32 %v352_v0, %v290_v59 }
  0x73   : > { %v222_v6 = vadd.f32 %v221_v2, %v158_v61  ;;  %v354_v8 = vadd.f32 %v353_v4, %v291_v63 }
  0x75   : > { %v223_v10 = vadd.f32 %v222_v6, %v159_v1  ;;  %v355_v12 = vadd.f32 %v354_v8, %v292_v3 }
  0x77   : > { %v224_v14 = vadd.f32 %v223_v10, %v160_v5  ;;  %v356_v16 = vadd.f32 %v355_v12, %v293_v7  ;;  %v173_v10 = vld [vmem:[%s535_s1] sm:$0x3] }
  0x79   : > { %v225_v18 = vadd.f32 %v224_v14, %v161_v9  ;;  %v357_v20 = vadd.f32 %v356_v16, %v294_v11 }
  0x7b   : > { %v226_v22 = vadd.f32 %v225_v18, %v162_v13  ;;  %v358_v24 = vadd.f32 %v357_v20, %v295_v15 }
  0x7d   : > { %v227_v26 = vadd.f32 %v226_v22, %v163_v17  ;;  %v359_v28 = vadd.f32 %v358_v24, %v296_v19 }
  0x7f   : > { %v228_v30 = vadd.f32 %v227_v26, %v164_v21  ;;  %v360_v32 = vadd.f32 %v359_v28, %v297_v23 }
  0x81   : > { %v229_v34 = vadd.f32 %v228_v30, %v165_v25  ;;  %v361_v36 = vadd.f32 %v360_v32, %v298_v27 }
  0x83   : > { %v230_v38 = vadd.f32 %v229_v34, %v166_v29  ;;  %v362_v40 = vadd.f32 %v361_v36, %v299_v31 }
  0x85   : > { %v231_v42 = vadd.f32 %v230_v38, %v167_v33  ;;  %v363_v44 = vadd.f32 %v362_v40, %v300_v35 }
  0x87   : > { %v232_v46 = vadd.f32 %v231_v42, %v168_v37  ;;  %v364_v48 = vadd.f32 %v363_v44, %v301_v39 }
  0x89   : > { %v233_v50 = vadd.f32 %v232_v46, %v169_v41  ;;  %v365_v52 = vadd.f32 %v364_v48, %v302_v43 }
  0x8b   : > { %v234_v54 = vadd.f32 %v233_v50, %v170_v45  ;;  %v366_v56 = vadd.f32 %v365_v52, %v303_v47 }
  0x8d   : > { %v235_v57 = vadd.f32 %v234_v54, %v171_v49  ;;  %v367_v59 = vadd.f32 %v366_v56, %v304_v51 }
  0x8f   : > { %v236_v60 = vadd.f32 %v235_v57, %v172_v53  ;;  %v368_v61 = vadd.f32 %v367_v59, %v305_v55 }
  0x91   : > { %v237_v62 = vrot.slane %v236_v60, 4  ;;  %v369_v63 = vadd.f32 %v368_v61, %v306_v58 }
  0x93   : > { %v238_v0 = vadd.f32 %v237_v62, %v236_v60  ;;  %v370_v1 = vrot.slane %v369_v63, 4 }
  0x95   : > { %v239_v2 = vrot.slane %v238_v0, 2  ;;  %v371_v3 = vadd.f32 %v370_v1, %v369_v63 }
  0x97   : > { %v240_v4 = vadd.f32 %v239_v2, %v238_v0  ;;  %v372_v5 = vrot.slane %v371_v3, 2 }
  0x99   : > { %v241_v6 = vrot.slane %v240_v4, 1  ;;  %v373_v7 = vadd.f32 %v372_v5, %v371_v3 }
  0x9b   : > { %v242_v8 = vadd.f32 %v241_v6, %v240_v4  ;;  %v374_v9 = vrot.slane %v373_v7, 1 }
  0x9d   : > { %v375_v11 = vadd.f32 %v374_v9, %v373_v7 }
  0x9f   : > { %v377_v12 = vsel %vm376_vm0, %v242_v8, %v375_v11 }
  0xa0   : > { %v378_v13 = vadd.f32 %v377_v12, %v173_v10 }
  0xa2   : > { %379 = vst [vmem:[%s535_s1] sm:$0x3] %v378_v13 }
  0xa3 PF: > { %s11_s6 = sadd.s32 1, %s432_s6  }
  0xa4   : > { %p8_p5 = scmp.ge.s32.totalorder %s11_s6, 6  }
  0xa6   :  { %10 = sbr.rel (!%p8_p5) target bundleno = 1 (0x1), region = 54 }

// kernel: netG_forward.24
= control target key start
LH: loop header
LB: loop body
LE: loop exit
PB: predicated region body
PF: predicated region fallthrough
CT: control target
= control target key end

     0   :  { %s1188_s12 = smov 0   ;;  %s1447_s0 = inlined_call_operand.vmem [shape: f32[2048,128], index: 0, kind: input, shape index: {}]   ;;  %s1448_s1 = inlined_call_operand.vmem [shape: f32[1,128], index: 1, kind: input, shape index: {}]   ;;  %s1449_s2 = inlined_call_operand.vmem [shape: f32[1,128], index: 2, kind: input, shape index: {}]   ;;  %s1450_s3 = inlined_call_operand.vmem [shape: bf16[2048,128], index: 3, kind: output, shape index: {}]  }
   0x1 LB: > { %s820_s13 = sadd.s32 4294967295, %s1166_s12   ;;  %p824_p0 = scmp.ge.s32.totalorder %s1166_s12, 1  ;;  %s1166_s12 = sphi %s1188_s12, %s13_s12  }
   0x2   : > { %p138_p1 = scmp.lt.s32.totalorder %s1166_s12, 5 }
   0x4   : > { %p139_p2 = pnand %p824_p0, %p138_p1 }
   0x5   : > { %s825_s14 = sshll.u32 (!%p139_p2), %s820_s13, 6 }
   0x6   : > { %142 = sbr.rel (%p139_p2) target bundleno = 77 (0x4d), region = 32  ;;  %p163_p3 = scmp.lt.s32.totalorder (!%p139_p2), %s825_s14, 255 }
   0xb   : > { %s1452_s14 = smov (!%p163_p3, %s825_s14), 255  ;;  %v1202_v0 = vld [vmem:[%s1448_s1] ss:$0 sm:$0xff] }
   0xc   : > { %s826_s15 = sshll.u32 %s1452_s14, 3  ;;  %v1212_v1 = vld [vmem:[%s1449_s2] ss:$0 sm:$0xff]  ;;  %s828_s23 = sshll.u32 %s1452_s14, 2 }
   0xd   : > { %s1207_s20 = scalar_lea.vmem %s1447_s0, %s826_s15  ;;  %s1244_s26 = scalar_lea.vmem %s1450_s3, %s828_s23 }
   0xe   : > { %v174_v2 = vld [vmem:[%s1207_s20] sm:$0xff]  ;;  %v175_v3 = vld [vmem:[%s1207_s20 + $0x8] sm:$0xff]  ;;  %v176_v4 = vld [vmem:[%s1207_s20 + $0x10] sm:$0xff] }
   0xf   : > { %v245_v5 = vmul.f32 %v1202_v0, %v174_v2  ;;  %v246_v6 = vmul.f32 %v1202_v0, %v175_v3  ;;  %v177_v7 = vld [vmem:[%s1207_s20 + $0x18] sm:$0xff]  ;;  %v247_v8 = vmul.f32 %v1202_v0, %v176_v4  ;;  %v178_v9 = vld [vmem:[%s1207_s20 + $0x20] sm:$0xff]  ;;  %v179_v10 = vld [vmem:[%s1207_s20 + $0x28] sm:$0xff] }
  0x10   : > { %v248_v11 = vmul.f32 %v1202_v0, %v177_v7  ;;  %v249_v12 = vmul.f32 %v1202_v0, %v178_v9  ;;  %v250_v13 = vmul.f32 %v1202_v0, %v179_v10  ;;  %v180_v14 = vld [vmem:[%s1207_s20 + $0x30] sm:$0xff]  ;;  %v181_v15 = vld [vmem:[%s1207_s20 + $0x38] sm:$0xff]  ;;  %v182_v24 = vld [vmem:[%s1207_s20 + $0x40] sm:$0xff] }
  0x11   : > { %v316_v16 = vadd.f32 %v1212_v1, %v245_v5  ;;  %v317_v17 = vadd.f32 %v1212_v1, %v246_v6  ;;  %v318_v18 = vadd.f32 %v1212_v1, %v247_v8  ;;  %v251_v19 = vmul.f32 %v1202_v0, %v180_v14  ;;  %v183_v25 = vld [vmem:[%s1207_s20 + $0x48] sm:$0xff]  ;;  %v184_v30 = vld [vmem:[%s1207_s20 + $0x50] sm:$0xff]  ;;  %v185_v35 = vld [vmem:[%s1207_s20 + $0x58] sm:$0xff] }
  0x12   : > { %v319_v20 = vadd.f32 %v1212_v1, %v248_v11  ;;  %v320_v21 = vadd.f32 %v1212_v1, %v249_v12  ;;  %v321_v22 = vadd.f32 %v1212_v1, %v250_v13  ;;  %v252_v23 = vmul.f32 %v1202_v0, %v181_v15  ;;  %v186_v36 = vld [vmem:[%s1207_s20 + $0x60] sm:$0xff]  ;;  %v187_v41 = vld [vmem:[%s1207_s20 + $0x68] sm:$0xff]  ;;  %v188_v42 = vld [vmem:[%s1207_s20 + $0x70] sm:$0xff] }
  0x13   : > { %v380_v26 = vmax.f32 %v316_v16, 0.0  ;;  %v381_v27 = vmax.f32 %v317_v17, 0.0  ;;  %v382_v28 = vmax.f32 %v318_v18, 0.0  ;;  %v322_v29 = vadd.f32 %v1212_v1, %v251_v19  ;;  %v189_v51 = vld [vmem:[%s1207_s20 + $0x78] sm:$0xff]  ;;  %v190_v56 = vld [vmem:[%s1207_s20 + $0x80] sm:$0xff]  ;;  %v191_v61 = vld [vmem:[%s1207_s20 + $0x88] sm:$0xff] }
  0x14   : > { %v383_v31 = vmax.f32 %v319_v20, 0.0  ;;  %v384_v32 = vmax.f32 %v320_v21, 0.0  ;;  %v385_v33 = vmax.f32 %v321_v22, 0.0  ;;  %v323_v34 = vadd.f32 %v1212_v1, %v252_v23  ;;  %v192_v4 = vld [vmem:[%s1207_s20 + $0x90] sm:$0xff]  ;;  %v193_v5 = vld [vmem:[%s1207_s20 + $0x98] sm:$0xff]  ;;  %v194_v10 = vld [vmem:[%s1207_s20 + $0xa0] sm:$0xff] }
  0x15   : > { %v964_v37 = vpack.c.bf16 %v381_v27, %v380_v26  ;;  %v386_v38 = vmax.f32 %v322_v29, 0.0  ;;  %v253_v39 = vmul.f32 %v1202_v0, %v182_v24  ;;  %v254_v40 = vmul.f32 %v1202_v0, %v183_v25  ;;  %v195_v15 = vld [vmem:[%s1207_s20 + $0xa8] sm:$0xff]  ;;  %v196_v20 = vld [vmem:[%s1207_s20 + $0xb0] sm:$0xff]  ;;  %v197_v25 = vld [vmem:[%s1207_s20 + $0xb8] sm:$0xff] }
  0x16   : > { %v969_v43 = vpack.c.bf16 %v383_v31, %v382_v28  ;;  %v974_v44 = vpack.c.bf16 %v385_v33, %v384_v32  ;;  %v387_v45 = vmax.f32 %v323_v34, 0.0  ;;  %v255_v46 = vmul.f32 %v1202_v0, %v184_v30  ;;  %v198_v30 = vld [vmem:[%s1207_s20 + $0xc0] sm:$0xff] }
  0x17   : > { %965 = vst [vmem:[%s1244_s26] sm:$0xff] %v964_v37   ;;  %v324_v47 = vadd.f32 %v1212_v1, %v253_v39  ;;  %v325_v48 = vadd.f32 %v1212_v1, %v254_v40  ;;  %v256_v49 = vmul.f32 %v1202_v0, %v185_v35  ;;  %v257_v50 = vmul.f32 %v1202_v0, %v186_v36  ;;  %v199_v35 = vld [vmem:[%s1207_s20 + $0xc8] sm:$0xff]  ;;  %v200_v40 = vld [vmem:[%s1207_s20 + $0xd0] sm:$0xff] }
  0x18   : > { %1121 = vst [vmem:[%s1244_s26 + $0x8] sm:$0xff] %v969_v43   ;;  %1122 = vst [vmem:[%s1244_s26 + $0x10] sm:$0xff] %v974_v44   ;;  %v979_v52 = vpack.c.bf16 %v387_v45, %v386_v38  ;;  %v326_v53 = vadd.f32 %v1212_v1, %v255_v46  ;;  %v258_v54 = vmul.f32 %v1202_v0, %v187_v41  ;;  %v201_v41 = vld [vmem:[%s1207_s20 + $0xd8] sm:$0xff]  ;;  %v202_v46 = vld [vmem:[%s1207_s20 + $0xe0] sm:$0xff] }
  0x19   : > { %v259_v55 = vmul.f32 %v1202_v0, %v188_v42  ;;  %v388_v57 = vmax.f32 %v324_v47, 0.0  ;;  %v389_v58 = vmax.f32 %v325_v48, 0.0  ;;  %v327_v59 = vadd.f32 %v1212_v1, %v256_v49 }
  0x1a   : > { %v328_v60 = vadd.f32 %v1212_v1, %v257_v50  ;;  %1123 = vst [vmem:[%s1244_s26 + $0x18] sm:$0xff] %v979_v52   ;;  %v390_v62 = vmax.f32 %v326_v53, 0.0  ;;  %v329_v63 = vadd.f32 %v1212_v1, %v258_v54  ;;  %v260_v2 = vmul.f32 %v1202_v0, %v189_v51  ;;  %v203_v51 = vld [vmem:[%s1207_s20 + $0xe8] sm:$0xff] }
  0x1b   : > { %v330_v3 = vadd.f32 %v1212_v1, %v259_v55  ;;  %v984_v6 = vpack.c.bf16 %v389_v58, %v388_v57  ;;  %v391_v7 = vmax.f32 %v327_v59, 0.0  ;;  %v261_v9 = vmul.f32 %v1202_v0, %v190_v56  ;;  %v204_v56 = vld [vmem:[%s1207_s20 + $0xf0] sm:$0xff] }
  0x1c   : > { %v392_v8 = vmax.f32 %v328_v60, 0.0  ;;  %v393_v11 = vmax.f32 %v329_v63, 0.0  ;;  %v331_v12 = vadd.f32 %v1212_v1, %v260_v2  ;;  %v262_v14 = vmul.f32 %v1202_v0, %v191_v61  ;;  %v205_v61 = vld [vmem:[%s1207_s20 + $0xf8] sm:$0xff] }
  0x1d   : > { %v394_v13 = vmax.f32 %v330_v3, 0.0  ;;  %1124 = vst [vmem:[%s1244_s26 + $0x20] sm:$0xff] %v984_v6   ;;  %v989_v16 = vpack.c.bf16 %v391_v7, %v390_v62  ;;  %v332_v17 = vadd.f32 %v1212_v1, %v261_v9  ;;  %v263_v18 = vmul.f32 %v1202_v0, %v192_v4  ;;  %v206_v4 = vld [vmem:[%s1207_s20 + $0x100] sm:$0xff]  ;;  %v207_v9 = vld [vmem:[%s1207_s20 + $0x108] sm:$0xff] }
  0x1e   : > { %v264_v19 = vmul.f32 %v1202_v0, %v193_v5  ;;  %v994_v21 = vpack.c.bf16 %v393_v11, %v392_v8  ;;  %v395_v22 = vmax.f32 %v331_v12, 0.0  ;;  %v333_v23 = vadd.f32 %v1212_v1, %v262_v14  ;;  %v208_v14 = vld [vmem:[%s1207_s20 + $0x110] sm:$0xff] }
  0x1f   : > { %v265_v24 = vmul.f32 %v1202_v0, %v194_v10  ;;  %1125 = vst [vmem:[%s1244_s26 + $0x28] sm:$0xff] %v989_v16   ;;  %v396_v26 = vmax.f32 %v332_v17, 0.0  ;;  %v334_v27 = vadd.f32 %v1212_v1, %v263_v18  ;;  %v266_v29 = vmul.f32 %v1202_v0, %v195_v15  ;;  %v209_v15 = vld [vmem:[%s1207_s20 + $0x118] sm:$0xff] }
  0x20   : > { %v335_v28 = vadd.f32 %v1212_v1, %v264_v19  ;;  %1126 = vst [vmem:[%s1244_s26 + $0x30] sm:$0xff] %v994_v21   ;;  %v999_v31 = vpack.c.bf16 %v395_v22, %v394_v13  ;;  %v397_v32 = vmax.f32 %v333_v23, 0.0  ;;  %v267_v34 = vmul.f32 %v1202_v0, %v196_v20  ;;  %v210_v20 = vld [vmem:[%s1207_s20 + $0x120] sm:$0xff] }
  0x21   : > { %v336_v33 = vadd.f32 %v1212_v1, %v265_v24  ;;  %v398_v36 = vmax.f32 %v334_v27, 0.0  ;;  %v337_v38 = vadd.f32 %v1212_v1, %v266_v29  ;;  %v268_v39 = vmul.f32 %v1202_v0, %v197_v25  ;;  %v211_v25 = vld [vmem:[%s1207_s20 + $0x128] sm:$0xff] }
  0x22   : > { %v399_v37 = vmax.f32 %v335_v28, 0.0  ;;  %1127 = vst [vmem:[%s1244_s26 + $0x38] sm:$0xff] %v999_v31   ;;  %v1004_v42 = vpack.c.bf16 %v397_v32, %v396_v26  ;;  %v338_v44 = vadd.f32 %v1212_v1, %v267_v34  ;;  %v269_v45 = vmul.f32 %v1202_v0, %v198_v30  ;;  %v212_v30 = vld [vmem:[%s1207_s20 + $0x130] sm:$0xff] }
  0x23   : > { %v400_v43 = vmax.f32 %v336_v33, 0.0  ;;  %v401_v48 = vmax.f32 %v337_v38, 0.0  ;;  %v339_v49 = vadd.f32 %v1212_v1, %v268_v39  ;;  %v270_v50 = vmul.f32 %v1202_v0, %v199_v35  ;;  %v213_v35 = vld [vmem:[%s1207_s20 + $0x138] sm:$0xff] }
  0x24   : > { %v1009_v47 = vpack.c.bf16 %v399_v37, %v398_v36  ;;  %1128 = vst [vmem:[%s1244_s26 + $0x40] sm:$0xff] %v1004_v42   ;;  %v402_v52 = vmax.f32 %v338_v44, 0.0  ;;  %v340_v53 = vadd.f32 %v1212_v1, %v269_v45  ;;  %v271_v54 = vmul.f32 %v1202_v0, %v200_v40  ;;  %v214_v40 = vld [vmem:[%s1207_s20 + $0x140] sm:$0xff]  ;;  %v215_v45 = vld [vmem:[%s1207_s20 + $0x148] sm:$0xff] }
  0x25   : > { %v272_v55 = vmul.f32 %v1202_v0, %v201_v41  ;;  %v1014_v57 = vpack.c.bf16 %v401_v48, %v400_v43  ;;  %v403_v58 = vmax.f32 %v339_v49, 0.0  ;;  %v341_v59 = vadd.f32 %v1212_v1, %v270_v50  ;;  %v216_v50 = vld [vmem:[%s1207_s20 + $0x150] sm:$0xff] }
  0x26   : > { %1129 = vst [vmem:[%s1244_s26 + $0x48] sm:$0xff] %v1009_v47   ;;  %v273_v60 = vmul.f32 %v1202_v0, %v202_v46  ;;  %v404_v62 = vmax.f32 %v340_v53, 0.0  ;;  %v342_v63 = vadd.f32 %v1212_v1, %v271_v54  ;;  %v274_v3 = vmul.f32 %v1202_v0, %v203_v51  ;;  %v217_v51 = vld [vmem:[%s1207_s20 + $0x158] sm:$0xff] }
  0x27   : > { %v343_v2 = vadd.f32 %v1212_v1, %v272_v55  ;;  %1130 = vst [vmem:[%s1244_s26 + $0x50] sm:$0xff] %v1014_v57   ;;  %v1019_v5 = vpack.c.bf16 %v403_v58, %v402_v52  ;;  %v405_v6 = vmax.f32 %v341_v59, 0.0  ;;  %v275_v8 = vmul.f32 %v1202_v0, %v204_v56  ;;  %v218_v56 = vld [vmem:[%s1207_s20 + $0x160] sm:$0xff] }
  0x28   : > { %v344_v7 = vadd.f32 %v1212_v1, %v273_v60  ;;  %v406_v10 = vmax.f32 %v342_v63, 0.0  ;;  %v345_v12 = vadd.f32 %v1212_v1, %v274_v3  ;;  %v276_v13 = vmul.f32 %v1202_v0, %v205_v61  ;;  %v219_v61 = vld [vmem:[%s1207_s20 + $0x168] sm:$0xff] }
  0x29   : > { %v407_v11 = vmax.f32 %v343_v2, 0.0  ;;  %1131 = vst [vmem:[%s1244_s26 + $0x58] sm:$0xff] %v1019_v5   ;;  %v1024_v16 = vpack.c.bf16 %v405_v6, %v404_v62  ;;  %v346_v18 = vadd.f32 %v1212_v1, %v275_v8  ;;  %v277_v19 = vmul.f32 %v1202_v0, %v206_v4  ;;  %v220_v4 = vld [vmem:[%s1207_s20 + $0x170] sm:$0xff] }
  0x2a   : > { %v408_v17 = vmax.f32 %v344_v7, 0.0  ;;  %v409_v22 = vmax.f32 %v345_v12, 0.0  ;;  %v347_v23 = vadd.f32 %v1212_v1, %v276_v13  ;;  %v278_v24 = vmul.f32 %v1202_v0, %v207_v9  ;;  %v221_v9 = vld [vmem:[%s1207_s20 + $0x178] sm:$0xff] }
  0x2b   : > { %v1029_v21 = vpack.c.bf16 %v407_v11, %v406_v10  ;;  %1132 = vst [vmem:[%s1244_s26 + $0x60] sm:$0xff] %v1024_v16   ;;  %v410_v26 = vmax.f32 %v346_v18, 0.0  ;;  %v348_v27 = vadd.f32 %v1212_v1, %v277_v19  ;;  %v279_v28 = vmul.f32 %v1202_v0, %v208_v14  ;;  %v222_v14 = vld [vmem:[%s1207_s20 + $0x180] sm:$0xff]  ;;  %v223_v19 = vld [vmem:[%s1207_s20 + $0x188] sm:$0xff] }
  0x2c   : > { %v280_v29 = vmul.f32 %v1202_v0, %v209_v15  ;;  %v1034_v31 = vpack.c.bf16 %v409_v22, %v408_v17  ;;  %v411_v32 = vmax.f32 %v347_v23, 0.0  ;;  %v349_v33 = vadd.f32 %v1212_v1, %v278_v24  ;;  %v224_v24 = vld [vmem:[%s1207_s20 + $0x190] sm:$0xff] }
  0x2d   : > { %1133 = vst [vmem:[%s1244_s26 + $0x68] sm:$0xff] %v1029_v21   ;;  %v281_v34 = vmul.f32 %v1202_v0, %v210_v20  ;;  %v412_v36 = vmax.f32 %v348_v27, 0.0  ;;  %v350_v37 = vadd.f32 %v1212_v1, %v279_v28  ;;  %v282_v39 = vmul.f32 %v1202_v0, %v211_v25  ;;  %v225_v25 = vld [vmem:[%s1207_s20 + $0x198] sm:$0xff] }
  0x2e   : > { %v351_v38 = vadd.f32 %v1212_v1, %v280_v29  ;;  %1134 = vst [vmem:[%s1244_s26 + $0x70] sm:$0xff] %v1034_v31   ;;  %v1039_v41 = vpack.c.bf16 %v411_v32, %v410_v26  ;;  %v413_v42 = vmax.f32 %v349_v33, 0.0  ;;  %v283_v44 = vmul.f32 %v1202_v0, %v212_v30  ;;  %v226_v30 = vld [vmem:[%s1207_s20 + $0x1a0] sm:$0xff] }
  0x2f   : > { %v352_v43 = vadd.f32 %v1212_v1, %v281_v34  ;;  %v414_v46 = vmax.f32 %v350_v37, 0.0  ;;  %v353_v48 = vadd.f32 %v1212_v1, %v282_v39  ;;  %v284_v49 = vmul.f32 %v1202_v0, %v213_v35  ;;  %v227_v35 = vld [vmem:[%s1207_s20 + $0x1a8] sm:$0xff] }
  0x30   : > { %v415_v47 = vmax.f32 %v351_v38, 0.0  ;;  %1135 = vst [vmem:[%s1244_s26 + $0x78] sm:$0xff] %v1039_v41   ;;  %v1044_v52 = vpack.c.bf16 %v413_v42, %v412_v36  ;;  %v354_v54 = vadd.f32 %v1212_v1, %v283_v44  ;;  %v285_v55 = vmul.f32 %v1202_v0, %v214_v40  ;;  %v228_v40 = vld [vmem:[%s1207_s20 + $0x1b0] sm:$0xff] }
  0x31   : > { %v416_v53 = vmax.f32 %v352_v43, 0.0  ;;  %v417_v58 = vmax.f32 %v353_v48, 0.0  ;;  %v355_v59 = vadd.f32 %v1212_v1, %v284_v49  ;;  %v286_v60 = vmul.f32 %v1202_v0, %v215_v45  ;;  %v229_v45 = vld [vmem:[%s1207_s20 + $0x1b8] sm:$0xff] }
  0x32   : > { %v1049_v57 = vpack.c.bf16 %v415_v47, %v414_v46  ;;  %1136 = vst [vmem:[%s1244_s26 + $0x80] sm:$0xff] %v1044_v52   ;;  %v418_v62 = vmax.f32 %v354_v54, 0.0  ;;  %v356_v63 = vadd.f32 %v1212_v1, %v285_v55  ;;  %v287_v2 = vmul.f32 %v1202_v0, %v216_v50  ;;  %v230_v50 = vld [vmem:[%s1207_s20 + $0x1c0] sm:$0xff]  ;;  %v231_v55 = vld [vmem:[%s1207_s20 + $0x1c8] sm:$0xff] }
  0x33   : > { %v288_v3 = vmul.f32 %v1202_v0, %v217_v51  ;;  %v1054_v5 = vpack.c.bf16 %v417_v58, %v416_v53  ;;  %v419_v6 = vmax.f32 %v355_v59, 0.0  ;;  %v357_v7 = vadd.f32 %v1212_v1, %v286_v60  ;;  %v232_v60 = vld [vmem:[%s1207_s20 + $0x1d0] sm:$0xff] }
  0x34   : > { %1137 = vst [vmem:[%s1244_s26 + $0x88] sm:$0xff] %v1049_v57   ;;  %v289_v8 = vmul.f32 %v1202_v0, %v218_v56  ;;  %v420_v10 = vmax.f32 %v356_v63, 0.0  ;;  %v358_v11 = vadd.f32 %v1212_v1, %v287_v2  ;;  %v290_v13 = vmul.f32 %v1202_v0, %v219_v61  ;;  %v233_v61 = vld [vmem:[%s1207_s20 + $0x1d8] sm:$0xff] }
  0x35   : > { %v359_v12 = vadd.f32 %v1212_v1, %v288_v3  ;;  %1138 = vst [vmem:[%s1244_s26 + $0x90] sm:$0xff] %v1054_v5   ;;  %v1059_v15 = vpack.c.bf16 %v419_v6, %v418_v62  ;;  %v421_v16 = vmax.f32 %v357_v7, 0.0  ;;  %v291_v18 = vmul.f32 %v1202_v0, %v220_v4  ;;  %v234_v4 = vld [vmem:[%s1207_s20 + $0x1e0] sm:$0xff] }
  0x36   : > { %v360_v17 = vadd.f32 %v1212_v1, %v289_v8  ;;  %v422_v20 = vmax.f32 %v358_v11, 0.0  ;;  %v361_v22 = vadd.f32 %v1212_v1, %v290_v13  ;;  %v292_v23 = vmul.f32 %v1202_v0, %v221_v9  ;;  %v235_v9 = vld [vmem:[%s1207_s20 + $0x1e8] sm:$0xff] }
  0x37   : > { %v423_v21 = vmax.f32 %v359_v12, 0.0  ;;  %1139 = vst [vmem:[%s1244_s26 + $0x98] sm:$0xff] %v1059_v15   ;;  %v1064_v26 = vpack.c.bf16 %v421_v16, %v420_v10  ;;  %v362_v28 = vadd.f32 %v1212_v1, %v291_v18  ;;  %v293_v29 = vmul.f32 %v1202_v0, %v222_v14  ;;  %v236_v14 = vld [vmem:[%s1207_s20 + $0x1f0] sm:$0xff] }
  0x38   : > { %v424_v27 = vmax.f32 %v360_v17, 0.0  ;;  %v425_v32 = vmax.f32 %v361_v22, 0.0  ;;  %v363_v33 = vadd.f32 %v1212_v1, %v292_v23  ;;  %v294_v34 = vmul.f32 %v1202_v0, %v223_v19  ;;  %v237_v19 = vld [vmem:[%s1207_s20 + $0x1f8] sm:$0xff] }
  0x39   : > { %v1069_v31 = vpack.c.bf16 %v423_v21, %v422_v20  ;;  %1140 = vst [vmem:[%s1244_s26 + $0xa0] sm:$0xff] %v1064_v26   ;;  %v426_v36 = vmax.f32 %v362_v28, 0.0  ;;  %v364_v37 = vadd.f32 %v1212_v1, %v293_v29  ;;  %v295_v38 = vmul.f32 %v1202_v0, %v224_v24 }
  0x3a   : > { %v296_v39 = vmul.f32 %v1202_v0, %v225_v25  ;;  %v1074_v41 = vpack.c.bf16 %v425_v32, %v424_v27  ;;  %v427_v42 = vmax.f32 %v363_v33, 0.0  ;;  %v365_v43 = vadd.f32 %v1212_v1, %v294_v34 }
  0x3b   : > { %1141 = vst [vmem:[%s1244_s26 + $0xa8] sm:$0xff] %v1069_v31   ;;  %v297_v44 = vmul.f32 %v1202_v0, %v226_v30  ;;  %v428_v46 = vmax.f32 %v364_v37, 0.0  ;;  %v366_v47 = vadd.f32 %v1212_v1, %v295_v38  ;;  %v298_v49 = vmul.f32 %v1202_v0, %v227_v35 }
  0x3c   : > { %v367_v48 = vadd.f32 %v1212_v1, %v296_v39  ;;  %1142 = vst [vmem:[%s1244_s26 + $0xb0] sm:$0xff] %v1074_v41   ;;  %v1079_v51 = vpack.c.bf16 %v427_v42, %v426_v36  ;;  %v429_v52 = vmax.f32 %v365_v43, 0.0  ;;  %v299_v54 = vmul.f32 %v1202_v0, %v228_v40 }
  0x3d   : > { %v368_v53 = vadd.f32 %v1212_v1, %v297_v44  ;;  %v430_v56 = vmax.f32 %v366_v47, 0.0  ;;  %v369_v58 = vadd.f32 %v1212_v1, %v298_v49  ;;  %v300_v59 = vmul.f32 %v1202_v0, %v229_v45 }
  0x3e   : > { %v431_v57 = vmax.f32 %v367_v48, 0.0  ;;  %1143 = vst [vmem:[%s1244_s26 + $0xb8] sm:$0xff] %v1079_v51   ;;  %v1084_v62 = vpack.c.bf16 %v429_v52, %v428_v46  ;;  %v370_v2 = vadd.f32 %v1212_v1, %v299_v54  ;;  %v301_v3 = vmul.f32 %v1202_v0, %v230_v50 }
  0x3f   : > { %v432_v63 = vmax.f32 %v368_v53, 0.0  ;;  %v433_v6 = vmax.f32 %v369_v58, 0.0  ;;  %v371_v7 = vadd.f32 %v1212_v1, %v300_v59  ;;  %v302_v8 = vmul.f32 %v1202_v0, %v231_v55 }
  0x40   : > { %v1089_v5 = vpack.c.bf16 %v431_v57, %v430_v56  ;;  %1144 = vst [vmem:[%s1244_s26 + $0xc0] sm:$0xff] %v1084_v62   ;;  %v434_v10 = vmax.f32 %v370_v2, 0.0  ;;  %v372_v11 = vadd.f32 %v1212_v1, %v301_v3  ;;  %v303_v12 = vmul.f32 %v1202_v0, %v232_v60 }
  0x41   : > { %v304_v13 = vmul.f32 %v1202_v0, %v233_v61  ;;  %v1094_v15 = vpack.c.bf16 %v433_v6, %v432_v63  ;;  %v435_v16 = vmax.f32 %v371_v7, 0.0  ;;  %v373_v17 = vadd.f32 %v1212_v1, %v302_v8 }
  0x42   : > { %1145 = vst [vmem:[%s1244_s26 + $0xc8] sm:$0xff] %v1089_v5   ;;  %v305_v18 = vmul.f32 %v1202_v0, %v234_v4  ;;  %v436_v20 = vmax.f32 %v372_v11, 0.0  ;;  %v374_v21 = vadd.f32 %v1212_v1, %v303_v12  ;;  %v306_v23 = vmul.f32 %v1202_v0, %v235_v9 }
  0x43   : > { %v375_v22 = vadd.f32 %v1212_v1, %v304_v13  ;;  %1146 = vst [vmem:[%s1244_s26 + $0xd0] sm:$0xff] %v1094_v15   ;;  %v1099_v24 = vpack.c.bf16 %v435_v16, %v434_v10  ;;  %v437_v25 = vmax.f32 %v373_v17, 0.0  ;;  %v307_v27 = vmul.f32 %v1202_v0, %v236_v14 }
  0x44   : > { %v376_v26 = vadd.f32 %v1212_v1, %v305_v18  ;;  %v438_v28 = vmax.f32 %v374_v21, 0.0  ;;  %v377_v30 = vadd.f32 %v1212_v1, %v306_v23  ;;  %v308_v31 = vmul.f32 %v1202_v0, %v237_v19 }
  0x45   : > { %v439_v29 = vmax.f32 %v375_v22, 0.0  ;;  %1147 = vst [vmem:[%s1244_s26 + $0xd8] sm:$0xff] %v1099_v24   ;;  %v1104_v32 = vpack.c.bf16 %v437_v25, %v436_v20  ;;  %v378_v34 = vadd.f32 %v1212_v1, %v307_v27 }
  0x46   : > { %v440_v33 = vmax.f32 %v376_v26, 0.0  ;;  %v441_v36 = vmax.f32 %v377_v30, 0.0  ;;  %v379_v37 = vadd.f32 %v1212_v1, %v308_v31 }
  0x47   : > { %v1109_v35 = vpack.c.bf16 %v439_v29, %v438_v28  ;;  %1148 = vst [vmem:[%s1244_s26 + $0xe0] sm:$0xff] %v1104_v32   ;;  %v442_v38 = vmax.f32 %v378_v34, 0.0 }
  0x48   : > { %v1114_v39 = vpack.c.bf16 %v441_v36, %v440_v33  ;;  %v443_v40 = vmax.f32 %v379_v37, 0.0 }
  0x49   : > { %1149 = vst [vmem:[%s1244_s26 + $0xe8] sm:$0xff] %v1109_v35  }
  0x4a   : > { %1150 = vst [vmem:[%s1244_s26 + $0xf0] sm:$0xff] %v1114_v39   ;;  %v1119_v41 = vpack.c.bf16 %v443_v40, %v442_v38 }
  0x4c   : > { %1151 = vst [vmem:[%s1244_s26 + $0xf8] sm:$0xff] %v1119_v41  }
  0x4d PF: > { %s13_s12 = sadd.s32 1, %s1166_s12  }
  0x4e   : > { %p10_p4 = scmp.ge.s32.totalorder %s13_s12, 6  }
  0x50   :  { %12 = sbr.rel (!%p10_p4) target bundleno = 1 (0x1), region = 62 }

// kernel: netG_forward.22
= control target key start
LH: loop header
LB: loop body
LE: loop exit
PB: predicated region body
PF: predicated region fallthrough
CT: control target
= control target key end

     0   :  { %s2818_s9 = smov 0   ;;  %s2820_s10 = smov 0   ;;  %s3121_s0 = inlined_call_operand.vmem [shape: bf16[4,512,512], index: 0, kind: input, shape index: {}]   ;;  %s3122_s1 = inlined_call_operand.vmem [shape: bf16[4,512,128], index: 1, kind: input, shape index: {}]   ;;  %s3123_s2 = inlined_call_operand.vmem [shape: f32[4,512,128], index: 2, kind: output, shape index: {}]  }
   0x1   :  { %s2822_s11 = smov 0  }
   0x2 LB: > { %s31_s12 = sadd.s32 1, %s2796_s10  ;;  %p2357_p0 = scmp.ge.s32.totalorder %s2800_s11, 1  ;;  %s2800_s11 = sphi %s2822_s11, %s12_s11   ;;  %s2796_s10 = sphi %s2820_s10, %s3125_s10   ;;  %s2792_s9 = sphi %s2818_s9, %s3124_s9  }
   0x3   : > { %p33_p1 = scmp.ge.s32.totalorder %s31_s12, 4  ;;  %p165_p2 = scmp.lt.s32.totalorder %s2800_s11, 5 }
   0x5   : > { %s3127_s12 = smov (%p33_p1, %s31_s12), 0  ;;  %p166_p3 = pnand %p2357_p0, %p165_p2 }
   0x6   : > { %p211_p4 = scmp.lt.s32.totalorder (!%p166_p3), %s2792_s9, 3 }
   0x7   : > { %169 = sbr.rel (%p166_p3) target bundleno = 528 (0x210), region = 28 }
   0xc   : > { %v2802_v0 = vmov 0   ;;  %s3129_s9 = smov (!%p211_p4, %s2792_s9), 3 }
   0xd   : > { %1402 = vmatprep.subr.bf16.mxu0 %v2802_v0  ;;  %1691 = vmatprep.subr.bf16.mxu1 %v2802_v0  ;;  %s2527_s13 = sshll.u32 %s3129_s9, 8  ;;  %s2526_s17 = sshll.u32 %s3129_s9, 10 }
   0xe   : > { %s2844_s16 = scalar_lea.vmem %s3122_s1, %s2527_s13  ;;  %s2881_s20 = scalar_lea.vmem %s3121_s0, %s2526_s17 }
   0xf   : > { %v2554_v1 = vld [vmem:[%s2844_s16 + $0x38] sm:$0xff]   ;;  %v2556_v3 = vld [vmem:[%s2844_s16 + $0x30] sm:$0xff]   ;;  %v2558_v5 = vld [vmem:[%s2844_s16 + $0x28] sm:$0xff]   ;;  %s2528_s21 = sshll.u32 %s3129_s9, 9 }
  0x10   : > { %v2555_v2 = vld [vmem:[%s2844_s16 + $0xb8] sm:$0xff]   ;;  %1403 = vmatpush1.bf16.msra.mxu0 %v2554_v1  ;;  %v2557_v4 = vld [vmem:[%s2844_s16 + $0xb0] sm:$0xff]   ;;  %v2559_v6 = vld [vmem:[%s2844_s16 + $0xa8] sm:$0xff]   ;;  %s3020_s24 = scalar_lea.vmem %s3123_s2, %s2528_s21 }
  0x11   : > { %1692 = vmatpush1.bf16.msra.mxu1 %v2555_v2  ;;  %1404 = vmatprep.subr.bf16.mxu0 %v2802_v0  ;;  %v2560_v7 = vld [vmem:[%s2844_s16 + $0x20] sm:$0xff]   ;;  %v2562_v9 = vld [vmem:[%s2844_s16 + $0x18] sm:$0xff]   ;;  %v2564_v11 = vld [vmem:[%s2844_s16 + $0x10] sm:$0xff]  }
  0x12   : > { %1693 = vmatprep.subr.bf16.mxu1 %v2802_v0  ;;  %v2561_v8 = vld [vmem:[%s2844_s16 + $0xa0] sm:$0xff]   ;;  %v2563_v10 = vld [vmem:[%s2844_s16 + $0x98] sm:$0xff]   ;;  %v2565_v12 = vld [vmem:[%s2844_s16 + $0x90] sm:$0xff]  }
  0x13   : > { %v2566_v13 = vld [vmem:[%s2844_s16 + $0x8] sm:$0xff]   ;;  %v2568_v15 = vld [vmem:[%s2844_s16] sm:$0xff]   ;;  %v2570_v17 = vld [vmem:[%s2844_s16 + $0x78] sm:$0xff]  }
  0x14   : > { %1405 = vmatpush1.bf16.msra.mxu0 %v2556_v3  ;;  %v2567_v14 = vld [vmem:[%s2844_s16 + $0x88] sm:$0xff]   ;;  %v2569_v16 = vld [vmem:[%s2844_s16 + $0x80] sm:$0xff]   ;;  %v2571_v18 = vld [vmem:[%s2844_s16 + $0xf8] sm:$0xff]  }
  0x15   : > { %1694 = vmatpush1.bf16.msra.mxu1 %v2557_v4  ;;  %1406 = vmatprep.subr.bf16.mxu0 %v2802_v0  ;;  %v2588_v19 = vld [vmem:[%s2881_s20 + $0x4] ss:$16 sps:$4 sm:$0xff]   ;;  %v2591_v21 = vld [vmem:[%s2881_s20 + $0xc] ss:$16 sps:$4 sm:$0xff]   ;;  %v2586_v35 = vld [vmem:[%s2881_s20] ss:$16 sps:$4 sm:$0xff]  }
  0x16   : > { %1695 = vmatprep.subr.bf16.mxu1 %v2802_v0  ;;  %v2572_v20 = vld [vmem:[%s2844_s16 + $0x70] sm:$0xff]   ;;  %1434 = vmatprep.mubr.bf16.mxu0 %v2588_v19  ;;  %v2574_v23 = vld [vmem:[%s2844_s16 + $0x68] sm:$0xff]   ;;  %v2576_v25 = vld [vmem:[%s2844_s16 + $0x60] sm:$0xff]  }
  0x17   : > { %v2573_v22 = vld [vmem:[%s2844_s16 + $0xf0] sm:$0xff]   ;;  %1723 = vmatprep.mubr.bf16.mxu1 %v2591_v21  ;;  %v2575_v24 = vld [vmem:[%s2844_s16 + $0xe8] sm:$0xff]   ;;  %v2577_v26 = vld [vmem:[%s2844_s16 + $0xe0] sm:$0xff]  }
  0x18   : > { %1407 = vmatpush1.bf16.msra.mxu0 %v2558_v5  ;;  %v2578_v27 = vld [vmem:[%s2844_s16 + $0x58] sm:$0xff]   ;;  %v2580_v29 = vld [vmem:[%s2844_s16 + $0x50] sm:$0xff]   ;;  %v2582_v31 = vld [vmem:[%s2844_s16 + $0x48] sm:$0xff]  }
  0x19   : > { %1696 = vmatpush1.bf16.msra.mxu1 %v2559_v6  ;;  %1408 = vmatprep.subr.bf16.mxu0 %v2802_v0  ;;  %v2579_v28 = vld [vmem:[%s2844_s16 + $0xd8] sm:$0xff]   ;;  %v2581_v30 = vld [vmem:[%s2844_s16 + $0xd0] sm:$0xff]   ;;  %v2583_v32 = vld [vmem:[%s2844_s16 + $0xc8] sm:$0xff]  }
  0x1a   : > { %1697 = vmatprep.subr.bf16.mxu1 %v2802_v0  ;;  %v2584_v33 = vld [vmem:[%s2844_s16 + $0x40] sm:$0xff]   ;;  %v2589_v36 = vld [vmem:[%s2881_s20 + $0x8] ss:$16 sps:$4 sm:$0xff]   ;;  %v2594_v38 = vld [vmem:[%s2881_s20 + $0x2c] ss:$16 sps:$4 sm:$0xff]  }
  0x1b   : > { %v2585_v34 = vld [vmem:[%s2844_s16 + $0xc0] sm:$0xff]   ;;  %v2597_v40 = vld [vmem:[%s2881_s20 + $0x28] ss:$16 sps:$4 sm:$0xff]   ;;  %v2600_v42 = vld [vmem:[%s2881_s20 + $0x4c] ss:$16 sps:$4 sm:$0xff]  }
  0x1c   : > { %1409 = vmatpush1.bf16.msra.mxu0 %v2560_v7  ;;  %v2592_v37 = vld [vmem:[%s2881_s20 + $0x24] ss:$16 sps:$4 sm:$0xff]   ;;  %v2596_v39 = vld [vmem:[%s2881_s20 + $0x20] ss:$16 sps:$4 sm:$0xff]   ;;  %v2603_v44 = vld [vmem:[%s2881_s20 + $0x48] ss:$16 sps:$4 sm:$0xff]  }
  0x1d   : > { %1698 = vmatpush1.bf16.msra.mxu1 %v2561_v8  ;;  %1410 = vmatprep.subr.bf16.mxu0 %v2802_v0  ;;  %v2598_v41 = vld [vmem:[%s2881_s20 + $0x44] ss:$16 sps:$4 sm:$0xff]   ;;  %v2602_v43 = vld [vmem:[%s2881_s20 + $0x40] ss:$16 sps:$4 sm:$0xff]   ;;  %v2606_v46 = vld [vmem:[%s2881_s20 + $0x6c] ss:$16 sps:$4 sm:$0xff]  }
  0x1e   : > { %1699 = vmatprep.subr.bf16.mxu1 %v2802_v0  ;;  %v2604_v45 = vld [vmem:[%s2881_s20 + $0x64] ss:$16 sps:$4 sm:$0xff]   ;;  %v2608_v47 = vld [vmem:[%s2881_s20 + $0x60] ss:$16 sps:$4 sm:$0xff]   ;;  %v2609_v48 = vld [vmem:[%s2881_s20 + $0x68] ss:$16 sps:$4 sm:$0xff]  }
  0x1f   : > { %v2610_v49 = vld [vmem:[%s2881_s20 + $0x84] ss:$16 sps:$4 sm:$0xff]   ;;  %v2612_v50 = vld [vmem:[%s2881_s20 + $0x8c] ss:$16 sps:$4 sm:$0xff]   ;;  %v2614_v51 = vld [vmem:[%s2881_s20 + $0x80] ss:$16 sps:$4 sm:$0xff]  }
  0x20   : > { %1411 = vmatpush1.bf16.msra.mxu0 %v2562_v9  ;;  %v2615_v52 = vld [vmem:[%s2881_s20 + $0x88] ss:$16 sps:$4 sm:$0xff]   ;;  %v2616_v53 = vld [vmem:[%s2881_s20 + $0xa4] ss:$16 sps:$4 sm:$0xff]   ;;  %v2618_v54 = vld [vmem:[%s2881_s20 + $0xac] ss:$16 sps:$4 sm:$0xff]  }
  0x21   : > { %1700 = vmatpush1.bf16.msra.mxu1 %v2563_v10  ;;  %1412 = vmatprep.subr.bf16.mxu0 %v2802_v0  ;;  %v2620_v55 = vld [vmem:[%s2881_s20 + $0xa0] ss:$16 sps:$4 sm:$0xff]   ;;  %v2621_v56 = vld [vmem:[%s2881_s20 + $0xa8] ss:$16 sps:$4 sm:$0xff]   ;;  %v2622_v57 = vld [vmem:[%s2881_s20 + $0xc4] ss:$16 sps:$4 sm:$0xff]  }
  0x22   : > { %1701 = vmatprep.subr.bf16.mxu1 %v2802_v0  ;;  %v2624_v58 = vld [vmem:[%s2881_s20 + $0xcc] ss:$16 sps:$4 sm:$0xff]   ;;  %v2626_v59 = vld [vmem:[%s2881_s20 + $0xc0] ss:$16 sps:$4 sm:$0xff]   ;;  %v2627_v60 = vld [vmem:[%s2881_s20 + $0xc8] ss:$16 sps:$4 sm:$0xff]  }
  0x23   : > { %v2628_v61 = vld [vmem:[%s2881_s20 + $0xe4] ss:$16 sps:$4 sm:$0xff]   ;;  %v2630_v62 = vld [vmem:[%s2881_s20 + $0xec] ss:$16 sps:$4 sm:$0xff]   ;;  %v2632_v63 = vld [vmem:[%s2881_s20 + $0xe0] ss:$16 sps:$4 sm:$0xff]  }
  0x24   : > { %1413 = vmatpush1.bf16.msra.mxu0 %v2564_v11  ;;  %v2634_v1 = vld [vmem:[%s2881_s20 + $0x104] ss:$16 sps:$4 sm:$0xff]   ;;  %v2636_v2 = vld [vmem:[%s2881_s20 + $0x10c] ss:$16 sps:$4 sm:$0xff]   ;;  %v2638_v3 = vld [vmem:[%s2881_s20 + $0x100] ss:$16 sps:$4 sm:$0xff]  }
  0x25   : > { %1702 = vmatpush1.bf16.msra.mxu1 %v2565_v12  ;;  %1414 = vmatprep.subr.bf16.mxu0 %v2802_v0  ;;  %v2639_v4 = vld [vmem:[%s2881_s20 + $0x108] ss:$16 sps:$4 sm:$0xff]   ;;  %v2640_v5 = vld [vmem:[%s2881_s20 + $0x124] ss:$16 sps:$4 sm:$0xff]   ;;  %v2642_v6 = vld [vmem:[%s2881_s20 + $0x12c] ss:$16 sps:$4 sm:$0xff]  }
  0x26   : > { %1703 = vmatprep.subr.bf16.mxu1 %v2802_v0  ;;  %v2644_v7 = vld [vmem:[%s2881_s20 + $0x120] ss:$16 sps:$4 sm:$0xff]   ;;  %v2645_v8 = vld [vmem:[%s2881_s20 + $0x128] ss:$16 sps:$4 sm:$0xff]   ;;  %v2646_v9 = vld [vmem:[%s2881_s20 + $0x144] ss:$16 sps:$4 sm:$0xff]  }
  0x27   : > { %v2648_v10 = vld [vmem:[%s2881_s20 + $0x14c] ss:$16 sps:$4 sm:$0xff]   ;;  %v2650_v11 = vld [vmem:[%s2881_s20 + $0x140] ss:$16 sps:$4 sm:$0xff]   ;;  %v2651_v12 = vld [vmem:[%s2881_s20 + $0x148] ss:$16 sps:$4 sm:$0xff]  }
  0x28   : > { %1415 = vmatpush1.bf16.msra.mxu0 %v2566_v13  ;;  %v2652_v13 = vld [vmem:[%s2881_s20 + $0x164] ss:$16 sps:$4 sm:$0xff]   ;;  %v2662_v19 = vld [vmem:[%s2881_s20 + $0x180] ss:$16 sps:$4 sm:$0xff]  }
  0x29   : > { %1704 = vmatpush1.bf16.msra.mxu1 %v2567_v14  ;;  %1416 = vmatprep.subr.bf16.mxu0 %v2802_v0  ;;  %v2654_v14 = vld [vmem:[%s2881_s20 + $0x16c] ss:$16 sps:$4 sm:$0xff]   ;;  %v2664_v21 = vld [vmem:[%s2881_s20 + $0x1a4] ss:$16 sps:$4 sm:$0xff]  }
  0x2a   : > { %1705 = vmatprep.subr.bf16.mxu1 %v2802_v0 }
  0x2c   : > { %1417 = vmatpush1.bf16.msra.mxu0 %v2568_v15  ;;  %v2656_v15 = vld [vmem:[%s2881_s20 + $0x160] ss:$16 sps:$4 sm:$0xff]  }
  0x2d   : > { %1706 = vmatpush1.bf16.msra.mxu1 %v2569_v16  ;;  %1418 = vmatprep.subr.bf16.mxu0 %v2802_v0  ;;  %v2657_v16 = vld [vmem:[%s2881_s20 + $0x168] ss:$16 sps:$4 sm:$0xff]  }
  0x2e   : > { %1707 = vmatprep.subr.bf16.mxu1 %v2802_v0 }
  0x30   : > { %1419 = vmatpush2.bf16.msra.mxu0 %v2570_v17  ;;  %v2658_v17 = vld [vmem:[%s2881_s20 + $0x184] ss:$16 sps:$4 sm:$0xff]  }
  0x31   : > { %1708 = vmatpush2.bf16.msra.mxu1 %v2571_v18  ;;  %1420 = vmatprep.subr.bf16.mxu0 %v2802_v0  ;;  %v2660_v18 = vld [vmem:[%s2881_s20 + $0x18c] ss:$16 sps:$4 sm:$0xff]  }
  0x32   : > { %1709 = vmatprep.subr.bf16.mxu1 %v2802_v0 }
  0x34   : > { %1421 = vmatpush2.bf16.msra.mxu0 %v2572_v20  ;;  %v2663_v20 = vld [vmem:[%s2881_s20 + $0x188] ss:$16 sps:$4 sm:$0xff]  }
  0x35   : > { %1710 = vmatpush2.bf16.msra.mxu1 %v2573_v22  ;;  %1422 = vmatprep.subr.bf16.mxu0 %v2802_v0  ;;  %v2666_v22 = vld [vmem:[%s2881_s20 + $0x1ac] ss:$16 sps:$4 sm:$0xff]  }
  0x36   : > { %1711 = vmatprep.subr.bf16.mxu1 %v2802_v0 }
  0x38   : > { %1423 = vmatpush2.bf16.msra.mxu0 %v2574_v23  ;;  %v2668_v23 = vld [vmem:[%s2881_s20 + $0x1a0] ss:$16 sps:$4 sm:$0xff]  }
  0x39   : > { %1712 = vmatpush2.bf16.msra.mxu1 %v2575_v24  ;;  %1424 = vmatprep.subr.bf16.mxu0 %v2802_v0  ;;  %v2669_v24 = vld [vmem:[%s2881_s20 + $0x1a8] ss:$16 sps:$4 sm:$0xff]  }
  0x3a   : > { %1713 = vmatprep.subr.bf16.mxu1 %v2802_v0 }
  0x3c   : > { %1425 = vmatpush2.bf16.msra.mxu0 %v2576_v25  ;;  %v2670_v25 = vld [vmem:[%s2881_s20 + $0x1c4] ss:$16 sps:$4 sm:$0xff]  }
  0x3d   : > { %1714 = vmatpush2.bf16.msra.mxu1 %v2577_v26  ;;  %1426 = vmatprep.subr.bf16.mxu0 %v2802_v0  ;;  %v2672_v26 = vld [vmem:[%s2881_s20 + $0x1cc] ss:$16 sps:$4 sm:$0xff]  }
  0x3e   : > { %1715 = vmatprep.subr.bf16.mxu1 %v2802_v0 }
  0x40   : > { %1427 = vmatpush2.bf16.msra.mxu0 %v2578_v27  ;;  %v2674_v27 = vld [vmem:[%s2881_s20 + $0x1c0] ss:$16 sps:$4 sm:$0xff]  }
  0x41   : > { %1716 = vmatpush2.bf16.msra.mxu1 %v2579_v28  ;;  %1428 = vmatprep.subr.bf16.mxu0 %v2802_v0  ;;  %v2675_v28 = vld [vmem:[%s2881_s20 + $0x1c8] ss:$16 sps:$4 sm:$0xff]  }
  0x42   : > { %1717 = vmatprep.subr.bf16.mxu1 %v2802_v0 }
  0x44   : > { %1429 = vmatpush2.bf16.msra.mxu0 %v2580_v29  ;;  %v2676_v29 = vld [vmem:[%s2881_s20 + $0x1e4] ss:$16 sps:$4 sm:$0xff]  }
  0x45   : > { %1718 = vmatpush2.bf16.msra.mxu1 %v2581_v30  ;;  %1430 = vmatprep.subr.bf16.mxu0 %v2802_v0  ;;  %v2678_v30 = vld [vmem:[%s2881_s20 + $0x1ec] ss:$16 sps:$4 sm:$0xff]  }
  0x46   : > { %1719 = vmatprep.subr.bf16.mxu1 %v2802_v0 }
  0x48   : > { %1431 = vmatpush2.bf16.msra.mxu0 %v2582_v31  ;;  %v2680_v31 = vld [vmem:[%s2881_s20 + $0x1e0] ss:$16 sps:$4 sm:$0xff]  }
  0x49   : > { %1720 = vmatpush2.bf16.msra.mxu1 %v2583_v32  ;;  %1432 = vmatprep.subr.bf16.mxu0 %v2802_v0  ;;  %v2681_v32 = vld [vmem:[%s2881_s20 + $0x1e8] ss:$16 sps:$4 sm:$0xff]  }
  0x4a   : > { %1721 = vmatprep.subr.bf16.mxu1 %v2802_v0  ;;  %v2633_v0 = vld [vmem:[%s2881_s20 + $0xe8] ss:$16 sps:$4 sm:$0xff]  }
  0x4c   : > { %1433 = vmatpush2.bf16.msra.mxu0 %v2584_v33  ;;  %v2682_v33 = vld [vmem:[%s2881_s20 + $0x204] ss:$16 sps:$4 sm:$0xff]  }
  0x4d   : > { %1722 = vmatpush2.bf16.msra.mxu1 %v2585_v34  ;;  %v2684_v34 = vld [vmem:[%s2881_s20 + $0x20c] ss:$16 sps:$4 sm:$0xff]  }
  0x4f   : > { %1435 = vmatmul.mubr.bf16.vlgmr.msra.gmra.mxu0 %v2586_v35  ;;  %v2686_v35 = vld [vmem:[%s2881_s20 + $0x200] ss:$16 sps:$4 sm:$0xff]  }
  0x50   : > { %1724 = vmatmul.mubr.bf16.vlgmr.msra.gmra.mxu1 %v2589_v36  ;;  %1442 = vmatprep.mubr.bf16.mxu0 %v2592_v37  ;;  %v2687_v36 = vld [vmem:[%s2881_s20 + $0x208] ss:$16 sps:$4 sm:$0xff]   ;;  %v2688_v37 = vld [vmem:[%s2881_s20 + $0x224] ss:$16 sps:$4 sm:$0xff]  }
  0x51   : > { %1731 = vmatprep.mubr.bf16.mxu1 %v2594_v38  ;;  %v2690_v38 = vld [vmem:[%s2881_s20 + $0x22c] ss:$16 sps:$4 sm:$0xff]  }
  0x57   : > { %1443 = vmatmul.mubr.bf16.gmra.mxu0 %v2596_v39  ;;  %v2692_v39 = vld [vmem:[%s2881_s20 + $0x220] ss:$16 sps:$4 sm:$0xff]  }
  0x58   : > { %1732 = vmatmul.mubr.bf16.gmra.mxu1 %v2597_v40  ;;  %1450 = vmatprep.mubr.bf16.mxu0 %v2598_v41  ;;  %v2693_v40 = vld [vmem:[%s2881_s20 + $0x228] ss:$16 sps:$4 sm:$0xff]   ;;  %v2694_v41 = vld [vmem:[%s2881_s20 + $0x244] ss:$16 sps:$4 sm:$0xff]  }
  0x59   : > { %1739 = vmatprep.mubr.bf16.mxu1 %v2600_v42  ;;  %v2696_v42 = vld [vmem:[%s2881_s20 + $0x24c] ss:$16 sps:$4 sm:$0xff]  }
  0x5f   : > { %1451 = vmatmul.mubr.bf16.gmra.mxu0 %v2602_v43  ;;  %v2698_v43 = vld [vmem:[%s2881_s20 + $0x240] ss:$16 sps:$4 sm:$0xff]  }
  0x60   : > { %1740 = vmatmul.mubr.bf16.gmra.mxu1 %v2603_v44  ;;  %1458 = vmatprep.mubr.bf16.mxu0 %v2604_v45  ;;  %v2699_v44 = vld [vmem:[%s2881_s20 + $0x248] ss:$16 sps:$4 sm:$0xff]   ;;  %v2700_v45 = vld [vmem:[%s2881_s20 + $0x264] ss:$16 sps:$4 sm:$0xff]  }
  0x61   : > { %1747 = vmatprep.mubr.bf16.mxu1 %v2606_v46  ;;  %v2702_v46 = vld [vmem:[%s2881_s20 + $0x26c] ss:$16 sps:$4 sm:$0xff]  }
  0x67   : > { %1459 = vmatmul.mubr.bf16.gmra.mxu0 %v2608_v47  ;;  %v2704_v47 = vld [vmem:[%s2881_s20 + $0x260] ss:$16 sps:$4 sm:$0xff]  }
  0x68   : > { %1748 = vmatmul.mubr.bf16.gmra.mxu1 %v2609_v48  ;;  %1466 = vmatprep.mubr.bf16.mxu0 %v2610_v49  ;;  %v2705_v48 = vld [vmem:[%s2881_s20 + $0x268] ss:$16 sps:$4 sm:$0xff]   ;;  %v2706_v49 = vld [vmem:[%s2881_s20 + $0x284] ss:$16 sps:$4 sm:$0xff]  }
  0x69   : > { %1755 = vmatprep.mubr.bf16.mxu1 %v2612_v50  ;;  %v2708_v50 = vld [vmem:[%s2881_s20 + $0x28c] ss:$16 sps:$4 sm:$0xff]  }
  0x6f   : > { %1467 = vmatmul.mubr.bf16.gmra.mxu0 %v2614_v51  ;;  %v2710_v51 = vld [vmem:[%s2881_s20 + $0x280] ss:$16 sps:$4 sm:$0xff]  }
  0x70   : > { %1756 = vmatmul.mubr.bf16.gmra.mxu1 %v2615_v52  ;;  %1474 = vmatprep.mubr.bf16.mxu0 %v2616_v53  ;;  %v2711_v52 = vld [vmem:[%s2881_s20 + $0x288] ss:$16 sps:$4 sm:$0xff]   ;;  %v2712_v53 = vld [vmem:[%s2881_s20 + $0x2a4] ss:$16 sps:$4 sm:$0xff]  }
  0x71   : > { %1763 = vmatprep.mubr.bf16.mxu1 %v2618_v54  ;;  %v2714_v54 = vld [vmem:[%s2881_s20 + $0x2ac] ss:$16 sps:$4 sm:$0xff]  }
  0x77   : > { %1475 = vmatmul.mubr.bf16.gmra.mxu0 %v2620_v55  ;;  %v2716_v55 = vld [vmem:[%s2881_s20 + $0x2a0] ss:$16 sps:$4 sm:$0xff]  }
  0x78   : > { %1764 = vmatmul.mubr.bf16.gmra.mxu1 %v2621_v56  ;;  %1482 = vmatprep.mubr.bf16.mxu0 %v2622_v57  ;;  %v2717_v56 = vld [vmem:[%s2881_s20 + $0x2a8] ss:$16 sps:$4 sm:$0xff]   ;;  %v2718_v57 = vld [vmem:[%s2881_s20 + $0x2c4] ss:$16 sps:$4 sm:$0xff]  }
  0x79   : > { %1771 = vmatprep.mubr.bf16.mxu1 %v2624_v58  ;;  %v2720_v58 = vld [vmem:[%s2881_s20 + $0x2cc] ss:$16 sps:$4 sm:$0xff]  }
  0x7f   : > { %1483 = vmatmul.mubr.bf16.gmra.mxu0 %v2626_v59  ;;  %v2722_v59 = vld [vmem:[%s2881_s20 + $0x2c0] ss:$16 sps:$4 sm:$0xff]  }
  0x80   : > { %1772 = vmatmul.mubr.bf16.gmra.mxu1 %v2627_v60  ;;  %1490 = vmatprep.mubr.bf16.mxu0 %v2628_v61  ;;  %v2723_v60 = vld [vmem:[%s2881_s20 + $0x2c8] ss:$16 sps:$4 sm:$0xff]   ;;  %v2724_v61 = vld [vmem:[%s2881_s20 + $0x2e4] ss:$16 sps:$4 sm:$0xff]  }
  0x81   : > { %1779 = vmatprep.mubr.bf16.mxu1 %v2630_v62  ;;  %v2726_v62 = vld [vmem:[%s2881_s20 + $0x2ec] ss:$16 sps:$4 sm:$0xff]  }
  0x87   : > { %1491 = vmatmul.mubr.bf16.gmra.mxu0 %v2632_v63  ;;  %v2728_v63 = vld [vmem:[%s2881_s20 + $0x2e0] ss:$16 sps:$4 sm:$0xff]  }
  0x88   : > { %1780 = vmatmul.mubr.bf16.gmra.mxu1 %v2633_v0  ;;  %1498 = vmatprep.mubr.bf16.mxu0 %v2634_v1  ;;  %v2729_v0 = vld [vmem:[%s2881_s20 + $0x2e8] ss:$16 sps:$4 sm:$0xff]   ;;  %v2730_v1 = vld [vmem:[%s2881_s20 + $0x304] ss:$16 sps:$4 sm:$0xff]  }
  0x89   : > { %1787 = vmatprep.mubr.bf16.mxu1 %v2636_v2  ;;  %v2732_v2 = vld [vmem:[%s2881_s20 + $0x30c] ss:$16 sps:$4 sm:$0xff]  }
  0x8f   : > { %1499 = vmatmul.mubr.bf16.gmra.mxu0 %v2638_v3  ;;  %v2734_v3 = vld [vmem:[%s2881_s20 + $0x300] ss:$16 sps:$4 sm:$0xff]  }
  0x90   : > { %1788 = vmatmul.mubr.bf16.gmra.mxu1 %v2639_v4  ;;  %1506 = vmatprep.mubr.bf16.mxu0 %v2640_v5  ;;  %v2735_v4 = vld [vmem:[%s2881_s20 + $0x308] ss:$16 sps:$4 sm:$0xff]   ;;  %v2736_v5 = vld [vmem:[%s2881_s20 + $0x324] ss:$16 sps:$4 sm:$0xff]  }
  0x91   : > { %1795 = vmatprep.mubr.bf16.mxu1 %v2642_v6  ;;  %v2738_v6 = vld [vmem:[%s2881_s20 + $0x32c] ss:$16 sps:$4 sm:$0xff]  }
  0x97   : > { %1507 = vmatmul.mubr.bf16.gmra.mxu0 %v2644_v7 }
  0x98   : > { %1796 = vmatmul.mubr.bf16.gmra.mxu1 %v2645_v8  ;;  %1514 = vmatprep.mubr.bf16.mxu0 %v2646_v9 }
  0x99   : > { %1803 = vmatprep.mubr.bf16.mxu1 %v2648_v10 }
  0x9f   : > { %1515 = vmatmul.mubr.bf16.gmra.mxu0 %v2650_v11 }
  0xa0   : > { %1804 = vmatmul.mubr.bf16.gmra.mxu1 %v2651_v12  ;;  %1522 = vmatprep.mubr.bf16.mxu0 %v2652_v13  ;;  %v2740_v13 = vld [vmem:[%s2881_s20 + $0x320] ss:$16 sps:$4 sm:$0xff]  }
  0xa1   : > { %1811 = vmatprep.mubr.bf16.mxu1 %v2654_v14 }
  0xa7   : > { %1523 = vmatmul.mubr.bf16.gmra.mxu0 %v2656_v15  ;;  %v2741_v15 = vld [vmem:[%s2881_s20 + $0x328] ss:$16 sps:$4 sm:$0xff]  }
  0xa8   : > { %1812 = vmatmul.mubr.bf16.gmra.mxu1 %v2657_v16  ;;  %1530 = vmatprep.mubr.bf16.mxu0 %v2658_v17  ;;  %v2742_v16 = vld [vmem:[%s2881_s20 + $0x344] ss:$16 sps:$4 sm:$0xff]  }
  0xa9   : > { %1819 = vmatprep.mubr.bf16.mxu1 %v2660_v18 }
  0xaf   : > { %1531 = vmatmul.mubr.bf16.gmra.mxu0 %v2662_v19  ;;  %v2744_v19 = vld [vmem:[%s2881_s20 + $0x34c] ss:$16 sps:$4 sm:$0xff]  }
  0xb0   : > { %1820 = vmatmul.mubr.bf16.gmra.mxu1 %v2663_v20  ;;  %1538 = vmatprep.mubr.bf16.mxu0 %v2664_v21 }
  0xb1   : > { %1827 = vmatprep.mubr.bf16.mxu1 %v2666_v22 }
  0xb7   : > { %1539 = vmatmul.mubr.bf16.gmra.mxu0 %v2668_v23 }
  0xb8   : > { %1828 = vmatmul.mubr.bf16.gmra.mxu1 %v2669_v24  ;;  %1546 = vmatprep.mubr.bf16.mxu0 %v2670_v25 }
  0xb9   : > { %1835 = vmatprep.mubr.bf16.mxu1 %v2672_v26 }
  0xbf   : > { %1547 = vmatmul.mubr.bf16.gmra.mxu0 %v2674_v27  ;;  %v2746_v27 = vld [vmem:[%s2881_s20 + $0x340] ss:$16 sps:$4 sm:$0xff]  }
  0xc0   : > { %1836 = vmatmul.mubr.bf16.gmra.mxu1 %v2675_v28  ;;  %1554 = vmatprep.mubr.bf16.mxu0 %v2676_v29  ;;  %v2747_v29 = vld [vmem:[%s2881_s20 + $0x348] ss:$16 sps:$4 sm:$0xff]  }
  0xc1   : > { %1843 = vmatprep.mubr.bf16.mxu1 %v2678_v30  ;;  %v2748_v30 = vld [vmem:[%s2881_s20 + $0x364] ss:$16 sps:$4 sm:$0xff]  }
  0xc7   : > { %1555 = vmatmul.mubr.bf16.gmra.mxu0 %v2680_v31 }
  0xc8   : > { %1844 = vmatmul.mubr.bf16.gmra.mxu1 %v2681_v32  ;;  %1562 = vmatprep.mubr.bf16.mxu0 %v2682_v33  ;;  %v2750_v33 = vld [vmem:[%s2881_s20 + $0x36c] ss:$16 sps:$4 sm:$0xff]  }
  0xc9   : > { %1851 = vmatprep.mubr.bf16.mxu1 %v2684_v34 }
  0xcf   : > { %1563 = vmatmul.mubr.bf16.gmra.mxu0 %v2686_v35 }
  0xd0   : > { %1852 = vmatmul.mubr.bf16.gmra.mxu1 %v2687_v36  ;;  %1570 = vmatprep.mubr.bf16.mxu0 %v2688_v37 }
  0xd1   : > { %1859 = vmatprep.mubr.bf16.mxu1 %v2690_v38 }
  0xd7   : > { %1571 = vmatmul.mubr.bf16.gmra.mxu0 %v2692_v39 }
  0xd8   : > { %1860 = vmatmul.mubr.bf16.gmra.mxu1 %v2693_v40  ;;  %1578 = vmatprep.mubr.bf16.mxu0 %v2694_v41  ;;  %v2752_v41 = vld [vmem:[%s2881_s20 + $0x360] ss:$16 sps:$4 sm:$0xff]  }
  0xd9   : > { %1867 = vmatprep.mubr.bf16.mxu1 %v2696_v42 }
  0xdf   : > { %1579 = vmatmul.mubr.bf16.gmra.mxu0 %v2698_v43  ;;  %v2753_v43 = vld [vmem:[%s2881_s20 + $0x368] ss:$16 sps:$4 sm:$0xff]  }
  0xe0   : > { %1868 = vmatmul.mubr.bf16.gmra.mxu1 %v2699_v44  ;;  %1586 = vmatprep.mubr.bf16.mxu0 %v2700_v45  ;;  %v2756_v44 = vld [vmem:[%s2881_s20 + $0x384] ss:$16 sps:$4 sm:$0xff]  }
  0xe1   : > { %1875 = vmatprep.mubr.bf16.mxu1 %v2702_v46 }
  0xe7   : > { %1587 = vmatmul.mubr.bf16.gmra.mxu0 %v2704_v47  ;;  %v2759_v47 = vld [vmem:[%s2881_s20 + $0x38c] ss:$16 sps:$4 sm:$0xff]  }
  0xe8   : > { %1876 = vmatmul.mubr.bf16.gmra.mxu1 %v2705_v48  ;;  %1594 = vmatprep.mubr.bf16.mxu0 %v2706_v49 }
  0xe9   : > { %1883 = vmatprep.mubr.bf16.mxu1 %v2708_v50 }
  0xef   : > { %1595 = vmatmul.mubr.bf16.gmra.mxu0 %v2710_v51 }
  0xf0   : > { %1884 = vmatmul.mubr.bf16.gmra.mxu1 %v2711_v52  ;;  %1602 = vmatprep.mubr.bf16.mxu0 %v2712_v53 }
  0xf1   : > { %1891 = vmatprep.mubr.bf16.mxu1 %v2714_v54 }
  0xf7   : > { %1603 = vmatmul.mubr.bf16.gmra.mxu0 %v2716_v55  ;;  %v2754_v55 = vld [vmem:[%s2881_s20 + $0x380] ss:$16 sps:$4 sm:$0xff]  }
  0xf8   : > { %1892 = vmatmul.mubr.bf16.gmra.mxu1 %v2717_v56  ;;  %1610 = vmatprep.mubr.bf16.mxu0 %v2718_v57  ;;  %v2757_v57 = vld [vmem:[%s2881_s20 + $0x388] ss:$16 sps:$4 sm:$0xff]  }
  0xf9   : > { %1899 = vmatprep.mubr.bf16.mxu1 %v2720_v58  ;;  %v2762_v58 = vld [vmem:[%s2881_s20 + $0x3a4] ss:$16 sps:$4 sm:$0xff]  }
  0xff   : > { %1611 = vmatmul.mubr.bf16.gmra.mxu0 %v2722_v59 }
 0x100   : > { %1900 = vmatmul.mubr.bf16.gmra.mxu1 %v2723_v60  ;;  %1618 = vmatprep.mubr.bf16.mxu0 %v2724_v61  ;;  %v2765_v61 = vld [vmem:[%s2881_s20 + $0x3ac] ss:$16 sps:$4 sm:$0xff]  }
 0x101   : > { %1907 = vmatprep.mubr.bf16.mxu1 %v2726_v62 }
 0x107   : > { %1619 = vmatmul.mubr.bf16.gmra.mxu0 %v2728_v63 }
 0x108   : > { %1908 = vmatmul.mubr.bf16.gmra.mxu1 %v2729_v0  ;;  %1626 = vmatprep.mubr.bf16.mxu0 %v2730_v1 }
 0x109   : > { %1915 = vmatprep.mubr.bf16.mxu1 %v2732_v2 }
 0x10f   : > { %v1436_v7 = vpop.f32.mrf.mxu0  ;;  %1627 = vmatmul.mubr.bf16.gmra.mxu0 %v2734_v3 }
 0x110   : > { %v1725_v8 = vpop.f32.mrf.mxu1  ;;  %1916 = vmatmul.mubr.bf16.gmra.mxu1 %v2735_v4  ;;  %1634 = vmatprep.mubr.bf16.mxu0 %v2736_v5  ;;  %v2760_v5 = vld [vmem:[%s2881_s20 + $0x3a0] ss:$16 sps:$4 sm:$0xff]  }
 0x111   : > { %v1726_v9 = vadd.f32 %v1725_v8, %v1436_v7  ;;  %v1438_v10 = vpop.f32.mrf.mxu0  ;;  %1923 = vmatprep.mubr.bf16.mxu1 %v2738_v6  ;;  %v2763_v7 = vld [vmem:[%s2881_s20 + $0x3a8] ss:$16 sps:$4 sm:$0xff]   ;;  %v2768_v8 = vld [vmem:[%s2881_s20 + $0x3c4] ss:$16 sps:$4 sm:$0xff]  }
 0x112   : > { %v1727_v11 = vpop.f32.mrf.mxu1 }
 0x113   : > { %2175 = vst [vmem:[%s3020_s24] sm:$0xff] %v1726_v9  ;;  %v1439_v12 = vpop.f32.mrf.mxu0  ;;  %v2771_v11 = vld [vmem:[%s2881_s20 + $0x3cc] ss:$16 sps:$4 sm:$0xff]  }
 0x114   : > { %v1728_v14 = vpop.f32.mrf.mxu1 }
 0x115   : > { %v1729_v17 = vadd.f32 %v1728_v14, %v1439_v12  ;;  %v1441_v18 = vpop.f32.mrf.mxu0 }
 0x116   : > { %v1730_v20 = vpop.f32.mrf.mxu1 }
 0x117   : > { %2176 = vst [vmem:[%s3020_s24 + $0x8] sm:$0xff] %v1729_v17  ;;  %v1444_v21 = vpop.f32.mrf.mxu0  ;;  %1635 = vmatmul.mubr.bf16.gmra.mxu0 %v2740_v13 }
 0x118   : > { %v1733_v22 = vpop.f32.mrf.mxu1  ;;  %1924 = vmatmul.mubr.bf16.gmra.mxu1 %v2741_v15  ;;  %1642 = vmatprep.mubr.bf16.mxu0 %v2742_v16 }
 0x119   : > { %v1734_v23 = vadd.f32 %v1733_v22, %v1444_v21  ;;  %v1446_v24 = vpop.f32.mrf.mxu0  ;;  %1931 = vmatprep.mubr.bf16.mxu1 %v2744_v19  ;;  %v2766_v19 = vld [vmem:[%s2881_s20 + $0x3c0] ss:$16 sps:$4 sm:$0xff]   ;;  %v2769_v21 = vld [vmem:[%s2881_s20 + $0x3c8] ss:$16 sps:$4 sm:$0xff]   ;;  %v2774_v22 = vld [vmem:[%s2881_s20 + $0x3e4] ss:$16 sps:$4 sm:$0xff]  }
 0x11a   : > { %v1735_v25 = vpop.f32.mrf.mxu1 }
 0x11b   : > { %2177 = vst [vmem:[%s3020_s24 + $0x10] sm:$0xff] %v1734_v23  ;;  %v1447_v26 = vpop.f32.mrf.mxu0  ;;  %v2777_v25 = vld [vmem:[%s2881_s20 + $0x3ec] ss:$16 sps:$4 sm:$0xff]  }
 0x11c   : > { %v1736_v28 = vpop.f32.mrf.mxu1 }
 0x11d   : > { %v1737_v31 = vadd.f32 %v1736_v28, %v1447_v26  ;;  %v1449_v32 = vpop.f32.mrf.mxu0 }
 0x11e   : > { %v1738_v34 = vpop.f32.mrf.mxu1 }
 0x11f   : > { %2178 = vst [vmem:[%s3020_s24 + $0x18] sm:$0xff] %v1737_v31  ;;  %v1452_v35 = vpop.f32.mrf.mxu0  ;;  %1643 = vmatmul.mubr.bf16.gmra.mxu0 %v2746_v27 }
 0x120   : > { %v1741_v36 = vpop.f32.mrf.mxu1  ;;  %1932 = vmatmul.mubr.bf16.gmra.mxu1 %v2747_v29  ;;  %1650 = vmatprep.mubr.bf16.mxu0 %v2748_v30 }
 0x121   : > { %v1742_v37 = vadd.f32 %v1741_v36, %v1452_v35  ;;  %v1454_v38 = vpop.f32.mrf.mxu0  ;;  %1939 = vmatprep.mubr.bf16.mxu1 %v2750_v33  ;;  %v2772_v33 = vld [vmem:[%s2881_s20 + $0x3e0] ss:$16 sps:$4 sm:$0xff]   ;;  %v2775_v35 = vld [vmem:[%s2881_s20 + $0x3e8] ss:$16 sps:$4 sm:$0xff]  }
 0x122   : > { %v1743_v39 = vpop.f32.mrf.mxu1 }
 0x123   : > { %2179 = vst [vmem:[%s3020_s24 + $0x20] sm:$0xff] %v1742_v37  ;;  %v1455_v40 = vpop.f32.mrf.mxu0 }
 0x124   : > { %v1744_v42 = vpop.f32.mrf.mxu1 }
 0x125   : > { %v1745_v45 = vadd.f32 %v1744_v42, %v1455_v40  ;;  %v1457_v46 = vpop.f32.mrf.mxu0 }
 0x126   : > { %v1746_v48 = vpop.f32.mrf.mxu1 }
 0x127   : > { %2180 = vst [vmem:[%s3020_s24 + $0x28] sm:$0xff] %v1745_v45  ;;  %v1460_v49 = vpop.f32.mrf.mxu0  ;;  %1651 = vmatmul.mubr.bf16.gmra.mxu0 %v2752_v41 }
 0x128   : > { %v1749_v50 = vpop.f32.mrf.mxu1  ;;  %1940 = vmatmul.mubr.bf16.gmra.mxu1 %v2753_v43  ;;  %1658 = vmatprep.mubr.bf16.mxu0 %v2756_v44 }
 0x129   : > { %v1750_v51 = vadd.f32 %v1749_v50, %v1460_v49  ;;  %v1462_v52 = vpop.f32.mrf.mxu0  ;;  %1947 = vmatprep.mubr.bf16.mxu1 %v2759_v47 }
 0x12a   : > { %v1751_v53 = vpop.f32.mrf.mxu1 }
 0x12b   : > { %2181 = vst [vmem:[%s3020_s24 + $0x30] sm:$0xff] %v1750_v51  ;;  %v1463_v54 = vpop.f32.mrf.mxu0 }
 0x12c   : > { %v1752_v56 = vpop.f32.mrf.mxu1 }
 0x12d   : > { %v1753_v59 = vadd.f32 %v1752_v56, %v1463_v54  ;;  %v1465_v60 = vpop.f32.mrf.mxu0 }
 0x12e   : > { %v1754_v62 = vpop.f32.mrf.mxu1 }
 0x12f   : > { %2182 = vst [vmem:[%s3020_s24 + $0x38] sm:$0xff] %v1753_v59  ;;  %v1468_v63 = vpop.f32.mrf.mxu0  ;;  %1659 = vmatmul.mubr.bf16.gmra.mxu0 %v2754_v55 }
 0x130   : > { %v1757_v0 = vpop.f32.mrf.mxu1  ;;  %1948 = vmatmul.mubr.bf16.gmra.mxu1 %v2757_v57  ;;  %1666 = vmatprep.mubr.bf16.mxu0 %v2762_v58 }
 0x131   : > { %v1758_v1 = vadd.f32 %v1757_v0, %v1468_v63  ;;  %v1470_v2 = vpop.f32.mrf.mxu0  ;;  %1955 = vmatprep.mubr.bf16.mxu1 %v2765_v61 }
 0x132   : > { %v1759_v3 = vpop.f32.mrf.mxu1 }
 0x133   : > { %2183 = vst [vmem:[%s3020_s24 + $0x40] sm:$0xff] %v1758_v1  ;;  %v1471_v4 = vpop.f32.mrf.mxu0 }
 0x134   : > { %v1760_v6 = vpop.f32.mrf.mxu1 }
 0x135   : > { %v1761_v9 = vadd.f32 %v1760_v6, %v1471_v4  ;;  %v1473_v10 = vpop.f32.mrf.mxu0 }
 0x136   : > { %v1762_v12 = vpop.f32.mrf.mxu1 }
 0x137   : > { %2184 = vst [vmem:[%s3020_s24 + $0x48] sm:$0xff] %v1761_v9  ;;  %v1476_v13 = vpop.f32.mrf.mxu0  ;;  %1667 = vmatmul.mubr.bf16.gmra.mxu0 %v2760_v5 }
 0x138   : > { %v1765_v14 = vpop.f32.mrf.mxu1  ;;  %1956 = vmatmul.mubr.bf16.gmra.mxu1 %v2763_v7  ;;  %1674 = vmatprep.mubr.bf16.mxu0 %v2768_v8 }
 0x139   : > { %v1766_v15 = vadd.f32 %v1765_v14, %v1476_v13  ;;  %v1478_v16 = vpop.f32.mrf.mxu0  ;;  %1963 = vmatprep.mubr.bf16.mxu1 %v2771_v11 }
 0x13a   : > { %v1767_v17 = vpop.f32.mrf.mxu1 }
 0x13b   : > { %2185 = vst [vmem:[%s3020_s24 + $0x50] sm:$0xff] %v1766_v15  ;;  %v1479_v18 = vpop.f32.mrf.mxu0 }
 0x13c   : > { %v1768_v20 = vpop.f32.mrf.mxu1 }
 0x13d   : > { %v1769_v23 = vadd.f32 %v1768_v20, %v1479_v18  ;;  %v1481_v24 = vpop.f32.mrf.mxu0 }
 0x13e   : > { %v1770_v26 = vpop.f32.mrf.mxu1 }
 0x13f   : > { %2186 = vst [vmem:[%s3020_s24 + $0x58] sm:$0xff] %v1769_v23  ;;  %v1484_v27 = vpop.f32.mrf.mxu0  ;;  %1675 = vmatmul.mubr.bf16.gmra.mxu0 %v2766_v19 }
 0x140   : > { %v1773_v28 = vpop.f32.mrf.mxu1  ;;  %1964 = vmatmul.mubr.bf16.gmra.mxu1 %v2769_v21  ;;  %1682 = vmatprep.mubr.bf16.mxu0 %v2774_v22 }
 0x141   : > { %v1774_v29 = vadd.f32 %v1773_v28, %v1484_v27  ;;  %v1486_v30 = vpop.f32.mrf.mxu0  ;;  %1971 = vmatprep.mubr.bf16.mxu1 %v2777_v25 }
 0x142   : > { %v1775_v31 = vpop.f32.mrf.mxu1 }
 0x143   : > { %2187 = vst [vmem:[%s3020_s24 + $0x60] sm:$0xff] %v1774_v29  ;;  %v1487_v32 = vpop.f32.mrf.mxu0 }
 0x144   : > { %v1776_v34 = vpop.f32.mrf.mxu1 }
 0x145   : > { %v1777_v36 = vadd.f32 %v1776_v34, %v1487_v32  ;;  %v1489_v37 = vpop.f32.mrf.mxu0 }
 0x146   : > { %v1778_v38 = vpop.f32.mrf.mxu1 }
 0x147   : > { %2188 = vst [vmem:[%s3020_s24 + $0x68] sm:$0xff] %v1777_v36  ;;  %v1492_v39 = vpop.f32.mrf.mxu0  ;;  %1683 = vmatmul.mubr.bf16.gmra.mxu0 %v2772_v33 }
 0x148   : > { %v1781_v40 = vpop.f32.mrf.mxu1  ;;  %1972 = vmatmul.mubr.bf16.gmra.mxu1 %v2775_v35 }
 0x149   : > { %v1782_v41 = vadd.f32 %v1781_v40, %v1492_v39  ;;  %v1494_v42 = vpop.f32.mrf.mxu0 }
 0x14a   : > { %v1783_v43 = vpop.f32.mrf.mxu1 }
 0x14b   : > { %2189 = vst [vmem:[%s3020_s24 + $0x70] sm:$0xff] %v1782_v41  ;;  %v1495_v44 = vpop.f32.mrf.mxu0 }
 0x14c   : > { %v1784_v45 = vpop.f32.mrf.mxu1 }
 0x14d   : > { %v1785_v46 = vadd.f32 %v1784_v45, %v1495_v44  ;;  %v1497_v47 = vpop.f32.mrf.mxu0 }
 0x14e   : > { %v1786_v48 = vpop.f32.mrf.mxu1 }
 0x14f   : > { %2190 = vst [vmem:[%s3020_s24 + $0x78] sm:$0xff] %v1785_v46  ;;  %v1500_v49 = vpop.f32.mrf.mxu0 }
 0x150   : > { %v1789_v50 = vpop.f32.mrf.mxu1 }
 0x151   : > { %v1790_v51 = vadd.f32 %v1789_v50, %v1500_v49  ;;  %v1502_v52 = vpop.f32.mrf.mxu0 }
 0x152   : > { %v1791_v53 = vpop.f32.mrf.mxu1 }
 0x153   : > { %2191 = vst [vmem:[%s3020_s24 + $0x80] sm:$0xff] %v1790_v51  ;;  %v1503_v54 = vpop.f32.mrf.mxu0 }
 0x154   : > { %v1792_v55 = vpop.f32.mrf.mxu1 }
 0x155   : > { %v1793_v56 = vadd.f32 %v1792_v55, %v1503_v54  ;;  %v1505_v57 = vpop.f32.mrf.mxu0 }
 0x156   : > { %v1794_v58 = vpop.f32.mrf.mxu1 }
 0x157   : > { %2192 = vst [vmem:[%s3020_s24 + $0x88] sm:$0xff] %v1793_v56  ;;  %v1508_v59 = vpop.f32.mrf.mxu0 }
 0x158   : > { %v1797_v60 = vpop.f32.mrf.mxu1 }
 0x159   : > { %v1798_v61 = vadd.f32 %v1797_v60, %v1508_v59  ;;  %v1510_v62 = vpop.f32.mrf.mxu0 }
 0x15a   : > { %v1799_v63 = vpop.f32.mrf.mxu1 }
 0x15b   : > { %2193 = vst [vmem:[%s3020_s24 + $0x90] sm:$0xff] %v1798_v61  ;;  %v1511_v0 = vpop.f32.mrf.mxu0 }
 0x15c   : > { %v1800_v1 = vpop.f32.mrf.mxu1 }
 0x15d   : > { %v1801_v2 = vadd.f32 %v1800_v1, %v1511_v0  ;;  %v1513_v3 = vpop.f32.mrf.mxu0 }
 0x15e   : > { %v1802_v4 = vpop.f32.mrf.mxu1 }
 0x15f   : > { %2194 = vst [vmem:[%s3020_s24 + $0x98] sm:$0xff] %v1801_v2  ;;  %v1516_v5 = vpop.f32.mrf.mxu0 }
 0x160   : > { %v1805_v6 = vpop.f32.mrf.mxu1 }
 0x161   : > { %v1806_v7 = vadd.f32 %v1805_v6, %v1516_v5  ;;  %v1518_v8 = vpop.f32.mrf.mxu0 }
 0x162   : > { %v1807_v9 = vpop.f32.mrf.mxu1 }
 0x163   : > { %2195 = vst [vmem:[%s3020_s24 + $0xa0] sm:$0xff] %v1806_v7  ;;  %v1519_v10 = vpop.f32.mrf.mxu0 }
 0x164   : > { %v1808_v11 = vpop.f32.mrf.mxu1 }
 0x165   : > { %v1809_v12 = vadd.f32 %v1808_v11, %v1519_v10  ;;  %v1521_v13 = vpop.f32.mrf.mxu0 }
 0x166   : > { %v1810_v14 = vpop.f32.mrf.mxu1 }
 0x167   : > { %2196 = vst [vmem:[%s3020_s24 + $0xa8] sm:$0xff] %v1809_v12  ;;  %v1524_v15 = vpop.f32.mrf.mxu0 }
 0x168   : > { %v1813_v16 = vpop.f32.mrf.mxu1 }
 0x169   : > { %v1814_v17 = vadd.f32 %v1813_v16, %v1524_v15  ;;  %v1526_v18 = vpop.f32.mrf.mxu0 }
 0x16a   : > { %v1815_v19 = vpop.f32.mrf.mxu1 }
 0x16b   : > { %2197 = vst [vmem:[%s3020_s24 + $0xb0] sm:$0xff] %v1814_v17  ;;  %v1527_v20 = vpop.f32.mrf.mxu0 }
 0x16c   : > { %v1816_v21 = vpop.f32.mrf.mxu1 }
 0x16d   : > { %v1817_v22 = vadd.f32 %v1816_v21, %v1527_v20  ;;  %v1529_v23 = vpop.f32.mrf.mxu0 }
 0x16e   : > { %v1818_v24 = vpop.f32.mrf.mxu1 }
 0x16f   : > { %2198 = vst [vmem:[%s3020_s24 + $0xb8] sm:$0xff] %v1817_v22  ;;  %v1532_v25 = vpop.f32.mrf.mxu0 }
 0x170   : > { %v1821_v26 = vpop.f32.mrf.mxu1 }
 0x171   : > { %v1822_v27 = vadd.f32 %v1821_v26, %v1532_v25  ;;  %v1534_v28 = vpop.f32.mrf.mxu0 }
 0x172   : > { %v1823_v29 = vpop.f32.mrf.mxu1 }
 0x173   : > { %2199 = vst [vmem:[%s3020_s24 + $0xc0] sm:$0xff] %v1822_v27  ;;  %v1535_v30 = vpop.f32.mrf.mxu0 }
 0x174   : > { %v1824_v31 = vpop.f32.mrf.mxu1 }
 0x175   : > { %v1825_v32 = vadd.f32 %v1824_v31, %v1535_v30  ;;  %v1537_v33 = vpop.f32.mrf.mxu0 }
 0x176   : > { %v1826_v34 = vpop.f32.mrf.mxu1 }
 0x177   : > { %2200 = vst [vmem:[%s3020_s24 + $0xc8] sm:$0xff] %v1825_v32  ;;  %v1540_v35 = vpop.f32.mrf.mxu0 }
 0x178   : > { %v1829_v36 = vpop.f32.mrf.mxu1 }
 0x179   : > { %v1830_v37 = vadd.f32 %v1829_v36, %v1540_v35  ;;  %v1542_v38 = vpop.f32.mrf.mxu0 }
 0x17a   : > { %v1831_v39 = vpop.f32.mrf.mxu1 }
 0x17b   : > { %2201 = vst [vmem:[%s3020_s24 + $0xd0] sm:$0xff] %v1830_v37  ;;  %v1543_v40 = vpop.f32.mrf.mxu0 }
 0x17c   : > { %v1832_v41 = vpop.f32.mrf.mxu1 }
 0x17d   : > { %v1833_v42 = vadd.f32 %v1832_v41, %v1543_v40  ;;  %v1545_v43 = vpop.f32.mrf.mxu0 }
 0x17e   : > { %v1834_v44 = vpop.f32.mrf.mxu1 }
 0x17f   : > { %2202 = vst [vmem:[%s3020_s24 + $0xd8] sm:$0xff] %v1833_v42  ;;  %v1548_v45 = vpop.f32.mrf.mxu0 }
 0x180   : > { %v1837_v46 = vpop.f32.mrf.mxu1 }
 0x181   : > { %v1838_v47 = vadd.f32 %v1837_v46, %v1548_v45  ;;  %v1550_v48 = vpop.f32.mrf.mxu0 }
 0x182   : > { %v1839_v49 = vpop.f32.mrf.mxu1 }
 0x183   : > { %2203 = vst [vmem:[%s3020_s24 + $0xe0] sm:$0xff] %v1838_v47  ;;  %v1551_v50 = vpop.f32.mrf.mxu0 }
 0x184   : > { %v1840_v51 = vpop.f32.mrf.mxu1 }
 0x185   : > { %v1841_v52 = vadd.f32 %v1840_v51, %v1551_v50  ;;  %v1553_v53 = vpop.f32.mrf.mxu0 }
 0x186   : > { %v1842_v54 = vpop.f32.mrf.mxu1 }
 0x187   : > { %2204 = vst [vmem:[%s3020_s24 + $0xe8] sm:$0xff] %v1841_v52  ;;  %v1556_v55 = vpop.f32.mrf.mxu0 }
 0x188   : > { %v1845_v56 = vpop.f32.mrf.mxu1 }
 0x189   : > { %v1846_v57 = vadd.f32 %v1845_v56, %v1556_v55  ;;  %v1558_v58 = vpop.f32.mrf.mxu0 }
 0x18a   : > { %v1847_v59 = vpop.f32.mrf.mxu1 }
 0x18b   : > { %2205 = vst [vmem:[%s3020_s24 + $0xf0] sm:$0xff] %v1846_v57  ;;  %v1559_v60 = vpop.f32.mrf.mxu0 }
 0x18c   : > { %v1848_v61 = vpop.f32.mrf.mxu1 }
 0x18d   : > { %v1849_v62 = vadd.f32 %v1848_v61, %v1559_v60  ;;  %v1561_v63 = vpop.f32.mrf.mxu0 }
 0x18e   : > { %v1850_v0 = vpop.f32.mrf.mxu1 }
 0x18f   : > { %2206 = vst [vmem:[%s3020_s24 + $0xf8] sm:$0xff] %v1849_v62  ;;  %v1564_v1 = vpop.f32.mrf.mxu0 }
 0x190   : > { %v1853_v2 = vpop.f32.mrf.mxu1 }
 0x191   : > { %v1854_v3 = vadd.f32 %v1853_v2, %v1564_v1  ;;  %v1566_v4 = vpop.f32.mrf.mxu0 }
 0x192   : > { %v1855_v5 = vpop.f32.mrf.mxu1 }
 0x193   : > { %2207 = vst [vmem:[%s3020_s24 + $0x100] sm:$0xff] %v1854_v3  ;;  %v1567_v6 = vpop.f32.mrf.mxu0 }
 0x194   : > { %v1856_v7 = vpop.f32.mrf.mxu1 }
 0x195   : > { %v1857_v8 = vadd.f32 %v1856_v7, %v1567_v6  ;;  %v1569_v9 = vpop.f32.mrf.mxu0 }
 0x196   : > { %v1858_v10 = vpop.f32.mrf.mxu1 }
 0x197   : > { %2208 = vst [vmem:[%s3020_s24 + $0x108] sm:$0xff] %v1857_v8  ;;  %v1572_v11 = vpop.f32.mrf.mxu0 }
 0x198   : > { %v1861_v12 = vpop.f32.mrf.mxu1 }
 0x199   : > { %v1862_v13 = vadd.f32 %v1861_v12, %v1572_v11  ;;  %v1574_v14 = vpop.f32.mrf.mxu0 }
 0x19a   : > { %v1863_v15 = vpop.f32.mrf.mxu1 }
 0x19b   : > { %2209 = vst [vmem:[%s3020_s24 + $0x110] sm:$0xff] %v1862_v13  ;;  %v1575_v16 = vpop.f32.mrf.mxu0 }
 0x19c   : > { %v1864_v17 = vpop.f32.mrf.mxu1 }
 0x19d   : > { %v1865_v18 = vadd.f32 %v1864_v17, %v1575_v16  ;;  %v1577_v19 = vpop.f32.mrf.mxu0 }
 0x19e   : > { %v1866_v20 = vpop.f32.mrf.mxu1 }
 0x19f   : > { %2210 = vst [vmem:[%s3020_s24 + $0x118] sm:$0xff] %v1865_v18  ;;  %v1580_v21 = vpop.f32.mrf.mxu0 }
 0x1a0   : > { %v1869_v22 = vpop.f32.mrf.mxu1 }
 0x1a1   : > { %v1870_v23 = vadd.f32 %v1869_v22, %v1580_v21  ;;  %v1582_v24 = vpop.f32.mrf.mxu0 }
 0x1a2   : > { %v1871_v25 = vpop.f32.mrf.mxu1 }
 0x1a3   : > { %2211 = vst [vmem:[%s3020_s24 + $0x120] sm:$0xff] %v1870_v23  ;;  %v1583_v26 = vpop.f32.mrf.mxu0 }
 0x1a4   : > { %v1872_v27 = vpop.f32.mrf.mxu1 }
 0x1a5   : > { %v1873_v28 = vadd.f32 %v1872_v27, %v1583_v26  ;;  %v1585_v29 = vpop.f32.mrf.mxu0 }
 0x1a6   : > { %v1874_v30 = vpop.f32.mrf.mxu1 }
 0x1a7   : > { %2212 = vst [vmem:[%s3020_s24 + $0x128] sm:$0xff] %v1873_v28  ;;  %v1588_v31 = vpop.f32.mrf.mxu0 }
 0x1a8   : > { %v1877_v32 = vpop.f32.mrf.mxu1 }
 0x1a9   : > { %v1878_v33 = vadd.f32 %v1877_v32, %v1588_v31  ;;  %v1590_v34 = vpop.f32.mrf.mxu0 }
 0x1aa   : > { %v1879_v35 = vpop.f32.mrf.mxu1 }
 0x1ab   : > { %2213 = vst [vmem:[%s3020_s24 + $0x130] sm:$0xff] %v1878_v33  ;;  %v1591_v36 = vpop.f32.mrf.mxu0 }
 0x1ac   : > { %v1880_v37 = vpop.f32.mrf.mxu1 }
 0x1ad   : > { %v1881_v38 = vadd.f32 %v1880_v37, %v1591_v36  ;;  %v1593_v39 = vpop.f32.mrf.mxu0 }
 0x1ae   : > { %v1882_v40 = vpop.f32.mrf.mxu1 }
 0x1af   : > { %2214 = vst [vmem:[%s3020_s24 + $0x138] sm:$0xff] %v1881_v38  ;;  %v1596_v41 = vpop.f32.mrf.mxu0 }
 0x1b0   : > { %v1885_v42 = vpop.f32.mrf.mxu1 }
 0x1b1   : > { %v1886_v43 = vadd.f32 %v1885_v42, %v1596_v41  ;;  %v1598_v44 = vpop.f32.mrf.mxu0 }
 0x1b2   : > { %v1887_v45 = vpop.f32.mrf.mxu1 }
 0x1b3   : > { %2215 = vst [vmem:[%s3020_s24 + $0x140] sm:$0xff] %v1886_v43  ;;  %v1599_v46 = vpop.f32.mrf.mxu0 }
 0x1b4   : > { %v1888_v47 = vpop.f32.mrf.mxu1 }
 0x1b5   : > { %v1889_v48 = vadd.f32 %v1888_v47, %v1599_v46  ;;  %v1601_v49 = vpop.f32.mrf.mxu0 }
 0x1b6   : > { %v1890_v50 = vpop.f32.mrf.mxu1 }
 0x1b7   : > { %2216 = vst [vmem:[%s3020_s24 + $0x148] sm:$0xff] %v1889_v48  ;;  %v1604_v51 = vpop.f32.mrf.mxu0 }
 0x1b8   : > { %v1893_v52 = vpop.f32.mrf.mxu1 }
 0x1b9   : > { %v1894_v53 = vadd.f32 %v1893_v52, %v1604_v51  ;;  %v1606_v54 = vpop.f32.mrf.mxu0 }
 0x1ba   : > { %v1895_v55 = vpop.f32.mrf.mxu1 }
 0x1bb   : > { %2217 = vst [vmem:[%s3020_s24 + $0x150] sm:$0xff] %v1894_v53  ;;  %v1607_v56 = vpop.f32.mrf.mxu0 }
 0x1bc   : > { %v1896_v57 = vpop.f32.mrf.mxu1 }
 0x1bd   : > { %v1897_v58 = vadd.f32 %v1896_v57, %v1607_v56  ;;  %v1609_v59 = vpop.f32.mrf.mxu0 }
 0x1be   : > { %v1898_v60 = vpop.f32.mrf.mxu1 }
 0x1bf   : > { %2218 = vst [vmem:[%s3020_s24 + $0x158] sm:$0xff] %v1897_v58  ;;  %v1612_v61 = vpop.f32.mrf.mxu0 }
 0x1c0   : > { %v1901_v62 = vpop.f32.mrf.mxu1 }
 0x1c1   : > { %v1902_v63 = vadd.f32 %v1901_v62, %v1612_v61  ;;  %v1614_v0 = vpop.f32.mrf.mxu0 }
 0x1c2   : > { %v1903_v1 = vpop.f32.mrf.mxu1 }
 0x1c3   : > { %2219 = vst [vmem:[%s3020_s24 + $0x160] sm:$0xff] %v1902_v63  ;;  %v1615_v2 = vpop.f32.mrf.mxu0 }
 0x1c4   : > { %v1904_v3 = vpop.f32.mrf.mxu1 }
 0x1c5   : > { %v1905_v4 = vadd.f32 %v1904_v3, %v1615_v2  ;;  %v1617_v5 = vpop.f32.mrf.mxu0 }
 0x1c6   : > { %v1906_v6 = vpop.f32.mrf.mxu1 }
 0x1c7   : > { %2220 = vst [vmem:[%s3020_s24 + $0x168] sm:$0xff] %v1905_v4  ;;  %v1620_v7 = vpop.f32.mrf.mxu0 }
 0x1c8   : > { %v1909_v8 = vpop.f32.mrf.mxu1 }
 0x1c9   : > { %v1910_v9 = vadd.f32 %v1909_v8, %v1620_v7  ;;  %v1622_v10 = vpop.f32.mrf.mxu0 }
 0x1ca   : > { %v1911_v11 = vpop.f32.mrf.mxu1 }
 0x1cb   : > { %2221 = vst [vmem:[%s3020_s24 + $0x170] sm:$0xff] %v1910_v9  ;;  %v1623_v12 = vpop.f32.mrf.mxu0 }
 0x1cc   : > { %v1912_v13 = vpop.f32.mrf.mxu1 }
 0x1cd   : > { %v1913_v14 = vadd.f32 %v1912_v13, %v1623_v12  ;;  %v1625_v15 = vpop.f32.mrf.mxu0 }
 0x1ce   : > { %v1914_v16 = vpop.f32.mrf.mxu1 }
 0x1cf   : > { %2222 = vst [vmem:[%s3020_s24 + $0x178] sm:$0xff] %v1913_v14  ;;  %v1628_v17 = vpop.f32.mrf.mxu0 }
 0x1d0   : > { %v1917_v18 = vpop.f32.mrf.mxu1 }
 0x1d1   : > { %v1918_v19 = vadd.f32 %v1917_v18, %v1628_v17  ;;  %v1630_v20 = vpop.f32.mrf.mxu0 }
 0x1d2   : > { %v1919_v21 = vpop.f32.mrf.mxu1 }
 0x1d3   : > { %2223 = vst [vmem:[%s3020_s24 + $0x180] sm:$0xff] %v1918_v19  ;;  %v1631_v22 = vpop.f32.mrf.mxu0 }
 0x1d4   : > { %v1920_v23 = vpop.f32.mrf.mxu1 }
 0x1d5   : > { %v1921_v24 = vadd.f32 %v1920_v23, %v1631_v22  ;;  %v1633_v25 = vpop.f32.mrf.mxu0 }
 0x1d6   : > { %v1922_v26 = vpop.f32.mrf.mxu1 }
 0x1d7   : > { %2224 = vst [vmem:[%s3020_s24 + $0x188] sm:$0xff] %v1921_v24  ;;  %v1636_v27 = vpop.f32.mrf.mxu0 }
 0x1d8   : > { %v1925_v28 = vpop.f32.mrf.mxu1 }
 0x1d9   : > { %v1926_v29 = vadd.f32 %v1925_v28, %v1636_v27  ;;  %v1638_v30 = vpop.f32.mrf.mxu0 }
 0x1da   : > { %v1927_v31 = vpop.f32.mrf.mxu1 }
 0x1db   : > { %2225 = vst [vmem:[%s3020_s24 + $0x190] sm:$0xff] %v1926_v29  ;;  %v1639_v32 = vpop.f32.mrf.mxu0 }
 0x1dc   : > { %v1928_v33 = vpop.f32.mrf.mxu1 }
 0x1dd   : > { %v1929_v34 = vadd.f32 %v1928_v33, %v1639_v32  ;;  %v1641_v35 = vpop.f32.mrf.mxu0 }
 0x1de   : > { %v1930_v36 = vpop.f32.mrf.mxu1 }
 0x1df   : > { %2226 = vst [vmem:[%s3020_s24 + $0x198] sm:$0xff] %v1929_v34  ;;  %v1644_v37 = vpop.f32.mrf.mxu0 }
 0x1e0   : > { %v1933_v38 = vpop.f32.mrf.mxu1 }
 0x1e1   : > { %v1934_v39 = vadd.f32 %v1933_v38, %v1644_v37  ;;  %v1646_v40 = vpop.f32.mrf.mxu0 }
 0x1e2   : > { %v1935_v41 = vpop.f32.mrf.mxu1 }
 0x1e3   : > { %2227 = vst [vmem:[%s3020_s24 + $0x1a0] sm:$0xff] %v1934_v39  ;;  %v1647_v42 = vpop.f32.mrf.mxu0 }
 0x1e4   : > { %v1936_v43 = vpop.f32.mrf.mxu1 }
 0x1e5   : > { %v1937_v44 = vadd.f32 %v1936_v43, %v1647_v42  ;;  %v1649_v45 = vpop.f32.mrf.mxu0 }
 0x1e6   : > { %v1938_v46 = vpop.f32.mrf.mxu1 }
 0x1e7   : > { %2228 = vst [vmem:[%s3020_s24 + $0x1a8] sm:$0xff] %v1937_v44  ;;  %v1652_v47 = vpop.f32.mrf.mxu0 }
 0x1e8   : > { %v1941_v48 = vpop.f32.mrf.mxu1 }
 0x1e9   : > { %v1942_v49 = vadd.f32 %v1941_v48, %v1652_v47  ;;  %v1654_v50 = vpop.f32.mrf.mxu0 }
 0x1ea   : > { %v1943_v51 = vpop.f32.mrf.mxu1 }
 0x1eb   : > { %2229 = vst [vmem:[%s3020_s24 + $0x1b0] sm:$0xff] %v1942_v49  ;;  %v1655_v52 = vpop.f32.mrf.mxu0 }
 0x1ec   : > { %v1944_v53 = vpop.f32.mrf.mxu1 }
 0x1ed   : > { %v1945_v54 = vadd.f32 %v1944_v53, %v1655_v52  ;;  %v1657_v55 = vpop.f32.mrf.mxu0 }
 0x1ee   : > { %v1946_v56 = vpop.f32.mrf.mxu1 }
 0x1ef   : > { %2230 = vst [vmem:[%s3020_s24 + $0x1b8] sm:$0xff] %v1945_v54  ;;  %v1660_v57 = vpop.f32.mrf.mxu0 }
 0x1f0   : > { %v1949_v58 = vpop.f32.mrf.mxu1 }
 0x1f1   : > { %v1950_v59 = vadd.f32 %v1949_v58, %v1660_v57  ;;  %v1662_v60 = vpop.f32.mrf.mxu0 }
 0x1f2   : > { %v1951_v61 = vpop.f32.mrf.mxu1 }
 0x1f3   : > { %2231 = vst [vmem:[%s3020_s24 + $0x1c0] sm:$0xff] %v1950_v59  ;;  %v1663_v62 = vpop.f32.mrf.mxu0 }
 0x1f4   : > { %v1952_v63 = vpop.f32.mrf.mxu1 }
 0x1f5   : > { %v1953_v0 = vadd.f32 %v1952_v63, %v1663_v62  ;;  %v1665_v1 = vpop.f32.mrf.mxu0 }
 0x1f6   : > { %v1954_v2 = vpop.f32.mrf.mxu1 }
 0x1f7   : > { %2232 = vst [vmem:[%s3020_s24 + $0x1c8] sm:$0xff] %v1953_v0  ;;  %v1668_v3 = vpop.f32.mrf.mxu0 }
 0x1f8   : > { %v1957_v4 = vpop.f32.mrf.mxu1 }
 0x1f9   : > { %v1958_v5 = vadd.f32 %v1957_v4, %v1668_v3  ;;  %v1670_v6 = vpop.f32.mrf.mxu0 }
 0x1fa   : > { %v1959_v7 = vpop.f32.mrf.mxu1 }
 0x1fb   : > { %2233 = vst [vmem:[%s3020_s24 + $0x1d0] sm:$0xff] %v1958_v5  ;;  %v1671_v8 = vpop.f32.mrf.mxu0 }
 0x1fc   : > { %v1960_v9 = vpop.f32.mrf.mxu1 }
 0x1fd   : > { %v1961_v10 = vadd.f32 %v1960_v9, %v1671_v8  ;;  %v1673_v11 = vpop.f32.mrf.mxu0 }
 0x1fe   : > { %v1962_v12 = vpop.f32.mrf.mxu1 }
 0x1ff   : > { %2234 = vst [vmem:[%s3020_s24 + $0x1d8] sm:$0xff] %v1961_v10  ;;  %v1676_v13 = vpop.f32.mrf.mxu0 }
 0x200   : > { %v1965_v14 = vpop.f32.mrf.mxu1 }
 0x201   : > { %v1966_v15 = vadd.f32 %v1965_v14, %v1676_v13  ;;  %v1678_v16 = vpop.f32.mrf.mxu0 }
 0x202   : > { %v1967_v17 = vpop.f32.mrf.mxu1 }
 0x203   : > { %2235 = vst [vmem:[%s3020_s24 + $0x1e0] sm:$0xff] %v1966_v15  ;;  %v1679_v18 = vpop.f32.mrf.mxu0 }
 0x204   : > { %v1968_v19 = vpop.f32.mrf.mxu1 }
 0x205   : > { %v1969_v20 = vadd.f32 %v1968_v19, %v1679_v18  ;;  %v1681_v21 = vpop.f32.mrf.mxu0 }
 0x206   : > { %v1970_v22 = vpop.f32.mrf.mxu1 }
 0x207   : > { %2236 = vst [vmem:[%s3020_s24 + $0x1e8] sm:$0xff] %v1969_v20  ;;  %v1684_v23 = vpop.f32.mrf.mxu0 }
 0x208   : > { %v1973_v24 = vpop.f32.mrf.mxu1 }
 0x209   : > { %v1974_v25 = vadd.f32 %v1973_v24, %v1684_v23  ;;  %v1686_v26 = vpop.f32.mrf.mxu0 }
 0x20a   : > { %v1975_v27 = vpop.f32.mrf.mxu1 }
 0x20b   : > { %2237 = vst [vmem:[%s3020_s24 + $0x1f0] sm:$0xff] %v1974_v25  ;;  %v1687_v28 = vpop.f32.mrf.mxu0 }
 0x20c   : > { %v1976_v29 = vpop.f32.mrf.mxu1 }
 0x20d   : > { %v1977_v30 = vadd.f32 %v1976_v29, %v1687_v28  ;;  %v1689_v31 = vpop.f32.mrf.mxu0 }
 0x20e   : > { %v1978_v32 = vpop.f32.mrf.mxu1 }
 0x20f   : > { %2238 = vst [vmem:[%s3020_s24 + $0x1f8] sm:$0xff] %v1977_v30 }
 0x210 PF: > { %s12_s11 = sadd.s32 1, %s2800_s11   ;;  %s3124_s9 = smov %s2796_s10 }
 0x211   : > { %p9_p5 = scmp.ge.s32.totalorder %s12_s11, 6   ;;  %s3125_s10 = smov %s3127_s12 }
 0x213   :  { %11 = sbr.rel (!%p9_p5) target bundleno = 2 (0x2), region = 69 }

// kernel: netG_forward.25
= control target key start
LH: loop header
LB: loop body
LE: loop exit
PB: predicated region body
PF: predicated region fallthrough
CT: control target
= control target key end

     0   :  { %s3046_s9 = smov 0   ;;  %s3048_s10 = smov 0   ;;  %s3377_s0 = inlined_call_operand.vmem [shape: bf16[4,2048,512], index: 0, kind: input, shape index: {}]   ;;  %s3378_s1 = inlined_call_operand.vmem [shape: bf16[4,512,128], index: 1, kind: input, shape index: {}]   ;;  %s3379_s2 = inlined_call_operand.vmem [shape: f32[4,2048,128], index: 2, kind: output, shape index: {}]  }
   0x1   :  { %s3050_s11 = smov 0   ;;  %s3052_s12 = smov 0  }
   0x2   :  { %s3054_s13 = smov 0  }
   0x3 LB: > { %s27_s14 = sadd.s32 1, %s3020_s11  ;;  %s31_s15 = sadd.s32 1, %s3024_s12  ;;  %s3028_s13 = sphi %s3054_s13, %s12_s13   ;;  %s3024_s12 = sphi %s3052_s12, %s3383_s12   ;;  %s3020_s11 = sphi %s3050_s11, %s3382_s11   ;;  %s3016_s10 = sphi %s3048_s10, %s3381_s10   ;;  %s3012_s9 = sphi %s3046_s9, %s3380_s9  }
   0x4   : > { %p29_p0 = scmp.ge.s32.totalorder %s27_s14, 4  ;;  %p2424_p1 = scmp.ge.s32.totalorder %s3028_s13, 1 }
   0x5   : > { %p165_p2 = scmp.lt.s32.totalorder %s3028_s13, 17 }
   0x6   : > { %s3385_s14 = smov (%p29_p0, %s27_s14), 0  ;;  %s3387_s15 = smov (!%p29_p0, %s31_s15), %s3024_s12 }
   0x7   : > { %p166_p3 = pnand %p2424_p1, %p165_p2  ;;  %p33_p4 = scmp.ge.s32.totalorder %s3387_s15, 4 }
   0x8   : > { %p211_p5 = scmp.lt.s32.totalorder (!%p166_p3), %s3016_s10, 3  ;;  %s2425_s20 = sshll.u32 (!%p166_p3), %s3012_s9, 6 }
   0x9   : > { %s3389_s15 = smov (%p33_p4, %s3387_s15), 0  ;;  %169 = sbr.rel (%p166_p3) target bundleno = 544 (0x220), region = 28 }
   0xa   : > { %p213_p6 = scmp.lt.s32.totalorder (!%p166_p3), %s2425_s20, 255 }
   0xe   : > { %v3030_v0 = vmov 0   ;;  %s3391_s10 = smov (!%p211_p5, %s3016_s10), 3  ;;  %s3393_s20 = smov (!%p213_p6, %s2425_s20), 255 }
   0xf   : > { %1402 = vmatprep.subr.bf16.mxu0 %v3030_v0  ;;  %1691 = vmatprep.subr.bf16.mxu1 %v3030_v0  ;;  %s2596_s16 = sshll.u32 %s3391_s10, 8  ;;  %s2426_s21 = sshll.u32 %s3393_s20, 2 }
  0x10   : > { %s3088_s19 = scalar_lea.vmem %s3378_s1, %s2596_s16  ;;  %s2427_s22 = sshll.u32 %s3391_s10, 10 }
  0x11   : > { %v2638_v1 = vld [vmem:[%s3088_s19 + $0x38] sm:$0xff]   ;;  %v2640_v3 = vld [vmem:[%s3088_s19 + $0x30] sm:$0xff]   ;;  %v2642_v5 = vld [vmem:[%s3088_s19 + $0x28] sm:$0xff]   ;;  %s220_s23 = sadd.s32 %s2427_s22, %s2426_s21  ;;  %s241_s28 = sadd.s32 %s2596_s16, %s3393_s20 }
  0x12   : > { %v2639_v2 = vld [vmem:[%s3088_s19 + $0xb8] sm:$0xff]   ;;  %1403 = vmatpush1.bf16.msra.mxu0 %v2638_v1  ;;  %v2641_v4 = vld [vmem:[%s3088_s19 + $0xb0] sm:$0xff]   ;;  %v2643_v6 = vld [vmem:[%s3088_s19 + $0xa8] sm:$0xff]   ;;  %s2428_s24 = sshll.u32 %s220_s23, 2  ;;  %s2433_s29 = sshll.u32 %s241_s28, 3 }
  0x13   : > { %1692 = vmatpush1.bf16.msra.mxu1 %v2639_v2  ;;  %1404 = vmatprep.subr.bf16.mxu0 %v3030_v0  ;;  %v2644_v7 = vld [vmem:[%s3088_s19 + $0x20] sm:$0xff]   ;;  %v2646_v9 = vld [vmem:[%s3088_s19 + $0x18] sm:$0xff]   ;;  %v2648_v11 = vld [vmem:[%s3088_s19 + $0x10] sm:$0xff]   ;;  %s3128_s27 = scalar_lea.vmem %s3377_s0, %s2428_s24  ;;  %s3278_s4 = scalar_lea.vmem %s3379_s2, %s2433_s29 }
  0x14   : > { %1693 = vmatprep.subr.bf16.mxu1 %v3030_v0  ;;  %v2645_v8 = vld [vmem:[%s3088_s19 + $0xa0] sm:$0xff]   ;;  %v2647_v10 = vld [vmem:[%s3088_s19 + $0x98] sm:$0xff]   ;;  %v2649_v12 = vld [vmem:[%s3088_s19 + $0x90] sm:$0xff]  }
  0x15   : > { %v2650_v13 = vld [vmem:[%s3088_s19 + $0x8] sm:$0xff]   ;;  %v2652_v15 = vld [vmem:[%s3088_s19] sm:$0xff]   ;;  %v2654_v17 = vld [vmem:[%s3088_s19 + $0x78] sm:$0xff]  }
  0x16   : > { %1405 = vmatpush1.bf16.msra.mxu0 %v2640_v3  ;;  %v2651_v14 = vld [vmem:[%s3088_s19 + $0x88] sm:$0xff]   ;;  %v2653_v16 = vld [vmem:[%s3088_s19 + $0x80] sm:$0xff]   ;;  %v2655_v18 = vld [vmem:[%s3088_s19 + $0xf8] sm:$0xff]  }
  0x17   : > { %1694 = vmatpush1.bf16.msra.mxu1 %v2641_v4  ;;  %1406 = vmatprep.subr.bf16.mxu0 %v3030_v0  ;;  %v2672_v19 = vld [vmem:[%s3128_s27 + $0x4] ss:$16 sps:$4 sm:$0xff]   ;;  %v2675_v21 = vld [vmem:[%s3128_s27 + $0xc] ss:$16 sps:$4 sm:$0xff]   ;;  %v2670_v35 = vld [vmem:[%s3128_s27] ss:$16 sps:$4 sm:$0xff]  }
  0x18   : > { %1695 = vmatprep.subr.bf16.mxu1 %v3030_v0  ;;  %v2656_v20 = vld [vmem:[%s3088_s19 + $0x70] sm:$0xff]   ;;  %1434 = vmatprep.mubr.bf16.mxu0 %v2672_v19  ;;  %v2658_v23 = vld [vmem:[%s3088_s19 + $0x68] sm:$0xff]   ;;  %v2660_v25 = vld [vmem:[%s3088_s19 + $0x60] sm:$0xff]  }
  0x19   : > { %v2657_v22 = vld [vmem:[%s3088_s19 + $0xf0] sm:$0xff]   ;;  %1723 = vmatprep.mubr.bf16.mxu1 %v2675_v21  ;;  %v2659_v24 = vld [vmem:[%s3088_s19 + $0xe8] sm:$0xff]   ;;  %v2661_v26 = vld [vmem:[%s3088_s19 + $0xe0] sm:$0xff]  }
  0x1a   : > { %1407 = vmatpush1.bf16.msra.mxu0 %v2642_v5  ;;  %v2662_v27 = vld [vmem:[%s3088_s19 + $0x58] sm:$0xff]   ;;  %v2664_v29 = vld [vmem:[%s3088_s19 + $0x50] sm:$0xff]   ;;  %v2666_v31 = vld [vmem:[%s3088_s19 + $0x48] sm:$0xff]  }
  0x1b   : > { %1696 = vmatpush1.bf16.msra.mxu1 %v2643_v6  ;;  %1408 = vmatprep.subr.bf16.mxu0 %v3030_v0  ;;  %v2663_v28 = vld [vmem:[%s3088_s19 + $0xd8] sm:$0xff]   ;;  %v2665_v30 = vld [vmem:[%s3088_s19 + $0xd0] sm:$0xff]   ;;  %v2667_v32 = vld [vmem:[%s3088_s19 + $0xc8] sm:$0xff]  }
  0x1c   : > { %1697 = vmatprep.subr.bf16.mxu1 %v3030_v0  ;;  %v2668_v33 = vld [vmem:[%s3088_s19 + $0x40] sm:$0xff]   ;;  %v2673_v36 = vld [vmem:[%s3128_s27 + $0x8] ss:$16 sps:$4 sm:$0xff]   ;;  %v2678_v38 = vld [vmem:[%s3128_s27 + $0x2c] ss:$16 sps:$4 sm:$0xff]  }
  0x1d   : > { %v2669_v34 = vld [vmem:[%s3088_s19 + $0xc0] sm:$0xff]   ;;  %v2681_v40 = vld [vmem:[%s3128_s27 + $0x28] ss:$16 sps:$4 sm:$0xff]   ;;  %v2684_v42 = vld [vmem:[%s3128_s27 + $0x4c] ss:$16 sps:$4 sm:$0xff]  }
  0x1e   : > { %1409 = vmatpush1.bf16.msra.mxu0 %v2644_v7  ;;  %v2676_v37 = vld [vmem:[%s3128_s27 + $0x24] ss:$16 sps:$4 sm:$0xff]   ;;  %v2680_v39 = vld [vmem:[%s3128_s27 + $0x20] ss:$16 sps:$4 sm:$0xff]   ;;  %v2687_v44 = vld [vmem:[%s3128_s27 + $0x48] ss:$16 sps:$4 sm:$0xff]  }
  0x1f   : > { %1698 = vmatpush1.bf16.msra.mxu1 %v2645_v8  ;;  %1410 = vmatprep.subr.bf16.mxu0 %v3030_v0  ;;  %v2682_v41 = vld [vmem:[%s3128_s27 + $0x44] ss:$16 sps:$4 sm:$0xff]   ;;  %v2686_v43 = vld [vmem:[%s3128_s27 + $0x40] ss:$16 sps:$4 sm:$0xff]   ;;  %v2690_v46 = vld [vmem:[%s3128_s27 + $0x6c] ss:$16 sps:$4 sm:$0xff]  }
  0x20   : > { %1699 = vmatprep.subr.bf16.mxu1 %v3030_v0  ;;  %v2688_v45 = vld [vmem:[%s3128_s27 + $0x64] ss:$16 sps:$4 sm:$0xff]   ;;  %v2692_v47 = vld [vmem:[%s3128_s27 + $0x60] ss:$16 sps:$4 sm:$0xff]   ;;  %v2693_v48 = vld [vmem:[%s3128_s27 + $0x68] ss:$16 sps:$4 sm:$0xff]  }
  0x21   : > { %v2694_v49 = vld [vmem:[%s3128_s27 + $0x84] ss:$16 sps:$4 sm:$0xff]   ;;  %v2696_v50 = vld [vmem:[%s3128_s27 + $0x8c] ss:$16 sps:$4 sm:$0xff]   ;;  %v2698_v51 = vld [vmem:[%s3128_s27 + $0x80] ss:$16 sps:$4 sm:$0xff]  }
  0x22   : > { %1411 = vmatpush1.bf16.msra.mxu0 %v2646_v9  ;;  %v2699_v52 = vld [vmem:[%s3128_s27 + $0x88] ss:$16 sps:$4 sm:$0xff]   ;;  %v2700_v53 = vld [vmem:[%s3128_s27 + $0xa4] ss:$16 sps:$4 sm:$0xff]   ;;  %v2702_v54 = vld [vmem:[%s3128_s27 + $0xac] ss:$16 sps:$4 sm:$0xff]  }
  0x23   : > { %1700 = vmatpush1.bf16.msra.mxu1 %v2647_v10  ;;  %1412 = vmatprep.subr.bf16.mxu0 %v3030_v0  ;;  %v2704_v55 = vld [vmem:[%s3128_s27 + $0xa0] ss:$16 sps:$4 sm:$0xff]   ;;  %v2705_v56 = vld [vmem:[%s3128_s27 + $0xa8] ss:$16 sps:$4 sm:$0xff]   ;;  %v2706_v57 = vld [vmem:[%s3128_s27 + $0xc4] ss:$16 sps:$4 sm:$0xff]  }
  0x24   : > { %1701 = vmatprep.subr.bf16.mxu1 %v3030_v0  ;;  %v2708_v58 = vld [vmem:[%s3128_s27 + $0xcc] ss:$16 sps:$4 sm:$0xff]   ;;  %v2710_v59 = vld [vmem:[%s3128_s27 + $0xc0] ss:$16 sps:$4 sm:$0xff]   ;;  %v2711_v60 = vld [vmem:[%s3128_s27 + $0xc8] ss:$16 sps:$4 sm:$0xff]  }
  0x25   : > { %v2712_v61 = vld [vmem:[%s3128_s27 + $0xe4] ss:$16 sps:$4 sm:$0xff]   ;;  %v2714_v62 = vld [vmem:[%s3128_s27 + $0xec] ss:$16 sps:$4 sm:$0xff]   ;;  %v2716_v63 = vld [vmem:[%s3128_s27 + $0xe0] ss:$16 sps:$4 sm:$0xff]  }
  0x26   : > { %1413 = vmatpush1.bf16.msra.mxu0 %v2648_v11  ;;  %v2718_v1 = vld [vmem:[%s3128_s27 + $0x104] ss:$16 sps:$4 sm:$0xff]   ;;  %v2720_v2 = vld [vmem:[%s3128_s27 + $0x10c] ss:$16 sps:$4 sm:$0xff]   ;;  %v2722_v3 = vld [vmem:[%s3128_s27 + $0x100] ss:$16 sps:$4 sm:$0xff]  }
  0x27   : > { %1702 = vmatpush1.bf16.msra.mxu1 %v2649_v12  ;;  %1414 = vmatprep.subr.bf16.mxu0 %v3030_v0  ;;  %v2723_v4 = vld [vmem:[%s3128_s27 + $0x108] ss:$16 sps:$4 sm:$0xff]   ;;  %v2724_v5 = vld [vmem:[%s3128_s27 + $0x124] ss:$16 sps:$4 sm:$0xff]   ;;  %v2726_v6 = vld [vmem:[%s3128_s27 + $0x12c] ss:$16 sps:$4 sm:$0xff]  }
  0x28   : > { %1703 = vmatprep.subr.bf16.mxu1 %v3030_v0  ;;  %v2728_v7 = vld [vmem:[%s3128_s27 + $0x120] ss:$16 sps:$4 sm:$0xff]   ;;  %v2729_v8 = vld [vmem:[%s3128_s27 + $0x128] ss:$16 sps:$4 sm:$0xff]   ;;  %v2730_v9 = vld [vmem:[%s3128_s27 + $0x144] ss:$16 sps:$4 sm:$0xff]  }
  0x29   : > { %v2732_v10 = vld [vmem:[%s3128_s27 + $0x14c] ss:$16 sps:$4 sm:$0xff]   ;;  %v2734_v11 = vld [vmem:[%s3128_s27 + $0x140] ss:$16 sps:$4 sm:$0xff]   ;;  %v2735_v12 = vld [vmem:[%s3128_s27 + $0x148] ss:$16 sps:$4 sm:$0xff]  }
  0x2a   : > { %1415 = vmatpush1.bf16.msra.mxu0 %v2650_v13  ;;  %v2736_v13 = vld [vmem:[%s3128_s27 + $0x164] ss:$16 sps:$4 sm:$0xff]   ;;  %v2746_v19 = vld [vmem:[%s3128_s27 + $0x180] ss:$16 sps:$4 sm:$0xff]  }
  0x2b   : > { %1704 = vmatpush1.bf16.msra.mxu1 %v2651_v14  ;;  %1416 = vmatprep.subr.bf16.mxu0 %v3030_v0  ;;  %v2738_v14 = vld [vmem:[%s3128_s27 + $0x16c] ss:$16 sps:$4 sm:$0xff]   ;;  %v2748_v21 = vld [vmem:[%s3128_s27 + $0x1a4] ss:$16 sps:$4 sm:$0xff]  }
  0x2c   : > { %1705 = vmatprep.subr.bf16.mxu1 %v3030_v0 }
  0x2e   : > { %1417 = vmatpush1.bf16.msra.mxu0 %v2652_v15  ;;  %v2740_v15 = vld [vmem:[%s3128_s27 + $0x160] ss:$16 sps:$4 sm:$0xff]  }
  0x2f   : > { %1706 = vmatpush1.bf16.msra.mxu1 %v2653_v16  ;;  %1418 = vmatprep.subr.bf16.mxu0 %v3030_v0  ;;  %v2741_v16 = vld [vmem:[%s3128_s27 + $0x168] ss:$16 sps:$4 sm:$0xff]  }
  0x30   : > { %1707 = vmatprep.subr.bf16.mxu1 %v3030_v0 }
  0x32   : > { %1419 = vmatpush2.bf16.msra.mxu0 %v2654_v17  ;;  %v2742_v17 = vld [vmem:[%s3128_s27 + $0x184] ss:$16 sps:$4 sm:$0xff]  }
  0x33   : > { %1708 = vmatpush2.bf16.msra.mxu1 %v2655_v18  ;;  %1420 = vmatprep.subr.bf16.mxu0 %v3030_v0  ;;  %v2744_v18 = vld [vmem:[%s3128_s27 + $0x18c] ss:$16 sps:$4 sm:$0xff]  }
  0x34   : > { %1709 = vmatprep.subr.bf16.mxu1 %v3030_v0 }
  0x36   : > { %1421 = vmatpush2.bf16.msra.mxu0 %v2656_v20  ;;  %v2747_v20 = vld [vmem:[%s3128_s27 + $0x188] ss:$16 sps:$4 sm:$0xff]  }
  0x37   : > { %1710 = vmatpush2.bf16.msra.mxu1 %v2657_v22  ;;  %1422 = vmatprep.subr.bf16.mxu0 %v3030_v0  ;;  %v2750_v22 = vld [vmem:[%s3128_s27 + $0x1ac] ss:$16 sps:$4 sm:$0xff]  }
  0x38   : > { %1711 = vmatprep.subr.bf16.mxu1 %v3030_v0 }
  0x3a   : > { %1423 = vmatpush2.bf16.msra.mxu0 %v2658_v23  ;;  %v2752_v23 = vld [vmem:[%s3128_s27 + $0x1a0] ss:$16 sps:$4 sm:$0xff]  }
  0x3b   : > { %1712 = vmatpush2.bf16.msra.mxu1 %v2659_v24  ;;  %1424 = vmatprep.subr.bf16.mxu0 %v3030_v0  ;;  %v2753_v24 = vld [vmem:[%s3128_s27 + $0x1a8] ss:$16 sps:$4 sm:$0xff]  }
  0x3c   : > { %1713 = vmatprep.subr.bf16.mxu1 %v3030_v0 }
  0x3e   : > { %1425 = vmatpush2.bf16.msra.mxu0 %v2660_v25  ;;  %v2754_v25 = vld [vmem:[%s3128_s27 + $0x1c4] ss:$16 sps:$4 sm:$0xff]  }
  0x3f   : > { %1714 = vmatpush2.bf16.msra.mxu1 %v2661_v26  ;;  %1426 = vmatprep.subr.bf16.mxu0 %v3030_v0  ;;  %v2756_v26 = vld [vmem:[%s3128_s27 + $0x1cc] ss:$16 sps:$4 sm:$0xff]  }
  0x40   : > { %1715 = vmatprep.subr.bf16.mxu1 %v3030_v0 }
  0x42   : > { %1427 = vmatpush2.bf16.msra.mxu0 %v2662_v27  ;;  %v2758_v27 = vld [vmem:[%s3128_s27 + $0x1c0] ss:$16 sps:$4 sm:$0xff]  }
  0x43   : > { %1716 = vmatpush2.bf16.msra.mxu1 %v2663_v28  ;;  %1428 = vmatprep.subr.bf16.mxu0 %v3030_v0  ;;  %v2759_v28 = vld [vmem:[%s3128_s27 + $0x1c8] ss:$16 sps:$4 sm:$0xff]  }
  0x44   : > { %1717 = vmatprep.subr.bf16.mxu1 %v3030_v0 }
  0x46   : > { %1429 = vmatpush2.bf16.msra.mxu0 %v2664_v29  ;;  %v2760_v29 = vld [vmem:[%s3128_s27 + $0x1e4] ss:$16 sps:$4 sm:$0xff]  }
  0x47   : > { %1718 = vmatpush2.bf16.msra.mxu1 %v2665_v30  ;;  %1430 = vmatprep.subr.bf16.mxu0 %v3030_v0  ;;  %v2762_v30 = vld [vmem:[%s3128_s27 + $0x1ec] ss:$16 sps:$4 sm:$0xff]  }
  0x48   : > { %1719 = vmatprep.subr.bf16.mxu1 %v3030_v0 }
  0x4a   : > { %1431 = vmatpush2.bf16.msra.mxu0 %v2666_v31  ;;  %v2764_v31 = vld [vmem:[%s3128_s27 + $0x1e0] ss:$16 sps:$4 sm:$0xff]  }
  0x4b   : > { %1720 = vmatpush2.bf16.msra.mxu1 %v2667_v32  ;;  %1432 = vmatprep.subr.bf16.mxu0 %v3030_v0  ;;  %v2765_v32 = vld [vmem:[%s3128_s27 + $0x1e8] ss:$16 sps:$4 sm:$0xff]  }
  0x4c   : > { %1721 = vmatprep.subr.bf16.mxu1 %v3030_v0  ;;  %v2717_v0 = vld [vmem:[%s3128_s27 + $0xe8] ss:$16 sps:$4 sm:$0xff]  }
  0x4e   : > { %1433 = vmatpush2.bf16.msra.mxu0 %v2668_v33  ;;  %v2766_v33 = vld [vmem:[%s3128_s27 + $0x204] ss:$16 sps:$4 sm:$0xff]  }
  0x4f   : > { %1722 = vmatpush2.bf16.msra.mxu1 %v2669_v34  ;;  %v2768_v34 = vld [vmem:[%s3128_s27 + $0x20c] ss:$16 sps:$4 sm:$0xff]  }
  0x51   : > { %1435 = vmatmul.mubr.bf16.vlgmr.msra.gmra.mxu0 %v2670_v35  ;;  %v2770_v35 = vld [vmem:[%s3128_s27 + $0x200] ss:$16 sps:$4 sm:$0xff]  }
  0x52   : > { %1724 = vmatmul.mubr.bf16.vlgmr.msra.gmra.mxu1 %v2673_v36  ;;  %1442 = vmatprep.mubr.bf16.mxu0 %v2676_v37  ;;  %v2771_v36 = vld [vmem:[%s3128_s27 + $0x208] ss:$16 sps:$4 sm:$0xff]   ;;  %v2772_v37 = vld [vmem:[%s3128_s27 + $0x224] ss:$16 sps:$4 sm:$0xff]  }
  0x53   : > { %1731 = vmatprep.mubr.bf16.mxu1 %v2678_v38  ;;  %v2774_v38 = vld [vmem:[%s3128_s27 + $0x22c] ss:$16 sps:$4 sm:$0xff]  }
  0x59   : > { %1443 = vmatmul.mubr.bf16.gmra.mxu0 %v2680_v39  ;;  %v2776_v39 = vld [vmem:[%s3128_s27 + $0x220] ss:$16 sps:$4 sm:$0xff]  }
  0x5a   : > { %1732 = vmatmul.mubr.bf16.gmra.mxu1 %v2681_v40  ;;  %1450 = vmatprep.mubr.bf16.mxu0 %v2682_v41  ;;  %v2777_v40 = vld [vmem:[%s3128_s27 + $0x228] ss:$16 sps:$4 sm:$0xff]   ;;  %v2778_v41 = vld [vmem:[%s3128_s27 + $0x244] ss:$16 sps:$4 sm:$0xff]  }
  0x5b   : > { %1739 = vmatprep.mubr.bf16.mxu1 %v2684_v42  ;;  %v2780_v42 = vld [vmem:[%s3128_s27 + $0x24c] ss:$16 sps:$4 sm:$0xff]  }
  0x61   : > { %1451 = vmatmul.mubr.bf16.gmra.mxu0 %v2686_v43  ;;  %v2782_v43 = vld [vmem:[%s3128_s27 + $0x240] ss:$16 sps:$4 sm:$0xff]  }
  0x62   : > { %1740 = vmatmul.mubr.bf16.gmra.mxu1 %v2687_v44  ;;  %1458 = vmatprep.mubr.bf16.mxu0 %v2688_v45  ;;  %v2783_v44 = vld [vmem:[%s3128_s27 + $0x248] ss:$16 sps:$4 sm:$0xff]   ;;  %v2784_v45 = vld [vmem:[%s3128_s27 + $0x264] ss:$16 sps:$4 sm:$0xff]  }
  0x63   : > { %1747 = vmatprep.mubr.bf16.mxu1 %v2690_v46  ;;  %v2786_v46 = vld [vmem:[%s3128_s27 + $0x26c] ss:$16 sps:$4 sm:$0xff]  }
  0x69   : > { %1459 = vmatmul.mubr.bf16.gmra.mxu0 %v2692_v47  ;;  %v2788_v47 = vld [vmem:[%s3128_s27 + $0x260] ss:$16 sps:$4 sm:$0xff]  }
  0x6a   : > { %1748 = vmatmul.mubr.bf16.gmra.mxu1 %v2693_v48  ;;  %1466 = vmatprep.mubr.bf16.mxu0 %v2694_v49  ;;  %v2789_v48 = vld [vmem:[%s3128_s27 + $0x268] ss:$16 sps:$4 sm:$0xff]   ;;  %v2790_v49 = vld [vmem:[%s3128_s27 + $0x284] ss:$16 sps:$4 sm:$0xff]  }
  0x6b   : > { %1755 = vmatprep.mubr.bf16.mxu1 %v2696_v50  ;;  %v2792_v50 = vld [vmem:[%s3128_s27 + $0x28c] ss:$16 sps:$4 sm:$0xff]  }
  0x71   : > { %1467 = vmatmul.mubr.bf16.gmra.mxu0 %v2698_v51  ;;  %v2794_v51 = vld [vmem:[%s3128_s27 + $0x280] ss:$16 sps:$4 sm:$0xff]  }
  0x72   : > { %1756 = vmatmul.mubr.bf16.gmra.mxu1 %v2699_v52  ;;  %1474 = vmatprep.mubr.bf16.mxu0 %v2700_v53  ;;  %v2795_v52 = vld [vmem:[%s3128_s27 + $0x288] ss:$16 sps:$4 sm:$0xff]   ;;  %v2796_v53 = vld [vmem:[%s3128_s27 + $0x2a4] ss:$16 sps:$4 sm:$0xff]  }
  0x73   : > { %1763 = vmatprep.mubr.bf16.mxu1 %v2702_v54  ;;  %v2798_v54 = vld [vmem:[%s3128_s27 + $0x2ac] ss:$16 sps:$4 sm:$0xff]  }
  0x79   : > { %1475 = vmatmul.mubr.bf16.gmra.mxu0 %v2704_v55  ;;  %v2800_v55 = vld [vmem:[%s3128_s27 + $0x2a0] ss:$16 sps:$4 sm:$0xff]  }
  0x7a   : > { %1764 = vmatmul.mubr.bf16.gmra.mxu1 %v2705_v56  ;;  %1482 = vmatprep.mubr.bf16.mxu0 %v2706_v57  ;;  %v2801_v56 = vld [vmem:[%s3128_s27 + $0x2a8] ss:$16 sps:$4 sm:$0xff]   ;;  %v2802_v57 = vld [vmem:[%s3128_s27 + $0x2c4] ss:$16 sps:$4 sm:$0xff]  }
  0x7b   : > { %1771 = vmatprep.mubr.bf16.mxu1 %v2708_v58  ;;  %v2804_v58 = vld [vmem:[%s3128_s27 + $0x2cc] ss:$16 sps:$4 sm:$0xff]  }
  0x81   : > { %1483 = vmatmul.mubr.bf16.gmra.mxu0 %v2710_v59  ;;  %v2806_v59 = vld [vmem:[%s3128_s27 + $0x2c0] ss:$16 sps:$4 sm:$0xff]  }
  0x82   : > { %1772 = vmatmul.mubr.bf16.gmra.mxu1 %v2711_v60  ;;  %1490 = vmatprep.mubr.bf16.mxu0 %v2712_v61  ;;  %v2807_v60 = vld [vmem:[%s3128_s27 + $0x2c8] ss:$16 sps:$4 sm:$0xff]   ;;  %v2808_v61 = vld [vmem:[%s3128_s27 + $0x2e4] ss:$16 sps:$4 sm:$0xff]  }
  0x83   : > { %1779 = vmatprep.mubr.bf16.mxu1 %v2714_v62  ;;  %v2810_v62 = vld [vmem:[%s3128_s27 + $0x2ec] ss:$16 sps:$4 sm:$0xff]  }
  0x89   : > { %1491 = vmatmul.mubr.bf16.gmra.mxu0 %v2716_v63  ;;  %v2812_v63 = vld [vmem:[%s3128_s27 + $0x2e0] ss:$16 sps:$4 sm:$0xff]  }
  0x8a   : > { %1780 = vmatmul.mubr.bf16.gmra.mxu1 %v2717_v0  ;;  %1498 = vmatprep.mubr.bf16.mxu0 %v2718_v1  ;;  %v2813_v0 = vld [vmem:[%s3128_s27 + $0x2e8] ss:$16 sps:$4 sm:$0xff]   ;;  %v2814_v1 = vld [vmem:[%s3128_s27 + $0x304] ss:$16 sps:$4 sm:$0xff]  }
  0x8b   : > { %1787 = vmatprep.mubr.bf16.mxu1 %v2720_v2  ;;  %v2816_v2 = vld [vmem:[%s3128_s27 + $0x30c] ss:$16 sps:$4 sm:$0xff]  }
  0x91   : > { %1499 = vmatmul.mubr.bf16.gmra.mxu0 %v2722_v3  ;;  %v2818_v3 = vld [vmem:[%s3128_s27 + $0x300] ss:$16 sps:$4 sm:$0xff]  }
  0x92   : > { %1788 = vmatmul.mubr.bf16.gmra.mxu1 %v2723_v4  ;;  %1506 = vmatprep.mubr.bf16.mxu0 %v2724_v5  ;;  %v2819_v4 = vld [vmem:[%s3128_s27 + $0x308] ss:$16 sps:$4 sm:$0xff]   ;;  %v2820_v5 = vld [vmem:[%s3128_s27 + $0x324] ss:$16 sps:$4 sm:$0xff]  }
  0x93   : > { %1795 = vmatprep.mubr.bf16.mxu1 %v2726_v6  ;;  %v2822_v6 = vld [vmem:[%s3128_s27 + $0x32c] ss:$16 sps:$4 sm:$0xff]  }
  0x99   : > { %1507 = vmatmul.mubr.bf16.gmra.mxu0 %v2728_v7 }
  0x9a   : > { %1796 = vmatmul.mubr.bf16.gmra.mxu1 %v2729_v8  ;;  %1514 = vmatprep.mubr.bf16.mxu0 %v2730_v9 }
  0x9b   : > { %1803 = vmatprep.mubr.bf16.mxu1 %v2732_v10 }
  0xa1   : > { %1515 = vmatmul.mubr.bf16.gmra.mxu0 %v2734_v11 }
  0xa2   : > { %1804 = vmatmul.mubr.bf16.gmra.mxu1 %v2735_v12  ;;  %1522 = vmatprep.mubr.bf16.mxu0 %v2736_v13  ;;  %v2824_v13 = vld [vmem:[%s3128_s27 + $0x320] ss:$16 sps:$4 sm:$0xff]  }
  0xa3   : > { %1811 = vmatprep.mubr.bf16.mxu1 %v2738_v14 }
  0xa9   : > { %1523 = vmatmul.mubr.bf16.gmra.mxu0 %v2740_v15  ;;  %v2825_v15 = vld [vmem:[%s3128_s27 + $0x328] ss:$16 sps:$4 sm:$0xff]  }
  0xaa   : > { %1812 = vmatmul.mubr.bf16.gmra.mxu1 %v2741_v16  ;;  %1530 = vmatprep.mubr.bf16.mxu0 %v2742_v17  ;;  %v2826_v16 = vld [vmem:[%s3128_s27 + $0x344] ss:$16 sps:$4 sm:$0xff]  }
  0xab   : > { %1819 = vmatprep.mubr.bf16.mxu1 %v2744_v18 }
  0xb1   : > { %1531 = vmatmul.mubr.bf16.gmra.mxu0 %v2746_v19  ;;  %v2828_v19 = vld [vmem:[%s3128_s27 + $0x34c] ss:$16 sps:$4 sm:$0xff]  }
  0xb2   : > { %1820 = vmatmul.mubr.bf16.gmra.mxu1 %v2747_v20  ;;  %1538 = vmatprep.mubr.bf16.mxu0 %v2748_v21 }
  0xb3   : > { %1827 = vmatprep.mubr.bf16.mxu1 %v2750_v22 }
  0xb9   : > { %1539 = vmatmul.mubr.bf16.gmra.mxu0 %v2752_v23 }
  0xba   : > { %1828 = vmatmul.mubr.bf16.gmra.mxu1 %v2753_v24  ;;  %1546 = vmatprep.mubr.bf16.mxu0 %v2754_v25 }
  0xbb   : > { %1835 = vmatprep.mubr.bf16.mxu1 %v2756_v26 }
  0xc1   : > { %1547 = vmatmul.mubr.bf16.gmra.mxu0 %v2758_v27  ;;  %v2830_v27 = vld [vmem:[%s3128_s27 + $0x340] ss:$16 sps:$4 sm:$0xff]  }
  0xc2   : > { %1836 = vmatmul.mubr.bf16.gmra.mxu1 %v2759_v28  ;;  %1554 = vmatprep.mubr.bf16.mxu0 %v2760_v29  ;;  %v2831_v29 = vld [vmem:[%s3128_s27 + $0x348] ss:$16 sps:$4 sm:$0xff]  }
  0xc3   : > { %1843 = vmatprep.mubr.bf16.mxu1 %v2762_v30  ;;  %v2832_v30 = vld [vmem:[%s3128_s27 + $0x364] ss:$16 sps:$4 sm:$0xff]  }
  0xc9   : > { %1555 = vmatmul.mubr.bf16.gmra.mxu0 %v2764_v31 }
  0xca   : > { %1844 = vmatmul.mubr.bf16.gmra.mxu1 %v2765_v32  ;;  %1562 = vmatprep.mubr.bf16.mxu0 %v2766_v33  ;;  %v2834_v33 = vld [vmem:[%s3128_s27 + $0x36c] ss:$16 sps:$4 sm:$0xff]  }
  0xcb   : > { %1851 = vmatprep.mubr.bf16.mxu1 %v2768_v34 }
  0xd1   : > { %1563 = vmatmul.mubr.bf16.gmra.mxu0 %v2770_v35 }
  0xd2   : > { %1852 = vmatmul.mubr.bf16.gmra.mxu1 %v2771_v36  ;;  %1570 = vmatprep.mubr.bf16.mxu0 %v2772_v37 }
  0xd3   : > { %1859 = vmatprep.mubr.bf16.mxu1 %v2774_v38 }
  0xd9   : > { %1571 = vmatmul.mubr.bf16.gmra.mxu0 %v2776_v39 }
  0xda   : > { %1860 = vmatmul.mubr.bf16.gmra.mxu1 %v2777_v40  ;;  %1578 = vmatprep.mubr.bf16.mxu0 %v2778_v41 }
  0xdb   : > { %1867 = vmatprep.mubr.bf16.mxu1 %v2780_v42  ;;  %v2836_v42 = vld [vmem:[%s3128_s27 + $0x360] ss:$16 sps:$4 sm:$0xff]  }
  0xe1   : > { %1579 = vmatmul.mubr.bf16.gmra.mxu0 %v2782_v43 }
  0xe2   : > { %1868 = vmatmul.mubr.bf16.gmra.mxu1 %v2783_v44  ;;  %1586 = vmatprep.mubr.bf16.mxu0 %v2784_v45  ;;  %v2837_v45 = vld [vmem:[%s3128_s27 + $0x368] ss:$16 sps:$4 sm:$0xff]  }
  0xe3   : > { %1875 = vmatprep.mubr.bf16.mxu1 %v2786_v46  ;;  %v2840_v46 = vld [vmem:[%s3128_s27 + $0x384] ss:$16 sps:$4 sm:$0xff]  }
  0xe9   : > { %1587 = vmatmul.mubr.bf16.gmra.mxu0 %v2788_v47 }
  0xea   : > { %1876 = vmatmul.mubr.bf16.gmra.mxu1 %v2789_v48  ;;  %1594 = vmatprep.mubr.bf16.mxu0 %v2790_v49  ;;  %v2843_v49 = vld [vmem:[%s3128_s27 + $0x38c] ss:$16 sps:$4 sm:$0xff]  }
  0xeb   : > { %1883 = vmatprep.mubr.bf16.mxu1 %v2792_v50 }
  0xf1   : > { %1595 = vmatmul.mubr.bf16.gmra.mxu0 %v2794_v51 }
  0xf2   : > { %1884 = vmatmul.mubr.bf16.gmra.mxu1 %v2795_v52  ;;  %1602 = vmatprep.mubr.bf16.mxu0 %v2796_v53 }
  0xf3   : > { %1891 = vmatprep.mubr.bf16.mxu1 %v2798_v54 }
  0xf9   : > { %1603 = vmatmul.mubr.bf16.gmra.mxu0 %v2800_v55 }
  0xfa   : > { %1892 = vmatmul.mubr.bf16.gmra.mxu1 %v2801_v56  ;;  %1610 = vmatprep.mubr.bf16.mxu0 %v2802_v57 }
  0xfb   : > { %1899 = vmatprep.mubr.bf16.mxu1 %v2804_v58  ;;  %v2838_v58 = vld [vmem:[%s3128_s27 + $0x380] ss:$16 sps:$4 sm:$0xff]  }
 0x101   : > { %1611 = vmatmul.mubr.bf16.gmra.mxu0 %v2806_v59 }
 0x102   : > { %1900 = vmatmul.mubr.bf16.gmra.mxu1 %v2807_v60  ;;  %1618 = vmatprep.mubr.bf16.mxu0 %v2808_v61  ;;  %v2841_v61 = vld [vmem:[%s3128_s27 + $0x388] ss:$16 sps:$4 sm:$0xff]  }
 0x103   : > { %1907 = vmatprep.mubr.bf16.mxu1 %v2810_v62  ;;  %v2846_v62 = vld [vmem:[%s3128_s27 + $0x3a4] ss:$16 sps:$4 sm:$0xff]  }
 0x109   : > { %1619 = vmatmul.mubr.bf16.gmra.mxu0 %v2812_v63 }
 0x10a   : > { %1908 = vmatmul.mubr.bf16.gmra.mxu1 %v2813_v0  ;;  %1626 = vmatprep.mubr.bf16.mxu0 %v2814_v1  ;;  %v2849_v1 = vld [vmem:[%s3128_s27 + $0x3ac] ss:$16 sps:$4 sm:$0xff]  }
 0x10b   : > { %1915 = vmatprep.mubr.bf16.mxu1 %v2816_v2 }
 0x111   : > { %v1436_v7 = vpop.f32.mrf.mxu0  ;;  %1627 = vmatmul.mubr.bf16.gmra.mxu0 %v2818_v3 }
 0x112   : > { %v1725_v8 = vpop.f32.mrf.mxu1  ;;  %1916 = vmatmul.mubr.bf16.gmra.mxu1 %v2819_v4  ;;  %1634 = vmatprep.mubr.bf16.mxu0 %v2820_v5 }
 0x113   : > { %v1726_v9 = vadd.f32 %v1725_v8, %v1436_v7  ;;  %v1438_v10 = vpop.f32.mrf.mxu0  ;;  %1923 = vmatprep.mubr.bf16.mxu1 %v2822_v6 }
 0x114   : > { %v1727_v11 = vpop.f32.mrf.mxu1  ;;  %v2844_v10 = vld [vmem:[%s3128_s27 + $0x3a0] ss:$16 sps:$4 sm:$0xff]  }
 0x115   : > { %2862 = vtanh.f32 %v1726_v9  ;;  %v1439_v12 = vpop.f32.mrf.mxu0 }
 0x116   : > { %v1728_v14 = vpop.f32.mrf.mxu1 }
 0x117   : > { %v1729_v17 = vadd.f32 %v1728_v14, %v1439_v12  ;;  %v1441_v18 = vpop.f32.mrf.mxu0  ;;  %v2852_v14 = vld [vmem:[%s3128_s27 + $0x3c4] ss:$16 sps:$4 sm:$0xff]  }
 0x118   : > { %v1730_v20 = vpop.f32.mrf.mxu1 }
 0x119   : > { %2864 = vtanh.f32 %v1729_v17  ;;  %v1444_v21 = vpop.f32.mrf.mxu0  ;;  %1635 = vmatmul.mubr.bf16.gmra.mxu0 %v2824_v13  ;;  %v2847_v13 = vld [vmem:[%s3128_s27 + $0x3a8] ss:$16 sps:$4 sm:$0xff]   ;;  %v2855_v17 = vld [vmem:[%s3128_s27 + $0x3cc] ss:$16 sps:$4 sm:$0xff]  }
 0x11a   : > { %v1733_v22 = vpop.f32.mrf.mxu1  ;;  %1924 = vmatmul.mubr.bf16.gmra.mxu1 %v2825_v15  ;;  %1642 = vmatprep.mubr.bf16.mxu0 %v2826_v16 }
 0x11b   : > { %v1734_v23 = vadd.f32 %v1733_v22, %v1444_v21  ;;  %v1446_v24 = vpop.f32.mrf.mxu0  ;;  %1931 = vmatprep.mubr.bf16.mxu1 %v2828_v19 }
 0x11c   : > { %v1735_v25 = vpop.f32.mrf.mxu1 }
 0x11d   : > { %2866 = vtanh.f32 %v1734_v23  ;;  %v1447_v26 = vpop.f32.mrf.mxu0 }
 0x11e   : > { %v1736_v28 = vpop.f32.mrf.mxu1 }
 0x11f   : > { %v1737_v31 = vadd.f32 %v1736_v28, %v1447_v26  ;;  %v1449_v32 = vpop.f32.mrf.mxu0  ;;  %v2850_v26 = vld [vmem:[%s3128_s27 + $0x3c0] ss:$16 sps:$4 sm:$0xff]  }
 0x120   : > { %v1738_v34 = vpop.f32.mrf.mxu1 }
 0x121   : > { %2868 = vtanh.f32 %v1737_v31  ;;  %v1452_v35 = vpop.f32.mrf.mxu0  ;;  %1643 = vmatmul.mubr.bf16.gmra.mxu0 %v2830_v27 }
 0x122   : > { %v2863_v36 = vpop.eup %2862  ;;  %v1741_v37 = vpop.f32.mrf.mxu1  ;;  %1932 = vmatmul.mubr.bf16.gmra.mxu1 %v2831_v29  ;;  %1650 = vmatprep.mubr.bf16.mxu0 %v2832_v30  ;;  %v2853_v29 = vld [vmem:[%s3128_s27 + $0x3c8] ss:$16 sps:$4 sm:$0xff]   ;;  %v2858_v30 = vld [vmem:[%s3128_s27 + $0x3e4] ss:$16 sps:$4 sm:$0xff]  }
 0x123   : > { %2239 = vst [vmem:[%s3278_s4] sm:$0xff] %v2863_v36  ;;  %v1742_v38 = vadd.f32 %v1741_v37, %v1452_v35  ;;  %v1454_v39 = vpop.f32.mrf.mxu0  ;;  %1939 = vmatprep.mubr.bf16.mxu1 %v2834_v33  ;;  %v2861_v33 = vld [vmem:[%s3128_s27 + $0x3ec] ss:$16 sps:$4 sm:$0xff]  }
 0x124   : > { %v1743_v40 = vpop.f32.mrf.mxu1 }
 0x125   : > { %2870 = vtanh.f32 %v1742_v38  ;;  %v1455_v41 = vpop.f32.mrf.mxu0 }
 0x126   : > { %v2865_v43 = vpop.eup %2864  ;;  %v1744_v44 = vpop.f32.mrf.mxu1 }
 0x127   : > { %2240 = vst [vmem:[%s3278_s4 + $0x8] sm:$0xff] %v2865_v43  ;;  %v1745_v47 = vadd.f32 %v1744_v44, %v1455_v41  ;;  %v1457_v48 = vpop.f32.mrf.mxu0 }
 0x128   : > { %v1746_v50 = vpop.f32.mrf.mxu1 }
 0x129   : > { %2872 = vtanh.f32 %v1745_v47  ;;  %v1460_v51 = vpop.f32.mrf.mxu0  ;;  %1651 = vmatmul.mubr.bf16.gmra.mxu0 %v2836_v42  ;;  %v2856_v42 = vld [vmem:[%s3128_s27 + $0x3e0] ss:$16 sps:$4 sm:$0xff]  }
 0x12a   : > { %v2867_v52 = vpop.eup %2866  ;;  %v1749_v53 = vpop.f32.mrf.mxu1  ;;  %1940 = vmatmul.mubr.bf16.gmra.mxu1 %v2837_v45  ;;  %1658 = vmatprep.mubr.bf16.mxu0 %v2840_v46  ;;  %v2859_v45 = vld [vmem:[%s3128_s27 + $0x3e8] ss:$16 sps:$4 sm:$0xff]  }
 0x12b   : > { %2241 = vst [vmem:[%s3278_s4 + $0x10] sm:$0xff] %v2867_v52  ;;  %v1750_v54 = vadd.f32 %v1749_v53, %v1460_v51  ;;  %v1462_v55 = vpop.f32.mrf.mxu0  ;;  %1947 = vmatprep.mubr.bf16.mxu1 %v2843_v49 }
 0x12c   : > { %v1751_v56 = vpop.f32.mrf.mxu1 }
 0x12d   : > { %2874 = vtanh.f32 %v1750_v54  ;;  %v1463_v57 = vpop.f32.mrf.mxu0 }
 0x12e   : > { %v2869_v59 = vpop.eup %2868  ;;  %v1752_v60 = vpop.f32.mrf.mxu1 }
 0x12f   : > { %2242 = vst [vmem:[%s3278_s4 + $0x18] sm:$0xff] %v2869_v59  ;;  %v1753_v63 = vadd.f32 %v1752_v60, %v1463_v57  ;;  %v1465_v0 = vpop.f32.mrf.mxu0 }
 0x130   : > { %v1754_v2 = vpop.f32.mrf.mxu1 }
 0x131   : > { %2876 = vtanh.f32 %v1753_v63  ;;  %v1468_v3 = vpop.f32.mrf.mxu0  ;;  %1659 = vmatmul.mubr.bf16.gmra.mxu0 %v2838_v58 }
 0x132   : > { %v2871_v4 = vpop.eup %2870  ;;  %v1757_v5 = vpop.f32.mrf.mxu1  ;;  %1948 = vmatmul.mubr.bf16.gmra.mxu1 %v2841_v61  ;;  %1666 = vmatprep.mubr.bf16.mxu0 %v2846_v62 }
 0x133   : > { %2243 = vst [vmem:[%s3278_s4 + $0x20] sm:$0xff] %v2871_v4  ;;  %v1758_v6 = vadd.f32 %v1757_v5, %v1468_v3  ;;  %v1470_v7 = vpop.f32.mrf.mxu0  ;;  %1955 = vmatprep.mubr.bf16.mxu1 %v2849_v1 }
 0x134   : > { %v1759_v8 = vpop.f32.mrf.mxu1 }
 0x135   : > { %2878 = vtanh.f32 %v1758_v6  ;;  %v1471_v9 = vpop.f32.mrf.mxu0 }
 0x136   : > { %v2873_v11 = vpop.eup %2872  ;;  %v1760_v12 = vpop.f32.mrf.mxu1 }
 0x137   : > { %2244 = vst [vmem:[%s3278_s4 + $0x28] sm:$0xff] %v2873_v11  ;;  %v1761_v15 = vadd.f32 %v1760_v12, %v1471_v9  ;;  %v1473_v16 = vpop.f32.mrf.mxu0 }
 0x138   : > { %v1762_v18 = vpop.f32.mrf.mxu1 }
 0x139   : > { %2880 = vtanh.f32 %v1761_v15  ;;  %v1476_v19 = vpop.f32.mrf.mxu0  ;;  %1667 = vmatmul.mubr.bf16.gmra.mxu0 %v2844_v10 }
 0x13a   : > { %v2875_v20 = vpop.eup %2874  ;;  %v1765_v21 = vpop.f32.mrf.mxu1  ;;  %1956 = vmatmul.mubr.bf16.gmra.mxu1 %v2847_v13  ;;  %1674 = vmatprep.mubr.bf16.mxu0 %v2852_v14 }
 0x13b   : > { %2245 = vst [vmem:[%s3278_s4 + $0x30] sm:$0xff] %v2875_v20  ;;  %v1766_v22 = vadd.f32 %v1765_v21, %v1476_v19  ;;  %v1478_v23 = vpop.f32.mrf.mxu0  ;;  %1963 = vmatprep.mubr.bf16.mxu1 %v2855_v17 }
 0x13c   : > { %v1767_v24 = vpop.f32.mrf.mxu1 }
 0x13d   : > { %2882 = vtanh.f32 %v1766_v22  ;;  %v1479_v25 = vpop.f32.mrf.mxu0 }
 0x13e   : > { %v2877_v27 = vpop.eup %2876  ;;  %v1768_v28 = vpop.f32.mrf.mxu1 }
 0x13f   : > { %2246 = vst [vmem:[%s3278_s4 + $0x38] sm:$0xff] %v2877_v27  ;;  %v1769_v31 = vadd.f32 %v1768_v28, %v1479_v25  ;;  %v1481_v32 = vpop.f32.mrf.mxu0 }
 0x140   : > { %v1770_v34 = vpop.f32.mrf.mxu1 }
 0x141   : > { %2884 = vtanh.f32 %v1769_v31  ;;  %v1484_v35 = vpop.f32.mrf.mxu0  ;;  %1675 = vmatmul.mubr.bf16.gmra.mxu0 %v2850_v26 }
 0x142   : > { %v2879_v36 = vpop.eup %2878  ;;  %v1773_v37 = vpop.f32.mrf.mxu1  ;;  %1964 = vmatmul.mubr.bf16.gmra.mxu1 %v2853_v29  ;;  %1682 = vmatprep.mubr.bf16.mxu0 %v2858_v30 }
 0x143   : > { %2247 = vst [vmem:[%s3278_s4 + $0x40] sm:$0xff] %v2879_v36  ;;  %v1774_v38 = vadd.f32 %v1773_v37, %v1484_v35  ;;  %v1486_v39 = vpop.f32.mrf.mxu0  ;;  %1971 = vmatprep.mubr.bf16.mxu1 %v2861_v33 }
 0x144   : > { %v1775_v40 = vpop.f32.mrf.mxu1 }
 0x145   : > { %2886 = vtanh.f32 %v1774_v38  ;;  %v1487_v41 = vpop.f32.mrf.mxu0 }
 0x146   : > { %v2881_v43 = vpop.eup %2880  ;;  %v1776_v44 = vpop.f32.mrf.mxu1 }
 0x147   : > { %2248 = vst [vmem:[%s3278_s4 + $0x48] sm:$0xff] %v2881_v43  ;;  %v1777_v46 = vadd.f32 %v1776_v44, %v1487_v41  ;;  %v1489_v47 = vpop.f32.mrf.mxu0 }
 0x148   : > { %v1778_v48 = vpop.f32.mrf.mxu1 }
 0x149   : > { %2888 = vtanh.f32 %v1777_v46  ;;  %v1492_v49 = vpop.f32.mrf.mxu0  ;;  %1683 = vmatmul.mubr.bf16.gmra.mxu0 %v2856_v42 }
 0x14a   : > { %v2883_v50 = vpop.eup %2882  ;;  %v1781_v51 = vpop.f32.mrf.mxu1  ;;  %1972 = vmatmul.mubr.bf16.gmra.mxu1 %v2859_v45 }
 0x14b   : > { %2249 = vst [vmem:[%s3278_s4 + $0x50] sm:$0xff] %v2883_v50  ;;  %v1782_v52 = vadd.f32 %v1781_v51, %v1492_v49  ;;  %v1494_v53 = vpop.f32.mrf.mxu0 }
 0x14c   : > { %v1783_v54 = vpop.f32.mrf.mxu1 }
 0x14d   : > { %2890 = vtanh.f32 %v1782_v52  ;;  %v1495_v55 = vpop.f32.mrf.mxu0 }
 0x14e   : > { %v2885_v56 = vpop.eup %2884  ;;  %v1784_v57 = vpop.f32.mrf.mxu1 }
 0x14f   : > { %2250 = vst [vmem:[%s3278_s4 + $0x58] sm:$0xff] %v2885_v56  ;;  %v1785_v58 = vadd.f32 %v1784_v57, %v1495_v55  ;;  %v1497_v59 = vpop.f32.mrf.mxu0 }
 0x150   : > { %v1786_v60 = vpop.f32.mrf.mxu1 }
 0x151   : > { %2892 = vtanh.f32 %v1785_v58  ;;  %v1500_v61 = vpop.f32.mrf.mxu0 }
 0x152   : > { %v2887_v62 = vpop.eup %2886  ;;  %v1789_v63 = vpop.f32.mrf.mxu1 }
 0x153   : > { %2251 = vst [vmem:[%s3278_s4 + $0x60] sm:$0xff] %v2887_v62  ;;  %v1790_v0 = vadd.f32 %v1789_v63, %v1500_v61  ;;  %v1502_v1 = vpop.f32.mrf.mxu0 }
 0x154   : > { %v1791_v2 = vpop.f32.mrf.mxu1 }
 0x155   : > { %2894 = vtanh.f32 %v1790_v0  ;;  %v1503_v3 = vpop.f32.mrf.mxu0 }
 0x156   : > { %v2889_v4 = vpop.eup %2888  ;;  %v1792_v5 = vpop.f32.mrf.mxu1 }
 0x157   : > { %2252 = vst [vmem:[%s3278_s4 + $0x68] sm:$0xff] %v2889_v4  ;;  %v1793_v6 = vadd.f32 %v1792_v5, %v1503_v3  ;;  %v1505_v7 = vpop.f32.mrf.mxu0 }
 0x158   : > { %v1794_v8 = vpop.f32.mrf.mxu1 }
 0x159   : > { %2896 = vtanh.f32 %v1793_v6  ;;  %v1508_v9 = vpop.f32.mrf.mxu0 }
 0x15a   : > { %v2891_v10 = vpop.eup %2890  ;;  %v1797_v11 = vpop.f32.mrf.mxu1 }
 0x15b   : > { %2253 = vst [vmem:[%s3278_s4 + $0x70] sm:$0xff] %v2891_v10  ;;  %v1798_v12 = vadd.f32 %v1797_v11, %v1508_v9  ;;  %v1510_v13 = vpop.f32.mrf.mxu0 }
 0x15c   : > { %v1799_v14 = vpop.f32.mrf.mxu1 }
 0x15d   : > { %2898 = vtanh.f32 %v1798_v12  ;;  %v1511_v15 = vpop.f32.mrf.mxu0 }
 0x15e   : > { %v2893_v16 = vpop.eup %2892  ;;  %v1800_v17 = vpop.f32.mrf.mxu1 }
 0x15f   : > { %2254 = vst [vmem:[%s3278_s4 + $0x78] sm:$0xff] %v2893_v16  ;;  %v1801_v18 = vadd.f32 %v1800_v17, %v1511_v15  ;;  %v1513_v19 = vpop.f32.mrf.mxu0 }
 0x160   : > { %v1802_v20 = vpop.f32.mrf.mxu1 }
 0x161   : > { %2900 = vtanh.f32 %v1801_v18  ;;  %v1516_v21 = vpop.f32.mrf.mxu0 }
 0x162   : > { %v2895_v22 = vpop.eup %2894  ;;  %v1805_v23 = vpop.f32.mrf.mxu1 }
 0x163   : > { %2255 = vst [vmem:[%s3278_s4 + $0x80] sm:$0xff] %v2895_v22  ;;  %v1806_v24 = vadd.f32 %v1805_v23, %v1516_v21  ;;  %v1518_v25 = vpop.f32.mrf.mxu0 }
 0x164   : > { %v1807_v26 = vpop.f32.mrf.mxu1 }
 0x165   : > { %2902 = vtanh.f32 %v1806_v24  ;;  %v1519_v27 = vpop.f32.mrf.mxu0 }
 0x166   : > { %v2897_v28 = vpop.eup %2896  ;;  %v1808_v29 = vpop.f32.mrf.mxu1 }
 0x167   : > { %2256 = vst [vmem:[%s3278_s4 + $0x88] sm:$0xff] %v2897_v28  ;;  %v1809_v30 = vadd.f32 %v1808_v29, %v1519_v27  ;;  %v1521_v31 = vpop.f32.mrf.mxu0 }
 0x168   : > { %v1810_v32 = vpop.f32.mrf.mxu1 }
 0x169   : > { %2904 = vtanh.f32 %v1809_v30  ;;  %v1524_v33 = vpop.f32.mrf.mxu0 }
 0x16a   : > { %v2899_v34 = vpop.eup %2898  ;;  %v1813_v35 = vpop.f32.mrf.mxu1 }
 0x16b   : > { %2257 = vst [vmem:[%s3278_s4 + $0x90] sm:$0xff] %v2899_v34  ;;  %v1814_v36 = vadd.f32 %v1813_v35, %v1524_v33  ;;  %v1526_v37 = vpop.f32.mrf.mxu0 }
 0x16c   : > { %v1815_v38 = vpop.f32.mrf.mxu1 }
 0x16d   : > { %2906 = vtanh.f32 %v1814_v36  ;;  %v1527_v39 = vpop.f32.mrf.mxu0 }
 0x16e   : > { %v2901_v40 = vpop.eup %2900  ;;  %v1816_v41 = vpop.f32.mrf.mxu1 }
 0x16f   : > { %2258 = vst [vmem:[%s3278_s4 + $0x98] sm:$0xff] %v2901_v40  ;;  %v1817_v42 = vadd.f32 %v1816_v41, %v1527_v39  ;;  %v1529_v43 = vpop.f32.mrf.mxu0 }
 0x170   : > { %v1818_v44 = vpop.f32.mrf.mxu1 }
 0x171   : > { %2908 = vtanh.f32 %v1817_v42  ;;  %v1532_v45 = vpop.f32.mrf.mxu0 }
 0x172   : > { %v2903_v46 = vpop.eup %2902  ;;  %v1821_v47 = vpop.f32.mrf.mxu1 }
 0x173   : > { %2259 = vst [vmem:[%s3278_s4 + $0xa0] sm:$0xff] %v2903_v46  ;;  %v1822_v48 = vadd.f32 %v1821_v47, %v1532_v45  ;;  %v1534_v49 = vpop.f32.mrf.mxu0 }
 0x174   : > { %v1823_v50 = vpop.f32.mrf.mxu1 }
 0x175   : > { %2910 = vtanh.f32 %v1822_v48  ;;  %v1535_v51 = vpop.f32.mrf.mxu0 }
 0x176   : > { %v2905_v52 = vpop.eup %2904  ;;  %v1824_v53 = vpop.f32.mrf.mxu1 }
 0x177   : > { %2260 = vst [vmem:[%s3278_s4 + $0xa8] sm:$0xff] %v2905_v52  ;;  %v1825_v54 = vadd.f32 %v1824_v53, %v1535_v51  ;;  %v1537_v55 = vpop.f32.mrf.mxu0 }
 0x178   : > { %v1826_v56 = vpop.f32.mrf.mxu1 }
 0x179   : > { %2912 = vtanh.f32 %v1825_v54  ;;  %v1540_v57 = vpop.f32.mrf.mxu0 }
 0x17a   : > { %v2907_v58 = vpop.eup %2906  ;;  %v1829_v59 = vpop.f32.mrf.mxu1 }
 0x17b   : > { %2261 = vst [vmem:[%s3278_s4 + $0xb0] sm:$0xff] %v2907_v58  ;;  %v1830_v60 = vadd.f32 %v1829_v59, %v1540_v57  ;;  %v1542_v61 = vpop.f32.mrf.mxu0 }
 0x17c   : > { %v1831_v62 = vpop.f32.mrf.mxu1 }
 0x17d   : > { %2914 = vtanh.f32 %v1830_v60  ;;  %v1543_v63 = vpop.f32.mrf.mxu0 }
 0x17e   : > { %v2909_v0 = vpop.eup %2908  ;;  %v1832_v1 = vpop.f32.mrf.mxu1 }
 0x17f   : > { %2262 = vst [vmem:[%s3278_s4 + $0xb8] sm:$0xff] %v2909_v0  ;;  %v1833_v2 = vadd.f32 %v1832_v1, %v1543_v63  ;;  %v1545_v3 = vpop.f32.mrf.mxu0 }
 0x180   : > { %v1834_v4 = vpop.f32.mrf.mxu1 }
 0x181   : > { %2916 = vtanh.f32 %v1833_v2  ;;  %v1548_v5 = vpop.f32.mrf.mxu0 }
 0x182   : > { %v2911_v6 = vpop.eup %2910  ;;  %v1837_v7 = vpop.f32.mrf.mxu1 }
 0x183   : > { %2263 = vst [vmem:[%s3278_s4 + $0xc0] sm:$0xff] %v2911_v6  ;;  %v1838_v8 = vadd.f32 %v1837_v7, %v1548_v5  ;;  %v1550_v9 = vpop.f32.mrf.mxu0 }
 0x184   : > { %v1839_v10 = vpop.f32.mrf.mxu1 }
 0x185   : > { %2918 = vtanh.f32 %v1838_v8  ;;  %v1551_v11 = vpop.f32.mrf.mxu0 }
 0x186   : > { %v2913_v12 = vpop.eup %2912  ;;  %v1840_v13 = vpop.f32.mrf.mxu1 }
 0x187   : > { %2264 = vst [vmem:[%s3278_s4 + $0xc8] sm:$0xff] %v2913_v12  ;;  %v1841_v14 = vadd.f32 %v1840_v13, %v1551_v11  ;;  %v1553_v15 = vpop.f32.mrf.mxu0 }
 0x188   : > { %v1842_v16 = vpop.f32.mrf.mxu1 }
 0x189   : > { %2920 = vtanh.f32 %v1841_v14  ;;  %v1556_v17 = vpop.f32.mrf.mxu0 }
 0x18a   : > { %v2915_v18 = vpop.eup %2914  ;;  %v1845_v19 = vpop.f32.mrf.mxu1 }
 0x18b   : > { %2265 = vst [vmem:[%s3278_s4 + $0xd0] sm:$0xff] %v2915_v18  ;;  %v1846_v20 = vadd.f32 %v1845_v19, %v1556_v17  ;;  %v1558_v21 = vpop.f32.mrf.mxu0 }
 0x18c   : > { %v1847_v22 = vpop.f32.mrf.mxu1 }
 0x18d   : > { %2922 = vtanh.f32 %v1846_v20  ;;  %v1559_v23 = vpop.f32.mrf.mxu0 }
 0x18e   : > { %v2917_v24 = vpop.eup %2916  ;;  %v1848_v25 = vpop.f32.mrf.mxu1 }
 0x18f   : > { %2266 = vst [vmem:[%s3278_s4 + $0xd8] sm:$0xff] %v2917_v24  ;;  %v1849_v26 = vadd.f32 %v1848_v25, %v1559_v23  ;;  %v1561_v27 = vpop.f32.mrf.mxu0 }
 0x190   : > { %v1850_v28 = vpop.f32.mrf.mxu1 }
 0x191   : > { %2924 = vtanh.f32 %v1849_v26  ;;  %v1564_v29 = vpop.f32.mrf.mxu0 }
 0x192   : > { %v2919_v30 = vpop.eup %2918  ;;  %v1853_v31 = vpop.f32.mrf.mxu1 }
 0x193   : > { %2267 = vst [vmem:[%s3278_s4 + $0xe0] sm:$0xff] %v2919_v30  ;;  %v1854_v32 = vadd.f32 %v1853_v31, %v1564_v29  ;;  %v1566_v33 = vpop.f32.mrf.mxu0 }
 0x194   : > { %v1855_v34 = vpop.f32.mrf.mxu1 }
 0x195   : > { %2926 = vtanh.f32 %v1854_v32  ;;  %v1567_v35 = vpop.f32.mrf.mxu0 }
 0x196   : > { %v2921_v36 = vpop.eup %2920  ;;  %v1856_v37 = vpop.f32.mrf.mxu1 }
 0x197   : > { %2268 = vst [vmem:[%s3278_s4 + $0xe8] sm:$0xff] %v2921_v36  ;;  %v1857_v38 = vadd.f32 %v1856_v37, %v1567_v35  ;;  %v1569_v39 = vpop.f32.mrf.mxu0 }
 0x198   : > { %v1858_v40 = vpop.f32.mrf.mxu1 }
 0x199   : > { %2928 = vtanh.f32 %v1857_v38  ;;  %v1572_v41 = vpop.f32.mrf.mxu0 }
 0x19a   : > { %v2923_v42 = vpop.eup %2922  ;;  %v1861_v43 = vpop.f32.mrf.mxu1 }
 0x19b   : > { %2269 = vst [vmem:[%s3278_s4 + $0xf0] sm:$0xff] %v2923_v42  ;;  %v1862_v44 = vadd.f32 %v1861_v43, %v1572_v41  ;;  %v1574_v45 = vpop.f32.mrf.mxu0 }
 0x19c   : > { %v1863_v46 = vpop.f32.mrf.mxu1 }
 0x19d   : > { %2930 = vtanh.f32 %v1862_v44  ;;  %v1575_v47 = vpop.f32.mrf.mxu0 }
 0x19e   : > { %v2925_v48 = vpop.eup %2924  ;;  %v1864_v49 = vpop.f32.mrf.mxu1 }
 0x19f   : > { %2270 = vst [vmem:[%s3278_s4 + $0xf8] sm:$0xff] %v2925_v48  ;;  %v1865_v50 = vadd.f32 %v1864_v49, %v1575_v47  ;;  %v1577_v51 = vpop.f32.mrf.mxu0 }
 0x1a0   : > { %v1866_v52 = vpop.f32.mrf.mxu1 }
 0x1a1   : > { %2932 = vtanh.f32 %v1865_v50  ;;  %v1580_v53 = vpop.f32.mrf.mxu0 }
 0x1a2   : > { %v2927_v54 = vpop.eup %2926  ;;  %v1869_v55 = vpop.f32.mrf.mxu1 }
 0x1a3   : > { %2271 = vst [vmem:[%s3278_s4 + $0x100] sm:$0xff] %v2927_v54  ;;  %v1870_v56 = vadd.f32 %v1869_v55, %v1580_v53  ;;  %v1582_v57 = vpop.f32.mrf.mxu0 }
 0x1a4   : > { %v1871_v58 = vpop.f32.mrf.mxu1 }
 0x1a5   : > { %2934 = vtanh.f32 %v1870_v56  ;;  %v1583_v59 = vpop.f32.mrf.mxu0 }
 0x1a6   : > { %v2929_v60 = vpop.eup %2928  ;;  %v1872_v61 = vpop.f32.mrf.mxu1 }
 0x1a7   : > { %2272 = vst [vmem:[%s3278_s4 + $0x108] sm:$0xff] %v2929_v60  ;;  %v1873_v62 = vadd.f32 %v1872_v61, %v1583_v59  ;;  %v1585_v63 = vpop.f32.mrf.mxu0 }
 0x1a8   : > { %v1874_v0 = vpop.f32.mrf.mxu1 }
 0x1a9   : > { %2936 = vtanh.f32 %v1873_v62  ;;  %v1588_v1 = vpop.f32.mrf.mxu0 }
 0x1aa   : > { %v2931_v2 = vpop.eup %2930  ;;  %v1877_v3 = vpop.f32.mrf.mxu1 }
 0x1ab   : > { %2273 = vst [vmem:[%s3278_s4 + $0x110] sm:$0xff] %v2931_v2  ;;  %v1878_v4 = vadd.f32 %v1877_v3, %v1588_v1  ;;  %v1590_v5 = vpop.f32.mrf.mxu0 }
 0x1ac   : > { %v1879_v6 = vpop.f32.mrf.mxu1 }
 0x1ad   : > { %2938 = vtanh.f32 %v1878_v4  ;;  %v1591_v7 = vpop.f32.mrf.mxu0 }
 0x1ae   : > { %v2933_v8 = vpop.eup %2932  ;;  %v1880_v9 = vpop.f32.mrf.mxu1 }
 0x1af   : > { %2274 = vst [vmem:[%s3278_s4 + $0x118] sm:$0xff] %v2933_v8  ;;  %v1881_v10 = vadd.f32 %v1880_v9, %v1591_v7  ;;  %v1593_v11 = vpop.f32.mrf.mxu0 }
 0x1b0   : > { %v1882_v12 = vpop.f32.mrf.mxu1 }
 0x1b1   : > { %2940 = vtanh.f32 %v1881_v10  ;;  %v1596_v13 = vpop.f32.mrf.mxu0 }
 0x1b2   : > { %v2935_v14 = vpop.eup %2934  ;;  %v1885_v15 = vpop.f32.mrf.mxu1 }
 0x1b3   : > { %2275 = vst [vmem:[%s3278_s4 + $0x120] sm:$0xff] %v2935_v14  ;;  %v1886_v16 = vadd.f32 %v1885_v15, %v1596_v13  ;;  %v1598_v17 = vpop.f32.mrf.mxu0 }
 0x1b4   : > { %v1887_v18 = vpop.f32.mrf.mxu1 }
 0x1b5   : > { %2942 = vtanh.f32 %v1886_v16  ;;  %v1599_v19 = vpop.f32.mrf.mxu0 }
 0x1b6   : > { %v2937_v20 = vpop.eup %2936  ;;  %v1888_v21 = vpop.f32.mrf.mxu1 }
 0x1b7   : > { %2276 = vst [vmem:[%s3278_s4 + $0x128] sm:$0xff] %v2937_v20  ;;  %v1889_v22 = vadd.f32 %v1888_v21, %v1599_v19  ;;  %v1601_v23 = vpop.f32.mrf.mxu0 }
 0x1b8   : > { %v1890_v24 = vpop.f32.mrf.mxu1 }
 0x1b9   : > { %2944 = vtanh.f32 %v1889_v22  ;;  %v1604_v25 = vpop.f32.mrf.mxu0 }
 0x1ba   : > { %v2939_v26 = vpop.eup %2938  ;;  %v1893_v27 = vpop.f32.mrf.mxu1 }
 0x1bb   : > { %2277 = vst [vmem:[%s3278_s4 + $0x130] sm:$0xff] %v2939_v26  ;;  %v1894_v28 = vadd.f32 %v1893_v27, %v1604_v25  ;;  %v1606_v29 = vpop.f32.mrf.mxu0 }
 0x1bc   : > { %v1895_v30 = vpop.f32.mrf.mxu1 }
 0x1bd   : > { %2946 = vtanh.f32 %v1894_v28  ;;  %v1607_v31 = vpop.f32.mrf.mxu0 }
 0x1be   : > { %v2941_v32 = vpop.eup %2940  ;;  %v1896_v33 = vpop.f32.mrf.mxu1 }
 0x1bf   : > { %2278 = vst [vmem:[%s3278_s4 + $0x138] sm:$0xff] %v2941_v32  ;;  %v1897_v34 = vadd.f32 %v1896_v33, %v1607_v31  ;;  %v1609_v35 = vpop.f32.mrf.mxu0 }
 0x1c0   : > { %v1898_v36 = vpop.f32.mrf.mxu1 }
 0x1c1   : > { %2948 = vtanh.f32 %v1897_v34  ;;  %v1612_v37 = vpop.f32.mrf.mxu0 }
 0x1c2   : > { %v2943_v38 = vpop.eup %2942  ;;  %v1901_v39 = vpop.f32.mrf.mxu1 }
 0x1c3   : > { %2279 = vst [vmem:[%s3278_s4 + $0x140] sm:$0xff] %v2943_v38  ;;  %v1902_v40 = vadd.f32 %v1901_v39, %v1612_v37  ;;  %v1614_v41 = vpop.f32.mrf.mxu0 }
 0x1c4   : > { %v1903_v42 = vpop.f32.mrf.mxu1 }
 0x1c5   : > { %2950 = vtanh.f32 %v1902_v40  ;;  %v1615_v43 = vpop.f32.mrf.mxu0 }
 0x1c6   : > { %v2945_v44 = vpop.eup %2944  ;;  %v1904_v45 = vpop.f32.mrf.mxu1 }
 0x1c7   : > { %2280 = vst [vmem:[%s3278_s4 + $0x148] sm:$0xff] %v2945_v44  ;;  %v1905_v46 = vadd.f32 %v1904_v45, %v1615_v43  ;;  %v1617_v47 = vpop.f32.mrf.mxu0 }
 0x1c8   : > { %v1906_v48 = vpop.f32.mrf.mxu1 }
 0x1c9   : > { %2952 = vtanh.f32 %v1905_v46  ;;  %v1620_v49 = vpop.f32.mrf.mxu0 }
 0x1ca   : > { %v2947_v50 = vpop.eup %2946  ;;  %v1909_v51 = vpop.f32.mrf.mxu1 }
 0x1cb   : > { %2281 = vst [vmem:[%s3278_s4 + $0x150] sm:$0xff] %v2947_v50  ;;  %v1910_v52 = vadd.f32 %v1909_v51, %v1620_v49  ;;  %v1622_v53 = vpop.f32.mrf.mxu0 }
 0x1cc   : > { %v1911_v54 = vpop.f32.mrf.mxu1 }
 0x1cd   : > { %2954 = vtanh.f32 %v1910_v52  ;;  %v1623_v55 = vpop.f32.mrf.mxu0 }
 0x1ce   : > { %v2949_v56 = vpop.eup %2948  ;;  %v1912_v57 = vpop.f32.mrf.mxu1 }
 0x1cf   : > { %2282 = vst [vmem:[%s3278_s4 + $0x158] sm:$0xff] %v2949_v56  ;;  %v1913_v58 = vadd.f32 %v1912_v57, %v1623_v55  ;;  %v1625_v59 = vpop.f32.mrf.mxu0 }
 0x1d0   : > { %v1914_v60 = vpop.f32.mrf.mxu1 }
 0x1d1   : > { %2956 = vtanh.f32 %v1913_v58  ;;  %v1628_v61 = vpop.f32.mrf.mxu0 }
 0x1d2   : > { %v2951_v62 = vpop.eup %2950  ;;  %v1917_v63 = vpop.f32.mrf.mxu1 }
 0x1d3   : > { %2283 = vst [vmem:[%s3278_s4 + $0x160] sm:$0xff] %v2951_v62  ;;  %v1918_v0 = vadd.f32 %v1917_v63, %v1628_v61  ;;  %v1630_v1 = vpop.f32.mrf.mxu0 }
 0x1d4   : > { %v1919_v2 = vpop.f32.mrf.mxu1 }
 0x1d5   : > { %2958 = vtanh.f32 %v1918_v0  ;;  %v1631_v3 = vpop.f32.mrf.mxu0 }
 0x1d6   : > { %v2953_v4 = vpop.eup %2952  ;;  %v1920_v5 = vpop.f32.mrf.mxu1 }
 0x1d7   : > { %2284 = vst [vmem:[%s3278_s4 + $0x168] sm:$0xff] %v2953_v4  ;;  %v1921_v6 = vadd.f32 %v1920_v5, %v1631_v3  ;;  %v1633_v7 = vpop.f32.mrf.mxu0 }
 0x1d8   : > { %v1922_v8 = vpop.f32.mrf.mxu1 }
 0x1d9   : > { %2960 = vtanh.f32 %v1921_v6  ;;  %v1636_v9 = vpop.f32.mrf.mxu0 }
 0x1da   : > { %v2955_v10 = vpop.eup %2954  ;;  %v1925_v11 = vpop.f32.mrf.mxu1 }
 0x1db   : > { %2285 = vst [vmem:[%s3278_s4 + $0x170] sm:$0xff] %v2955_v10  ;;  %v1926_v12 = vadd.f32 %v1925_v11, %v1636_v9  ;;  %v1638_v13 = vpop.f32.mrf.mxu0 }
 0x1dc   : > { %v1927_v14 = vpop.f32.mrf.mxu1 }
 0x1dd   : > { %2962 = vtanh.f32 %v1926_v12  ;;  %v1639_v15 = vpop.f32.mrf.mxu0 }
 0x1de   : > { %v2957_v16 = vpop.eup %2956  ;;  %v1928_v17 = vpop.f32.mrf.mxu1 }
 0x1df   : > { %2286 = vst [vmem:[%s3278_s4 + $0x178] sm:$0xff] %v2957_v16  ;;  %v1929_v18 = vadd.f32 %v1928_v17, %v1639_v15  ;;  %v1641_v19 = vpop.f32.mrf.mxu0 }
 0x1e0   : > { %v1930_v20 = vpop.f32.mrf.mxu1 }
 0x1e1   : > { %2964 = vtanh.f32 %v1929_v18  ;;  %v1644_v21 = vpop.f32.mrf.mxu0 }
 0x1e2   : > { %v2959_v22 = vpop.eup %2958  ;;  %v1933_v23 = vpop.f32.mrf.mxu1 }
 0x1e3   : > { %2287 = vst [vmem:[%s3278_s4 + $0x180] sm:$0xff] %v2959_v22  ;;  %v1934_v24 = vadd.f32 %v1933_v23, %v1644_v21  ;;  %v1646_v25 = vpop.f32.mrf.mxu0 }
 0x1e4   : > { %v1935_v26 = vpop.f32.mrf.mxu1 }
 0x1e5   : > { %2966 = vtanh.f32 %v1934_v24  ;;  %v1647_v27 = vpop.f32.mrf.mxu0 }
 0x1e6   : > { %v2961_v28 = vpop.eup %2960  ;;  %v1936_v29 = vpop.f32.mrf.mxu1 }
 0x1e7   : > { %2288 = vst [vmem:[%s3278_s4 + $0x188] sm:$0xff] %v2961_v28  ;;  %v1937_v30 = vadd.f32 %v1936_v29, %v1647_v27  ;;  %v1649_v31 = vpop.f32.mrf.mxu0 }
 0x1e8   : > { %v1938_v32 = vpop.f32.mrf.mxu1 }
 0x1e9   : > { %2968 = vtanh.f32 %v1937_v30  ;;  %v1652_v33 = vpop.f32.mrf.mxu0 }
 0x1ea   : > { %v2963_v34 = vpop.eup %2962  ;;  %v1941_v35 = vpop.f32.mrf.mxu1 }
 0x1eb   : > { %2289 = vst [vmem:[%s3278_s4 + $0x190] sm:$0xff] %v2963_v34  ;;  %v1942_v36 = vadd.f32 %v1941_v35, %v1652_v33  ;;  %v1654_v37 = vpop.f32.mrf.mxu0 }
 0x1ec   : > { %v1943_v38 = vpop.f32.mrf.mxu1 }
 0x1ed   : > { %2970 = vtanh.f32 %v1942_v36  ;;  %v1655_v39 = vpop.f32.mrf.mxu0 }
 0x1ee   : > { %v2965_v40 = vpop.eup %2964  ;;  %v1944_v41 = vpop.f32.mrf.mxu1 }
 0x1ef   : > { %2290 = vst [vmem:[%s3278_s4 + $0x198] sm:$0xff] %v2965_v40  ;;  %v1945_v42 = vadd.f32 %v1944_v41, %v1655_v39  ;;  %v1657_v43 = vpop.f32.mrf.mxu0 }
 0x1f0   : > { %v1946_v44 = vpop.f32.mrf.mxu1 }
 0x1f1   : > { %2972 = vtanh.f32 %v1945_v42  ;;  %v1660_v45 = vpop.f32.mrf.mxu0 }
 0x1f2   : > { %v2967_v46 = vpop.eup %2966  ;;  %v1949_v47 = vpop.f32.mrf.mxu1 }
 0x1f3   : > { %2291 = vst [vmem:[%s3278_s4 + $0x1a0] sm:$0xff] %v2967_v46  ;;  %v1950_v48 = vadd.f32 %v1949_v47, %v1660_v45  ;;  %v1662_v49 = vpop.f32.mrf.mxu0 }
 0x1f4   : > { %v1951_v50 = vpop.f32.mrf.mxu1 }
 0x1f5   : > { %2974 = vtanh.f32 %v1950_v48  ;;  %v1663_v51 = vpop.f32.mrf.mxu0 }
 0x1f6   : > { %v2969_v52 = vpop.eup %2968  ;;  %v1952_v53 = vpop.f32.mrf.mxu1 }
 0x1f7   : > { %2292 = vst [vmem:[%s3278_s4 + $0x1a8] sm:$0xff] %v2969_v52  ;;  %v1953_v54 = vadd.f32 %v1952_v53, %v1663_v51  ;;  %v1665_v55 = vpop.f32.mrf.mxu0 }
 0x1f8   : > { %v1954_v56 = vpop.f32.mrf.mxu1 }
 0x1f9   : > { %2976 = vtanh.f32 %v1953_v54  ;;  %v1668_v57 = vpop.f32.mrf.mxu0 }
 0x1fa   : > { %v2971_v58 = vpop.eup %2970  ;;  %v1957_v59 = vpop.f32.mrf.mxu1 }
 0x1fb   : > { %2293 = vst [vmem:[%s3278_s4 + $0x1b0] sm:$0xff] %v2971_v58  ;;  %v1958_v60 = vadd.f32 %v1957_v59, %v1668_v57  ;;  %v1670_v61 = vpop.f32.mrf.mxu0 }
 0x1fc   : > { %v1959_v62 = vpop.f32.mrf.mxu1 }
 0x1fd   : > { %2978 = vtanh.f32 %v1958_v60  ;;  %v1671_v63 = vpop.f32.mrf.mxu0 }
 0x1fe   : > { %v2973_v0 = vpop.eup %2972  ;;  %v1960_v1 = vpop.f32.mrf.mxu1 }
 0x1ff   : > { %2294 = vst [vmem:[%s3278_s4 + $0x1b8] sm:$0xff] %v2973_v0  ;;  %v1961_v2 = vadd.f32 %v1960_v1, %v1671_v63  ;;  %v1673_v3 = vpop.f32.mrf.mxu0 }
 0x200   : > { %v1962_v4 = vpop.f32.mrf.mxu1 }
 0x201   : > { %2980 = vtanh.f32 %v1961_v2  ;;  %v1676_v5 = vpop.f32.mrf.mxu0 }
 0x202   : > { %v2975_v6 = vpop.eup %2974  ;;  %v1965_v7 = vpop.f32.mrf.mxu1 }
 0x203   : > { %2295 = vst [vmem:[%s3278_s4 + $0x1c0] sm:$0xff] %v2975_v6  ;;  %v1966_v8 = vadd.f32 %v1965_v7, %v1676_v5  ;;  %v1678_v9 = vpop.f32.mrf.mxu0 }
 0x204   : > { %v1967_v10 = vpop.f32.mrf.mxu1 }
 0x205   : > { %2982 = vtanh.f32 %v1966_v8  ;;  %v1679_v11 = vpop.f32.mrf.mxu0 }
 0x206   : > { %v2977_v12 = vpop.eup %2976  ;;  %v1968_v13 = vpop.f32.mrf.mxu1 }
 0x207   : > { %2296 = vst [vmem:[%s3278_s4 + $0x1c8] sm:$0xff] %v2977_v12  ;;  %v1969_v14 = vadd.f32 %v1968_v13, %v1679_v11  ;;  %v1681_v15 = vpop.f32.mrf.mxu0 }
 0x208   : > { %v1970_v16 = vpop.f32.mrf.mxu1 }
 0x209   : > { %2984 = vtanh.f32 %v1969_v14  ;;  %v1684_v17 = vpop.f32.mrf.mxu0 }
 0x20a   : > { %v2979_v18 = vpop.eup %2978  ;;  %v1973_v19 = vpop.f32.mrf.mxu1 }
 0x20b   : > { %2297 = vst [vmem:[%s3278_s4 + $0x1d0] sm:$0xff] %v2979_v18  ;;  %v1974_v20 = vadd.f32 %v1973_v19, %v1684_v17  ;;  %v1686_v21 = vpop.f32.mrf.mxu0 }
 0x20c   : > { %v1975_v22 = vpop.f32.mrf.mxu1 }
 0x20d   : > { %2986 = vtanh.f32 %v1974_v20  ;;  %v1687_v23 = vpop.f32.mrf.mxu0 }
 0x20e   : > { %v2981_v24 = vpop.eup %2980  ;;  %v1976_v25 = vpop.f32.mrf.mxu1 }
 0x20f   : > { %2298 = vst [vmem:[%s3278_s4 + $0x1d8] sm:$0xff] %v2981_v24  ;;  %v1977_v26 = vadd.f32 %v1976_v25, %v1687_v23  ;;  %v1689_v27 = vpop.f32.mrf.mxu0 }
 0x210   : > { %v1978_v28 = vpop.f32.mrf.mxu1 }
 0x211   : > { %2988 = vtanh.f32 %v1977_v26 }
 0x212   : > { %v2983_v29 = vpop.eup %2982 }
 0x213   : > { %2299 = vst [vmem:[%s3278_s4 + $0x1e0] sm:$0xff] %v2983_v29 }
 0x216   : > { %v2985_v30 = vpop.eup %2984 }
 0x217   : > { %2300 = vst [vmem:[%s3278_s4 + $0x1e8] sm:$0xff] %v2985_v30 }
 0x21a   : > { %v2987_v31 = vpop.eup %2986 }
 0x21b   : > { %2301 = vst [vmem:[%s3278_s4 + $0x1f0] sm:$0xff] %v2987_v31 }
 0x21e   : > { %v2989_v32 = vpop.eup %2988 }
 0x21f   : > { %2302 = vst [vmem:[%s3278_s4 + $0x1f8] sm:$0xff] %v2989_v32 }
 0x220 PF: > { %s12_s13 = sadd.s32 1, %s3028_s13   ;;  %s3380_s9 = smov %s3020_s11 }
 0x221   : > { %p9_p7 = scmp.ge.s32.totalorder %s12_s13, 18   ;;  %s3381_s10 = smov %s3024_s12 }
 0x222   : > { %s3382_s11 = smov %s3385_s14  ;;  %s3383_s12 = smov %s3389_s15 }
 0x223   :  { %11 = sbr.rel (!%p9_p7) target bundleno = 3 (0x3), region = 69 }

</bundles_post_ra>
